<compile_context>
chip_gen: v7x
topology: tpu7x:2x2x1
jax: 0.10.0
libtpu: 0.0.40
codegen_flags: <defaults>
</compile_context>

<pallas_src>
import math
import functools

import jax
import jax.numpy as jnp
from jax.experimental import pallas as pl
from jax.experimental.pallas import tpu as pltpu


# ----------------------------------------------------------------------------
# helpers
# ----------------------------------------------------------------------------

def _fs(shape):
    """Full-array BlockSpec (2-D) for a grid=(1,) pallas_call."""
    assert len(shape) == 2
    return pl.BlockSpec(shape, lambda i: (0, 0))


def _call(kernel, out_shape, *arrays, **static):
    """Run `kernel` once over whole-array VMEM blocks (grid=(1,))."""
    return pl.pallas_call(
        functools.partial(kernel, **static),
        grid=(1,),
        in_specs=[_fs(a.shape) for a in arrays],
        out_specs=_fs(out_shape),
        out_shape=jax.ShapeDtypeStruct(out_shape, jnp.float32),
        compiler_params=pltpu.CompilerParams(dimension_semantics=("arbitrary",)),
    )(*arrays)


def _layernorm(x, g, b, eps):
    """LayerNorm over the last dim (biased variance, matches torch)."""
    mean = jnp.mean(x, axis=-1, keepdims=True)
    c = x - mean
    var = jnp.mean(c * c, axis=-1, keepdims=True)
    return c * jax.lax.rsqrt(var + eps) * g + b


def _mha(q_all, k_all, v_all, *, nhead, q_len, kv_len, head_dim):
    """Multi-head attention on batch-major activations held in registers.

    q_all: (B*q_len, D), k_all/v_all: (B*kv_len, D); rows ordered b*len + pos.
    Returns (B*q_len, D) f32.  Static per-(batch, head) unroll; 2-D dots on the
    MXU (dot_general with rhs-contraction, i.e. trans_b) so no transposes.
    """
    batch = q_all.shape[0] // q_len
    scale = 1.0 / math.sqrt(head_dim)
    # Scale + cast once (f32 scale, then one bf16 cast per operand).
    q_all = (q_all * scale).astype(jnp.bfloat16)
    k_all = k_all.astype(jnp.bfloat16)
    v_all = v_all.astype(jnp.bfloat16)
    dn = (((1,), (1,)), ((), ()))  # contract last dims: q @ k^T
    out_rows = []
    for b in range(batch):
        q_b = q_all[b * q_len:(b + 1) * q_len, :]
        k_b = k_all[b * kv_len:(b + 1) * kv_len, :]
        v_b = v_all[b * kv_len:(b + 1) * kv_len, :]
        heads = []
        for h in range(nhead):
            c0 = h * head_dim
            q = q_b[:, c0:c0 + head_dim]
            k = k_b[:, c0:c0 + head_dim]
            v = v_b[:, c0:c0 + head_dim]
            s = jax.lax.dot_general(q, k, dn,
                                    preferred_element_type=jnp.float32)   # (q_len, kv_len)
            m = jnp.max(s, axis=-1, keepdims=True)
            p = jnp.exp(s - m)
            denom = jnp.sum(p, axis=-1, keepdims=True)
            p = p * pl.reciprocal(denom, approx=True)
            heads.append(jnp.dot(p.astype(jnp.bfloat16), v,
                                 preferred_element_type=jnp.float32))     # (q_len, head_dim)
        out_rows.append(jnp.concatenate(heads, axis=1))                   # (q_len, D)
    return jnp.concatenate(out_rows, axis=0)                              # (B*q_len, D)


# ----------------------------------------------------------------------------
# fused Pallas kernels
# ----------------------------------------------------------------------------

def _scale_add_kernel(e_ref, p_ref, o_ref, *, scale):
    """o = embedding * sqrt(d_model) + positional encoding."""
    o_ref[...] = e_ref[...] * scale + p_ref[...]


def _layernorm_kernel(x_ref, g_ref, b_ref, o_ref, *, eps):
    """Plain LayerNorm (no residual)."""
    o_ref[...] = _layernorm(x_ref[...], g_ref[...], b_ref[...], eps)


def _encoder_layer_kernel(x_ref, wqkv_ref, bqkv_ref, wo_ref, bo_ref,
                          ln1_g_ref, ln1_b_ref,
                          w1_ref, b1_ref, w2_ref, b2_ref,
                          ln2_g_ref, ln2_b_ref,
                          o_ref, *, nhead, seq_len, eps):
    x = x_ref[...]                                       # (B*L, D) f32
    d_model = x.shape[1]
    head_dim = d_model // nhead

    # fused QKV projection (bf16 operands, f32 accumulation)
    qkv = jnp.dot(x.astype(jnp.bfloat16), wqkv_ref[...],
                  preferred_element_type=jnp.float32) + bqkv_ref[...]     # (M, 3D)
    attn = _mha(qkv[:, :d_model], qkv[:, d_model:2 * d_model], qkv[:, 2 * d_model:],
                nhead=nhead, q_len=seq_len, kv_len=seq_len, head_dim=head_dim)
    attn = jnp.dot(attn.astype(jnp.bfloat16), wo_ref[...],
                   preferred_element_type=jnp.float32) + bo_ref[...]

    h1 = _layernorm(x + attn, ln1_g_ref[...], ln1_b_ref[...], eps)

    f = jnp.dot(h1.astype(jnp.bfloat16), w1_ref[...],
                preferred_element_type=jnp.float32) + b1_ref[...]
    f = jnp.maximum(f, 0.0)                                               # ReLU
    f = jnp.dot(f.astype(jnp.bfloat16), w2_ref[...],
                preferred_element_type=jnp.float32) + b2_ref[...]

    o_ref[...] = _layernorm(h1 + f, ln2_g_ref[...], ln2_b_ref[...], eps)


def _decoder_layer_kernel(x_ref, mem_ref,
                          sa_wqkv_ref, sa_bqkv_ref, sa_wo_ref, sa_bo_ref,
                          ln1_g_ref, ln1_b_ref,
                          ca_wq_ref, ca_bq_ref, ca_wkv_ref, ca_bkv_ref,
                          ca_wo_ref, ca_bo_ref,
                          ln2_g_ref, ln2_b_ref,
                          w1_ref, b1_ref, w2_ref, b2_ref,
                          ln3_g_ref, ln3_b_ref,
                          o_ref, *, nhead, tgt_len, src_len, eps):
    x = x_ref[...]                                       # (B*T, D) f32
    mem = mem_ref[...]                                   # (B*S, D) f32
    d_model = x.shape[1]
    head_dim = d_model // nhead

    # --- self attention (module calls transformer without tgt_mask -> no causal mask)
    qkv = jnp.dot(x.astype(jnp.bfloat16), sa_wqkv_ref[...],
                  preferred_element_type=jnp.float32) + sa_bqkv_ref[...]
    sa = _mha(qkv[:, :d_model], qkv[:, d_model:2 * d_model], qkv[:, 2 * d_model:],
              nhead=nhead, q_len=tgt_len, kv_len=tgt_len, head_dim=head_dim)
    sa = jnp.dot(sa.astype(jnp.bfloat16), sa_wo_ref[...],
                 preferred_element_type=jnp.float32) + sa_bo_ref[...]
    h1 = _layernorm(x + sa, ln1_g_ref[...], ln1_b_ref[...], eps)

    # --- cross attention (q from decoder state, fused K/V from encoder memory)
    q = jnp.dot(h1.astype(jnp.bfloat16), ca_wq_ref[...],
                preferred_element_type=jnp.float32) + ca_bq_ref[...]
    kv = jnp.dot(mem.astype(jnp.bfloat16), ca_wkv_ref[...],
                 preferred_element_type=jnp.float32) + ca_bkv_ref[...]
    ca = _mha(q, kv[:, :d_model], kv[:, d_model:],
              nhead=nhead, q_len=tgt_len, kv_len=src_len, head_dim=head_dim)
    ca = jnp.dot(ca.astype(jnp.bfloat16), ca_wo_ref[...],
                 preferred_element_type=jnp.float32) + ca_bo_ref[...]
    h2 = _layernorm(h1 + ca, ln2_g_ref[...], ln2_b_ref[...], eps)

    # --- feed forward
    f = jnp.dot(h2.astype(jnp.bfloat16), w1_ref[...],
                preferred_element_type=jnp.float32) + b1_ref[...]
    f = jnp.maximum(f, 0.0)
    f = jnp.dot(f.astype(jnp.bfloat16), w2_ref[...],
                preferred_element_type=jnp.float32) + b2_ref[...]

    o_ref[...] = _layernorm(h2 + f, ln3_g_ref[...], ln3_b_ref[...], eps)


def _norm_proj_kernel(x_ref, g_ref, b_ref, w_ref, ob_ref, o_ref, *, eps):
    """Final decoder LayerNorm fused with the (lane-dense padded) classifier."""
    h = _layernorm(x_ref[...], g_ref[...], b_ref[...], eps)
    o_ref[...] = jnp.dot(h.astype(jnp.bfloat16), w_ref[...],
                         preferred_element_type=jnp.float32) + ob_ref[...]


# ----------------------------------------------------------------------------
# model glue (plain JAX: gathers, reshapes, parameter handling)
# ----------------------------------------------------------------------------

def make_positional_encoding(max_len, d_model):
    position = jnp.arange(max_len, dtype=jnp.float32)[:, None]
    div_term = jnp.exp(jnp.arange(0, d_model, 2, dtype=jnp.float32)
                       * (-math.log(10000.0) / d_model))
    pe = jnp.zeros((max_len, d_model), jnp.float32)
    pe = pe.at[:, 0::2].set(jnp.sin(position * div_term))
    pe = pe.at[:, 1::2].set(jnp.cos(position * div_term))
    return pe


def embed_with_pe(ids_lb, table, pe, d_model):
    """ids: (L, B) int32 (sequence-first).  Returns batch-major (B*L, D) f32."""
    L, B = ids_lb.shape
    ids_bl = ids_lb.T.reshape(-1)                         # (B*L,) row = b*L + l
    emb = jnp.take(table, ids_bl, axis=0)                 # gather (no one_hot matmul)
    pe_b = jnp.tile(pe[:L], (B, 1))                       # (B*L, D)
    return _call(_scale_add_kernel, (B * L, d_model), emb, pe_b,
                 scale=math.sqrt(d_model))


def encoder_layer_fwd(x, p, *, nhead, seq_len):
    M, D = x.shape
    return _call(_encoder_layer_kernel, (M, D),
                 x, p["wqkv"], p["bqkv"], p["wo"], p["bo"],
                 p["ln1_g"], p["ln1_b"],
                 p["w1"], p["b1"], p["w2"], p["b2"],
                 p["ln2_g"], p["ln2_b"],
                 nhead=nhead, seq_len=seq_len, eps=1e-5)


def decoder_layer_fwd(x, mem, p, *, nhead, tgt_len, src_len):
    M, D = x.shape
    return _call(_decoder_layer_kernel, (M, D),
                 x, mem,
                 p["sa_wqkv"], p["sa_bqkv"], p["sa_wo"], p["sa_bo"],
                 p["ln1_g"], p["ln1_b"],
                 p["ca_wq"], p["ca_bq"], p["ca_wkv"], p["ca_bkv"],
                 p["ca_wo"], p["ca_bo"],
                 p["ln2_g"], p["ln2_b"],
                 p["w1"], p["b1"], p["w2"], p["b2"],
                 p["ln3_g"], p["ln3_b"],
                 nhead=nhead, tgt_len=tgt_len, src_len=src_len, eps=1e-5)


def forward(params, src_ids, tgt_ids, pe, *, nhead, d_model, num_events):
    # dropout layers are identities (inference mode)
    S, B = src_ids.shape
    T, _ = tgt_ids.shape

    src = embed_with_pe(src_ids, params["embed"], pe, d_model)     # (B*S, D)
    tgt = embed_with_pe(tgt_ids, params["embed"], pe, d_model)     # (B*T, D)

    mem = src
    for p in params["enc_layers"]:
        mem = encoder_layer_fwd(mem, p, nhead=nhead, seq_len=S)
    mem = _call(_layernorm_kernel, (B * S, d_model),
                mem, params["enc_norm_g"], params["enc_norm_b"], eps=1e-5)

    out = tgt
    for p in params["dec_layers"]:
        out = decoder_layer_fwd(out, mem, p, nhead=nhead, tgt_len=T, src_len=S)

    pad_w = params["out_w_pad"].shape[1]
    logits_p = _call(_norm_proj_kernel, (B * T, pad_w),
                     out, params["dec_norm_g"], params["dec_norm_b"],
                     params["out_w_pad"], params["out_b_pad"], eps=1e-5)
    logits = logits_p[:, :num_events]                              # (B*T, E)
    return logits.reshape(B, T, num_events).transpose(1, 0, 2)     # (T, B, E)


# ----------------------------------------------------------------------------
# deterministic parameter init (synthetic weights; shapes from the module)
# ----------------------------------------------------------------------------

def init_params(key, num_events, d_model, nhead, n_enc, n_dec, d_ff):
    assert d_model % nhead == 0
    keys = iter(jax.random.split(key, 64))

    def w(shape, scale=0.02):
        # matmul weights stored in bf16 (MXU operands); accumulation is f32
        return (jax.random.normal(next(keys), shape, jnp.float32) * scale
                ).astype(jnp.bfloat16)

    def zeros(shape):
        return jnp.zeros(shape, jnp.float32)

    def ones(shape):
        return jnp.ones(shape, jnp.float32)

    def enc_layer():
        return dict(
            wqkv=w((d_model, 3 * d_model)), bqkv=zeros((1, 3 * d_model)),
            wo=w((d_model, d_model)), bo=zeros((1, d_model)),
            ln1_g=ones((1, d_model)), ln1_b=zeros((1, d_model)),
            w1=w((d_model, d_ff)), b1=zeros((1, d_ff)),
            w2=w((d_ff, d_model)), b2=zeros((1, d_model)),
            ln2_g=ones((1, d_model)), ln2_b=zeros((1, d_model)))

    def dec_layer():
        return dict(
            sa_wqkv=w((d_model, 3 * d_model)), sa_bqkv=zeros((1, 3 * d_model)),
            sa_wo=w((d_model, d_model)), sa_bo=zeros((1, d_model)),
            ln1_g=ones((1, d_model)), ln1_b=zeros((1, d_model)),
            ca_wq=w((d_model, d_model)), ca_bq=zeros((1, d_model)),
            ca_wkv=w((d_model, 2 * d_model)), ca_bkv=zeros((1, 2 * d_model)),
            ca_wo=w((d_model, d_model)), ca_bo=zeros((1, d_model)),
            ln2_g=ones((1, d_model)), ln2_b=zeros((1, d_model)),
            w1=w((d_model, d_ff)), b1=zeros((1, d_ff)),
            w2=w((d_ff, d_model)), b2=zeros((1, d_model)),
            ln3_g=ones((1, d_model)), ln3_b=zeros((1, d_model)))

    # classifier padded to a lane-dense width (multiple of 128) for unmasked stores
    out_pad = ((num_events + 127) // 128) * 128
    out_w = jax.random.normal(next(keys), (d_model, num_events), jnp.float32) * 0.02
    out_w_pad = (jnp.zeros((d_model, out_pad), jnp.float32)
                 .at[:, :num_events].set(out_w).astype(jnp.bfloat16))
    out_b_pad = jnp.zeros((1, out_pad), jnp.float32)

    return dict(
        embed=jax.random.normal(next(keys), (num_events, d_model), jnp.float32),
        enc_layers=[enc_layer() for _ in range(n_enc)],
        dec_layers=[dec_layer() for _ in range(n_dec)],
        enc_norm_g=ones((1, d_model)), enc_norm_b=zeros((1, d_model)),
        dec_norm_g=ones((1, d_model)), dec_norm_b=zeros((1, d_model)),
        out_w_pad=out_w_pad, out_b_pad=out_b_pad,
    )


# ----------------------------------------------------------------------------

if __name__ == "__main__":
    # small, forward-consistent configuration
    num_events = 12
    d_model = 32
    nhead = 4
    num_encoder_layers = 2
    num_decoder_layers = 2
    dim_feedforward = 64
    max_seq_length = 16
    S, T, B = 8, 8, 2

    key = jax.random.PRNGKey(0)
    kp, ks, kt = jax.random.split(key, 3)
    params = init_params(kp, num_events, d_model, nhead,
                         num_encoder_layers, num_decoder_layers, dim_feedforward)
    pe = make_positional_encoding(max_seq_length, d_model)

    src_ids = jax.random.randint(ks, (S, B), 0, num_events, dtype=jnp.int32)
    tgt_ids = jax.random.randint(kt, (T, B), 0, num_events, dtype=jnp.int32)

    fwd = jax.jit(functools.partial(forward, nhead=nhead, d_model=d_model,
                                    num_events=num_events))
    logits = fwd(params, src_ids, tgt_ids, pe)
    jax.block_until_ready(logits)

    assert logits.shape == (T, B, num_events)
    assert logits.dtype == jnp.float32
    assert bool(jnp.all(jnp.isfinite(logits)))
    print("KERNEL_OK")
</pallas_src>

<mosaic_0001>
module attributes {stable_mosaic.version = 11 : i64} {
  func.func @_scale_add_kernel(%arg0: i32, %arg1: memref<16x32xf32, #tpu.memory_space<vmem>>, %arg2: memref<16x32xf32, #tpu.memory_space<vmem>>, %arg3: memref<16x32xf32, #tpu.memory_space<vmem>>) attributes {dimension_semantics = [#tpu.dimension_semantics<arbitrary>], iteration_bounds = array<i64: 1>, scalar_prefetch = 0 : i64, scratch_operands = 0 : i64, tpu.core_type = #tpu.core_type<tc>, window_params = [{pipeline_mode = #tpu.pipeline_mode<synchronous>, transform_indices = @transform_0, window_bounds = array<i64: 16, 32>}, {pipeline_mode = #tpu.pipeline_mode<synchronous>, transform_indices = @transform_1, window_bounds = array<i64: 16, 32>}, {pipeline_mode = #tpu.pipeline_mode<synchronous>, transform_indices = @transform_2, window_bounds = array<i64: 16, 32>}]} {
    %c0 = arith.constant 0 : index
    %c0_0 = arith.constant 0 : index
    %0 = vector.load %arg1[%c0, %c0_0] : memref<16x32xf32, #tpu.memory_space<vmem>>, vector<16x32xf32>
    %cst = arith.constant 5.65685415 : f32
    %1 = vector.broadcast %cst : f32 to vector<16x32xf32>
    %2 = arith.mulf %0, %1 : vector<16x32xf32>
    %c0_1 = arith.constant 0 : index
    %c0_2 = arith.constant 0 : index
    %3 = vector.load %arg2[%c0_1, %c0_2] : memref<16x32xf32, #tpu.memory_space<vmem>>, vector<16x32xf32>
    %4 = arith.addf %2, %3 : vector<16x32xf32>
    %c0_3 = arith.constant 0 : index
    %c0_4 = arith.constant 0 : index
    %5 = vector.load %arg3[%c0_3, %c0_4] : memref<16x32xf32, #tpu.memory_space<vmem>>, vector<16x32xf32>
    tpu.vector_store %arg3[%c0_3, %c0_4], %4 {strides = array<i32>} : memref<16x32xf32, #tpu.memory_space<vmem>>, vector<16x32xf32>,
    return
  }
  func.func @transform_0(%arg0: i32) -> (i32, i32) {
    %c0_i32 = arith.constant 0 : i32
    %c0_i32_0 = arith.constant 0 : i32
    %c0_i32_1 = arith.constant 0 : i32
    return %c0_i32, %c0_i32_0 : i32, i32
  }
  func.func @transform_1(%arg0: i32) -> (i32, i32) {
    %c0_i32 = arith.constant 0 : i32
    %c0_i32_0 = arith.constant 0 : i32
    %c0_i32_1 = arith.constant 0 : i32
    return %c0_i32, %c0_i32_0 : i32, i32
  }
  func.func @transform_2(%arg0: i32) -> (i32, i32) {
    %c0_i32 = arith.constant 0 : i32
    %c0_i32_0 = arith.constant 0 : i32
    %c0_i32_1 = arith.constant 0 : i32
    return %c0_i32, %c0_i32_0 : i32, i32
  }
}

module attributes {stable_mosaic.version = 11 : i64} {
  func.func @_layernorm_kernel(%arg0: i32, %arg1: memref<16x32xf32, #tpu.memory_space<vmem>>, %arg2: memref<1x32xf32, #tpu.memory_space<vmem>>, %arg3: memref<1x32xf32, #tpu.memory_space<vmem>>, %arg4: memref<16x32xf32, #tpu.memory_space<vmem>>) attributes {dimension_semantics = [#tpu.dimension_semantics<arbitrary>], iteration_bounds = array<i64: 1>, scalar_prefetch = 0 : i64, scratch_operands = 0 : i64, tpu.core_type = #tpu.core_type<tc>, window_params = [{pipeline_mode = #tpu.pipeline_mode<synchronous>, transform_indices = @transform_0, window_bounds = array<i64: 16, 32>}, {pipeline_mode = #tpu.pipeline_mode<synchronous>, transform_indices = @transform_1, window_bounds = array<i64: 1, 32>}, {pipeline_mode = #tpu.pipeline_mode<synchronous>, transform_indices = @transform_2, window_bounds = array<i64: 1, 32>}, {pipeline_mode = #tpu.pipeline_mode<synchronous>, transform_indices = @transform_3, window_bounds = array<i64: 16, 32>}]} {
    %c0 = arith.constant 0 : index
    %c0_0 = arith.constant 0 : index
    %0 = vector.load %arg1[%c0, %c0_0] : memref<16x32xf32, #tpu.memory_space<vmem>>, vector<16x32xf32>
    %c0_1 = arith.constant 0 : index
    %c0_2 = arith.constant 0 : index
    %1 = vector.load %arg2[%c0_1, %c0_2] : memref<1x32xf32, #tpu.memory_space<vmem>>, vector<1x32xf32>
    %c0_3 = arith.constant 0 : index
    %c0_4 = arith.constant 0 : index
    %2 = vector.load %arg3[%c0_3, %c0_4] : memref<1x32xf32, #tpu.memory_space<vmem>>, vector<1x32xf32>
    %cst = arith.constant dense<0.000000e+00> : vector<16xf32>
    %3 = vector.multi_reduction <add>, %0, %cst [1] : vector<16x32xf32> to vector<16xf32>
    %4 = vector.shape_cast %3 : vector<16xf32> to vector<16x1xf32>
    %cst_5 = arith.constant 3.200000e+01 : f32
    %5 = vector.broadcast %cst_5 : f32 to vector<16x1xf32>
    %6 = arith.divf %4, %5 : vector<16x1xf32>
    %7 = vector.broadcast %6 : vector<16x1xf32> to vector<16x32xf32>
    %8 = arith.subf %0, %7 : vector<16x32xf32>
    %9 = arith.mulf %8, %8 : vector<16x32xf32>
    %cst_6 = arith.constant dense<0.000000e+00> : vector<16xf32>
    %10 = vector.multi_reduction <add>, %9, %cst_6 [1] : vector<16x32xf32> to vector<16xf32>
    %11 = vector.shape_cast %10 : vector<16xf32> to vector<16x1xf32>
    %cst_7 = arith.constant 3.200000e+01 : f32
    %12 = vector.broadcast %cst_7 : f32 to vector<16x1xf32>
    %13 = arith.divf %11, %12 : vector<16x1xf32>
    %cst_8 = arith.constant 9.99999974E-6 : f32
    %14 = vector.broadcast %cst_8 : f32 to vector<16x1xf32>
    %15 = arith.addf %13, %14 : vector<16x1xf32>
    %16 = math.rsqrt %15 : vector<16x1xf32>
    %17 = vector.broadcast %16 : vector<16x1xf32> to vector<16x32xf32>
    %18 = arith.mulf %8, %17 : vector<16x32xf32>
    %19 = vector.broadcast %1 : vector<1x32xf32> to vector<16x32xf32>
    %20 = arith.mulf %18, %19 : vector<16x32xf32>
    %21 = vector.broadcast %2 : vector<1x32xf32> to vector<16x32xf32>
    %22 = arith.addf %20, %21 : vector<16x32xf32>
    %c0_9 = arith.constant 0 : index
    %c0_10 = arith.constant 0 : index
    %23 = vector.load %arg4[%c0_9, %c0_10] : memref<16x32xf32, #tpu.memory_space<vmem>>, vector<16x32xf32>
    tpu.vector_store %arg4[%c0_9, %c0_10], %22 {strides = array<i32>} : memref<16x32xf32, #tpu.memory_space<vmem>>, vector<16x32xf32>,
    return
  }
  func.func @transform_0(%arg0: i32) -> (i32, i32) {
    %c0_i32 = arith.constant 0 : i32
    %c0_i32_0 = arith.constant 0 : i32
    %c0_i32_1 = arith.constant 0 : i32
    return %c0_i32, %c0_i32_0 : i32, i32
  }
  func.func @transform_1(%arg0: i32) -> (i32, i32) {
    %c0_i32 = arith.constant 0 : i32
    %c0_i32_0 = arith.constant 0 : i32
    %c0_i32_1 = arith.constant 0 : i32
    return %c0_i32, %c0_i32_0 : i32, i32
  }
  func.func @transform_2(%arg0: i32) -> (i32, i32) {
    %c0_i32 = arith.constant 0 : i32
    %c0_i32_0 = arith.constant 0 : i32
    %c0_i32_1 = arith.constant 0 : i32
    return %c0_i32, %c0_i32_0 : i32, i32
  }
  func.func @transform_3(%arg0: i32) -> (i32, i32) {
    %c0_i32 = arith.constant 0 : i32
    %c0_i32_0 = arith.constant 0 : i32
    %c0_i32_1 = arith.constant 0 : i32
    return %c0_i32, %c0_i32_0 : i32, i32
  }
}

module attributes {stable_mosaic.version = 11 : i64} {
  func.func @_encoder_layer_kernel(%arg0: i32, %arg1: memref<16x32xf32, #tpu.memory_space<vmem>>, %arg2: memref<32x96xbf16, #tpu.memory_space<vmem>>, %arg3: memref<1x96xf32, #tpu.memory_space<vmem>>, %arg4: memref<32x32xbf16, #tpu.memory_space<vmem>>, %arg5: memref<1x32xf32, #tpu.memory_space<vmem>>, %arg6: memref<1x32xf32, #tpu.memory_space<vmem>>, %arg7: memref<1x32xf32, #tpu.memory_space<vmem>>, %arg8: memref<32x64xbf16, #tpu.memory_space<vmem>>, %arg9: memref<1x64xf32, #tpu.memory_space<vmem>>, %arg10: memref<64x32xbf16, #tpu.memory_space<vmem>>, %arg11: memref<1x32xf32, #tpu.memory_space<vmem>>, %arg12: memref<1x32xf32, #tpu.memory_space<vmem>>, %arg13: memref<1x32xf32, #tpu.memory_space<vmem>>, %arg14: memref<16x32xf32, #tpu.memory_space<vmem>>) attributes {dimension_semantics = [#tpu.dimension_semantics<arbitrary>], iteration_bounds = array<i64: 1>, scalar_prefetch = 0 : i64, scratch_operands = 0 : i64, tpu.core_type = #tpu.core_type<tc>, window_params = [{pipeline_mode = #tpu.pipeline_mode<synchronous>, transform_indices = @transform_0, window_bounds = array<i64: 16, 32>}, {pipeline_mode = #tpu.pipeline_mode<synchronous>, transform_indices = @transform_1, window_bounds = array<i64: 32, 96>}, {pipeline_mode = #tpu.pipeline_mode<synchronous>, transform_indices = @transform_2, window_bounds = array<i64: 1, 96>}, {pipeline_mode = #tpu.pipeline_mode<synchronous>, transform_indices = @transform_3, window_bounds = array<i64: 32, 32>}, {pipeline_mode = #tpu.pipeline_mode<synchronous>, transform_indices = @transform_4, window_bounds = array<i64: 1, 32>}, {pipeline_mode = #tpu.pipeline_mode<synchronous>, transform_indices = @transform_5, window_bounds = array<i64: 1, 32>}, {pipeline_mode = #tpu.pipeline_mode<synchronous>, transform_indices = @transform_6, window_bounds = array<i64: 1, 32>}, {pipeline_mode = #tpu.pipeline_mode<synchronous>, transform_indices = @transform_7, window_bounds = array<i64: 32, 64>}, {pipeline_mode = #tpu.pipeline_mode<synchronous>, transform_indices = @transform_8, window_bounds = array<i64: 1, 64>}, {pipeline_mode = #tpu.pipeline_mode<synchronous>, transform_indices = @transform_9, window_bounds = array<i64: 64, 32>}, {pipeline_mode = #tpu.pipeline_mode<synchronous>, transform_indices = @transform_10, window_bounds = array<i64: 1, 32>}, {pipeline_mode = #tpu.pipeline_mode<synchronous>, transform_indices = @transform_11, window_bounds = array<i64: 1, 32>}, {pipeline_mode = #tpu.pipeline_mode<synchronous>, transform_indices = @transform_12, window_bounds = array<i64: 1, 32>}, {pipeline_mode = #tpu.pipeline_mode<synchronous>, transform_indices = @transform_13, window_bounds = array<i64: 16, 32>}]} {
    %c0 = arith.constant 0 : index
    %c0_0 = arith.constant 0 : index
    %0 = vector.load %arg1[%c0, %c0_0] : memref<16x32xf32, #tpu.memory_space<vmem>>, vector<16x32xf32>
    %1 = arith.truncf %0 : vector<16x32xf32> to vector<16x32xbf16>
    %c0_1 = arith.constant 0 : index
    %c0_2 = arith.constant 0 : index
    %2 = vector.load %arg2[%c0_1, %c0_2] : memref<32x96xbf16, #tpu.memory_space<vmem>>, vector<32x96xbf16>
    %cst = arith.constant dense<0.000000e+00> : vector<16x96xf32>
    %3 = tpu.matmul %1, %2, %cst {dimension_numbers = #tpu.dot_dimension_numbers<[1], [0], [0], [1], [0, 0, 1, 1], [], []>} : vector<16x32xbf16>, vector<32x96xbf16>, vector<16x96xf32> -> vector<16x96xf32>
    %c0_3 = arith.constant 0 : index
    %c0_4 = arith.constant 0 : index
    %4 = vector.load %arg3[%c0_3, %c0_4] : memref<1x96xf32, #tpu.memory_space<vmem>>, vector<1x96xf32>
    %5 = vector.broadcast %4 : vector<1x96xf32> to vector<16x96xf32>
    %6 = arith.addf %3, %5 : vector<16x96xf32>
    %7 = vector.extract_strided_slice %6 {offsets = [0, 0], sizes = [16, 32], strides = [1, 1]} : vector<16x96xf32> to vector<16x32xf32>
    %8 = vector.extract_strided_slice %6 {offsets = [0, 32], sizes = [16, 32], strides = [1, 1]} : vector<16x96xf32> to vector<16x32xf32>
    %9 = vector.extract_strided_slice %6 {offsets = [0, 64], sizes = [16, 32], strides = [1, 1]} : vector<16x96xf32> to vector<16x32xf32>
    %cst_5 = arith.constant 0.353553385 : f32
    %10 = vector.broadcast %cst_5 : f32 to vector<16x32xf32>
    %11 = arith.mulf %7, %10 : vector<16x32xf32>
    %12 = arith.truncf %11 : vector<16x32xf32> to vector<16x32xbf16>
    %13 = arith.truncf %8 : vector<16x32xf32> to vector<16x32xbf16>
    %14 = arith.truncf %9 : vector<16x32xf32> to vector<16x32xbf16>
    %15 = vector.extract_strided_slice %12 {offsets = [0, 0], sizes = [8, 32], strides = [1, 1]} : vector<16x32xbf16> to vector<8x32xbf16>
    %16 = vector.extract_strided_slice %13 {offsets = [0, 0], sizes = [8, 32], strides = [1, 1]} : vector<16x32xbf16> to vector<8x32xbf16>
    %17 = vector.extract_strided_slice %14 {offsets = [0, 0], sizes = [8, 32], strides = [1, 1]} : vector<16x32xbf16> to vector<8x32xbf16>
    %18 = vector.extract_strided_slice %15 {offsets = [0, 0], sizes = [8, 8], strides = [1, 1]} : vector<8x32xbf16> to vector<8x8xbf16>
    %19 = vector.extract_strided_slice %16 {offsets = [0, 0], sizes = [8, 8], strides = [1, 1]} : vector<8x32xbf16> to vector<8x8xbf16>
    %20 = vector.extract_strided_slice %17 {offsets = [0, 0], sizes = [8, 8], strides = [1, 1]} : vector<8x32xbf16> to vector<8x8xbf16>
    %cst_6 = arith.constant dense<0.000000e+00> : vector<8x8xf32>
    %21 = tpu.matmul %18, %19, %cst_6 {dimension_numbers = #tpu.dot_dimension_numbers<[1], [1], [0], [0], [0, 0, 1, 0], [], []>} : vector<8x8xbf16>, vector<8x8xbf16>, vector<8x8xf32> -> vector<8x8xf32>
    %cst_7 = arith.constant dense<0xFF800000> : vector<8xf32>
    %22 = vector.multi_reduction <maximumf>, %21, %cst_7 [1] : vector<8x8xf32> to vector<8xf32>
    %23 = vector.shape_cast %22 : vector<8xf32> to vector<8x1xf32>
    %24 = vector.broadcast %23 : vector<8x1xf32> to vector<8x8xf32>
    %25 = arith.subf %21, %24 : vector<8x8xf32>
    %26 = math.exp %25 : vector<8x8xf32>
    %cst_8 = arith.constant dense<0.000000e+00> : vector<8xf32>
    %27 = vector.multi_reduction <add>, %26, %cst_8 [1] : vector<8x8xf32> to vector<8xf32>
    %28 = vector.shape_cast %27 : vector<8xf32> to vector<8x1xf32>
    %29 = tpu.reciprocal %28 {approx = true} : vector<8x1xf32> -> vector<8x1xf32>
    %30 = vector.broadcast %29 : vector<8x1xf32> to vector<8x8xf32>
    %31 = arith.mulf %26, %30 : vector<8x8xf32>
    %32 = arith.truncf %31 : vector<8x8xf32> to vector<8x8xbf16>
    %cst_9 = arith.constant dense<0.000000e+00> : vector<8x8xf32>
    %33 = tpu.matmul %32, %20, %cst_9 {dimension_numbers = #tpu.dot_dimension_numbers<[1], [0], [0], [1], [0, 0, 1, 1], [], []>} : vector<8x8xbf16>, vector<8x8xbf16>, vector<8x8xf32> -> vector<8x8xf32>
    %34 = vector.extract_strided_slice %15 {offsets = [0, 8], sizes = [8, 8], strides = [1, 1]} : vector<8x32xbf16> to vector<8x8xbf16>
    %35 = vector.extract_strided_slice %16 {offsets = [0, 8], sizes = [8, 8], strides = [1, 1]} : vector<8x32xbf16> to vector<8x8xbf16>
    %36 = vector.extract_strided_slice %17 {offsets = [0, 8], sizes = [8, 8], strides = [1, 1]} : vector<8x32xbf16> to vector<8x8xbf16>
    %cst_10 = arith.constant dense<0.000000e+00> : vector<8x8xf32>
    %37 = tpu.matmul %34, %35, %cst_10 {dimension_numbers = #tpu.dot_dimension_numbers<[1], [1], [0], [0], [0, 0, 1, 0], [], []>} : vector<8x8xbf16>, vector<8x8xbf16>, vector<8x8xf32> -> vector<8x8xf32>
    %cst_11 = arith.constant dense<0xFF800000> : vector<8xf32>
    %38 = vector.multi_reduction <maximumf>, %37, %cst_11 [1] : vector<8x8xf32> to vector<8xf32>
    %39 = vector.shape_cast %38 : vector<8xf32> to vector<8x1xf32>
    %40 = vector.broadcast %39 : vector<8x1xf32> to vector<8x8xf32>
    %41 = arith.subf %37, %40 : vector<8x8xf32>
    %42 = math.exp %41 : vector<8x8xf32>
    %cst_12 = arith.constant dense<0.000000e+00> : vector<8xf32>
    %43 = vector.multi_reduction <add>, %42, %cst_12 [1] : vector<8x8xf32> to vector<8xf32>
    %44 = vector.shape_cast %43 : vector<8xf32> to vector<8x1xf32>
    %45 = tpu.reciprocal %44 {approx = true} : vector<8x1xf32> -> vector<8x1xf32>
    %46 = vector.broadcast %45 : vector<8x1xf32> to vector<8x8xf32>
    %47 = arith.mulf %42, %46 : vector<8x8xf32>
    %48 = arith.truncf %47 : vector<8x8xf32> to vector<8x8xbf16>
    %cst_13 = arith.constant dense<0.000000e+00> : vector<8x8xf32>
    %49 = tpu.matmul %48, %36, %cst_13 {dimension_numbers = #tpu.dot_dimension_numbers<[1], [0], [0], [1], [0, 0, 1, 1], [], []>} : vector<8x8xbf16>, vector<8x8xbf16>, vector<8x8xf32> -> vector<8x8xf32>
    %50 = vector.extract_strided_slice %15 {offsets = [0, 16], sizes = [8, 8], strides = [1, 1]} : vector<8x32xbf16> to vector<8x8xbf16>
    %51 = vector.extract_strided_slice %16 {offsets = [0, 16], sizes = [8, 8], strides = [1, 1]} : vector<8x32xbf16> to vector<8x8xbf16>
    %52 = vector.extract_strided_slice %17 {offsets = [0, 16], sizes = [8, 8], strides = [1, 1]} : vector<8x32xbf16> to vector<8x8xbf16>
    %cst_14 = arith.constant dense<0.000000e+00> : vector<8x8xf32>
    %53 = tpu.matmul %50, %51, %cst_14 {dimension_numbers = #tpu.dot_dimension_numbers<[1], [1], [0], [0], [0, 0, 1, 0], [], []>} : vector<8x8xbf16>, vector<8x8xbf16>, vector<8x8xf32> -> vector<8x8xf32>
    %cst_15 = arith.constant dense<0xFF800000> : vector<8xf32>
    %54 = vector.multi_reduction <maximumf>, %53, %cst_15 [1] : vector<8x8xf32> to vector<8xf32>
    %55 = vector.shape_cast %54 : vector<8xf32> to vector<8x1xf32>
    %56 = vector.broadcast %55 : vector<8x1xf32> to vector<8x8xf32>
    %57 = arith.subf %53, %56 : vector<8x8xf32>
    %58 = math.exp %57 : vector<8x8xf32>
    %cst_16 = arith.constant dense<0.000000e+00> : vector<8xf32>
    %59 = vector.multi_reduction <add>, %58, %cst_16 [1] : vector<8x8xf32> to vector<8xf32>
    %60 = vector.shape_cast %59 : vector<8xf32> to vector<8x1xf32>
    %61 = tpu.reciprocal %60 {approx = true} : vector<8x1xf32> -> vector<8x1xf32>
    %62 = vector.broadcast %61 : vector<8x1xf32> to vector<8x8xf32>
    %63 = arith.mulf %58, %62 : vector<8x8xf32>
    %64 = arith.truncf %63 : vector<8x8xf32> to vector<8x8xbf16>
    %cst_17 = arith.constant dense<0.000000e+00> : vector<8x8xf32>
    %65 = tpu.matmul %64, %52, %cst_17 {dimension_numbers = #tpu.dot_dimension_numbers<[1], [0], [0], [1], [0, 0, 1, 1], [], []>} : vector<8x8xbf16>, vector<8x8xbf16>, vector<8x8xf32> -> vector<8x8xf32>
    %66 = vector.extract_strided_slice %15 {offsets = [0, 24], sizes = [8, 8], strides = [1, 1]} : vector<8x32xbf16> to vector<8x8xbf16>
    %67 = vector.extract_strided_slice %16 {offsets = [0, 24], sizes = [8, 8], strides = [1, 1]} : vector<8x32xbf16> to vector<8x8xbf16>
    %68 = vector.extract_strided_slice %17 {offsets = [0, 24], sizes = [8, 8], strides = [1, 1]} : vector<8x32xbf16> to vector<8x8xbf16>
    %cst_18 = arith.constant dense<0.000000e+00> : vector<8x8xf32>
    %69 = tpu.matmul %66, %67, %cst_18 {dimension_numbers = #tpu.dot_dimension_numbers<[1], [1], [0], [0], [0, 0, 1, 0], [], []>} : vector<8x8xbf16>, vector<8x8xbf16>, vector<8x8xf32> -> vector<8x8xf32>
    %cst_19 = arith.constant dense<0xFF800000> : vector<8xf32>
    %70 = vector.multi_reduction <maximumf>, %69, %cst_19 [1] : vector<8x8xf32> to vector<8xf32>
    %71 = vector.shape_cast %70 : vector<8xf32> to vector<8x1xf32>
    %72 = vector.broadcast %71 : vector<8x1xf32> to vector<8x8xf32>
    %73 = arith.subf %69, %72 : vector<8x8xf32>
    %74 = math.exp %73 : vector<8x8xf32>
    %cst_20 = arith.constant dense<0.000000e+00> : vector<8xf32>
    %75 = vector.multi_reduction <add>, %74, %cst_20 [1] : vector<8x8xf32> to vector<8xf32>
    %76 = vector.shape_cast %75 : vector<8xf32> to vector<8x1xf32>
    %77 = tpu.reciprocal %76 {approx = true} : vector<8x1xf32> -> vector<8x1xf32>
    %78 = vector.broadcast %77 : vector<8x1xf32> to vector<8x8xf32>
    %79 = arith.mulf %74, %78 : vector<8x8xf32>
    %80 = arith.truncf %79 : vector<8x8xf32> to vector<8x8xbf16>
    %cst_21 = arith.constant dense<0.000000e+00> : vector<8x8xf32>
    %81 = tpu.matmul %80, %68, %cst_21 {dimension_numbers = #tpu.dot_dimension_numbers<[1], [0], [0], [1], [0, 0, 1, 1], [], []>} : vector<8x8xbf16>, vector<8x8xbf16>, vector<8x8xf32> -> vector<8x8xf32>
    %82 = tpu.concatenate %33, %49, %65, %81 in 1 : vector<8x8xf32>, vector<8x8xf32>, vector<8x8xf32>, vector<8x8xf32> -> vector<8x32xf32>
    %83 = vector.extract_strided_slice %12 {offsets = [8, 0], sizes = [8, 32], strides = [1, 1]} : vector<16x32xbf16> to vector<8x32xbf16>
    %84 = vector.extract_strided_slice %13 {offsets = [8, 0], sizes = [8, 32], strides = [1, 1]} : vector<16x32xbf16> to vector<8x32xbf16>
    %85 = vector.extract_strided_slice %14 {offsets = [8, 0], sizes = [8, 32], strides = [1, 1]} : vector<16x32xbf16> to vector<8x32xbf16>
    %86 = vector.extract_strided_slice %83 {offsets = [0, 0], sizes = [8, 8], strides = [1, 1]} : vector<8x32xbf16> to vector<8x8xbf16>
    %87 = vector.extract_strided_slice %84 {offsets = [0, 0], sizes = [8, 8], strides = [1, 1]} : vector<8x32xbf16> to vector<8x8xbf16>
    %88 = vector.extract_strided_slice %85 {offsets = [0, 0], sizes = [8, 8], strides = [1, 1]} : vector<8x32xbf16> to vector<8x8xbf16>
    %cst_22 = arith.constant dense<0.000000e+00> : vector<8x8xf32>
    %89 = tpu.matmul %86, %87, %cst_22 {dimension_numbers = #tpu.dot_dimension_numbers<[1], [1], [0], [0], [0, 0, 1, 0], [], []>} : vector<8x8xbf16>, vector<8x8xbf16>, vector<8x8xf32> -> vector<8x8xf32>
    %cst_23 = arith.constant dense<0xFF800000> : vector<8xf32>
    %90 = vector.multi_reduction <maximumf>, %89, %cst_23 [1] : vector<8x8xf32> to vector<8xf32>
    %91 = vector.shape_cast %90 : vector<8xf32> to vector<8x1xf32>
    %92 = vector.broadcast %91 : vector<8x1xf32> to vector<8x8xf32>
    %93 = arith.subf %89, %92 : vector<8x8xf32>
    %94 = math.exp %93 : vector<8x8xf32>
    %cst_24 = arith.constant dense<0.000000e+00> : vector<8xf32>
    %95 = vector.multi_reduction <add>, %94, %cst_24 [1] : vector<8x8xf32> to vector<8xf32>
    %96 = vector.shape_cast %95 : vector<8xf32> to vector<8x1xf32>
    %97 = tpu.reciprocal %96 {approx = true} : vector<8x1xf32> -> vector<8x1xf32>
    %98 = vector.broadcast %97 : vector<8x1xf32> to vector<8x8xf32>
    %99 = arith.mulf %94, %98 : vector<8x8xf32>
    %100 = arith.truncf %99 : vector<8x8xf32> to vector<8x8xbf16>
    %cst_25 = arith.constant dense<0.000000e+00> : vector<8x8xf32>
    %101 = tpu.matmul %100, %88, %cst_25 {dimension_numbers = #tpu.dot_dimension_numbers<[1], [0], [0], [1], [0, 0, 1, 1], [], []>} : vector<8x8xbf16>, vector<8x8xbf16>, vector<8x8xf32> -> vector<8x8xf32>
    %102 = vector.extract_strided_slice %83 {offsets = [0, 8], sizes = [8, 8], strides = [1, 1]} : vector<8x32xbf16> to vector<8x8xbf16>
    %103 = vector.extract_strided_slice %84 {offsets = [0, 8], sizes = [8, 8], strides = [1, 1]} : vector<8x32xbf16> to vector<8x8xbf16>
    %104 = vector.extract_strided_slice %85 {offsets = [0, 8], sizes = [8, 8], strides = [1, 1]} : vector<8x32xbf16> to vector<8x8xbf16>
    %cst_26 = arith.constant dense<0.000000e+00> : vector<8x8xf32>
    %105 = tpu.matmul %102, %103, %cst_26 {dimension_numbers = #tpu.dot_dimension_numbers<[1], [1], [0], [0], [0, 0, 1, 0], [], []>} : vector<8x8xbf16>, vector<8x8xbf16>, vector<8x8xf32> -> vector<8x8xf32>
    %cst_27 = arith.constant dense<0xFF800000> : vector<8xf32>
    %106 = vector.multi_reduction <maximumf>, %105, %cst_27 [1] : vector<8x8xf32> to vector<8xf32>
    %107 = vector.shape_cast %106 : vector<8xf32> to vector<8x1xf32>
    %108 = vector.broadcast %107 : vector<8x1xf32> to vector<8x8xf32>
    %109 = arith.subf %105, %108 : vector<8x8xf32>
    %110 = math.exp %109 : vector<8x8xf32>
    %cst_28 = arith.constant dense<0.000000e+00> : vector<8xf32>
    %111 = vector.multi_reduction <add>, %110, %cst_28 [1] : vector<8x8xf32> to vector<8xf32>
    %112 = vector.shape_cast %111 : vector<8xf32> to vector<8x1xf32>
    %113 = tpu.reciprocal %112 {approx = true} : vector<8x1xf32> -> vector<8x1xf32>
    %114 = vector.broadcast %113 : vector<8x1xf32> to vector<8x8xf32>
    %115 = arith.mulf %110, %114 : vector<8x8xf32>
    %116 = arith.truncf %115 : vector<8x8xf32> to vector<8x8xbf16>
    %cst_29 = arith.constant dense<0.000000e+00> : vector<8x8xf32>
    %117 = tpu.matmul %116, %104, %cst_29 {dimension_numbers = #tpu.dot_dimension_numbers<[1], [0], [0], [1], [0, 0, 1, 1], [], []>} : vector<8x8xbf16>, vector<8x8xbf16>, vector<8x8xf32> -> vector<8x8xf32>
    %118 = vector.extract_strided_slice %83 {offsets = [0, 16], sizes = [8, 8], strides = [1, 1]} : vector<8x32xbf16> to vector<8x8xbf16>
    %119 = vector.extract_strided_slice %84 {offsets = [0, 16], sizes = [8, 8], strides = [1, 1]} : vector<8x32xbf16> to vector<8x8xbf16>
    %120 = vector.extract_strided_slice %85 {offsets = [0, 16], sizes = [8, 8], strides = [1, 1]} : vector<8x32xbf16> to vector<8x8xbf16>
    %cst_30 = arith.constant dense<0.000000e+00> : vector<8x8xf32>
    %121 = tpu.matmul %118, %119, %cst_30 {dimension_numbers = #tpu.dot_dimension_numbers<[1], [1], [0], [0], [0, 0, 1, 0], [], []>} : vector<8x8xbf16>, vector<8x8xbf16>, vector<8x8xf32> -> vector<8x8xf32>
    %cst_31 = arith.constant dense<0xFF800000> : vector<8xf32>
    %122 = vector.multi_reduction <maximumf>, %121, %cst_31 [1] : vector<8x8xf32> to vector<8xf32>
    %123 = vector.shape_cast %122 : vector<8xf32> to vector<8x1xf32>
    %124 = vector.broadcast %123 : vector<8x1xf32> to vector<8x8xf32>
    %125 = arith.subf %121, %124 : vector<8x8xf32>
    %126 = math.exp %125 : vector<8x8xf32>
    %cst_32 = arith.constant dense<0.000000e+00> : vector<8xf32>
    %127 = vector.multi_reduction <add>, %126, %cst_32 [1] : vector<8x8xf32> to vector<8xf32>
    %128 = vector.shape_cast %127 : vector<8xf32> to vector<8x1xf32>
    %129 = tpu.reciprocal %128 {approx = true} : vector<8x1xf32> -> vector<8x1xf32>
    %130 = vector.broadcast %129 : vector<8x1xf32> to vector<8x8xf32>
    %131 = arith.mulf %126, %130 : vector<8x8xf32>
    %132 = arith.truncf %131 : vector<8x8xf32> to vector<8x8xbf16>
    %cst_33 = arith.constant dense<0.000000e+00> : vector<8x8xf32>
    %133 = tpu.matmul %132, %120, %cst_33 {dimension_numbers = #tpu.dot_dimension_numbers<[1], [0], [0], [1], [0, 0, 1, 1], [], []>} : vector<8x8xbf16>, vector<8x8xbf16>, vector<8x8xf32> -> vector<8x8xf32>
    %134 = vector.extract_strided_slice %83 {offsets = [0, 24], sizes = [8, 8], strides = [1, 1]} : vector<8x32xbf16> to vector<8x8xbf16>
    %135 = vector.extract_strided_slice %84 {offsets = [0, 24], sizes = [8, 8], strides = [1, 1]} : vector<8x32xbf16> to vector<8x8xbf16>
    %136 = vector.extract_strided_slice %85 {offsets = [0, 24], sizes = [8, 8], strides = [1, 1]} : vector<8x32xbf16> to vector<8x8xbf16>
    %cst_34 = arith.constant dense<0.000000e+00> : vector<8x8xf32>
    %137 = tpu.matmul %134, %135, %cst_34 {dimension_numbers = #tpu.dot_dimension_numbers<[1], [1], [0], [0], [0, 0, 1, 0], [], []>} : vector<8x8xbf16>, vector<8x8xbf16>, vector<8x8xf32> -> vector<8x8xf32>
    %cst_35 = arith.constant dense<0xFF800000> : vector<8xf32>
    %138 = vector.multi_reduction <maximumf>, %137, %cst_35 [1] : vector<8x8xf32> to vector<8xf32>
    %139 = vector.shape_cast %138 : vector<8xf32> to vector<8x1xf32>
    %140 = vector.broadcast %139 : vector<8x1xf32> to vector<8x8xf32>
    %141 = arith.subf %137, %140 : vector<8x8xf32>
    %142 = math.exp %141 : vector<8x8xf32>
    %cst_36 = arith.constant dense<0.000000e+00> : vector<8xf32>
    %143 = vector.multi_reduction <add>, %142, %cst_36 [1] : vector<8x8xf32> to vector<8xf32>
    %144 = vector.shape_cast %143 : vector<8xf32> to vector<8x1xf32>
    %145 = tpu.reciprocal %144 {approx = true} : vector<8x1xf32> -> vector<8x1xf32>
    %146 = vector.broadcast %145 : vector<8x1xf32> to vector<8x8xf32>
    %147 = arith.mulf %142, %146 : vector<8x8xf32>
    %148 = arith.truncf %147 : vector<8x8xf32> to vector<8x8xbf16>
    %cst_37 = arith.constant dense<0.000000e+00> : vector<8x8xf32>
    %149 = tpu.matmul %148, %136, %cst_37 {dimension_numbers = #tpu.dot_dimension_numbers<[1], [0], [0], [1], [0, 0, 1, 1], [], []>} : vector<8x8xbf16>, vector<8x8xbf16>, vector<8x8xf32> -> vector<8x8xf32>
    %150 = tpu.concatenate %101, %117, %133, %149 in 1 : vector<8x8xf32>, vector<8x8xf32>, vector<8x8xf32>, vector<8x8xf32> -> vector<8x32xf32>
    %151 = tpu.concatenate %82, %150 in 0 : vector<8x32xf32>, vector<8x32xf32> -> vector<16x32xf32>
    %152 = arith.truncf %151 : vector<16x32xf32> to vector<16x32xbf16>
    %c0_38 = arith.constant 0 : index
    %c0_39 = arith.constant 0 : index
    %153 = vector.load %arg4[%c0_38, %c0_39] : memref<32x32xbf16, #tpu.memory_space<vmem>>, vector<32x32xbf16>
    %cst_40 = arith.constant dense<0.000000e+00> : vector<16x32xf32>
    %154 = tpu.matmul %152, %153, %cst_40 {dimension_numbers = #tpu.dot_dimension_numbers<[1], [0], [0], [1], [0, 0, 1, 1], [], []>} : vector<16x32xbf16>, vector<32x32xbf16>, vector<16x32xf32> -> vector<16x32xf32>
    %c0_41 = arith.constant 0 : index
    %c0_42 = arith.constant 0 : index
    %155 = vector.load %arg5[%c0_41, %c0_42] : memref<1x32xf32, #tpu.memory_space<vmem>>, vector<1x32xf32>
    %156 = vector.broadcast %155 : vector<1x32xf32> to vector<16x32xf32>
    %157 = arith.addf %154, %156 : vector<16x32xf32>
    %158 = arith.addf %0, %157 : vector<16x32xf32>
    %c0_43 = arith.constant 0 : index
    %c0_44 = arith.constant 0 : index
    %159 = vector.load %arg6[%c0_43, %c0_44] : memref<1x32xf32, #tpu.memory_space<vmem>>, vector<1x32xf32>
    %c0_45 = arith.constant 0 : index
    %c0_46 = arith.constant 0 : index
    %160 = vector.load %arg7[%c0_45, %c0_46] : memref<1x32xf32, #tpu.memory_space<vmem>>, vector<1x32xf32>
    %cst_47 = arith.constant dense<0.000000e+00> : vector<16xf32>
    %161 = vector.multi_reduction <add>, %158, %cst_47 [1] : vector<16x32xf32> to vector<16xf32>
    %162 = vector.shape_cast %161 : vector<16xf32> to vector<16x1xf32>
    %cst_48 = arith.constant 3.200000e+01 : f32
    %163 = vector.broadcast %cst_48 : f32 to vector<16x1xf32>
    %164 = arith.divf %162, %163 : vector<16x1xf32>
    %165 = vector.broadcast %164 : vector<16x1xf32> to vector<16x32xf32>
    %166 = arith.subf %158, %165 : vector<16x32xf32>
    %167 = arith.mulf %166, %166 : vector<16x32xf32>
    %cst_49 = arith.constant dense<0.000000e+00> : vector<16xf32>
    %168 = vector.multi_reduction <add>, %167, %cst_49 [1] : vector<16x32xf32> to vector<16xf32>
    %169 = vector.shape_cast %168 : vector<16xf32> to vector<16x1xf32>
    %cst_50 = arith.constant 3.200000e+01 : f32
    %170 = vector.broadcast %cst_50 : f32 to vector<16x1xf32>
    %171 = arith.divf %169, %170 : vector<16x1xf32>
    %cst_51 = arith.constant 9.99999974E-6 : f32
    %172 = vector.broadcast %cst_51 : f32 to vector<16x1xf32>
    %173 = arith.addf %171, %172 : vector<16x1xf32>
    %174 = math.rsqrt %173 : vector<16x1xf32>
    %175 = vector.broadcast %174 : vector<16x1xf32> to vector<16x32xf32>
    %176 = arith.mulf %166, %175 : vector<16x32xf32>
    %177 = vector.broadcast %159 : vector<1x32xf32> to vector<16x32xf32>
    %178 = arith.mulf %176, %177 : vector<16x32xf32>
    %179 = vector.broadcast %160 : vector<1x32xf32> to vector<16x32xf32>
    %180 = arith.addf %178, %179 : vector<16x32xf32>
    %181 = arith.truncf %180 : vector<16x32xf32> to vector<16x32xbf16>
    %c0_52 = arith.constant 0 : index
    %c0_53 = arith.constant 0 : index
    %182 = vector.load %arg8[%c0_52, %c0_53] : memref<32x64xbf16, #tpu.memory_space<vmem>>, vector<32x64xbf16>
    %cst_54 = arith.constant dense<0.000000e+00> : vector<16x64xf32>
    %183 = tpu.matmul %181, %182, %cst_54 {dimension_numbers = #tpu.dot_dimension_numbers<[1], [0], [0], [1], [0, 0, 1, 1], [], []>} : vector<16x32xbf16>, vector<32x64xbf16>, vector<16x64xf32> -> vector<16x64xf32>
    %c0_55 = arith.constant 0 : index
    %c0_56 = arith.constant 0 : index
    %184 = vector.load %arg9[%c0_55, %c0_56] : memref<1x64xf32, #tpu.memory_space<vmem>>, vector<1x64xf32>
    %185 = vector.broadcast %184 : vector<1x64xf32> to vector<16x64xf32>
    %186 = arith.addf %183, %185 : vector<16x64xf32>
    %cst_57 = arith.constant 0.000000e+00 : f32
    %187 = vector.broadcast %cst_57 : f32 to vector<16x64xf32>
    %188 = arith.maximumf %186, %187 : vector<16x64xf32>
    %189 = arith.truncf %188 : vector<16x64xf32> to vector<16x64xbf16>
    %c0_58 = arith.constant 0 : index
    %c0_59 = arith.constant 0 : index
    %190 = vector.load %arg10[%c0_58, %c0_59] : memref<64x32xbf16, #tpu.memory_space<vmem>>, vector<64x32xbf16>
    %cst_60 = arith.constant dense<0.000000e+00> : vector<16x32xf32>
    %191 = tpu.matmul %189, %190, %cst_60 {dimension_numbers = #tpu.dot_dimension_numbers<[1], [0], [0], [1], [0, 0, 1, 1], [], []>} : vector<16x64xbf16>, vector<64x32xbf16>, vector<16x32xf32> -> vector<16x32xf32>
    %c0_61 = arith.constant 0 : index
    %c0_62 = arith.constant 0 : index
    %192 = vector.load %arg11[%c0_61, %c0_62] : memref<1x32xf32, #tpu.memory_space<vmem>>, vector<1x32xf32>
    %193 = vector.broadcast %192 : vector<1x32xf32> to vector<16x32xf32>
    %194 = arith.addf %191, %193 : vector<16x32xf32>
    %195 = arith.addf %180, %194 : vector<16x32xf32>
    %c0_63 = arith.constant 0 : index
    %c0_64 = arith.constant 0 : index
    %196 = vector.load %arg12[%c0_63, %c0_64] : memref<1x32xf32, #tpu.memory_space<vmem>>, vector<1x32xf32>
    %c0_65 = arith.constant 0 : index
    %c0_66 = arith.constant 0 : index
    %197 = vector.load %arg13[%c0_65, %c0_66] : memref<1x32xf32, #tpu.memory_space<vmem>>, vector<1x32xf32>
    %cst_67 = arith.constant dense<0.000000e+00> : vector<16xf32>
    %198 = vector.multi_reduction <add>, %195, %cst_67 [1] : vector<16x32xf32> to vector<16xf32>
    %199 = vector.shape_cast %198 : vector<16xf32> to vector<16x1xf32>
    %cst_68 = arith.constant 3.200000e+01 : f32
    %200 = vector.broadcast %cst_68 : f32 to vector<16x1xf32>
    %201 = arith.divf %199, %200 : vector<16x1xf32>
    %202 = vector.broadcast %201 : vector<16x1xf32> to vector<16x32xf32>
    %203 = arith.subf %195, %202 : vector<16x32xf32>
    %204 = arith.mulf %203, %203 : vector<16x32xf32>
    %cst_69 = arith.constant dense<0.000000e+00> : vector<16xf32>
    %205 = vector.multi_reduction <add>, %204, %cst_69 [1] : vector<16x32xf32> to vector<16xf32>
    %206 = vector.shape_cast %205 : vector<16xf32> to vector<16x1xf32>
    %cst_70 = arith.constant 3.200000e+01 : f32
    %207 = vector.broadcast %cst_70 : f32 to vector<16x1xf32>
    %208 = arith.divf %206, %207 : vector<16x1xf32>
    %cst_71 = arith.constant 9.99999974E-6 : f32
    %209 = vector.broadcast %cst_71 : f32 to vector<16x1xf32>
    %210 = arith.addf %208, %209 : vector<16x1xf32>
    %211 = math.rsqrt %210 : vector<16x1xf32>
    %212 = vector.broadcast %211 : vector<16x1xf32> to vector<16x32xf32>
    %213 = arith.mulf %203, %212 : vector<16x32xf32>
    %214 = vector.broadcast %196 : vector<1x32xf32> to vector<16x32xf32>
    %215 = arith.mulf %213, %214 : vector<16x32xf32>
    %216 = vector.broadcast %197 : vector<1x32xf32> to vector<16x32xf32>
    %217 = arith.addf %215, %216 : vector<16x32xf32>
    %c0_72 = arith.constant 0 : index
    %c0_73 = arith.constant 0 : index
    %218 = vector.load %arg14[%c0_72, %c0_73] : memref<16x32xf32, #tpu.memory_space<vmem>>, vector<16x32xf32>
    tpu.vector_store %arg14[%c0_72, %c0_73], %217 {strides = array<i32>} : memref<16x32xf32, #tpu.memory_space<vmem>>, vector<16x32xf32>,
    return
  }
  func.func @transform_0(%arg0: i32) -> (i32, i32) {
    %c0_i32 = arith.constant 0 : i32
    %c0_i32_0 = arith.constant 0 : i32
    %c0_i32_1 = arith.constant 0 : i32
    return %c0_i32, %c0_i32_0 : i32, i32
  }
  func.func @transform_1(%arg0: i32) -> (i32, i32) {
    %c0_i32 = arith.constant 0 : i32
    %c0_i32_0 = arith.constant 0 : i32
    %c0_i32_1 = arith.constant 0 : i32
    return %c0_i32, %c0_i32_0 : i32, i32
  }
  func.func @transform_2(%arg0: i32) -> (i32, i32) {
    %c0_i32 = arith.constant 0 : i32
    %c0_i32_0 = arith.constant 0 : i32
    %c0_i32_1 = arith.constant 0 : i32
    return %c0_i32, %c0_i32_0 : i32, i32
  }
  func.func @transform_3(%arg0: i32) -> (i32, i32) {
    %c0_i32 = arith.constant 0 : i32
    %c0_i32_0 = arith.constant 0 : i32
    %c0_i32_1 = arith.constant 0 : i32
    return %c0_i32, %c0_i32_0 : i32, i32
  }
  func.func @transform_4(%arg0: i32) -> (i32, i32) {
    %c0_i32 = arith.constant 0 : i32
    %c0_i32_0 = arith.constant 0 : i32
    %c0_i32_1 = arith.constant 0 : i32
    return %c0_i32, %c0_i32_0 : i32, i32
  }
  func.func @transform_5(%arg0: i32) -> (i32, i32) {
    %c0_i32 = arith.constant 0 : i32
    %c0_i32_0 = arith.constant 0 : i32
    %c0_i32_1 = arith.constant 0 : i32
    return %c0_i32, %c0_i32_0 : i32, i32
  }
  func.func @transform_6(%arg0: i32) -> (i32, i32) {
    %c0_i32 = arith.constant 0 : i32
    %c0_i32_0 = arith.constant 0 : i32
    %c0_i32_1 = arith.constant 0 : i32
    return %c0_i32, %c0_i32_0 : i32, i32
  }
  func.func @transform_7(%arg0: i32) -> (i32, i32) {
    %c0_i32 = arith.constant 0 : i32
    %c0_i32_0 = arith.constant 0 : i32
    %c0_i32_1 = arith.constant 0 : i32
    return %c0_i32, %c0_i32_0 : i32, i32
  }
  func.func @transform_8(%arg0: i32) -> (i32, i32) {
    %c0_i32 = arith.constant 0 : i32
    %c0_i32_0 = arith.constant 0 : i32
    %c0_i32_1 = arith.constant 0 : i32
    return %c0_i32, %c0_i32_0 : i32, i32
  }
  func.func @transform_9(%arg0: i32) -> (i32, i32) {
    %c0_i32 = arith.constant 0 : i32
    %c0_i32_0 = arith.constant 0 : i32
    %c0_i32_1 = arith.constant 0 : i32
    return %c0_i32, %c0_i32_0 : i32, i32
  }
  func.func @transform_10(%arg0: i32) -> (i32, i32) {
    %c0_i32 = arith.constant 0 : i32
    %c0_i32_0 = arith.constant 0 : i32
    %c0_i32_1 = arith.constant 0 : i32
    return %c0_i32, %c0_i32_0 : i32, i32
  }
  func.func @transform_11(%arg0: i32) -> (i32, i32) {
    %c0_i32 = arith.constant 0 : i32
    %c0_i32_0 = arith.constant 0 : i32
    %c0_i32_1 = arith.constant 0 : i32
    return %c0_i32, %c0_i32_0 : i32, i32
  }
  func.func @transform_12(%arg0: i32) -> (i32, i32) {
    %c0_i32 = arith.constant 0 : i32
    %c0_i32_0 = arith.constant 0 : i32
    %c0_i32_1 = arith.constant 0 : i32
    return %c0_i32, %c0_i32_0 : i32, i32
  }
  func.func @transform_13(%arg0: i32) -> (i32, i32) {
    %c0_i32 = arith.constant 0 : i32
    %c0_i32_0 = arith.constant 0 : i32
    %c0_i32_1 = arith.constant 0 : i32
    return %c0_i32, %c0_i32_0 : i32, i32
  }
}

module attributes {stable_mosaic.version = 11 : i64} {
  func.func @_decoder_layer_kernel(%arg0: i32, %arg1: memref<16x32xf32, #tpu.memory_space<vmem>>, %arg2: memref<16x32xf32, #tpu.memory_space<vmem>>, %arg3: memref<32x96xbf16, #tpu.memory_space<vmem>>, %arg4: memref<1x96xf32, #tpu.memory_space<vmem>>, %arg5: memref<32x32xbf16, #tpu.memory_space<vmem>>, %arg6: memref<1x32xf32, #tpu.memory_space<vmem>>, %arg7: memref<1x32xf32, #tpu.memory_space<vmem>>, %arg8: memref<1x32xf32, #tpu.memory_space<vmem>>, %arg9: memref<32x32xbf16, #tpu.memory_space<vmem>>, %arg10: memref<1x32xf32, #tpu.memory_space<vmem>>, %arg11: memref<32x64xbf16, #tpu.memory_space<vmem>>, %arg12: memref<1x64xf32, #tpu.memory_space<vmem>>, %arg13: memref<32x32xbf16, #tpu.memory_space<vmem>>, %arg14: memref<1x32xf32, #tpu.memory_space<vmem>>, %arg15: memref<1x32xf32, #tpu.memory_space<vmem>>, %arg16: memref<1x32xf32, #tpu.memory_space<vmem>>, %arg17: memref<32x64xbf16, #tpu.memory_space<vmem>>, %arg18: memref<1x64xf32, #tpu.memory_space<vmem>>, %arg19: memref<64x32xbf16, #tpu.memory_space<vmem>>, %arg20: memref<1x32xf32, #tpu.memory_space<vmem>>, %arg21: memref<1x32xf32, #tpu.memory_space<vmem>>, %arg22: memref<1x32xf32, #tpu.memory_space<vmem>>, %arg23: memref<16x32xf32, #tpu.memory_space<vmem>>) attributes {dimension_semantics = [#tpu.dimension_semantics<arbitrary>], iteration_bounds = array<i64: 1>, scalar_prefetch = 0 : i64, scratch_operands = 0 : i64, tpu.core_type = #tpu.core_type<tc>, window_params = [{pipeline_mode = #tpu.pipeline_mode<synchronous>, transform_indices = @transform_0, window_bounds = array<i64: 16, 32>}, {pipeline_mode = #tpu.pipeline_mode<synchronous>, transform_indices = @transform_1, window_bounds = array<i64: 16, 32>}, {pipeline_mode = #tpu.pipeline_mode<synchronous>, transform_indices = @transform_2, window_bounds = array<i64: 32, 96>}, {pipeline_mode = #tpu.pipeline_mode<synchronous>, transform_indices = @transform_3, window_bounds = array<i64: 1, 96>}, {pipeline_mode = #tpu.pipeline_mode<synchronous>, transform_indices = @transform_4, window_bounds = array<i64: 32, 32>}, {pipeline_mode = #tpu.pipeline_mode<synchronous>, transform_indices = @transform_5, window_bounds = array<i64: 1, 32>}, {pipeline_mode = #tpu.pipeline_mode<synchronous>, transform_indices = @transform_6, window_bounds = array<i64: 1, 32>}, {pipeline_mode = #tpu.pipeline_mode<synchronous>, transform_indices = @transform_7, window_bounds = array<i64: 1, 32>}, {pipeline_mode = #tpu.pipeline_mode<synchronous>, transform_indices = @transform_8, window_bounds = array<i64: 32, 32>}, {pipeline_mode = #tpu.pipeline_mode<synchronous>, transform_indices = @transform_9, window_bounds = array<i64: 1, 32>}, {pipeline_mode = #tpu.pipeline_mode<synchronous>, transform_indices = @transform_10, window_bounds = array<i64: 32, 64>}, {pipeline_mode = #tpu.pipeline_mode<synchronous>, transform_indices = @transform_11, window_bounds = array<i64: 1, 64>}, {pipeline_mode = #tpu.pipeline_mode<synchronous>, transform_indices = @transform_12, window_bounds = array<i64: 32, 32>}, {pipeline_mode = #tpu.pipeline_mode<synchronous>, transform_indices = @transform_13, window_bounds = array<i64: 1, 32>}, {pipeline_mode = #tpu.pipeline_mode<synchronous>, transform_indices = @transform_14, window_bounds = array<i64: 1, 32>}, {pipeline_mode = #tpu.pipeline_mode<synchronous>, transform_indices = @transform_15, window_bounds = array<i64: 1, 32>}, {pipeline_mode = #tpu.pipeline_mode<synchronous>, transform_indices = @transform_16, window_bounds = array<i64: 32, 64>}, {pipeline_mode = #tpu.pipeline_mode<synchronous>, transform_indices = @transform_17, window_bounds = array<i64: 1, 64>}, {pipeline_mode = #tpu.pipeline_mode<synchronous>, transform_indices = @transform_18, window_bounds = array<i64: 64, 32>}, {pipeline_mode = #tpu.pipeline_mode<synchronous>, transform_indices = @transform_19, window_bounds = array<i64: 1, 32>}, {pipeline_mode = #tpu.pipeline_mode<synchronous>, transform_indices = @transform_20, window_bounds = array<i64: 1, 32>}, {pipeline_mode = #tpu.pipeline_mode<synchronous>, transform_indices = @transform_21, window_bounds = array<i64: 1, 32>}, {pipeline_mode = #tpu.pipeline_mode<synchronous>, transform_indices = @transform_22, window_bounds = array<i64: 16, 32>}]} {
    %c0 = arith.constant 0 : index
    %c0_0 = arith.constant 0 : index
    %0 = vector.load %arg1[%c0, %c0_0] : memref<16x32xf32, #tpu.memory_space<vmem>>, vector<16x32xf32>
    %c0_1 = arith.constant 0 : index
    %c0_2 = arith.constant 0 : index
    %1 = vector.load %arg2[%c0_1, %c0_2] : memref<16x32xf32, #tpu.memory_space<vmem>>, vector<16x32xf32>
    %2 = arith.truncf %0 : vector<16x32xf32> to vector<16x32xbf16>
    %c0_3 = arith.constant 0 : index
    %c0_4 = arith.constant 0 : index
    %3 = vector.load %arg3[%c0_3, %c0_4] : memref<32x96xbf16, #tpu.memory_space<vmem>>, vector<32x96xbf16>
    %cst = arith.constant dense<0.000000e+00> : vector<16x96xf32>
    %4 = tpu.matmul %2, %3, %cst {dimension_numbers = #tpu.dot_dimension_numbers<[1], [0], [0], [1], [0, 0, 1, 1], [], []>} : vector<16x32xbf16>, vector<32x96xbf16>, vector<16x96xf32> -> vector<16x96xf32>
    %c0_5 = arith.constant 0 : index
    %c0_6 = arith.constant 0 : index
    %5 = vector.load %arg4[%c0_5, %c0_6] : memref<1x96xf32, #tpu.memory_space<vmem>>, vector<1x96xf32>
    %6 = vector.broadcast %5 : vector<1x96xf32> to vector<16x96xf32>
    %7 = arith.addf %4, %6 : vector<16x96xf32>
    %8 = vector.extract_strided_slice %7 {offsets = [0, 0], sizes = [16, 32], strides = [1, 1]} : vector<16x96xf32> to vector<16x32xf32>
    %9 = vector.extract_strided_slice %7 {offsets = [0, 32], sizes = [16, 32], strides = [1, 1]} : vector<16x96xf32> to vector<16x32xf32>
    %10 = vector.extract_strided_slice %7 {offsets = [0, 64], sizes = [16, 32], strides = [1, 1]} : vector<16x96xf32> to vector<16x32xf32>
    %cst_7 = arith.constant 0.353553385 : f32
    %11 = vector.broadcast %cst_7 : f32 to vector<16x32xf32>
    %12 = arith.mulf %8, %11 : vector<16x32xf32>
    %13 = arith.truncf %12 : vector<16x32xf32> to vector<16x32xbf16>
    %14 = arith.truncf %9 : vector<16x32xf32> to vector<16x32xbf16>
    %15 = arith.truncf %10 : vector<16x32xf32> to vector<16x32xbf16>
    %16 = vector.extract_strided_slice %13 {offsets = [0, 0], sizes = [8, 32], strides = [1, 1]} : vector<16x32xbf16> to vector<8x32xbf16>
    %17 = vector.extract_strided_slice %14 {offsets = [0, 0], sizes = [8, 32], strides = [1, 1]} : vector<16x32xbf16> to vector<8x32xbf16>
    %18 = vector.extract_strided_slice %15 {offsets = [0, 0], sizes = [8, 32], strides = [1, 1]} : vector<16x32xbf16> to vector<8x32xbf16>
    %19 = vector.extract_strided_slice %16 {offsets = [0, 0], sizes = [8, 8], strides = [1, 1]} : vector<8x32xbf16> to vector<8x8xbf16>
    %20 = vector.extract_strided_slice %17 {offsets = [0, 0], sizes = [8, 8], strides = [1, 1]} : vector<8x32xbf16> to vector<8x8xbf16>
    %21 = vector.extract_strided_slice %18 {offsets = [0, 0], sizes = [8, 8], strides = [1, 1]} : vector<8x32xbf16> to vector<8x8xbf16>
    %cst_8 = arith.constant dense<0.000000e+00> : vector<8x8xf32>
    %22 = tpu.matmul %19, %20, %cst_8 {dimension_numbers = #tpu.dot_dimension_numbers<[1], [1], [0], [0], [0, 0, 1, 0], [], []>} : vector<8x8xbf16>, vector<8x8xbf16>, vector<8x8xf32> -> vector<8x8xf32>
    %cst_9 = arith.constant dense<0xFF800000> : vector<8xf32>
    %23 = vector.multi_reduction <maximumf>, %22, %cst_9 [1] : vector<8x8xf32> to vector<8xf32>
    %24 = vector.shape_cast %23 : vector<8xf32> to vector<8x1xf32>
    %25 = vector.broadcast %24 : vector<8x1xf32> to vector<8x8xf32>
    %26 = arith.subf %22, %25 : vector<8x8xf32>
    %27 = math.exp %26 : vector<8x8xf32>
    %cst_10 = arith.constant dense<0.000000e+00> : vector<8xf32>
    %28 = vector.multi_reduction <add>, %27, %cst_10 [1] : vector<8x8xf32> to vector<8xf32>
    %29 = vector.shape_cast %28 : vector<8xf32> to vector<8x1xf32>
    %30 = tpu.reciprocal %29 {approx = true} : vector<8x1xf32> -> vector<8x1xf32>
    %31 = vector.broadcast %30 : vector<8x1xf32> to vector<8x8xf32>
    %32 = arith.mulf %27, %31 : vector<8x8xf32>
    %33 = arith.truncf %32 : vector<8x8xf32> to vector<8x8xbf16>
    %cst_11 = arith.constant dense<0.000000e+00> : vector<8x8xf32>
    %34 = tpu.matmul %33, %21, %cst_11 {dimension_numbers = #tpu.dot_dimension_numbers<[1], [0], [0], [1], [0, 0, 1, 1], [], []>} : vector<8x8xbf16>, vector<8x8xbf16>, vector<8x8xf32> -> vector<8x8xf32>
    %35 = vector.extract_strided_slice %16 {offsets = [0, 8], sizes = [8, 8], strides = [1, 1]} : vector<8x32xbf16> to vector<8x8xbf16>
    %36 = vector.extract_strided_slice %17 {offsets = [0, 8], sizes = [8, 8], strides = [1, 1]} : vector<8x32xbf16> to vector<8x8xbf16>
    %37 = vector.extract_strided_slice %18 {offsets = [0, 8], sizes = [8, 8], strides = [1, 1]} : vector<8x32xbf16> to vector<8x8xbf16>
    %cst_12 = arith.constant dense<0.000000e+00> : vector<8x8xf32>
    %38 = tpu.matmul %35, %36, %cst_12 {dimension_numbers = #tpu.dot_dimension_numbers<[1], [1], [0], [0], [0, 0, 1, 0], [], []>} : vector<8x8xbf16>, vector<8x8xbf16>, vector<8x8xf32> -> vector<8x8xf32>
    %cst_13 = arith.constant dense<0xFF800000> : vector<8xf32>
    %39 = vector.multi_reduction <maximumf>, %38, %cst_13 [1] : vector<8x8xf32> to vector<8xf32>
    %40 = vector.shape_cast %39 : vector<8xf32> to vector<8x1xf32>
    %41 = vector.broadcast %40 : vector<8x1xf32> to vector<8x8xf32>
    %42 = arith.subf %38, %41 : vector<8x8xf32>
    %43 = math.exp %42 : vector<8x8xf32>
    %cst_14 = arith.constant dense<0.000000e+00> : vector<8xf32>
    %44 = vector.multi_reduction <add>, %43, %cst_14 [1] : vector<8x8xf32> to vector<8xf32>
    %45 = vector.shape_cast %44 : vector<8xf32> to vector<8x1xf32>
    %46 = tpu.reciprocal %45 {approx = true} : vector<8x1xf32> -> vector<8x1xf32>
    %47 = vector.broadcast %46 : vector<8x1xf32> to vector<8x8xf32>
    %48 = arith.mulf %43, %47 : vector<8x8xf32>
    %49 = arith.truncf %48 : vector<8x8xf32> to vector<8x8xbf16>
    %cst_15 = arith.constant dense<0.000000e+00> : vector<8x8xf32>
    %50 = tpu.matmul %49, %37, %cst_15 {dimension_numbers = #tpu.dot_dimension_numbers<[1], [0], [0], [1], [0, 0, 1, 1], [], []>} : vector<8x8xbf16>, vector<8x8xbf16>, vector<8x8xf32> -> vector<8x8xf32>
    %51 = vector.extract_strided_slice %16 {offsets = [0, 16], sizes = [8, 8], strides = [1, 1]} : vector<8x32xbf16> to vector<8x8xbf16>
    %52 = vector.extract_strided_slice %17 {offsets = [0, 16], sizes = [8, 8], strides = [1, 1]} : vector<8x32xbf16> to vector<8x8xbf16>
    %53 = vector.extract_strided_slice %18 {offsets = [0, 16], sizes = [8, 8], strides = [1, 1]} : vector<8x32xbf16> to vector<8x8xbf16>
    %cst_16 = arith.constant dense<0.000000e+00> : vector<8x8xf32>
    %54 = tpu.matmul %51, %52, %cst_16 {dimension_numbers = #tpu.dot_dimension_numbers<[1], [1], [0], [0], [0, 0, 1, 0], [], []>} : vector<8x8xbf16>, vector<8x8xbf16>, vector<8x8xf32> -> vector<8x8xf32>
    %cst_17 = arith.constant dense<0xFF800000> : vector<8xf32>
    %55 = vector.multi_reduction <maximumf>, %54, %cst_17 [1] : vector<8x8xf32> to vector<8xf32>
    %56 = vector.shape_cast %55 : vector<8xf32> to vector<8x1xf32>
    %57 = vector.broadcast %56 : vector<8x1xf32> to vector<8x8xf32>
    %58 = arith.subf %54, %57 : vector<8x8xf32>
    %59 = math.exp %58 : vector<8x8xf32>
    %cst_18 = arith.constant dense<0.000000e+00> : vector<8xf32>
    %60 = vector.multi_reduction <add>, %59, %cst_18 [1] : vector<8x8xf32> to vector<8xf32>
    %61 = vector.shape_cast %60 : vector<8xf32> to vector<8x1xf32>
    %62 = tpu.reciprocal %61 {approx = true} : vector<8x1xf32> -> vector<8x1xf32>
    %63 = vector.broadcast %62 : vector<8x1xf32> to vector<8x8xf32>
    %64 = arith.mulf %59, %63 : vector<8x8xf32>
    %65 = arith.truncf %64 : vector<8x8xf32> to vector<8x8xbf16>
    %cst_19 = arith.constant dense<0.000000e+00> : vector<8x8xf32>
    %66 = tpu.matmul %65, %53, %cst_19 {dimension_numbers = #tpu.dot_dimension_numbers<[1], [0], [0], [1], [0, 0, 1, 1], [], []>} : vector<8x8xbf16>, vector<8x8xbf16>, vector<8x8xf32> -> vector<8x8xf32>
    %67 = vector.extract_strided_slice %16 {offsets = [0, 24], sizes = [8, 8], strides = [1, 1]} : vector<8x32xbf16> to vector<8x8xbf16>
    %68 = vector.extract_strided_slice %17 {offsets = [0, 24], sizes = [8, 8], strides = [1, 1]} : vector<8x32xbf16> to vector<8x8xbf16>
    %69 = vector.extract_strided_slice %18 {offsets = [0, 24], sizes = [8, 8], strides = [1, 1]} : vector<8x32xbf16> to vector<8x8xbf16>
    %cst_20 = arith.constant dense<0.000000e+00> : vector<8x8xf32>
    %70 = tpu.matmul %67, %68, %cst_20 {dimension_numbers = #tpu.dot_dimension_numbers<[1], [1], [0], [0], [0, 0, 1, 0], [], []>} : vector<8x8xbf16>, vector<8x8xbf16>, vector<8x8xf32> -> vector<8x8xf32>
    %cst_21 = arith.constant dense<0xFF800000> : vector<8xf32>
    %71 = vector.multi_reduction <maximumf>, %70, %cst_21 [1] : vector<8x8xf32> to vector<8xf32>
    %72 = vector.shape_cast %71 : vector<8xf32> to vector<8x1xf32>
    %73 = vector.broadcast %72 : vector<8x1xf32> to vector<8x8xf32>
    %74 = arith.subf %70, %73 : vector<8x8xf32>
    %75 = math.exp %74 : vector<8x8xf32>
    %cst_22 = arith.constant dense<0.000000e+00> : vector<8xf32>
    %76 = vector.multi_reduction <add>, %75, %cst_22 [1] : vector<8x8xf32> to vector<8xf32>
    %77 = vector.shape_cast %76 : vector<8xf32> to vector<8x1xf32>
    %78 = tpu.reciprocal %77 {approx = true} : vector<8x1xf32> -> vector<8x1xf32>
    %79 = vector.broadcast %78 : vector<8x1xf32> to vector<8x8xf32>
    %80 = arith.mulf %75, %79 : vector<8x8xf32>
    %81 = arith.truncf %80 : vector<8x8xf32> to vector<8x8xbf16>
    %cst_23 = arith.constant dense<0.000000e+00> : vector<8x8xf32>
    %82 = tpu.matmul %81, %69, %cst_23 {dimension_numbers = #tpu.dot_dimension_numbers<[1], [0], [0], [1], [0, 0, 1, 1], [], []>} : vector<8x8xbf16>, vector<8x8xbf16>, vector<8x8xf32> -> vector<8x8xf32>
    %83 = tpu.concatenate %34, %50, %66, %82 in 1 : vector<8x8xf32>, vector<8x8xf32>, vector<8x8xf32>, vector<8x8xf32> -> vector<8x32xf32>
    %84 = vector.extract_strided_slice %13 {offsets = [8, 0], sizes = [8, 32], strides = [1, 1]} : vector<16x32xbf16> to vector<8x32xbf16>
    %85 = vector.extract_strided_slice %14 {offsets = [8, 0], sizes = [8, 32], strides = [1, 1]} : vector<16x32xbf16> to vector<8x32xbf16>
    %86 = vector.extract_strided_slice %15 {offsets = [8, 0], sizes = [8, 32], strides = [1, 1]} : vector<16x32xbf16> to vector<8x32xbf16>
    %87 = vector.extract_strided_slice %84 {offsets = [0, 0], sizes = [8, 8], strides = [1, 1]} : vector<8x32xbf16> to vector<8x8xbf16>
    %88 = vector.extract_strided_slice %85 {offsets = [0, 0], sizes = [8, 8], strides = [1, 1]} : vector<8x32xbf16> to vector<8x8xbf16>
    %89 = vector.extract_strided_slice %86 {offsets = [0, 0], sizes = [8, 8], strides = [1, 1]} : vector<8x32xbf16> to vector<8x8xbf16>
    %cst_24 = arith.constant dense<0.000000e+00> : vector<8x8xf32>
    %90 = tpu.matmul %87, %88, %cst_24 {dimension_numbers = #tpu.dot_dimension_numbers<[1], [1], [0], [0], [0, 0, 1, 0], [], []>} : vector<8x8xbf16>, vector<8x8xbf16>, vector<8x8xf32> -> vector<8x8xf32>
    %cst_25 = arith.constant dense<0xFF800000> : vector<8xf32>
    %91 = vector.multi_reduction <maximumf>, %90, %cst_25 [1] : vector<8x8xf32> to vector<8xf32>
    %92 = vector.shape_cast %91 : vector<8xf32> to vector<8x1xf32>
    %93 = vector.broadcast %92 : vector<8x1xf32> to vector<8x8xf32>
    %94 = arith.subf %90, %93 : vector<8x8xf32>
    %95 = math.exp %94 : vector<8x8xf32>
    %cst_26 = arith.constant dense<0.000000e+00> : vector<8xf32>
    %96 = vector.multi_reduction <add>, %95, %cst_26 [1] : vector<8x8xf32> to vector<8xf32>
    %97 = vector.shape_cast %96 : vector<8xf32> to vector<8x1xf32>
    %98 = tpu.reciprocal %97 {approx = true} : vector<8x1xf32> -> vector<8x1xf32>
    %99 = vector.broadcast %98 : vector<8x1xf32> to vector<8x8xf32>
    %100 = arith.mulf %95, %99 : vector<8x8xf32>
    %101 = arith.truncf %100 : vector<8x8xf32> to vector<8x8xbf16>
    %cst_27 = arith.constant dense<0.000000e+00> : vector<8x8xf32>
    %102 = tpu.matmul %101, %89, %cst_27 {dimension_numbers = #tpu.dot_dimension_numbers<[1], [0], [0], [1], [0, 0, 1, 1], [], []>} : vector<8x8xbf16>, vector<8x8xbf16>, vector<8x8xf32> -> vector<8x8xf32>
    %103 = vector.extract_strided_slice %84 {offsets = [0, 8], sizes = [8, 8], strides = [1, 1]} : vector<8x32xbf16> to vector<8x8xbf16>
    %104 = vector.extract_strided_slice %85 {offsets = [0, 8], sizes = [8, 8], strides = [1, 1]} : vector<8x32xbf16> to vector<8x8xbf16>
    %105 = vector.extract_strided_slice %86 {offsets = [0, 8], sizes = [8, 8], strides = [1, 1]} : vector<8x32xbf16> to vector<8x8xbf16>
    %cst_28 = arith.constant dense<0.000000e+00> : vector<8x8xf32>
    %106 = tpu.matmul %103, %104, %cst_28 {dimension_numbers = #tpu.dot_dimension_numbers<[1], [1], [0], [0], [0, 0, 1, 0], [], []>} : vector<8x8xbf16>, vector<8x8xbf16>, vector<8x8xf32> -> vector<8x8xf32>
    %cst_29 = arith.constant dense<0xFF800000> : vector<8xf32>
    %107 = vector.multi_reduction <maximumf>, %106, %cst_29 [1] : vector<8x8xf32> to vector<8xf32>
    %108 = vector.shape_cast %107 : vector<8xf32> to vector<8x1xf32>
    %109 = vector.broadcast %108 : vector<8x1xf32> to vector<8x8xf32>
    %110 = arith.subf %106, %109 : vector<8x8xf32>
    %111 = math.exp %110 : vector<8x8xf32>
    %cst_30 = arith.constant dense<0.000000e+00> : vector<8xf32>
    %112 = vector.multi_reduction <add>, %111, %cst_30 [1] : vector<8x8xf32> to vector<8xf32>
    %113 = vector.shape_cast %112 : vector<8xf32> to vector<8x1xf32>
    %114 = tpu.reciprocal %113 {approx = true} : vector<8x1xf32> -> vector<8x1xf32>
    %115 = vector.broadcast %114 : vector<8x1xf32> to vector<8x8xf32>
    %116 = arith.mulf %111, %115 : vector<8x8xf32>
    %117 = arith.truncf %116 : vector<8x8xf32> to vector<8x8xbf16>
    %cst_31 = arith.constant dense<0.000000e+00> : vector<8x8xf32>
    %118 = tpu.matmul %117, %105, %cst_31 {dimension_numbers = #tpu.dot_dimension_numbers<[1], [0], [0], [1], [0, 0, 1, 1], [], []>} : vector<8x8xbf16>, vector<8x8xbf16>, vector<8x8xf32> -> vector<8x8xf32>
    %119 = vector.extract_strided_slice %84 {offsets = [0, 16], sizes = [8, 8], strides = [1, 1]} : vector<8x32xbf16> to vector<8x8xbf16>
    %120 = vector.extract_strided_slice %85 {offsets = [0, 16], sizes = [8, 8], strides = [1, 1]} : vector<8x32xbf16> to vector<8x8xbf16>
    %121 = vector.extract_strided_slice %86 {offsets = [0, 16], sizes = [8, 8], strides = [1, 1]} : vector<8x32xbf16> to vector<8x8xbf16>
    %cst_32 = arith.constant dense<0.000000e+00> : vector<8x8xf32>
    %122 = tpu.matmul %119, %120, %cst_32 {dimension_numbers = #tpu.dot_dimension_numbers<[1], [1], [0], [0], [0, 0, 1, 0], [], []>} : vector<8x8xbf16>, vector<8x8xbf16>, vector<8x8xf32> -> vector<8x8xf32>
    %cst_33 = arith.constant dense<0xFF800000> : vector<8xf32>
    %123 = vector.multi_reduction <maximumf>, %122, %cst_33 [1] : vector<8x8xf32> to vector<8xf32>
    %124 = vector.shape_cast %123 : vector<8xf32> to vector<8x1xf32>
    %125 = vector.broadcast %124 : vector<8x1xf32> to vector<8x8xf32>
    %126 = arith.subf %122, %125 : vector<8x8xf32>
    %127 = math.exp %126 : vector<8x8xf32>
    %cst_34 = arith.constant dense<0.000000e+00> : vector<8xf32>
    %128 = vector.multi_reduction <add>, %127, %cst_34 [1] : vector<8x8xf32> to vector<8xf32>
    %129 = vector.shape_cast %128 : vector<8xf32> to vector<8x1xf32>
    %130 = tpu.reciprocal %129 {approx = true} : vector<8x1xf32> -> vector<8x1xf32>
    %131 = vector.broadcast %130 : vector<8x1xf32> to vector<8x8xf32>
    %132 = arith.mulf %127, %131 : vector<8x8xf32>
    %133 = arith.truncf %132 : vector<8x8xf32> to vector<8x8xbf16>
    %cst_35 = arith.constant dense<0.000000e+00> : vector<8x8xf32>
    %134 = tpu.matmul %133, %121, %cst_35 {dimension_numbers = #tpu.dot_dimension_numbers<[1], [0], [0], [1], [0, 0, 1, 1], [], []>} : vector<8x8xbf16>, vector<8x8xbf16>, vector<8x8xf32> -> vector<8x8xf32>
    %135 = vector.extract_strided_slice %84 {offsets = [0, 24], sizes = [8, 8], strides = [1, 1]} : vector<8x32xbf16> to vector<8x8xbf16>
    %136 = vector.extract_strided_slice %85 {offsets = [0, 24], sizes = [8, 8], strides = [1, 1]} : vector<8x32xbf16> to vector<8x8xbf16>
    %137 = vector.extract_strided_slice %86 {offsets = [0, 24], sizes = [8, 8], strides = [1, 1]} : vector<8x32xbf16> to vector<8x8xbf16>
    %cst_36 = arith.constant dense<0.000000e+00> : vector<8x8xf32>
    %138 = tpu.matmul %135, %136, %cst_36 {dimension_numbers = #tpu.dot_dimension_numbers<[1], [1], [0], [0], [0, 0, 1, 0], [], []>} : vector<8x8xbf16>, vector<8x8xbf16>, vector<8x8xf32> -> vector<8x8xf32>
    %cst_37 = arith.constant dense<0xFF800000> : vector<8xf32>
    %139 = vector.multi_reduction <maximumf>, %138, %cst_37 [1] : vector<8x8xf32> to vector<8xf32>
    %140 = vector.shape_cast %139 : vector<8xf32> to vector<8x1xf32>
    %141 = vector.broadcast %140 : vector<8x1xf32> to vector<8x8xf32>
    %142 = arith.subf %138, %141 : vector<8x8xf32>
    %143 = math.exp %142 : vector<8x8xf32>
    %cst_38 = arith.constant dense<0.000000e+00> : vector<8xf32>
    %144 = vector.multi_reduction <add>, %143, %cst_38 [1] : vector<8x8xf32> to vector<8xf32>
    %145 = vector.shape_cast %144 : vector<8xf32> to vector<8x1xf32>
    %146 = tpu.reciprocal %145 {approx = true} : vector<8x1xf32> -> vector<8x1xf32>
    %147 = vector.broadcast %146 : vector<8x1xf32> to vector<8x8xf32>
    %148 = arith.mulf %143, %147 : vector<8x8xf32>
    %149 = arith.truncf %148 : vector<8x8xf32> to vector<8x8xbf16>
    %cst_39 = arith.constant dense<0.000000e+00> : vector<8x8xf32>
    %150 = tpu.matmul %149, %137, %cst_39 {dimension_numbers = #tpu.dot_dimension_numbers<[1], [0], [0], [1], [0, 0, 1, 1], [], []>} : vector<8x8xbf16>, vector<8x8xbf16>, vector<8x8xf32> -> vector<8x8xf32>
    %151 = tpu.concatenate %102, %118, %134, %150 in 1 : vector<8x8xf32>, vector<8x8xf32>, vector<8x8xf32>, vector<8x8xf32> -> vector<8x32xf32>
    %152 = tpu.concatenate %83, %151 in 0 : vector<8x32xf32>, vector<8x32xf32> -> vector<16x32xf32>
    %153 = arith.truncf %152 : vector<16x32xf32> to vector<16x32xbf16>
    %c0_40 = arith.constant 0 : index
    %c0_41 = arith.constant 0 : index
    %154 = vector.load %arg5[%c0_40, %c0_41] : memref<32x32xbf16, #tpu.memory_space<vmem>>, vector<32x32xbf16>
    %cst_42 = arith.constant dense<0.000000e+00> : vector<16x32xf32>
    %155 = tpu.matmul %153, %154, %cst_42 {dimension_numbers = #tpu.dot_dimension_numbers<[1], [0], [0], [1], [0, 0, 1, 1], [], []>} : vector<16x32xbf16>, vector<32x32xbf16>, vector<16x32xf32> -> vector<16x32xf32>
    %c0_43 = arith.constant 0 : index
    %c0_44 = arith.constant 0 : index
    %156 = vector.load %arg6[%c0_43, %c0_44] : memref<1x32xf32, #tpu.memory_space<vmem>>, vector<1x32xf32>
    %157 = vector.broadcast %156 : vector<1x32xf32> to vector<16x32xf32>
    %158 = arith.addf %155, %157 : vector<16x32xf32>
    %159 = arith.addf %0, %158 : vector<16x32xf32>
    %c0_45 = arith.constant 0 : index
    %c0_46 = arith.constant 0 : index
    %160 = vector.load %arg7[%c0_45, %c0_46] : memref<1x32xf32, #tpu.memory_space<vmem>>, vector<1x32xf32>
    %c0_47 = arith.constant 0 : index
    %c0_48 = arith.constant 0 : index
    %161 = vector.load %arg8[%c0_47, %c0_48] : memref<1x32xf32, #tpu.memory_space<vmem>>, vector<1x32xf32>
    %cst_49 = arith.constant dense<0.000000e+00> : vector<16xf32>
    %162 = vector.multi_reduction <add>, %159, %cst_49 [1] : vector<16x32xf32> to vector<16xf32>
    %163 = vector.shape_cast %162 : vector<16xf32> to vector<16x1xf32>
    %cst_50 = arith.constant 3.200000e+01 : f32
    %164 = vector.broadcast %cst_50 : f32 to vector<16x1xf32>
    %165 = arith.divf %163, %164 : vector<16x1xf32>
    %166 = vector.broadcast %165 : vector<16x1xf32> to vector<16x32xf32>
    %167 = arith.subf %159, %166 : vector<16x32xf32>
    %168 = arith.mulf %167, %167 : vector<16x32xf32>
    %cst_51 = arith.constant dense<0.000000e+00> : vector<16xf32>
    %169 = vector.multi_reduction <add>, %168, %cst_51 [1] : vector<16x32xf32> to vector<16xf32>
    %170 = vector.shape_cast %169 : vector<16xf32> to vector<16x1xf32>
    %cst_52 = arith.constant 3.200000e+01 : f32
    %171 = vector.broadcast %cst_52 : f32 to vector<16x1xf32>
    %172 = arith.divf %170, %171 : vector<16x1xf32>
    %cst_53 = arith.constant 9.99999974E-6 : f32
    %173 = vector.broadcast %cst_53 : f32 to vector<16x1xf32>
    %174 = arith.addf %172, %173 : vector<16x1xf32>
    %175 = math.rsqrt %174 : vector<16x1xf32>
    %176 = vector.broadcast %175 : vector<16x1xf32> to vector<16x32xf32>
    %177 = arith.mulf %167, %176 : vector<16x32xf32>
    %178 = vector.broadcast %160 : vector<1x32xf32> to vector<16x32xf32>
    %179 = arith.mulf %177, %178 : vector<16x32xf32>
    %180 = vector.broadcast %161 : vector<1x32xf32> to vector<16x32xf32>
    %181 = arith.addf %179, %180 : vector<16x32xf32>
    %182 = arith.truncf %181 : vector<16x32xf32> to vector<16x32xbf16>
    %c0_54 = arith.constant 0 : index
    %c0_55 = arith.constant 0 : index
    %183 = vector.load %arg9[%c0_54, %c0_55] : memref<32x32xbf16, #tpu.memory_space<vmem>>, vector<32x32xbf16>
    %cst_56 = arith.constant dense<0.000000e+00> : vector<16x32xf32>
    %184 = tpu.matmul %182, %183, %cst_56 {dimension_numbers = #tpu.dot_dimension_numbers<[1], [0], [0], [1], [0, 0, 1, 1], [], []>} : vector<16x32xbf16>, vector<32x32xbf16>, vector<16x32xf32> -> vector<16x32xf32>
    %c0_57 = arith.constant 0 : index
    %c0_58 = arith.constant 0 : index
    %185 = vector.load %arg10[%c0_57, %c0_58] : memref<1x32xf32, #tpu.memory_space<vmem>>, vector<1x32xf32>
    %186 = vector.broadcast %185 : vector<1x32xf32> to vector<16x32xf32>
    %187 = arith.addf %184, %186 : vector<16x32xf32>
    %188 = arith.truncf %1 : vector<16x32xf32> to vector<16x32xbf16>
    %c0_59 = arith.constant 0 : index
    %c0_60 = arith.constant 0 : index
    %189 = vector.load %arg11[%c0_59, %c0_60] : memref<32x64xbf16, #tpu.memory_space<vmem>>, vector<32x64xbf16>
    %cst_61 = arith.constant dense<0.000000e+00> : vector<16x64xf32>
    %190 = tpu.matmul %188, %189, %cst_61 {dimension_numbers = #tpu.dot_dimension_numbers<[1], [0], [0], [1], [0, 0, 1, 1], [], []>} : vector<16x32xbf16>, vector<32x64xbf16>, vector<16x64xf32> -> vector<16x64xf32>
    %c0_62 = arith.constant 0 : index
    %c0_63 = arith.constant 0 : index
    %191 = vector.load %arg12[%c0_62, %c0_63] : memref<1x64xf32, #tpu.memory_space<vmem>>, vector<1x64xf32>
    %192 = vector.broadcast %191 : vector<1x64xf32> to vector<16x64xf32>
    %193 = arith.addf %190, %192 : vector<16x64xf32>
    %194 = vector.extract_strided_slice %193 {offsets = [0, 0], sizes = [16, 32], strides = [1, 1]} : vector<16x64xf32> to vector<16x32xf32>
    %195 = vector.extract_strided_slice %193 {offsets = [0, 32], sizes = [16, 32], strides = [1, 1]} : vector<16x64xf32> to vector<16x32xf32>
    %cst_64 = arith.constant 0.353553385 : f32
    %196 = vector.broadcast %cst_64 : f32 to vector<16x32xf32>
    %197 = arith.mulf %187, %196 : vector<16x32xf32>
    %198 = arith.truncf %197 : vector<16x32xf32> to vector<16x32xbf16>
    %199 = arith.truncf %194 : vector<16x32xf32> to vector<16x32xbf16>
    %200 = arith.truncf %195 : vector<16x32xf32> to vector<16x32xbf16>
    %201 = vector.extract_strided_slice %198 {offsets = [0, 0], sizes = [8, 32], strides = [1, 1]} : vector<16x32xbf16> to vector<8x32xbf16>
    %202 = vector.extract_strided_slice %199 {offsets = [0, 0], sizes = [8, 32], strides = [1, 1]} : vector<16x32xbf16> to vector<8x32xbf16>
    %203 = vector.extract_strided_slice %200 {offsets = [0, 0], sizes = [8, 32], strides = [1, 1]} : vector<16x32xbf16> to vector<8x32xbf16>
    %204 = vector.extract_strided_slice %201 {offsets = [0, 0], sizes = [8, 8], strides = [1, 1]} : vector<8x32xbf16> to vector<8x8xbf16>
    %205 = vector.extract_strided_slice %202 {offsets = [0, 0], sizes = [8, 8], strides = [1, 1]} : vector<8x32xbf16> to vector<8x8xbf16>
    %206 = vector.extract_strided_slice %203 {offsets = [0, 0], sizes = [8, 8], strides = [1, 1]} : vector<8x32xbf16> to vector<8x8xbf16>
    %cst_65 = arith.constant dense<0.000000e+00> : vector<8x8xf32>
    %207 = tpu.matmul %204, %205, %cst_65 {dimension_numbers = #tpu.dot_dimension_numbers<[1], [1], [0], [0], [0, 0, 1, 0], [], []>} : vector<8x8xbf16>, vector<8x8xbf16>, vector<8x8xf32> -> vector<8x8xf32>
    %cst_66 = arith.constant dense<0xFF800000> : vector<8xf32>
    %208 = vector.multi_reduction <maximumf>, %207, %cst_66 [1] : vector<8x8xf32> to vector<8xf32>
    %209 = vector.shape_cast %208 : vector<8xf32> to vector<8x1xf32>
    %210 = vector.broadcast %209 : vector<8x1xf32> to vector<8x8xf32>
    %211 = arith.subf %207, %210 : vector<8x8xf32>
    %212 = math.exp %211 : vector<8x8xf32>
    %cst_67 = arith.constant dense<0.000000e+00> : vector<8xf32>
    %213 = vector.multi_reduction <add>, %212, %cst_67 [1] : vector<8x8xf32> to vector<8xf32>
    %214 = vector.shape_cast %213 : vector<8xf32> to vector<8x1xf32>
    %215 = tpu.reciprocal %214 {approx = true} : vector<8x1xf32> -> vector<8x1xf32>
    %216 = vector.broadcast %215 : vector<8x1xf32> to vector<8x8xf32>
    %217 = arith.mulf %212, %216 : vector<8x8xf32>
    %218 = arith.truncf %217 : vector<8x8xf32> to vector<8x8xbf16>
    %cst_68 = arith.constant dense<0.000000e+00> : vector<8x8xf32>
    %219 = tpu.matmul %218, %206, %cst_68 {dimension_numbers = #tpu.dot_dimension_numbers<[1], [0], [0], [1], [0, 0, 1, 1], [], []>} : vector<8x8xbf16>, vector<8x8xbf16>, vector<8x8xf32> -> vector<8x8xf32>
    %220 = vector.extract_strided_slice %201 {offsets = [0, 8], sizes = [8, 8], strides = [1, 1]} : vector<8x32xbf16> to vector<8x8xbf16>
    %221 = vector.extract_strided_slice %202 {offsets = [0, 8], sizes = [8, 8], strides = [1, 1]} : vector<8x32xbf16> to vector<8x8xbf16>
    %222 = vector.extract_strided_slice %203 {offsets = [0, 8], sizes = [8, 8], strides = [1, 1]} : vector<8x32xbf16> to vector<8x8xbf16>
    %cst_69 = arith.constant dense<0.000000e+00> : vector<8x8xf32>
    %223 = tpu.matmul %220, %221, %cst_69 {dimension_numbers = #tpu.dot_dimension_numbers<[1], [1], [0], [0], [0, 0, 1, 0], [], []>} : vector<8x8xbf16>, vector<8x8xbf16>, vector<8x8xf32> -> vector<8x8xf32>
    %cst_70 = arith.constant dense<0xFF800000> : vector<8xf32>
    %224 = vector.multi_reduction <maximumf>, %223, %cst_70 [1] : vector<8x8xf32> to vector<8xf32>
    %225 = vector.shape_cast %224 : vector<8xf32> to vector<8x1xf32>
    %226 = vector.broadcast %225 : vector<8x1xf32> to vector<8x8xf32>
    %227 = arith.subf %223, %226 : vector<8x8xf32>
    %228 = math.exp %227 : vector<8x8xf32>
    %cst_71 = arith.constant dense<0.000000e+00> : vector<8xf32>
    %229 = vector.multi_reduction <add>, %228, %cst_71 [1] : vector<8x8xf32> to vector<8xf32>
    %230 = vector.shape_cast %229 : vector<8xf32> to vector<8x1xf32>
    %231 = tpu.reciprocal %230 {approx = true} : vector<8x1xf32> -> vector<8x1xf32>
    %232 = vector.broadcast %231 : vector<8x1xf32> to vector<8x8xf32>
    %233 = arith.mulf %228, %232 : vector<8x8xf32>
    %234 = arith.truncf %233 : vector<8x8xf32> to vector<8x8xbf16>
    %cst_72 = arith.constant dense<0.000000e+00> : vector<8x8xf32>
    %235 = tpu.matmul %234, %222, %cst_72 {dimension_numbers = #tpu.dot_dimension_numbers<[1], [0], [0], [1], [0, 0, 1, 1], [], []>} : vector<8x8xbf16>, vector<8x8xbf16>, vector<8x8xf32> -> vector<8x8xf32>
    %236 = vector.extract_strided_slice %201 {offsets = [0, 16], sizes = [8, 8], strides = [1, 1]} : vector<8x32xbf16> to vector<8x8xbf16>
    %237 = vector.extract_strided_slice %202 {offsets = [0, 16], sizes = [8, 8], strides = [1, 1]} : vector<8x32xbf16> to vector<8x8xbf16>
    %238 = vector.extract_strided_slice %203 {offsets = [0, 16], sizes = [8, 8], strides = [1, 1]} : vector<8x32xbf16> to vector<8x8xbf16>
    %cst_73 = arith.constant dense<0.000000e+00> : vector<8x8xf32>
    %239 = tpu.matmul %236, %237, %cst_73 {dimension_numbers = #tpu.dot_dimension_numbers<[1], [1], [0], [0], [0, 0, 1, 0], [], []>} : vector<8x8xbf16>, vector<8x8xbf16>, vector<8x8xf32> -> vector<8x8xf32>
    %cst_74 = arith.constant dense<0xFF800000> : vector<8xf32>
    %240 = vector.multi_reduction <maximumf>, %239, %cst_74 [1] : vector<8x8xf32> to vector<8xf32>
    %241 = vector.shape_cast %240 : vector<8xf32> to vector<8x1xf32>
    %242 = vector.broadcast %241 : vector<8x1xf32> to vector<8x8xf32>
    %243 = arith.subf %239, %242 : vector<8x8xf32>
    %244 = math.exp %243 : vector<8x8xf32>
    %cst_75 = arith.constant dense<0.000000e+00> : vector<8xf32>
    %245 = vector.multi_reduction <add>, %244, %cst_75 [1] : vector<8x8xf32> to vector<8xf32>
    %246 = vector.shape_cast %245 : vector<8xf32> to vector<8x1xf32>
    %247 = tpu.reciprocal %246 {approx = true} : vector<8x1xf32> -> vector<8x1xf32>
    %248 = vector.broadcast %247 : vector<8x1xf32> to vector<8x8xf32>
    %249 = arith.mulf %244, %248 : vector<8x8xf32>
    %250 = arith.truncf %249 : vector<8x8xf32> to vector<8x8xbf16>
    %cst_76 = arith.constant dense<0.000000e+00> : vector<8x8xf32>
    %251 = tpu.matmul %250, %238, %cst_76 {dimension_numbers = #tpu.dot_dimension_numbers<[1], [0], [0], [1], [0, 0, 1, 1], [], []>} : vector<8x8xbf16>, vector<8x8xbf16>, vector<8x8xf32> -> vector<8x8xf32>
    %252 = vector.extract_strided_slice %201 {offsets = [0, 24], sizes = [8, 8], strides = [1, 1]} : vector<8x32xbf16> to vector<8x8xbf16>
    %253 = vector.extract_strided_slice %202 {offsets = [0, 24], sizes = [8, 8], strides = [1, 1]} : vector<8x32xbf16> to vector<8x8xbf16>
    %254 = vector.extract_strided_slice %203 {offsets = [0, 24], sizes = [8, 8], strides = [1, 1]} : vector<8x32xbf16> to vector<8x8xbf16>
    %cst_77 = arith.constant dense<0.000000e+00> : vector<8x8xf32>
    %255 = tpu.matmul %252, %253, %cst_77 {dimension_numbers = #tpu.dot_dimension_numbers<[1], [1], [0], [0], [0, 0, 1, 0], [], []>} : vector<8x8xbf16>, vector<8x8xbf16>, vector<8x8xf32> -> vector<8x8xf32>
    %cst_78 = arith.constant dense<0xFF800000> : vector<8xf32>
    %256 = vector.multi_reduction <maximumf>, %255, %cst_78 [1] : vector<8x8xf32> to vector<8xf32>
    %257 = vector.shape_cast %256 : vector<8xf32> to vector<8x1xf32>
    %258 = vector.broadcast %257 : vector<8x1xf32> to vector<8x8xf32>
    %259 = arith.subf %255, %258 : vector<8x8xf32>
    %260 = math.exp %259 : vector<8x8xf32>
    %cst_79 = arith.constant dense<0.000000e+00> : vector<8xf32>
    %261 = vector.multi_reduction <add>, %260, %cst_79 [1] : vector<8x8xf32> to vector<8xf32>
    %262 = vector.shape_cast %261 : vector<8xf32> to vector<8x1xf32>
    %263 = tpu.reciprocal %262 {approx = true} : vector<8x1xf32> -> vector<8x1xf32>
    %264 = vector.broadcast %263 : vector<8x1xf32> to vector<8x8xf32>
    %265 = arith.mulf %260, %264 : vector<8x8xf32>
    %266 = arith.truncf %265 : vector<8x8xf32> to vector<8x8xbf16>
    %cst_80 = arith.constant dense<0.000000e+00> : vector<8x8xf32>
    %267 = tpu.matmul %266, %254, %cst_80 {dimension_numbers = #tpu.dot_dimension_numbers<[1], [0], [0], [1], [0, 0, 1, 1], [], []>} : vector<8x8xbf16>, vector<8x8xbf16>, vector<8x8xf32> -> vector<8x8xf32>
    %268 = tpu.concatenate %219, %235, %251, %267 in 1 : vector<8x8xf32>, vector<8x8xf32>, vector<8x8xf32>, vector<8x8xf32> -> vector<8x32xf32>
    %269 = vector.extract_strided_slice %198 {offsets = [8, 0], sizes = [8, 32], strides = [1, 1]} : vector<16x32xbf16> to vector<8x32xbf16>
    %270 = vector.extract_strided_slice %199 {offsets = [8, 0], sizes = [8, 32], strides = [1, 1]} : vector<16x32xbf16> to vector<8x32xbf16>
    %271 = vector.extract_strided_slice %200 {offsets = [8, 0], sizes = [8, 32], strides = [1, 1]} : vector<16x32xbf16> to vector<8x32xbf16>
    %272 = vector.extract_strided_slice %269 {offsets = [0, 0], sizes = [8, 8], strides = [1, 1]} : vector<8x32xbf16> to vector<8x8xbf16>
    %273 = vector.extract_strided_slice %270 {offsets = [0, 0], sizes = [8, 8], strides = [1, 1]} : vector<8x32xbf16> to vector<8x8xbf16>
    %274 = vector.extract_strided_slice %271 {offsets = [0, 0], sizes = [8, 8], strides = [1, 1]} : vector<8x32xbf16> to vector<8x8xbf16>
    %cst_81 = arith.constant dense<0.000000e+00> : vector<8x8xf32>
    %275 = tpu.matmul %272, %273, %cst_81 {dimension_numbers = #tpu.dot_dimension_numbers<[1], [1], [0], [0], [0, 0, 1, 0], [], []>} : vector<8x8xbf16>, vector<8x8xbf16>, vector<8x8xf32> -> vector<8x8xf32>
    %cst_82 = arith.constant dense<0xFF800000> : vector<8xf32>
    %276 = vector.multi_reduction <maximumf>, %275, %cst_82 [1] : vector<8x8xf32> to vector<8xf32>
    %277 = vector.shape_cast %276 : vector<8xf32> to vector<8x1xf32>
    %278 = vector.broadcast %277 : vector<8x1xf32> to vector<8x8xf32>
    %279 = arith.subf %275, %278 : vector<8x8xf32>
    %280 = math.exp %279 : vector<8x8xf32>
    %cst_83 = arith.constant dense<0.000000e+00> : vector<8xf32>
    %281 = vector.multi_reduction <add>, %280, %cst_83 [1] : vector<8x8xf32> to vector<8xf32>
    %282 = vector.shape_cast %281 : vector<8xf32> to vector<8x1xf32>
    %283 = tpu.reciprocal %282 {approx = true} : vector<8x1xf32> -> vector<8x1xf32>
    %284 = vector.broadcast %283 : vector<8x1xf32> to vector<8x8xf32>
    %285 = arith.mulf %280, %284 : vector<8x8xf32>
    %286 = arith.truncf %285 : vector<8x8xf32> to vector<8x8xbf16>
    %cst_84 = arith.constant dense<0.000000e+00> : vector<8x8xf32>
    %287 = tpu.matmul %286, %274, %cst_84 {dimension_numbers = #tpu.dot_dimension_numbers<[1], [0], [0], [1], [0, 0, 1, 1], [], []>} : vector<8x8xbf16>, vector<8x8xbf16>, vector<8x8xf32> -> vector<8x8xf32>
    %288 = vector.extract_strided_slice %269 {offsets = [0, 8], sizes = [8, 8], strides = [1, 1]} : vector<8x32xbf16> to vector<8x8xbf16>
    %289 = vector.extract_strided_slice %270 {offsets = [0, 8], sizes = [8, 8], strides = [1, 1]} : vector<8x32xbf16> to vector<8x8xbf16>
    %290 = vector.extract_strided_slice %271 {offsets = [0, 8], sizes = [8, 8], strides = [1, 1]} : vector<8x32xbf16> to vector<8x8xbf16>
    %cst_85 = arith.constant dense<0.000000e+00> : vector<8x8xf32>
    %291 = tpu.matmul %288, %289, %cst_85 {dimension_numbers = #tpu.dot_dimension_numbers<[1], [1], [0], [0], [0, 0, 1, 0], [], []>} : vector<8x8xbf16>, vector<8x8xbf16>, vector<8x8xf32> -> vector<8x8xf32>
    %cst_86 = arith.constant dense<0xFF800000> : vector<8xf32>
    %292 = vector.multi_reduction <maximumf>, %291, %cst_86 [1] : vector<8x8xf32> to vector<8xf32>
    %293 = vector.shape_cast %292 : vector<8xf32> to vector<8x1xf32>
    %294 = vector.broadcast %293 : vector<8x1xf32> to vector<8x8xf32>
    %295 = arith.subf %291, %294 : vector<8x8xf32>
    %296 = math.exp %295 : vector<8x8xf32>
    %cst_87 = arith.constant dense<0.000000e+00> : vector<8xf32>
    %297 = vector.multi_reduction <add>, %296, %cst_87 [1] : vector<8x8xf32> to vector<8xf32>
    %298 = vector.shape_cast %297 : vector<8xf32> to vector<8x1xf32>
    %299 = tpu.reciprocal %298 {approx = true} : vector<8x1xf32> -> vector<8x1xf32>
    %300 = vector.broadcast %299 : vector<8x1xf32> to vector<8x8xf32>
    %301 = arith.mulf %296, %300 : vector<8x8xf32>
    %302 = arith.truncf %301 : vector<8x8xf32> to vector<8x8xbf16>
    %cst_88 = arith.constant dense<0.000000e+00> : vector<8x8xf32>
    %303 = tpu.matmul %302, %290, %cst_88 {dimension_numbers = #tpu.dot_dimension_numbers<[1], [0], [0], [1], [0, 0, 1, 1], [], []>} : vector<8x8xbf16>, vector<8x8xbf16>, vector<8x8xf32> -> vector<8x8xf32>
    %304 = vector.extract_strided_slice %269 {offsets = [0, 16], sizes = [8, 8], strides = [1, 1]} : vector<8x32xbf16> to vector<8x8xbf16>
    %305 = vector.extract_strided_slice %270 {offsets = [0, 16], sizes = [8, 8], strides = [1, 1]} : vector<8x32xbf16> to vector<8x8xbf16>
    %306 = vector.extract_strided_slice %271 {offsets = [0, 16], sizes = [8, 8], strides = [1, 1]} : vector<8x32xbf16> to vector<8x8xbf16>
    %cst_89 = arith.constant dense<0.000000e+00> : vector<8x8xf32>
    %307 = tpu.matmul %304, %305, %cst_89 {dimension_numbers = #tpu.dot_dimension_numbers<[1], [1], [0], [0], [0, 0, 1, 0], [], []>} : vector<8x8xbf16>, vector<8x8xbf16>, vector<8x8xf32> -> vector<8x8xf32>
    %cst_90 = arith.constant dense<0xFF800000> : vector<8xf32>
    %308 = vector.multi_reduction <maximumf>, %307, %cst_90 [1] : vector<8x8xf32> to vector<8xf32>
    %309 = vector.shape_cast %308 : vector<8xf32> to vector<8x1xf32>
    %310 = vector.broadcast %309 : vector<8x1xf32> to vector<8x8xf32>
    %311 = arith.subf %307, %310 : vector<8x8xf32>
    %312 = math.exp %311 : vector<8x8xf32>
    %cst_91 = arith.constant dense<0.000000e+00> : vector<8xf32>
    %313 = vector.multi_reduction <add>, %312, %cst_91 [1] : vector<8x8xf32> to vector<8xf32>
    %314 = vector.shape_cast %313 : vector<8xf32> to vector<8x1xf32>
    %315 = tpu.reciprocal %314 {approx = true} : vector<8x1xf32> -> vector<8x1xf32>
    %316 = vector.broadcast %315 : vector<8x1xf32> to vector<8x8xf32>
    %317 = arith.mulf %312, %316 : vector<8x8xf32>
    %318 = arith.truncf %317 : vector<8x8xf32> to vector<8x8xbf16>
    %cst_92 = arith.constant dense<0.000000e+00> : vector<8x8xf32>
    %319 = tpu.matmul %318, %306, %cst_92 {dimension_numbers = #tpu.dot_dimension_numbers<[1], [0], [0], [1], [0, 0, 1, 1], [], []>} : vector<8x8xbf16>, vector<8x8xbf16>, vector<8x8xf32> -> vector<8x8xf32>
    %320 = vector.extract_strided_slice %269 {offsets = [0, 24], sizes = [8, 8], strides = [1, 1]} : vector<8x32xbf16> to vector<8x8xbf16>
    %321 = vector.extract_strided_slice %270 {offsets = [0, 24], sizes = [8, 8], strides = [1, 1]} : vector<8x32xbf16> to vector<8x8xbf16>
    %322 = vector.extract_strided_slice %271 {offsets = [0, 24], sizes = [8, 8], strides = [1, 1]} : vector<8x32xbf16> to vector<8x8xbf16>
    %cst_93 = arith.constant dense<0.000000e+00> : vector<8x8xf32>
    %323 = tpu.matmul %320, %321, %cst_93 {dimension_numbers = #tpu.dot_dimension_numbers<[1], [1], [0], [0], [0, 0, 1, 0], [], []>} : vector<8x8xbf16>, vector<8x8xbf16>, vector<8x8xf32> -> vector<8x8xf32>
    %cst_94 = arith.constant dense<0xFF800000> : vector<8xf32>
    %324 = vector.multi_reduction <maximumf>, %323, %cst_94 [1] : vector<8x8xf32> to vector<8xf32>
    %325 = vector.shape_cast %324 : vector<8xf32> to vector<8x1xf32>
    %326 = vector.broadcast %325 : vector<8x1xf32> to vector<8x8xf32>
    %327 = arith.subf %323, %326 : vector<8x8xf32>
    %328 = math.exp %327 : vector<8x8xf32>
    %cst_95 = arith.constant dense<0.000000e+00> : vector<8xf32>
    %329 = vector.multi_reduction <add>, %328, %cst_95 [1] : vector<8x8xf32> to vector<8xf32>
    %330 = vector.shape_cast %329 : vector<8xf32> to vector<8x1xf32>
    %331 = tpu.reciprocal %330 {approx = true} : vector<8x1xf32> -> vector<8x1xf32>
    %332 = vector.broadcast %331 : vector<8x1xf32> to vector<8x8xf32>
    %333 = arith.mulf %328, %332 : vector<8x8xf32>
    %334 = arith.truncf %333 : vector<8x8xf32> to vector<8x8xbf16>
    %cst_96 = arith.constant dense<0.000000e+00> : vector<8x8xf32>
    %335 = tpu.matmul %334, %322, %cst_96 {dimension_numbers = #tpu.dot_dimension_numbers<[1], [0], [0], [1], [0, 0, 1, 1], [], []>} : vector<8x8xbf16>, vector<8x8xbf16>, vector<8x8xf32> -> vector<8x8xf32>
    %336 = tpu.concatenate %287, %303, %319, %335 in 1 : vector<8x8xf32>, vector<8x8xf32>, vector<8x8xf32>, vector<8x8xf32> -> vector<8x32xf32>
    %337 = tpu.concatenate %268, %336 in 0 : vector<8x32xf32>, vector<8x32xf32> -> vector<16x32xf32>
    %338 = arith.truncf %337 : vector<16x32xf32> to vector<16x32xbf16>
    %c0_97 = arith.constant 0 : index
    %c0_98 = arith.constant 0 : index
    %339 = vector.load %arg13[%c0_97, %c0_98] : memref<32x32xbf16, #tpu.memory_space<vmem>>, vector<32x32xbf16>
    %cst_99 = arith.constant dense<0.000000e+00> : vector<16x32xf32>
    %340 = tpu.matmul %338, %339, %cst_99 {dimension_numbers = #tpu.dot_dimension_numbers<[1], [0], [0], [1], [0, 0, 1, 1], [], []>} : vector<16x32xbf16>, vector<32x32xbf16>, vector<16x32xf32> -> vector<16x32xf32>
    %c0_100 = arith.constant 0 : index
    %c0_101 = arith.constant 0 : index
    %341 = vector.load %arg14[%c0_100, %c0_101] : memref<1x32xf32, #tpu.memory_space<vmem>>, vector<1x32xf32>
    %342 = vector.broadcast %341 : vector<1x32xf32> to vector<16x32xf32>
    %343 = arith.addf %340, %342 : vector<16x32xf32>
    %344 = arith.addf %181, %343 : vector<16x32xf32>
    %c0_102 = arith.constant 0 : index
    %c0_103 = arith.constant 0 : index
    %345 = vector.load %arg15[%c0_102, %c0_103] : memref<1x32xf32, #tpu.memory_space<vmem>>, vector<1x32xf32>
    %c0_104 = arith.constant 0 : index
    %c0_105 = arith.constant 0 : index
    %346 = vector.load %arg16[%c0_104, %c0_105] : memref<1x32xf32, #tpu.memory_space<vmem>>, vector<1x32xf32>
    %cst_106 = arith.constant dense<0.000000e+00> : vector<16xf32>
    %347 = vector.multi_reduction <add>, %344, %cst_106 [1] : vector<16x32xf32> to vector<16xf32>
    %348 = vector.shape_cast %347 : vector<16xf32> to vector<16x1xf32>
    %cst_107 = arith.constant 3.200000e+01 : f32
    %349 = vector.broadcast %cst_107 : f32 to vector<16x1xf32>
    %350 = arith.divf %348, %349 : vector<16x1xf32>
    %351 = vector.broadcast %350 : vector<16x1xf32> to vector<16x32xf32>
    %352 = arith.subf %344, %351 : vector<16x32xf32>
    %353 = arith.mulf %352, %352 : vector<16x32xf32>
    %cst_108 = arith.constant dense<0.000000e+00> : vector<16xf32>
    %354 = vector.multi_reduction <add>, %353, %cst_108 [1] : vector<16x32xf32> to vector<16xf32>
    %355 = vector.shape_cast %354 : vector<16xf32> to vector<16x1xf32>
    %cst_109 = arith.constant 3.200000e+01 : f32
    %356 = vector.broadcast %cst_109 : f32 to vector<16x1xf32>
    %357 = arith.divf %355, %356 : vector<16x1xf32>
    %cst_110 = arith.constant 9.99999974E-6 : f32
    %358 = vector.broadcast %cst_110 : f32 to vector<16x1xf32>
    %359 = arith.addf %357, %358 : vector<16x1xf32>
    %360 = math.rsqrt %359 : vector<16x1xf32>
    %361 = vector.broadcast %360 : vector<16x1xf32> to vector<16x32xf32>
    %362 = arith.mulf %352, %361 : vector<16x32xf32>
    %363 = vector.broadcast %345 : vector<1x32xf32> to vector<16x32xf32>
    %364 = arith.mulf %362, %363 : vector<16x32xf32>
    %365 = vector.broadcast %346 : vector<1x32xf32> to vector<16x32xf32>
    %366 = arith.addf %364, %365 : vector<16x32xf32>
    %367 = arith.truncf %366 : vector<16x32xf32> to vector<16x32xbf16>
    %c0_111 = arith.constant 0 : index
    %c0_112 = arith.constant 0 : index
    %368 = vector.load %arg17[%c0_111, %c0_112] : memref<32x64xbf16, #tpu.memory_space<vmem>>, vector<32x64xbf16>
    %cst_113 = arith.constant dense<0.000000e+00> : vector<16x64xf32>
    %369 = tpu.matmul %367, %368, %cst_113 {dimension_numbers = #tpu.dot_dimension_numbers<[1], [0], [0], [1], [0, 0, 1, 1], [], []>} : vector<16x32xbf16>, vector<32x64xbf16>, vector<16x64xf32> -> vector<16x64xf32>
    %c0_114 = arith.constant 0 : index
    %c0_115 = arith.constant 0 : index
    %370 = vector.load %arg18[%c0_114, %c0_115] : memref<1x64xf32, #tpu.memory_space<vmem>>, vector<1x64xf32>
    %371 = vector.broadcast %370 : vector<1x64xf32> to vector<16x64xf32>
    %372 = arith.addf %369, %371 : vector<16x64xf32>
    %cst_116 = arith.constant 0.000000e+00 : f32
    %373 = vector.broadcast %cst_116 : f32 to vector<16x64xf32>
    %374 = arith.maximumf %372, %373 : vector<16x64xf32>
    %375 = arith.truncf %374 : vector<16x64xf32> to vector<16x64xbf16>
    %c0_117 = arith.constant 0 : index
    %c0_118 = arith.constant 0 : index
    %376 = vector.load %arg19[%c0_117, %c0_118] : memref<64x32xbf16, #tpu.memory_space<vmem>>, vector<64x32xbf16>
    %cst_119 = arith.constant dense<0.000000e+00> : vector<16x32xf32>
    %377 = tpu.matmul %375, %376, %cst_119 {dimension_numbers = #tpu.dot_dimension_numbers<[1], [0], [0], [1], [0, 0, 1, 1], [], []>} : vector<16x64xbf16>, vector<64x32xbf16>, vector<16x32xf32> -> vector<16x32xf32>
    %c0_120 = arith.constant 0 : index
    %c0_121 = arith.constant 0 : index
    %378 = vector.load %arg20[%c0_120, %c0_121] : memref<1x32xf32, #tpu.memory_space<vmem>>, vector<1x32xf32>
    %379 = vector.broadcast %378 : vector<1x32xf32> to vector<16x32xf32>
    %380 = arith.addf %377, %379 : vector<16x32xf32>
    %381 = arith.addf %366, %380 : vector<16x32xf32>
    %c0_122 = arith.constant 0 : index
    %c0_123 = arith.constant 0 : index
    %382 = vector.load %arg21[%c0_122, %c0_123] : memref<1x32xf32, #tpu.memory_space<vmem>>, vector<1x32xf32>
    %c0_124 = arith.constant 0 : index
    %c0_125 = arith.constant 0 : index
    %383 = vector.load %arg22[%c0_124, %c0_125] : memref<1x32xf32, #tpu.memory_space<vmem>>, vector<1x32xf32>
    %cst_126 = arith.constant dense<0.000000e+00> : vector<16xf32>
    %384 = vector.multi_reduction <add>, %381, %cst_126 [1] : vector<16x32xf32> to vector<16xf32>
    %385 = vector.shape_cast %384 : vector<16xf32> to vector<16x1xf32>
    %cst_127 = arith.constant 3.200000e+01 : f32
    %386 = vector.broadcast %cst_127 : f32 to vector<16x1xf32>
    %387 = arith.divf %385, %386 : vector<16x1xf32>
    %388 = vector.broadcast %387 : vector<16x1xf32> to vector<16x32xf32>
    %389 = arith.subf %381, %388 : vector<16x32xf32>
    %390 = arith.mulf %389, %389 : vector<16x32xf32>
    %cst_128 = arith.constant dense<0.000000e+00> : vector<16xf32>
    %391 = vector.multi_reduction <add>, %390, %cst_128 [1] : vector<16x32xf32> to vector<16xf32>
    %392 = vector.shape_cast %391 : vector<16xf32> to vector<16x1xf32>
    %cst_129 = arith.constant 3.200000e+01 : f32
    %393 = vector.broadcast %cst_129 : f32 to vector<16x1xf32>
    %394 = arith.divf %392, %393 : vector<16x1xf32>
    %cst_130 = arith.constant 9.99999974E-6 : f32
    %395 = vector.broadcast %cst_130 : f32 to vector<16x1xf32>
    %396 = arith.addf %394, %395 : vector<16x1xf32>
    %397 = math.rsqrt %396 : vector<16x1xf32>
    %398 = vector.broadcast %397 : vector<16x1xf32> to vector<16x32xf32>
    %399 = arith.mulf %389, %398 : vector<16x32xf32>
    %400 = vector.broadcast %382 : vector<1x32xf32> to vector<16x32xf32>
    %401 = arith.mulf %399, %400 : vector<16x32xf32>
    %402 = vector.broadcast %383 : vector<1x32xf32> to vector<16x32xf32>
    %403 = arith.addf %401, %402 : vector<16x32xf32>
    %c0_131 = arith.constant 0 : index
    %c0_132 = arith.constant 0 : index
    %404 = vector.load %arg23[%c0_131, %c0_132] : memref<16x32xf32, #tpu.memory_space<vmem>>, vector<16x32xf32>
    tpu.vector_store %arg23[%c0_131, %c0_132], %403 {strides = array<i32>} : memref<16x32xf32, #tpu.memory_space<vmem>>, vector<16x32xf32>,
    return
  }
  func.func @transform_0(%arg0: i32) -> (i32, i32) {
    %c0_i32 = arith.constant 0 : i32
    %c0_i32_0 = arith.constant 0 : i32
    %c0_i32_1 = arith.constant 0 : i32
    return %c0_i32, %c0_i32_0 : i32, i32
  }
  func.func @transform_1(%arg0: i32) -> (i32, i32) {
    %c0_i32 = arith.constant 0 : i32
    %c0_i32_0 = arith.constant 0 : i32
    %c0_i32_1 = arith.constant 0 : i32
    return %c0_i32, %c0_i32_0 : i32, i32
  }
  func.func @transform_2(%arg0: i32) -> (i32, i32) {
    %c0_i32 = arith.constant 0 : i32
    %c0_i32_0 = arith.constant 0 : i32
    %c0_i32_1 = arith.constant 0 : i32
    return %c0_i32, %c0_i32_0 : i32, i32
  }
  func.func @transform_3(%arg0: i32) -> (i32, i32) {
    %c0_i32 = arith.constant 0 : i32
    %c0_i32_0 = arith.constant 0 : i32
    %c0_i32_1 = arith.constant 0 : i32
    return %c0_i32, %c0_i32_0 : i32, i32
  }
  func.func @transform_4(%arg0: i32) -> (i32, i32) {
    %c0_i32 = arith.constant 0 : i32
    %c0_i32_0 = arith.constant 0 : i32
    %c0_i32_1 = arith.constant 0 : i32
    return %c0_i32, %c0_i32_0 : i32, i32
  }
  func.func @transform_5(%arg0: i32) -> (i32, i32) {
    %c0_i32 = arith.constant 0 : i32
    %c0_i32_0 = arith.constant 0 : i32
    %c0_i32_1 = arith.constant 0 : i32
    return %c0_i32, %c0_i32_0 : i32, i32
  }
  func.func @transform_6(%arg0: i32) -> (i32, i32) {
    %c0_i32 = arith.constant 0 : i32
    %c0_i32_0 = arith.constant 0 : i32
    %c0_i32_1 = arith.constant 0 : i32
    return %c0_i32, %c0_i32_0 : i32, i32
  }
  func.func @transform_7(%arg0: i32) -> (i32, i32) {
    %c0_i32 = arith.constant 0 : i32
    %c0_i32_0 = arith.constant 0 : i32
    %c0_i32_1 = arith.constant 0 : i32
    return %c0_i32, %c0_i32_0 : i32, i32
  }
  func.func @transform_8(%arg0: i32) -> (i32, i32) {
    %c0_i32 = arith.constant 0 : i32
    %c0_i32_0 = arith.constant 0 : i32
    %c0_i32_1 = arith.constant 0 : i32
    return %c0_i32, %c0_i32_0 : i32, i32
  }
  func.func @transform_9(%arg0: i32) -> (i32, i32) {
    %c0_i32 = arith.constant 0 : i32
    %c0_i32_0 = arith.constant 0 : i32
    %c0_i32_1 = arith.constant 0 : i32
    return %c0_i32, %c0_i32_0 : i32, i32
  }
  func.func @transform_10(%arg0: i32) -> (i32, i32) {
    %c0_i32 = arith.constant 0 : i32
    %c0_i32_0 = arith.constant 0 : i32
    %c0_i32_1 = arith.constant 0 : i32
    return %c0_i32, %c0_i32_0 : i32, i32
  }
  func.func @transform_11(%arg0: i32) -> (i32, i32) {
    %c0_i32 = arith.constant 0 : i32
    %c0_i32_0 = arith.constant 0 : i32
    %c0_i32_1 = arith.constant 0 : i32
    return %c0_i32, %c0_i32_0 : i32, i32
  }
  func.func @transform_12(%arg0: i32) -> (i32, i32) {
    %c0_i32 = arith.constant 0 : i32
    %c0_i32_0 = arith.constant 0 : i32
    %c0_i32_1 = arith.constant 0 : i32
    return %c0_i32, %c0_i32_0 : i32, i32
  }
  func.func @transform_13(%arg0: i32) -> (i32, i32) {
    %c0_i32 = arith.constant 0 : i32
    %c0_i32_0 = arith.constant 0 : i32
    %c0_i32_1 = arith.constant 0 : i32
    return %c0_i32, %c0_i32_0 : i32, i32
  }
  func.func @transform_14(%arg0: i32) -> (i32, i32) {
    %c0_i32 = arith.constant 0 : i32
    %c0_i32_0 = arith.constant 0 : i32
    %c0_i32_1 = arith.constant 0 : i32
    return %c0_i32, %c0_i32_0 : i32, i32
  }
  func.func @transform_15(%arg0: i32) -> (i32, i32) {
    %c0_i32 = arith.constant 0 : i32
    %c0_i32_0 = arith.constant 0 : i32
    %c0_i32_1 = arith.constant 0 : i32
    return %c0_i32, %c0_i32_0 : i32, i32
  }
  func.func @transform_16(%arg0: i32) -> (i32, i32) {
    %c0_i32 = arith.constant 0 : i32
    %c0_i32_0 = arith.constant 0 : i32
    %c0_i32_1 = arith.constant 0 : i32
    return %c0_i32, %c0_i32_0 : i32, i32
  }
  func.func @transform_17(%arg0: i32) -> (i32, i32) {
    %c0_i32 = arith.constant 0 : i32
    %c0_i32_0 = arith.constant 0 : i32
    %c0_i32_1 = arith.constant 0 : i32
    return %c0_i32, %c0_i32_0 : i32, i32
  }
  func.func @transform_18(%arg0: i32) -> (i32, i32) {
    %c0_i32 = arith.constant 0 : i32
    %c0_i32_0 = arith.constant 0 : i32
    %c0_i32_1 = arith.constant 0 : i32
    return %c0_i32, %c0_i32_0 : i32, i32
  }
  func.func @transform_19(%arg0: i32) -> (i32, i32) {
    %c0_i32 = arith.constant 0 : i32
    %c0_i32_0 = arith.constant 0 : i32
    %c0_i32_1 = arith.constant 0 : i32
    return %c0_i32, %c0_i32_0 : i32, i32
  }
  func.func @transform_20(%arg0: i32) -> (i32, i32) {
    %c0_i32 = arith.constant 0 : i32
    %c0_i32_0 = arith.constant 0 : i32
    %c0_i32_1 = arith.constant 0 : i32
    return %c0_i32, %c0_i32_0 : i32, i32
  }
  func.func @transform_21(%arg0: i32) -> (i32, i32) {
    %c0_i32 = arith.constant 0 : i32
    %c0_i32_0 = arith.constant 0 : i32
    %c0_i32_1 = arith.constant 0 : i32
    return %c0_i32, %c0_i32_0 : i32, i32
  }
  func.func @transform_22(%arg0: i32) -> (i32, i32) {
    %c0_i32 = arith.constant 0 : i32
    %c0_i32_0 = arith.constant 0 : i32
    %c0_i32_1 = arith.constant 0 : i32
    return %c0_i32, %c0_i32_0 : i32, i32
  }
}

module attributes {stable_mosaic.version = 11 : i64} {
  func.func @_norm_proj_kernel(%arg0: i32, %arg1: memref<16x32xf32, #tpu.memory_space<vmem>>, %arg2: memref<1x32xf32, #tpu.memory_space<vmem>>, %arg3: memref<1x32xf32, #tpu.memory_space<vmem>>, %arg4: memref<32x128xbf16, #tpu.memory_space<vmem>>, %arg5: memref<1x128xf32, #tpu.memory_space<vmem>>, %arg6: memref<16x128xf32, #tpu.memory_space<vmem>>) attributes {dimension_semantics = [#tpu.dimension_semantics<arbitrary>], iteration_bounds = array<i64: 1>, scalar_prefetch = 0 : i64, scratch_operands = 0 : i64, tpu.core_type = #tpu.core_type<tc>, window_params = [{pipeline_mode = #tpu.pipeline_mode<synchronous>, transform_indices = @transform_0, window_bounds = array<i64: 16, 32>}, {pipeline_mode = #tpu.pipeline_mode<synchronous>, transform_indices = @transform_1, window_bounds = array<i64: 1, 32>}, {pipeline_mode = #tpu.pipeline_mode<synchronous>, transform_indices = @transform_2, window_bounds = array<i64: 1, 32>}, {pipeline_mode = #tpu.pipeline_mode<synchronous>, transform_indices = @transform_3, window_bounds = array<i64: 32, 128>}, {pipeline_mode = #tpu.pipeline_mode<synchronous>, transform_indices = @transform_4, window_bounds = array<i64: 1, 128>}, {pipeline_mode = #tpu.pipeline_mode<synchronous>, transform_indices = @transform_5, window_bounds = array<i64: 16, 128>}]} {
    %c0 = arith.constant 0 : index
    %c0_0 = arith.constant 0 : index
    %0 = vector.load %arg1[%c0, %c0_0] : memref<16x32xf32, #tpu.memory_space<vmem>>, vector<16x32xf32>
    %c0_1 = arith.constant 0 : index
    %c0_2 = arith.constant 0 : index
    %1 = vector.load %arg2[%c0_1, %c0_2] : memref<1x32xf32, #tpu.memory_space<vmem>>, vector<1x32xf32>
    %c0_3 = arith.constant 0 : index
    %c0_4 = arith.constant 0 : index
    %2 = vector.load %arg3[%c0_3, %c0_4] : memref<1x32xf32, #tpu.memory_space<vmem>>, vector<1x32xf32>
    %cst = arith.constant dense<0.000000e+00> : vector<16xf32>
    %3 = vector.multi_reduction <add>, %0, %cst [1] : vector<16x32xf32> to vector<16xf32>
    %4 = vector.shape_cast %3 : vector<16xf32> to vector<16x1xf32>
    %cst_5 = arith.constant 3.200000e+01 : f32
    %5 = vector.broadcast %cst_5 : f32 to vector<16x1xf32>
    %6 = arith.divf %4, %5 : vector<16x1xf32>
    %7 = vector.broadcast %6 : vector<16x1xf32> to vector<16x32xf32>
    %8 = arith.subf %0, %7 : vector<16x32xf32>
    %9 = arith.mulf %8, %8 : vector<16x32xf32>
    %cst_6 = arith.constant dense<0.000000e+00> : vector<16xf32>
    %10 = vector.multi_reduction <add>, %9, %cst_6 [1] : vector<16x32xf32> to vector<16xf32>
    %11 = vector.shape_cast %10 : vector<16xf32> to vector<16x1xf32>
    %cst_7 = arith.constant 3.200000e+01 : f32
    %12 = vector.broadcast %cst_7 : f32 to vector<16x1xf32>
    %13 = arith.divf %11, %12 : vector<16x1xf32>
    %cst_8 = arith.constant 9.99999974E-6 : f32
    %14 = vector.broadcast %cst_8 : f32 to vector<16x1xf32>
    %15 = arith.addf %13, %14 : vector<16x1xf32>
    %16 = math.rsqrt %15 : vector<16x1xf32>
    %17 = vector.broadcast %16 : vector<16x1xf32> to vector<16x32xf32>
    %18 = arith.mulf %8, %17 : vector<16x32xf32>
    %19 = vector.broadcast %1 : vector<1x32xf32> to vector<16x32xf32>
    %20 = arith.mulf %18, %19 : vector<16x32xf32>
    %21 = vector.broadcast %2 : vector<1x32xf32> to vector<16x32xf32>
    %22 = arith.addf %20, %21 : vector<16x32xf32>
    %23 = arith.truncf %22 : vector<16x32xf32> to vector<16x32xbf16>
    %c0_9 = arith.constant 0 : index
    %c0_10 = arith.constant 0 : index
    %24 = vector.load %arg4[%c0_9, %c0_10] : memref<32x128xbf16, #tpu.memory_space<vmem>>, vector<32x128xbf16>
    %cst_11 = arith.constant dense<0.000000e+00> : vector<16x128xf32>
    %25 = tpu.matmul %23, %24, %cst_11 {dimension_numbers = #tpu.dot_dimension_numbers<[1], [0], [0], [1], [0, 0, 1, 1], [], []>} : vector<16x32xbf16>, vector<32x128xbf16>, vector<16x128xf32> -> vector<16x128xf32>
    %c0_12 = arith.constant 0 : index
    %c0_13 = arith.constant 0 : index
    %26 = vector.load %arg5[%c0_12, %c0_13] : memref<1x128xf32, #tpu.memory_space<vmem>>, vector<1x128xf32>
    %27 = vector.broadcast %26 : vector<1x128xf32> to vector<16x128xf32>
    %28 = arith.addf %25, %27 : vector<16x128xf32>
    %c0_14 = arith.constant 0 : index
    %c0_15 = arith.constant 0 : index
    %29 = vector.load %arg6[%c0_14, %c0_15] : memref<16x128xf32, #tpu.memory_space<vmem>>, vector<16x128xf32>
    tpu.vector_store %arg6[%c0_14, %c0_15], %28 {strides = array<i32>} : memref<16x128xf32, #tpu.memory_space<vmem>>, vector<16x128xf32>,
    return
  }
  func.func @transform_0(%arg0: i32) -> (i32, i32) {
    %c0_i32 = arith.constant 0 : i32
    %c0_i32_0 = arith.constant 0 : i32
    %c0_i32_1 = arith.constant 0 : i32
    return %c0_i32, %c0_i32_0 : i32, i32
  }
  func.func @transform_1(%arg0: i32) -> (i32, i32) {
    %c0_i32 = arith.constant 0 : i32
    %c0_i32_0 = arith.constant 0 : i32
    %c0_i32_1 = arith.constant 0 : i32
    return %c0_i32, %c0_i32_0 : i32, i32
  }
  func.func @transform_2(%arg0: i32) -> (i32, i32) {
    %c0_i32 = arith.constant 0 : i32
    %c0_i32_0 = arith.constant 0 : i32
    %c0_i32_1 = arith.constant 0 : i32
    return %c0_i32, %c0_i32_0 : i32, i32
  }
  func.func @transform_3(%arg0: i32) -> (i32, i32) {
    %c0_i32 = arith.constant 0 : i32
    %c0_i32_0 = arith.constant 0 : i32
    %c0_i32_1 = arith.constant 0 : i32
    return %c0_i32, %c0_i32_0 : i32, i32
  }
  func.func @transform_4(%arg0: i32) -> (i32, i32) {
    %c0_i32 = arith.constant 0 : i32
    %c0_i32_0 = arith.constant 0 : i32
    %c0_i32_1 = arith.constant 0 : i32
    return %c0_i32, %c0_i32_0 : i32, i32
  }
  func.func @transform_5(%arg0: i32) -> (i32, i32) {
    %c0_i32 = arith.constant 0 : i32
    %c0_i32_0 = arith.constant 0 : i32
    %c0_i32_1 = arith.constant 0 : i32
    return %c0_i32, %c0_i32_0 : i32, i32
  }
}

module attributes {stable_mosaic.version = 11 : i64} {
  func.func @_decoder_layer_kernel(%arg0: i32, %arg1: memref<16x32xf32, #tpu.memory_space<vmem>>, %arg2: memref<16x32xf32, #tpu.memory_space<vmem>>, %arg3: memref<32x96xbf16, #tpu.memory_space<vmem>>, %arg4: memref<1x96xf32, #tpu.memory_space<vmem>>, %arg5: memref<32x32xbf16, #tpu.memory_space<vmem>>, %arg6: memref<1x32xf32, #tpu.memory_space<vmem>>, %arg7: memref<1x32xf32, #tpu.memory_space<vmem>>, %arg8: memref<1x32xf32, #tpu.memory_space<vmem>>, %arg9: memref<32x32xbf16, #tpu.memory_space<vmem>>, %arg10: memref<1x32xf32, #tpu.memory_space<vmem>>, %arg11: memref<32x64xbf16, #tpu.memory_space<vmem>>, %arg12: memref<1x64xf32, #tpu.memory_space<vmem>>, %arg13: memref<32x32xbf16, #tpu.memory_space<vmem>>, %arg14: memref<1x32xf32, #tpu.memory_space<vmem>>, %arg15: memref<1x32xf32, #tpu.memory_space<vmem>>, %arg16: memref<1x32xf32, #tpu.memory_space<vmem>>, %arg17: memref<32x64xbf16, #tpu.memory_space<vmem>>, %arg18: memref<1x64xf32, #tpu.memory_space<vmem>>, %arg19: memref<64x32xbf16, #tpu.memory_space<vmem>>, %arg20: memref<1x32xf32, #tpu.memory_space<vmem>>, %arg21: memref<1x32xf32, #tpu.memory_space<vmem>>, %arg22: memref<1x32xf32, #tpu.memory_space<vmem>>, %arg23: memref<16x32xf32, #tpu.memory_space<vmem>>) attributes {dimension_semantics = [#tpu.dimension_semantics<arbitrary>], iteration_bounds = array<i64: 1>, scalar_prefetch = 0 : i64, scratch_operands = 0 : i64, tpu.core_type = #tpu.core_type<tc>, window_params = [{pipeline_mode = #tpu.pipeline_mode<synchronous>, transform_indices = @transform_0, window_bounds = array<i64: 16, 32>}, {pipeline_mode = #tpu.pipeline_mode<synchronous>, transform_indices = @transform_1, window_bounds = array<i64: 16, 32>}, {pipeline_mode = #tpu.pipeline_mode<synchronous>, transform_indices = @transform_2, window_bounds = array<i64: 32, 96>}, {pipeline_mode = #tpu.pipeline_mode<synchronous>, transform_indices = @transform_3, window_bounds = array<i64: 1, 96>}, {pipeline_mode = #tpu.pipeline_mode<synchronous>, transform_indices = @transform_4, window_bounds = array<i64: 32, 32>}, {pipeline_mode = #tpu.pipeline_mode<synchronous>, transform_indices = @transform_5, window_bounds = array<i64: 1, 32>}, {pipeline_mode = #tpu.pipeline_mode<synchronous>, transform_indices = @transform_6, window_bounds = array<i64: 1, 32>}, {pipeline_mode = #tpu.pipeline_mode<synchronous>, transform_indices = @transform_7, window_bounds = array<i64: 1, 32>}, {pipeline_mode = #tpu.pipeline_mode<synchronous>, transform_indices = @transform_8, window_bounds = array<i64: 32, 32>}, {pipeline_mode = #tpu.pipeline_mode<synchronous>, transform_indices = @transform_9, window_bounds = array<i64: 1, 32>}, {pipeline_mode = #tpu.pipeline_mode<synchronous>, transform_indices = @transform_10, window_bounds = array<i64: 32, 64>}, {pipeline_mode = #tpu.pipeline_mode<synchronous>, transform_indices = @transform_11, window_bounds = array<i64: 1, 64>}, {pipeline_mode = #tpu.pipeline_mode<synchronous>, transform_indices = @transform_12, window_bounds = array<i64: 32, 32>}, {pipeline_mode = #tpu.pipeline_mode<synchronous>, transform_indices = @transform_13, window_bounds = array<i64: 1, 32>}, {pipeline_mode = #tpu.pipeline_mode<synchronous>, transform_indices = @transform_14, window_bounds = array<i64: 1, 32>}, {pipeline_mode = #tpu.pipeline_mode<synchronous>, transform_indices = @transform_15, window_bounds = array<i64: 1, 32>}, {pipeline_mode = #tpu.pipeline_mode<synchronous>, transform_indices = @transform_16, window_bounds = array<i64: 32, 64>}, {pipeline_mode = #tpu.pipeline_mode<synchronous>, transform_indices = @transform_17, window_bounds = array<i64: 1, 64>}, {pipeline_mode = #tpu.pipeline_mode<synchronous>, transform_indices = @transform_18, window_bounds = array<i64: 64, 32>}, {pipeline_mode = #tpu.pipeline_mode<synchronous>, transform_indices = @transform_19, window_bounds = array<i64: 1, 32>}, {pipeline_mode = #tpu.pipeline_mode<synchronous>, transform_indices = @transform_20, window_bounds = array<i64: 1, 32>}, {pipeline_mode = #tpu.pipeline_mode<synchronous>, transform_indices = @transform_21, window_bounds = array<i64: 1, 32>}, {pipeline_mode = #tpu.pipeline_mode<synchronous>, transform_indices = @transform_22, window_bounds = array<i64: 16, 32>}]} {
    %c0 = arith.constant 0 : index
    %c0_0 = arith.constant 0 : index
    %0 = vector.load %arg1[%c0, %c0_0] : memref<16x32xf32, #tpu.memory_space<vmem>>, vector<16x32xf32>
    %c0_1 = arith.constant 0 : index
    %c0_2 = arith.constant 0 : index
    %1 = vector.load %arg2[%c0_1, %c0_2] : memref<16x32xf32, #tpu.memory_space<vmem>>, vector<16x32xf32>
    %2 = arith.truncf %0 : vector<16x32xf32> to vector<16x32xbf16>
    %c0_3 = arith.constant 0 : index
    %c0_4 = arith.constant 0 : index
    %3 = vector.load %arg3[%c0_3, %c0_4] : memref<32x96xbf16, #tpu.memory_space<vmem>>, vector<32x96xbf16>
    %cst = arith.constant dense<0.000000e+00> : vector<16x96xf32>
    %4 = tpu.matmul %2, %3, %cst {dimension_numbers = #tpu.dot_dimension_numbers<[1], [0], [0], [1], [0, 0, 1, 1], [], []>} : vector<16x32xbf16>, vector<32x96xbf16>, vector<16x96xf32> -> vector<16x96xf32>
    %c0_5 = arith.constant 0 : index
    %c0_6 = arith.constant 0 : index
    %5 = vector.load %arg4[%c0_5, %c0_6] : memref<1x96xf32, #tpu.memory_space<vmem>>, vector<1x96xf32>
    %6 = vector.broadcast %5 : vector<1x96xf32> to vector<16x96xf32>
    %7 = arith.addf %4, %6 : vector<16x96xf32>
    %8 = vector.extract_strided_slice %7 {offsets = [0, 0], sizes = [16, 32], strides = [1, 1]} : vector<16x96xf32> to vector<16x32xf32>
    %9 = vector.extract_strided_slice %7 {offsets = [0, 32], sizes = [16, 32], strides = [1, 1]} : vector<16x96xf32> to vector<16x32xf32>
    %10 = vector.extract_strided_slice %7 {offsets = [0, 64], sizes = [16, 32], strides = [1, 1]} : vector<16x96xf32> to vector<16x32xf32>
    %cst_7 = arith.constant 0.353553385 : f32
    %11 = vector.broadcast %cst_7 : f32 to vector<16x32xf32>
    %12 = arith.mulf %8, %11 : vector<16x32xf32>
    %13 = arith.truncf %12 : vector<16x32xf32> to vector<16x32xbf16>
    %14 = arith.truncf %9 : vector<16x32xf32> to vector<16x32xbf16>
    %15 = arith.truncf %10 : vector<16x32xf32> to vector<16x32xbf16>
    %16 = vector.extract_strided_slice %13 {offsets = [0, 0], sizes = [8, 32], strides = [1, 1]} : vector<16x32xbf16> to vector<8x32xbf16>
    %17 = vector.extract_strided_slice %14 {offsets = [0, 0], sizes = [8, 32], strides = [1, 1]} : vector<16x32xbf16> to vector<8x32xbf16>
    %18 = vector.extract_strided_slice %15 {offsets = [0, 0], sizes = [8, 32], strides = [1, 1]} : vector<16x32xbf16> to vector<8x32xbf16>
    %19 = vector.extract_strided_slice %16 {offsets = [0, 0], sizes = [8, 8], strides = [1, 1]} : vector<8x32xbf16> to vector<8x8xbf16>
    %20 = vector.extract_strided_slice %17 {offsets = [0, 0], sizes = [8, 8], strides = [1, 1]} : vector<8x32xbf16> to vector<8x8xbf16>
    %21 = vector.extract_strided_slice %18 {offsets = [0, 0], sizes = [8, 8], strides = [1, 1]} : vector<8x32xbf16> to vector<8x8xbf16>
    %cst_8 = arith.constant dense<0.000000e+00> : vector<8x8xf32>
    %22 = tpu.matmul %19, %20, %cst_8 {dimension_numbers = #tpu.dot_dimension_numbers<[1], [1], [0], [0], [0, 0, 1, 0], [], []>} : vector<8x8xbf16>, vector<8x8xbf16>, vector<8x8xf32> -> vector<8x8xf32>
    %cst_9 = arith.constant dense<0xFF800000> : vector<8xf32>
    %23 = vector.multi_reduction <maximumf>, %22, %cst_9 [1] : vector<8x8xf32> to vector<8xf32>
    %24 = vector.shape_cast %23 : vector<8xf32> to vector<8x1xf32>
    %25 = vector.broadcast %24 : vector<8x1xf32> to vector<8x8xf32>
    %26 = arith.subf %22, %25 : vector<8x8xf32>
    %27 = math.exp %26 : vector<8x8xf32>
    %cst_10 = arith.constant dense<0.000000e+00> : vector<8xf32>
    %28 = vector.multi_reduction <add>, %27, %cst_10 [1] : vector<8x8xf32> to vector<8xf32>
    %29 = vector.shape_cast %28 : vector<8xf32> to vector<8x1xf32>
    %30 = tpu.reciprocal %29 {approx = true} : vector<8x1xf32> -> vector<8x1xf32>
    %31 = vector.broadcast %30 : vector<8x1xf32> to vector<8x8xf32>
    %32 = arith.mulf %27, %31 : vector<8x8xf32>
    %33 = arith.truncf %32 : vector<8x8xf32> to vector<8x8xbf16>
    %cst_11 = arith.constant dense<0.000000e+00> : vector<8x8xf32>
    %34 = tpu.matmul %33, %21, %cst_11 {dimension_numbers = #tpu.dot_dimension_numbers<[1], [0], [0], [1], [0, 0, 1, 1], [], []>} : vector<8x8xbf16>, vector<8x8xbf16>, vector<8x8xf32> -> vector<8x8xf32>
    %35 = vector.extract_strided_slice %16 {offsets = [0, 8], sizes = [8, 8], strides = [1, 1]} : vector<8x32xbf16> to vector<8x8xbf16>
    %36 = vector.extract_strided_slice %17 {offsets = [0, 8], sizes = [8, 8], strides = [1, 1]} : vector<8x32xbf16> to vector<8x8xbf16>
    %37 = vector.extract_strided_slice %18 {offsets = [0, 8], sizes = [8, 8], strides = [1, 1]} : vector<8x32xbf16> to vector<8x8xbf16>
    %cst_12 = arith.constant dense<0.000000e+00> : vector<8x8xf32>
    %38 = tpu.matmul %35, %36, %cst_12 {dimension_numbers = #tpu.dot_dimension_numbers<[1], [1], [0], [0], [0, 0, 1, 0], [], []>} : vector<8x8xbf16>, vector<8x8xbf16>, vector<8x8xf32> -> vector<8x8xf32>
    %cst_13 = arith.constant dense<0xFF800000> : vector<8xf32>
    %39 = vector.multi_reduction <maximumf>, %38, %cst_13 [1] : vector<8x8xf32> to vector<8xf32>
    %40 = vector.shape_cast %39 : vector<8xf32> to vector<8x1xf32>
    %41 = vector.broadcast %40 : vector<8x1xf32> to vector<8x8xf32>
    %42 = arith.subf %38, %41 : vector<8x8xf32>
    %43 = math.exp %42 : vector<8x8xf32>
    %cst_14 = arith.constant dense<0.000000e+00> : vector<8xf32>
    %44 = vector.multi_reduction <add>, %43, %cst_14 [1] : vector<8x8xf32> to vector<8xf32>
    %45 = vector.shape_cast %44 : vector<8xf32> to vector<8x1xf32>
    %46 = tpu.reciprocal %45 {approx = true} : vector<8x1xf32> -> vector<8x1xf32>
    %47 = vector.broadcast %46 : vector<8x1xf32> to vector<8x8xf32>
    %48 = arith.mulf %43, %47 : vector<8x8xf32>
    %49 = arith.truncf %48 : vector<8x8xf32> to vector<8x8xbf16>
    %cst_15 = arith.constant dense<0.000000e+00> : vector<8x8xf32>
    %50 = tpu.matmul %49, %37, %cst_15 {dimension_numbers = #tpu.dot_dimension_numbers<[1], [0], [0], [1], [0, 0, 1, 1], [], []>} : vector<8x8xbf16>, vector<8x8xbf16>, vector<8x8xf32> -> vector<8x8xf32>
    %51 = vector.extract_strided_slice %16 {offsets = [0, 16], sizes = [8, 8], strides = [1, 1]} : vector<8x32xbf16> to vector<8x8xbf16>
    %52 = vector.extract_strided_slice %17 {offsets = [0, 16], sizes = [8, 8], strides = [1, 1]} : vector<8x32xbf16> to vector<8x8xbf16>
    %53 = vector.extract_strided_slice %18 {offsets = [0, 16], sizes = [8, 8], strides = [1, 1]} : vector<8x32xbf16> to vector<8x8xbf16>
    %cst_16 = arith.constant dense<0.000000e+00> : vector<8x8xf32>
    %54 = tpu.matmul %51, %52, %cst_16 {dimension_numbers = #tpu.dot_dimension_numbers<[1], [1], [0], [0], [0, 0, 1, 0], [], []>} : vector<8x8xbf16>, vector<8x8xbf16>, vector<8x8xf32> -> vector<8x8xf32>
    %cst_17 = arith.constant dense<0xFF800000> : vector<8xf32>
    %55 = vector.multi_reduction <maximumf>, %54, %cst_17 [1] : vector<8x8xf32> to vector<8xf32>
    %56 = vector.shape_cast %55 : vector<8xf32> to vector<8x1xf32>
    %57 = vector.broadcast %56 : vector<8x1xf32> to vector<8x8xf32>
    %58 = arith.subf %54, %57 : vector<8x8xf32>
    %59 = math.exp %58 : vector<8x8xf32>
    %cst_18 = arith.constant dense<0.000000e+00> : vector<8xf32>
    %60 = vector.multi_reduction <add>, %59, %cst_18 [1] : vector<8x8xf32> to vector<8xf32>
    %61 = vector.shape_cast %60 : vector<8xf32> to vector<8x1xf32>
    %62 = tpu.reciprocal %61 {approx = true} : vector<8x1xf32> -> vector<8x1xf32>
    %63 = vector.broadcast %62 : vector<8x1xf32> to vector<8x8xf32>
    %64 = arith.mulf %59, %63 : vector<8x8xf32>
    %65 = arith.truncf %64 : vector<8x8xf32> to vector<8x8xbf16>
    %cst_19 = arith.constant dense<0.000000e+00> : vector<8x8xf32>
    %66 = tpu.matmul %65, %53, %cst_19 {dimension_numbers = #tpu.dot_dimension_numbers<[1], [0], [0], [1], [0, 0, 1, 1], [], []>} : vector<8x8xbf16>, vector<8x8xbf16>, vector<8x8xf32> -> vector<8x8xf32>
    %67 = vector.extract_strided_slice %16 {offsets = [0, 24], sizes = [8, 8], strides = [1, 1]} : vector<8x32xbf16> to vector<8x8xbf16>
    %68 = vector.extract_strided_slice %17 {offsets = [0, 24], sizes = [8, 8], strides = [1, 1]} : vector<8x32xbf16> to vector<8x8xbf16>
    %69 = vector.extract_strided_slice %18 {offsets = [0, 24], sizes = [8, 8], strides = [1, 1]} : vector<8x32xbf16> to vector<8x8xbf16>
    %cst_20 = arith.constant dense<0.000000e+00> : vector<8x8xf32>
    %70 = tpu.matmul %67, %68, %cst_20 {dimension_numbers = #tpu.dot_dimension_numbers<[1], [1], [0], [0], [0, 0, 1, 0], [], []>} : vector<8x8xbf16>, vector<8x8xbf16>, vector<8x8xf32> -> vector<8x8xf32>
    %cst_21 = arith.constant dense<0xFF800000> : vector<8xf32>
    %71 = vector.multi_reduction <maximumf>, %70, %cst_21 [1] : vector<8x8xf32> to vector<8xf32>
    %72 = vector.shape_cast %71 : vector<8xf32> to vector<8x1xf32>
    %73 = vector.broadcast %72 : vector<8x1xf32> to vector<8x8xf32>
    %74 = arith.subf %70, %73 : vector<8x8xf32>
    %75 = math.exp %74 : vector<8x8xf32>
    %cst_22 = arith.constant dense<0.000000e+00> : vector<8xf32>
    %76 = vector.multi_reduction <add>, %75, %cst_22 [1] : vector<8x8xf32> to vector<8xf32>
    %77 = vector.shape_cast %76 : vector<8xf32> to vector<8x1xf32>
    %78 = tpu.reciprocal %77 {approx = true} : vector<8x1xf32> -> vector<8x1xf32>
    %79 = vector.broadcast %78 : vector<8x1xf32> to vector<8x8xf32>
    %80 = arith.mulf %75, %79 : vector<8x8xf32>
    %81 = arith.truncf %80 : vector<8x8xf32> to vector<8x8xbf16>
    %cst_23 = arith.constant dense<0.000000e+00> : vector<8x8xf32>
    %82 = tpu.matmul %81, %69, %cst_23 {dimension_numbers = #tpu.dot_dimension_numbers<[1], [0], [0], [1], [0, 0, 1, 1], [], []>} : vector<8x8xbf16>, vector<8x8xbf16>, vector<8x8xf32> -> vector<8x8xf32>
    %83 = tpu.concatenate %34, %50, %66, %82 in 1 : vector<8x8xf32>, vector<8x8xf32>, vector<8x8xf32>, vector<8x8xf32> -> vector<8x32xf32>
    %84 = vector.extract_strided_slice %13 {offsets = [8, 0], sizes = [8, 32], strides = [1, 1]} : vector<16x32xbf16> to vector<8x32xbf16>
    %85 = vector.extract_strided_slice %14 {offsets = [8, 0], sizes = [8, 32], strides = [1, 1]} : vector<16x32xbf16> to vector<8x32xbf16>
    %86 = vector.extract_strided_slice %15 {offsets = [8, 0], sizes = [8, 32], strides = [1, 1]} : vector<16x32xbf16> to vector<8x32xbf16>
    %87 = vector.extract_strided_slice %84 {offsets = [0, 0], sizes = [8, 8], strides = [1, 1]} : vector<8x32xbf16> to vector<8x8xbf16>
    %88 = vector.extract_strided_slice %85 {offsets = [0, 0], sizes = [8, 8], strides = [1, 1]} : vector<8x32xbf16> to vector<8x8xbf16>
    %89 = vector.extract_strided_slice %86 {offsets = [0, 0], sizes = [8, 8], strides = [1, 1]} : vector<8x32xbf16> to vector<8x8xbf16>
    %cst_24 = arith.constant dense<0.000000e+00> : vector<8x8xf32>
    %90 = tpu.matmul %87, %88, %cst_24 {dimension_numbers = #tpu.dot_dimension_numbers<[1], [1], [0], [0], [0, 0, 1, 0], [], []>} : vector<8x8xbf16>, vector<8x8xbf16>, vector<8x8xf32> -> vector<8x8xf32>
    %cst_25 = arith.constant dense<0xFF800000> : vector<8xf32>
    %91 = vector.multi_reduction <maximumf>, %90, %cst_25 [1] : vector<8x8xf32> to vector<8xf32>
    %92 = vector.shape_cast %91 : vector<8xf32> to vector<8x1xf32>
    %93 = vector.broadcast %92 : vector<8x1xf32> to vector<8x8xf32>
    %94 = arith.subf %90, %93 : vector<8x8xf32>
    %95 = math.exp %94 : vector<8x8xf32>
    %cst_26 = arith.constant dense<0.000000e+00> : vector<8xf32>
    %96 = vector.multi_reduction <add>, %95, %cst_26 [1] : vector<8x8xf32> to vector<8xf32>
    %97 = vector.shape_cast %96 : vector<8xf32> to vector<8x1xf32>
    %98 = tpu.reciprocal %97 {approx = true} : vector<8x1xf32> -> vector<8x1xf32>
    %99 = vector.broadcast %98 : vector<8x1xf32> to vector<8x8xf32>
    %100 = arith.mulf %95, %99 : vector<8x8xf32>
    %101 = arith.truncf %100 : vector<8x8xf32> to vector<8x8xbf16>
    %cst_27 = arith.constant dense<0.000000e+00> : vector<8x8xf32>
    %102 = tpu.matmul %101, %89, %cst_27 {dimension_numbers = #tpu.dot_dimension_numbers<[1], [0], [0], [1], [0, 0, 1, 1], [], []>} : vector<8x8xbf16>, vector<8x8xbf16>, vector<8x8xf32> -> vector<8x8xf32>
    %103 = vector.extract_strided_slice %84 {offsets = [0, 8], sizes = [8, 8], strides = [1, 1]} : vector<8x32xbf16> to vector<8x8xbf16>
    %104 = vector.extract_strided_slice %85 {offsets = [0, 8], sizes = [8, 8], strides = [1, 1]} : vector<8x32xbf16> to vector<8x8xbf16>
    %105 = vector.extract_strided_slice %86 {offsets = [0, 8], sizes = [8, 8], strides = [1, 1]} : vector<8x32xbf16> to vector<8x8xbf16>
    %cst_28 = arith.constant dense<0.000000e+00> : vector<8x8xf32>
    %106 = tpu.matmul %103, %104, %cst_28 {dimension_numbers = #tpu.dot_dimension_numbers<[1], [1], [0], [0], [0, 0, 1, 0], [], []>} : vector<8x8xbf16>, vector<8x8xbf16>, vector<8x8xf32> -> vector<8x8xf32>
    %cst_29 = arith.constant dense<0xFF800000> : vector<8xf32>
    %107 = vector.multi_reduction <maximumf>, %106, %cst_29 [1] : vector<8x8xf32> to vector<8xf32>
    %108 = vector.shape_cast %107 : vector<8xf32> to vector<8x1xf32>
    %109 = vector.broadcast %108 : vector<8x1xf32> to vector<8x8xf32>
    %110 = arith.subf %106, %109 : vector<8x8xf32>
    %111 = math.exp %110 : vector<8x8xf32>
    %cst_30 = arith.constant dense<0.000000e+00> : vector<8xf32>
    %112 = vector.multi_reduction <add>, %111, %cst_30 [1] : vector<8x8xf32> to vector<8xf32>
    %113 = vector.shape_cast %112 : vector<8xf32> to vector<8x1xf32>
    %114 = tpu.reciprocal %113 {approx = true} : vector<8x1xf32> -> vector<8x1xf32>
    %115 = vector.broadcast %114 : vector<8x1xf32> to vector<8x8xf32>
    %116 = arith.mulf %111, %115 : vector<8x8xf32>
    %117 = arith.truncf %116 : vector<8x8xf32> to vector<8x8xbf16>
    %cst_31 = arith.constant dense<0.000000e+00> : vector<8x8xf32>
    %118 = tpu.matmul %117, %105, %cst_31 {dimension_numbers = #tpu.dot_dimension_numbers<[1], [0], [0], [1], [0, 0, 1, 1], [], []>} : vector<8x8xbf16>, vector<8x8xbf16>, vector<8x8xf32> -> vector<8x8xf32>
    %119 = vector.extract_strided_slice %84 {offsets = [0, 16], sizes = [8, 8], strides = [1, 1]} : vector<8x32xbf16> to vector<8x8xbf16>
    %120 = vector.extract_strided_slice %85 {offsets = [0, 16], sizes = [8, 8], strides = [1, 1]} : vector<8x32xbf16> to vector<8x8xbf16>
    %121 = vector.extract_strided_slice %86 {offsets = [0, 16], sizes = [8, 8], strides = [1, 1]} : vector<8x32xbf16> to vector<8x8xbf16>
    %cst_32 = arith.constant dense<0.000000e+00> : vector<8x8xf32>
    %122 = tpu.matmul %119, %120, %cst_32 {dimension_numbers = #tpu.dot_dimension_numbers<[1], [1], [0], [0], [0, 0, 1, 0], [], []>} : vector<8x8xbf16>, vector<8x8xbf16>, vector<8x8xf32> -> vector<8x8xf32>
    %cst_33 = arith.constant dense<0xFF800000> : vector<8xf32>
    %123 = vector.multi_reduction <maximumf>, %122, %cst_33 [1] : vector<8x8xf32> to vector<8xf32>
    %124 = vector.shape_cast %123 : vector<8xf32> to vector<8x1xf32>
    %125 = vector.broadcast %124 : vector<8x1xf32> to vector<8x8xf32>
    %126 = arith.subf %122, %125 : vector<8x8xf32>
    %127 = math.exp %126 : vector<8x8xf32>
    %cst_34 = arith.constant dense<0.000000e+00> : vector<8xf32>
    %128 = vector.multi_reduction <add>, %127, %cst_34 [1] : vector<8x8xf32> to vector<8xf32>
    %129 = vector.shape_cast %128 : vector<8xf32> to vector<8x1xf32>
    %130 = tpu.reciprocal %129 {approx = true} : vector<8x1xf32> -> vector<8x1xf32>
    %131 = vector.broadcast %130 : vector<8x1xf32> to vector<8x8xf32>
    %132 = arith.mulf %127, %131 : vector<8x8xf32>
    %133 = arith.truncf %132 : vector<8x8xf32> to vector<8x8xbf16>
    %cst_35 = arith.constant dense<0.000000e+00> : vector<8x8xf32>
    %134 = tpu.matmul %133, %121, %cst_35 {dimension_numbers = #tpu.dot_dimension_numbers<[1], [0], [0], [1], [0, 0, 1, 1], [], []>} : vector<8x8xbf16>, vector<8x8xbf16>, vector<8x8xf32> -> vector<8x8xf32>
    %135 = vector.extract_strided_slice %84 {offsets = [0, 24], sizes = [8, 8], strides = [1, 1]} : vector<8x32xbf16> to vector<8x8xbf16>
    %136 = vector.extract_strided_slice %85 {offsets = [0, 24], sizes = [8, 8], strides = [1, 1]} : vector<8x32xbf16> to vector<8x8xbf16>
    %137 = vector.extract_strided_slice %86 {offsets = [0, 24], sizes = [8, 8], strides = [1, 1]} : vector<8x32xbf16> to vector<8x8xbf16>
    %cst_36 = arith.constant dense<0.000000e+00> : vector<8x8xf32>
    %138 = tpu.matmul %135, %136, %cst_36 {dimension_numbers = #tpu.dot_dimension_numbers<[1], [1], [0], [0], [0, 0, 1, 0], [], []>} : vector<8x8xbf16>, vector<8x8xbf16>, vector<8x8xf32> -> vector<8x8xf32>
    %cst_37 = arith.constant dense<0xFF800000> : vector<8xf32>
    %139 = vector.multi_reduction <maximumf>, %138, %cst_37 [1] : vector<8x8xf32> to vector<8xf32>
    %140 = vector.shape_cast %139 : vector<8xf32> to vector<8x1xf32>
    %141 = vector.broadcast %140 : vector<8x1xf32> to vector<8x8xf32>
    %142 = arith.subf %138, %141 : vector<8x8xf32>
    %143 = math.exp %142 : vector<8x8xf32>
    %cst_38 = arith.constant dense<0.000000e+00> : vector<8xf32>
    %144 = vector.multi_reduction <add>, %143, %cst_38 [1] : vector<8x8xf32> to vector<8xf32>
    %145 = vector.shape_cast %144 : vector<8xf32> to vector<8x1xf32>
    %146 = tpu.reciprocal %145 {approx = true} : vector<8x1xf32> -> vector<8x1xf32>
    %147 = vector.broadcast %146 : vector<8x1xf32> to vector<8x8xf32>
    %148 = arith.mulf %143, %147 : vector<8x8xf32>
    %149 = arith.truncf %148 : vector<8x8xf32> to vector<8x8xbf16>
    %cst_39 = arith.constant dense<0.000000e+00> : vector<8x8xf32>
    %150 = tpu.matmul %149, %137, %cst_39 {dimension_numbers = #tpu.dot_dimension_numbers<[1], [0], [0], [1], [0, 0, 1, 1], [], []>} : vector<8x8xbf16>, vector<8x8xbf16>, vector<8x8xf32> -> vector<8x8xf32>
    %151 = tpu.concatenate %102, %118, %134, %150 in 1 : vector<8x8xf32>, vector<8x8xf32>, vector<8x8xf32>, vector<8x8xf32> -> vector<8x32xf32>
    %152 = tpu.concatenate %83, %151 in 0 : vector<8x32xf32>, vector<8x32xf32> -> vector<16x32xf32>
    %153 = arith.truncf %152 : vector<16x32xf32> to vector<16x32xbf16>
    %c0_40 = arith.constant 0 : index
    %c0_41 = arith.constant 0 : index
    %154 = vector.load %arg5[%c0_40, %c0_41] : memref<32x32xbf16, #tpu.memory_space<vmem>>, vector<32x32xbf16>
    %cst_42 = arith.constant dense<0.000000e+00> : vector<16x32xf32>
    %155 = tpu.matmul %153, %154, %cst_42 {dimension_numbers = #tpu.dot_dimension_numbers<[1], [0], [0], [1], [0, 0, 1, 1], [], []>} : vector<16x32xbf16>, vector<32x32xbf16>, vector<16x32xf32> -> vector<16x32xf32>
    %c0_43 = arith.constant 0 : index
    %c0_44 = arith.constant 0 : index
    %156 = vector.load %arg6[%c0_43, %c0_44] : memref<1x32xf32, #tpu.memory_space<vmem>>, vector<1x32xf32>
    %157 = vector.broadcast %156 : vector<1x32xf32> to vector<16x32xf32>
    %158 = arith.addf %155, %157 : vector<16x32xf32>
    %159 = arith.addf %0, %158 : vector<16x32xf32>
    %c0_45 = arith.constant 0 : index
    %c0_46 = arith.constant 0 : index
    %160 = vector.load %arg7[%c0_45, %c0_46] : memref<1x32xf32, #tpu.memory_space<vmem>>, vector<1x32xf32>
    %c0_47 = arith.constant 0 : index
    %c0_48 = arith.constant 0 : index
    %161 = vector.load %arg8[%c0_47, %c0_48] : memref<1x32xf32, #tpu.memory_space<vmem>>, vector<1x32xf32>
    %cst_49 = arith.constant dense<0.000000e+00> : vector<16xf32>
    %162 = vector.multi_reduction <add>, %159, %cst_49 [1] : vector<16x32xf32> to vector<16xf32>
    %163 = vector.shape_cast %162 : vector<16xf32> to vector<16x1xf32>
    %cst_50 = arith.constant 3.200000e+01 : f32
    %164 = vector.broadcast %cst_50 : f32 to vector<16x1xf32>
    %165 = arith.divf %163, %164 : vector<16x1xf32>
    %166 = vector.broadcast %165 : vector<16x1xf32> to vector<16x32xf32>
    %167 = arith.subf %159, %166 : vector<16x32xf32>
    %168 = arith.mulf %167, %167 : vector<16x32xf32>
    %cst_51 = arith.constant dense<0.000000e+00> : vector<16xf32>
    %169 = vector.multi_reduction <add>, %168, %cst_51 [1] : vector<16x32xf32> to vector<16xf32>
    %170 = vector.shape_cast %169 : vector<16xf32> to vector<16x1xf32>
    %cst_52 = arith.constant 3.200000e+01 : f32
    %171 = vector.broadcast %cst_52 : f32 to vector<16x1xf32>
    %172 = arith.divf %170, %171 : vector<16x1xf32>
    %cst_53 = arith.constant 9.99999974E-6 : f32
    %173 = vector.broadcast %cst_53 : f32 to vector<16x1xf32>
    %174 = arith.addf %172, %173 : vector<16x1xf32>
    %175 = math.rsqrt %174 : vector<16x1xf32>
    %176 = vector.broadcast %175 : vector<16x1xf32> to vector<16x32xf32>
    %177 = arith.mulf %167, %176 : vector<16x32xf32>
    %178 = vector.broadcast %160 : vector<1x32xf32> to vector<16x32xf32>
    %179 = arith.mulf %177, %178 : vector<16x32xf32>
    %180 = vector.broadcast %161 : vector<1x32xf32> to vector<16x32xf32>
    %181 = arith.addf %179, %180 : vector<16x32xf32>
    %182 = arith.truncf %181 : vector<16x32xf32> to vector<16x32xbf16>
    %c0_54 = arith.constant 0 : index
    %c0_55 = arith.constant 0 : index
    %183 = vector.load %arg9[%c0_54, %c0_55] : memref<32x32xbf16, #tpu.memory_space<vmem>>, vector<32x32xbf16>
    %cst_56 = arith.constant dense<0.000000e+00> : vector<16x32xf32>
    %184 = tpu.matmul %182, %183, %cst_56 {dimension_numbers = #tpu.dot_dimension_numbers<[1], [0], [0], [1], [0, 0, 1, 1], [], []>} : vector<16x32xbf16>, vector<32x32xbf16>, vector<16x32xf32> -> vector<16x32xf32>
    %c0_57 = arith.constant 0 : index
    %c0_58 = arith.constant 0 : index
    %185 = vector.load %arg10[%c0_57, %c0_58] : memref<1x32xf32, #tpu.memory_space<vmem>>, vector<1x32xf32>
    %186 = vector.broadcast %185 : vector<1x32xf32> to vector<16x32xf32>
    %187 = arith.addf %184, %186 : vector<16x32xf32>
    %188 = arith.truncf %1 : vector<16x32xf32> to vector<16x32xbf16>
    %c0_59 = arith.constant 0 : index
    %c0_60 = arith.constant 0 : index
    %189 = vector.load %arg11[%c0_59, %c0_60] : memref<32x64xbf16, #tpu.memory_space<vmem>>, vector<32x64xbf16>
    %cst_61 = arith.constant dense<0.000000e+00> : vector<16x64xf32>
    %190 = tpu.matmul %188, %189, %cst_61 {dimension_numbers = #tpu.dot_dimension_numbers<[1], [0], [0], [1], [0, 0, 1, 1], [], []>} : vector<16x32xbf16>, vector<32x64xbf16>, vector<16x64xf32> -> vector<16x64xf32>
    %c0_62 = arith.constant 0 : index
    %c0_63 = arith.constant 0 : index
    %191 = vector.load %arg12[%c0_62, %c0_63] : memref<1x64xf32, #tpu.memory_space<vmem>>, vector<1x64xf32>
    %192 = vector.broadcast %191 : vector<1x64xf32> to vector<16x64xf32>
    %193 = arith.addf %190, %192 : vector<16x64xf32>
    %194 = vector.extract_strided_slice %193 {offsets = [0, 0], sizes = [16, 32], strides = [1, 1]} : vector<16x64xf32> to vector<16x32xf32>
    %195 = vector.extract_strided_slice %193 {offsets = [0, 32], sizes = [16, 32], strides = [1, 1]} : vector<16x64xf32> to vector<16x32xf32>
    %cst_64 = arith.constant 0.353553385 : f32
    %196 = vector.broadcast %cst_64 : f32 to vector<16x32xf32>
    %197 = arith.mulf %187, %196 : vector<16x32xf32>
    %198 = arith.truncf %197 : vector<16x32xf32> to vector<16x32xbf16>
    %199 = arith.truncf %194 : vector<16x32xf32> to vector<16x32xbf16>
    %200 = arith.truncf %195 : vector<16x32xf32> to vector<16x32xbf16>
    %201 = vector.extract_strided_slice %198 {offsets = [0, 0], sizes = [8, 32], strides = [1, 1]} : vector<16x32xbf16> to vector<8x32xbf16>
    %202 = vector.extract_strided_slice %199 {offsets = [0, 0], sizes = [8, 32], strides = [1, 1]} : vector<16x32xbf16> to vector<8x32xbf16>
    %203 = vector.extract_strided_slice %200 {offsets = [0, 0], sizes = [8, 32], strides = [1, 1]} : vector<16x32xbf16> to vector<8x32xbf16>
    %204 = vector.extract_strided_slice %201 {offsets = [0, 0], sizes = [8, 8], strides = [1, 1]} : vector<8x32xbf16> to vector<8x8xbf16>
    %205 = vector.extract_strided_slice %202 {offsets = [0, 0], sizes = [8, 8], strides = [1, 1]} : vector<8x32xbf16> to vector<8x8xbf16>
    %206 = vector.extract_strided_slice %203 {offsets = [0, 0], sizes = [8, 8], strides = [1, 1]} : vector<8x32xbf16> to vector<8x8xbf16>
    %cst_65 = arith.constant dense<0.000000e+00> : vector<8x8xf32>
    %207 = tpu.matmul %204, %205, %cst_65 {dimension_numbers = #tpu.dot_dimension_numbers<[1], [1], [0], [0], [0, 0, 1, 0], [], []>} : vector<8x8xbf16>, vector<8x8xbf16>, vector<8x8xf32> -> vector<8x8xf32>
    %cst_66 = arith.constant dense<0xFF800000> : vector<8xf32>
    %208 = vector.multi_reduction <maximumf>, %207, %cst_66 [1] : vector<8x8xf32> to vector<8xf32>
    %209 = vector.shape_cast %208 : vector<8xf32> to vector<8x1xf32>
    %210 = vector.broadcast %209 : vector<8x1xf32> to vector<8x8xf32>
    %211 = arith.subf %207, %210 : vector<8x8xf32>
    %212 = math.exp %211 : vector<8x8xf32>
    %cst_67 = arith.constant dense<0.000000e+00> : vector<8xf32>
    %213 = vector.multi_reduction <add>, %212, %cst_67 [1] : vector<8x8xf32> to vector<8xf32>
    %214 = vector.shape_cast %213 : vector<8xf32> to vector<8x1xf32>
    %215 = tpu.reciprocal %214 {approx = true} : vector<8x1xf32> -> vector<8x1xf32>
    %216 = vector.broadcast %215 : vector<8x1xf32> to vector<8x8xf32>
    %217 = arith.mulf %212, %216 : vector<8x8xf32>
    %218 = arith.truncf %217 : vector<8x8xf32> to vector<8x8xbf16>
    %cst_68 = arith.constant dense<0.000000e+00> : vector<8x8xf32>
    %219 = tpu.matmul %218, %206, %cst_68 {dimension_numbers = #tpu.dot_dimension_numbers<[1], [0], [0], [1], [0, 0, 1, 1], [], []>} : vector<8x8xbf16>, vector<8x8xbf16>, vector<8x8xf32> -> vector<8x8xf32>
    %220 = vector.extract_strided_slice %201 {offsets = [0, 8], sizes = [8, 8], strides = [1, 1]} : vector<8x32xbf16> to vector<8x8xbf16>
    %221 = vector.extract_strided_slice %202 {offsets = [0, 8], sizes = [8, 8], strides = [1, 1]} : vector<8x32xbf16> to vector<8x8xbf16>
    %222 = vector.extract_strided_slice %203 {offsets = [0, 8], sizes = [8, 8], strides = [1, 1]} : vector<8x32xbf16> to vector<8x8xbf16>
    %cst_69 = arith.constant dense<0.000000e+00> : vector<8x8xf32>
    %223 = tpu.matmul %220, %221, %cst_69 {dimension_numbers = #tpu.dot_dimension_numbers<[1], [1], [0], [0], [0, 0, 1, 0], [], []>} : vector<8x8xbf16>, vector<8x8xbf16>, vector<8x8xf32> -> vector<8x8xf32>
    %cst_70 = arith.constant dense<0xFF800000> : vector<8xf32>
    %224 = vector.multi_reduction <maximumf>, %223, %cst_70 [1] : vector<8x8xf32> to vector<8xf32>
    %225 = vector.shape_cast %224 : vector<8xf32> to vector<8x1xf32>
    %226 = vector.broadcast %225 : vector<8x1xf32> to vector<8x8xf32>
    %227 = arith.subf %223, %226 : vector<8x8xf32>
    %228 = math.exp %227 : vector<8x8xf32>
    %cst_71 = arith.constant dense<0.000000e+00> : vector<8xf32>
    %229 = vector.multi_reduction <add>, %228, %cst_71 [1] : vector<8x8xf32> to vector<8xf32>
    %230 = vector.shape_cast %229 : vector<8xf32> to vector<8x1xf32>
    %231 = tpu.reciprocal %230 {approx = true} : vector<8x1xf32> -> vector<8x1xf32>
    %232 = vector.broadcast %231 : vector<8x1xf32> to vector<8x8xf32>
    %233 = arith.mulf %228, %232 : vector<8x8xf32>
    %234 = arith.truncf %233 : vector<8x8xf32> to vector<8x8xbf16>
    %cst_72 = arith.constant dense<0.000000e+00> : vector<8x8xf32>
    %235 = tpu.matmul %234, %222, %cst_72 {dimension_numbers = #tpu.dot_dimension_numbers<[1], [0], [0], [1], [0, 0, 1, 1], [], []>} : vector<8x8xbf16>, vector<8x8xbf16>, vector<8x8xf32> -> vector<8x8xf32>
    %236 = vector.extract_strided_slice %201 {offsets = [0, 16], sizes = [8, 8], strides = [1, 1]} : vector<8x32xbf16> to vector<8x8xbf16>
    %237 = vector.extract_strided_slice %202 {offsets = [0, 16], sizes = [8, 8], strides = [1, 1]} : vector<8x32xbf16> to vector<8x8xbf16>
    %238 = vector.extract_strided_slice %203 {offsets = [0, 16], sizes = [8, 8], strides = [1, 1]} : vector<8x32xbf16> to vector<8x8xbf16>
    %cst_73 = arith.constant dense<0.000000e+00> : vector<8x8xf32>
    %239 = tpu.matmul %236, %237, %cst_73 {dimension_numbers = #tpu.dot_dimension_numbers<[1], [1], [0], [0], [0, 0, 1, 0], [], []>} : vector<8x8xbf16>, vector<8x8xbf16>, vector<8x8xf32> -> vector<8x8xf32>
    %cst_74 = arith.constant dense<0xFF800000> : vector<8xf32>
    %240 = vector.multi_reduction <maximumf>, %239, %cst_74 [1] : vector<8x8xf32> to vector<8xf32>
    %241 = vector.shape_cast %240 : vector<8xf32> to vector<8x1xf32>
    %242 = vector.broadcast %241 : vector<8x1xf32> to vector<8x8xf32>
    %243 = arith.subf %239, %242 : vector<8x8xf32>
    %244 = math.exp %243 : vector<8x8xf32>
    %cst_75 = arith.constant dense<0.000000e+00> : vector<8xf32>
    %245 = vector.multi_reduction <add>, %244, %cst_75 [1] : vector<8x8xf32> to vector<8xf32>
    %246 = vector.shape_cast %245 : vector<8xf32> to vector<8x1xf32>
    %247 = tpu.reciprocal %246 {approx = true} : vector<8x1xf32> -> vector<8x1xf32>
    %248 = vector.broadcast %247 : vector<8x1xf32> to vector<8x8xf32>
    %249 = arith.mulf %244, %248 : vector<8x8xf32>
    %250 = arith.truncf %249 : vector<8x8xf32> to vector<8x8xbf16>
    %cst_76 = arith.constant dense<0.000000e+00> : vector<8x8xf32>
    %251 = tpu.matmul %250, %238, %cst_76 {dimension_numbers = #tpu.dot_dimension_numbers<[1], [0], [0], [1], [0, 0, 1, 1], [], []>} : vector<8x8xbf16>, vector<8x8xbf16>, vector<8x8xf32> -> vector<8x8xf32>
    %252 = vector.extract_strided_slice %201 {offsets = [0, 24], sizes = [8, 8], strides = [1, 1]} : vector<8x32xbf16> to vector<8x8xbf16>
    %253 = vector.extract_strided_slice %202 {offsets = [0, 24], sizes = [8, 8], strides = [1, 1]} : vector<8x32xbf16> to vector<8x8xbf16>
    %254 = vector.extract_strided_slice %203 {offsets = [0, 24], sizes = [8, 8], strides = [1, 1]} : vector<8x32xbf16> to vector<8x8xbf16>
    %cst_77 = arith.constant dense<0.000000e+00> : vector<8x8xf32>
    %255 = tpu.matmul %252, %253, %cst_77 {dimension_numbers = #tpu.dot_dimension_numbers<[1], [1], [0], [0], [0, 0, 1, 0], [], []>} : vector<8x8xbf16>, vector<8x8xbf16>, vector<8x8xf32> -> vector<8x8xf32>
    %cst_78 = arith.constant dense<0xFF800000> : vector<8xf32>
    %256 = vector.multi_reduction <maximumf>, %255, %cst_78 [1] : vector<8x8xf32> to vector<8xf32>
    %257 = vector.shape_cast %256 : vector<8xf32> to vector<8x1xf32>
    %258 = vector.broadcast %257 : vector<8x1xf32> to vector<8x8xf32>
    %259 = arith.subf %255, %258 : vector<8x8xf32>
    %260 = math.exp %259 : vector<8x8xf32>
    %cst_79 = arith.constant dense<0.000000e+00> : vector<8xf32>
    %261 = vector.multi_reduction <add>, %260, %cst_79 [1] : vector<8x8xf32> to vector<8xf32>
    %262 = vector.shape_cast %261 : vector<8xf32> to vector<8x1xf32>
    %263 = tpu.reciprocal %262 {approx = true} : vector<8x1xf32> -> vector<8x1xf32>
    %264 = vector.broadcast %263 : vector<8x1xf32> to vector<8x8xf32>
    %265 = arith.mulf %260, %264 : vector<8x8xf32>
    %266 = arith.truncf %265 : vector<8x8xf32> to vector<8x8xbf16>
    %cst_80 = arith.constant dense<0.000000e+00> : vector<8x8xf32>
    %267 = tpu.matmul %266, %254, %cst_80 {dimension_numbers = #tpu.dot_dimension_numbers<[1], [0], [0], [1], [0, 0, 1, 1], [], []>} : vector<8x8xbf16>, vector<8x8xbf16>, vector<8x8xf32> -> vector<8x8xf32>
    %268 = tpu.concatenate %219, %235, %251, %267 in 1 : vector<8x8xf32>, vector<8x8xf32>, vector<8x8xf32>, vector<8x8xf32> -> vector<8x32xf32>
    %269 = vector.extract_strided_slice %198 {offsets = [8, 0], sizes = [8, 32], strides = [1, 1]} : vector<16x32xbf16> to vector<8x32xbf16>
    %270 = vector.extract_strided_slice %199 {offsets = [8, 0], sizes = [8, 32], strides = [1, 1]} : vector<16x32xbf16> to vector<8x32xbf16>
    %271 = vector.extract_strided_slice %200 {offsets = [8, 0], sizes = [8, 32], strides = [1, 1]} : vector<16x32xbf16> to vector<8x32xbf16>
    %272 = vector.extract_strided_slice %269 {offsets = [0, 0], sizes = [8, 8], strides = [1, 1]} : vector<8x32xbf16> to vector<8x8xbf16>
    %273 = vector.extract_strided_slice %270 {offsets = [0, 0], sizes = [8, 8], strides = [1, 1]} : vector<8x32xbf16> to vector<8x8xbf16>
    %274 = vector.extract_strided_slice %271 {offsets = [0, 0], sizes = [8, 8], strides = [1, 1]} : vector<8x32xbf16> to vector<8x8xbf16>
    %cst_81 = arith.constant dense<0.000000e+00> : vector<8x8xf32>
    %275 = tpu.matmul %272, %273, %cst_81 {dimension_numbers = #tpu.dot_dimension_numbers<[1], [1], [0], [0], [0, 0, 1, 0], [], []>} : vector<8x8xbf16>, vector<8x8xbf16>, vector<8x8xf32> -> vector<8x8xf32>
    %cst_82 = arith.constant dense<0xFF800000> : vector<8xf32>
    %276 = vector.multi_reduction <maximumf>, %275, %cst_82 [1] : vector<8x8xf32> to vector<8xf32>
    %277 = vector.shape_cast %276 : vector<8xf32> to vector<8x1xf32>
    %278 = vector.broadcast %277 : vector<8x1xf32> to vector<8x8xf32>
    %279 = arith.subf %275, %278 : vector<8x8xf32>
    %280 = math.exp %279 : vector<8x8xf32>
    %cst_83 = arith.constant dense<0.000000e+00> : vector<8xf32>
    %281 = vector.multi_reduction <add>, %280, %cst_83 [1] : vector<8x8xf32> to vector<8xf32>
    %282 = vector.shape_cast %281 : vector<8xf32> to vector<8x1xf32>
    %283 = tpu.reciprocal %282 {approx = true} : vector<8x1xf32> -> vector<8x1xf32>
    %284 = vector.broadcast %283 : vector<8x1xf32> to vector<8x8xf32>
    %285 = arith.mulf %280, %284 : vector<8x8xf32>
    %286 = arith.truncf %285 : vector<8x8xf32> to vector<8x8xbf16>
    %cst_84 = arith.constant dense<0.000000e+00> : vector<8x8xf32>
    %287 = tpu.matmul %286, %274, %cst_84 {dimension_numbers = #tpu.dot_dimension_numbers<[1], [0], [0], [1], [0, 0, 1, 1], [], []>} : vector<8x8xbf16>, vector<8x8xbf16>, vector<8x8xf32> -> vector<8x8xf32>
    %288 = vector.extract_strided_slice %269 {offsets = [0, 8], sizes = [8, 8], strides = [1, 1]} : vector<8x32xbf16> to vector<8x8xbf16>
    %289 = vector.extract_strided_slice %270 {offsets = [0, 8], sizes = [8, 8], strides = [1, 1]} : vector<8x32xbf16> to vector<8x8xbf16>
    %290 = vector.extract_strided_slice %271 {offsets = [0, 8], sizes = [8, 8], strides = [1, 1]} : vector<8x32xbf16> to vector<8x8xbf16>
    %cst_85 = arith.constant dense<0.000000e+00> : vector<8x8xf32>
    %291 = tpu.matmul %288, %289, %cst_85 {dimension_numbers = #tpu.dot_dimension_numbers<[1], [1], [0], [0], [0, 0, 1, 0], [], []>} : vector<8x8xbf16>, vector<8x8xbf16>, vector<8x8xf32> -> vector<8x8xf32>
    %cst_86 = arith.constant dense<0xFF800000> : vector<8xf32>
    %292 = vector.multi_reduction <maximumf>, %291, %cst_86 [1] : vector<8x8xf32> to vector<8xf32>
    %293 = vector.shape_cast %292 : vector<8xf32> to vector<8x1xf32>
    %294 = vector.broadcast %293 : vector<8x1xf32> to vector<8x8xf32>
    %295 = arith.subf %291, %294 : vector<8x8xf32>
    %296 = math.exp %295 : vector<8x8xf32>
    %cst_87 = arith.constant dense<0.000000e+00> : vector<8xf32>
    %297 = vector.multi_reduction <add>, %296, %cst_87 [1] : vector<8x8xf32> to vector<8xf32>
    %298 = vector.shape_cast %297 : vector<8xf32> to vector<8x1xf32>
    %299 = tpu.reciprocal %298 {approx = true} : vector<8x1xf32> -> vector<8x1xf32>
    %300 = vector.broadcast %299 : vector<8x1xf32> to vector<8x8xf32>
    %301 = arith.mulf %296, %300 : vector<8x8xf32>
    %302 = arith.truncf %301 : vector<8x8xf32> to vector<8x8xbf16>
    %cst_88 = arith.constant dense<0.000000e+00> : vector<8x8xf32>
    %303 = tpu.matmul %302, %290, %cst_88 {dimension_numbers = #tpu.dot_dimension_numbers<[1], [0], [0], [1], [0, 0, 1, 1], [], []>} : vector<8x8xbf16>, vector<8x8xbf16>, vector<8x8xf32> -> vector<8x8xf32>
    %304 = vector.extract_strided_slice %269 {offsets = [0, 16], sizes = [8, 8], strides = [1, 1]} : vector<8x32xbf16> to vector<8x8xbf16>
    %305 = vector.extract_strided_slice %270 {offsets = [0, 16], sizes = [8, 8], strides = [1, 1]} : vector<8x32xbf16> to vector<8x8xbf16>
    %306 = vector.extract_strided_slice %271 {offsets = [0, 16], sizes = [8, 8], strides = [1, 1]} : vector<8x32xbf16> to vector<8x8xbf16>
    %cst_89 = arith.constant dense<0.000000e+00> : vector<8x8xf32>
    %307 = tpu.matmul %304, %305, %cst_89 {dimension_numbers = #tpu.dot_dimension_numbers<[1], [1], [0], [0], [0, 0, 1, 0], [], []>} : vector<8x8xbf16>, vector<8x8xbf16>, vector<8x8xf32> -> vector<8x8xf32>
    %cst_90 = arith.constant dense<0xFF800000> : vector<8xf32>
    %308 = vector.multi_reduction <maximumf>, %307, %cst_90 [1] : vector<8x8xf32> to vector<8xf32>
    %309 = vector.shape_cast %308 : vector<8xf32> to vector<8x1xf32>
    %310 = vector.broadcast %309 : vector<8x1xf32> to vector<8x8xf32>
    %311 = arith.subf %307, %310 : vector<8x8xf32>
    %312 = math.exp %311 : vector<8x8xf32>
    %cst_91 = arith.constant dense<0.000000e+00> : vector<8xf32>
    %313 = vector.multi_reduction <add>, %312, %cst_91 [1] : vector<8x8xf32> to vector<8xf32>
    %314 = vector.shape_cast %313 : vector<8xf32> to vector<8x1xf32>
    %315 = tpu.reciprocal %314 {approx = true} : vector<8x1xf32> -> vector<8x1xf32>
    %316 = vector.broadcast %315 : vector<8x1xf32> to vector<8x8xf32>
    %317 = arith.mulf %312, %316 : vector<8x8xf32>
    %318 = arith.truncf %317 : vector<8x8xf32> to vector<8x8xbf16>
    %cst_92 = arith.constant dense<0.000000e+00> : vector<8x8xf32>
    %319 = tpu.matmul %318, %306, %cst_92 {dimension_numbers = #tpu.dot_dimension_numbers<[1], [0], [0], [1], [0, 0, 1, 1], [], []>} : vector<8x8xbf16>, vector<8x8xbf16>, vector<8x8xf32> -> vector<8x8xf32>
    %320 = vector.extract_strided_slice %269 {offsets = [0, 24], sizes = [8, 8], strides = [1, 1]} : vector<8x32xbf16> to vector<8x8xbf16>
    %321 = vector.extract_strided_slice %270 {offsets = [0, 24], sizes = [8, 8], strides = [1, 1]} : vector<8x32xbf16> to vector<8x8xbf16>
    %322 = vector.extract_strided_slice %271 {offsets = [0, 24], sizes = [8, 8], strides = [1, 1]} : vector<8x32xbf16> to vector<8x8xbf16>
    %cst_93 = arith.constant dense<0.000000e+00> : vector<8x8xf32>
    %323 = tpu.matmul %320, %321, %cst_93 {dimension_numbers = #tpu.dot_dimension_numbers<[1], [1], [0], [0], [0, 0, 1, 0], [], []>} : vector<8x8xbf16>, vector<8x8xbf16>, vector<8x8xf32> -> vector<8x8xf32>
    %cst_94 = arith.constant dense<0xFF800000> : vector<8xf32>
    %324 = vector.multi_reduction <maximumf>, %323, %cst_94 [1] : vector<8x8xf32> to vector<8xf32>
    %325 = vector.shape_cast %324 : vector<8xf32> to vector<8x1xf32>
    %326 = vector.broadcast %325 : vector<8x1xf32> to vector<8x8xf32>
    %327 = arith.subf %323, %326 : vector<8x8xf32>
    %328 = math.exp %327 : vector<8x8xf32>
    %cst_95 = arith.constant dense<0.000000e+00> : vector<8xf32>
    %329 = vector.multi_reduction <add>, %328, %cst_95 [1] : vector<8x8xf32> to vector<8xf32>
    %330 = vector.shape_cast %329 : vector<8xf32> to vector<8x1xf32>
    %331 = tpu.reciprocal %330 {approx = true} : vector<8x1xf32> -> vector<8x1xf32>
    %332 = vector.broadcast %331 : vector<8x1xf32> to vector<8x8xf32>
    %333 = arith.mulf %328, %332 : vector<8x8xf32>
    %334 = arith.truncf %333 : vector<8x8xf32> to vector<8x8xbf16>
    %cst_96 = arith.constant dense<0.000000e+00> : vector<8x8xf32>
    %335 = tpu.matmul %334, %322, %cst_96 {dimension_numbers = #tpu.dot_dimension_numbers<[1], [0], [0], [1], [0, 0, 1, 1], [], []>} : vector<8x8xbf16>, vector<8x8xbf16>, vector<8x8xf32> -> vector<8x8xf32>
    %336 = tpu.concatenate %287, %303, %319, %335 in 1 : vector<8x8xf32>, vector<8x8xf32>, vector<8x8xf32>, vector<8x8xf32> -> vector<8x32xf32>
    %337 = tpu.concatenate %268, %336 in 0 : vector<8x32xf32>, vector<8x32xf32> -> vector<16x32xf32>
    %338 = arith.truncf %337 : vector<16x32xf32> to vector<16x32xbf16>
    %c0_97 = arith.constant 0 : index
    %c0_98 = arith.constant 0 : index
    %339 = vector.load %arg13[%c0_97, %c0_98] : memref<32x32xbf16, #tpu.memory_space<vmem>>, vector<32x32xbf16>
    %cst_99 = arith.constant dense<0.000000e+00> : vector<16x32xf32>
    %340 = tpu.matmul %338, %339, %cst_99 {dimension_numbers = #tpu.dot_dimension_numbers<[1], [0], [0], [1], [0, 0, 1, 1], [], []>} : vector<16x32xbf16>, vector<32x32xbf16>, vector<16x32xf32> -> vector<16x32xf32>
    %c0_100 = arith.constant 0 : index
    %c0_101 = arith.constant 0 : index
    %341 = vector.load %arg14[%c0_100, %c0_101] : memref<1x32xf32, #tpu.memory_space<vmem>>, vector<1x32xf32>
    %342 = vector.broadcast %341 : vector<1x32xf32> to vector<16x32xf32>
    %343 = arith.addf %340, %342 : vector<16x32xf32>
    %344 = arith.addf %181, %343 : vector<16x32xf32>
    %c0_102 = arith.constant 0 : index
    %c0_103 = arith.constant 0 : index
    %345 = vector.load %arg15[%c0_102, %c0_103] : memref<1x32xf32, #tpu.memory_space<vmem>>, vector<1x32xf32>
    %c0_104 = arith.constant 0 : index
    %c0_105 = arith.constant 0 : index
    %346 = vector.load %arg16[%c0_104, %c0_105] : memref<1x32xf32, #tpu.memory_space<vmem>>, vector<1x32xf32>
    %cst_106 = arith.constant dense<0.000000e+00> : vector<16xf32>
    %347 = vector.multi_reduction <add>, %344, %cst_106 [1] : vector<16x32xf32> to vector<16xf32>
    %348 = vector.shape_cast %347 : vector<16xf32> to vector<16x1xf32>
    %cst_107 = arith.constant 3.200000e+01 : f32
    %349 = vector.broadcast %cst_107 : f32 to vector<16x1xf32>
    %350 = arith.divf %348, %349 : vector<16x1xf32>
    %351 = vector.broadcast %350 : vector<16x1xf32> to vector<16x32xf32>
    %352 = arith.subf %344, %351 : vector<16x32xf32>
    %353 = arith.mulf %352, %352 : vector<16x32xf32>
    %cst_108 = arith.constant dense<0.000000e+00> : vector<16xf32>
    %354 = vector.multi_reduction <add>, %353, %cst_108 [1] : vector<16x32xf32> to vector<16xf32>
    %355 = vector.shape_cast %354 : vector<16xf32> to vector<16x1xf32>
    %cst_109 = arith.constant 3.200000e+01 : f32
    %356 = vector.broadcast %cst_109 : f32 to vector<16x1xf32>
    %357 = arith.divf %355, %356 : vector<16x1xf32>
    %cst_110 = arith.constant 9.99999974E-6 : f32
    %358 = vector.broadcast %cst_110 : f32 to vector<16x1xf32>
    %359 = arith.addf %357, %358 : vector<16x1xf32>
    %360 = math.rsqrt %359 : vector<16x1xf32>
    %361 = vector.broadcast %360 : vector<16x1xf32> to vector<16x32xf32>
    %362 = arith.mulf %352, %361 : vector<16x32xf32>
    %363 = vector.broadcast %345 : vector<1x32xf32> to vector<16x32xf32>
    %364 = arith.mulf %362, %363 : vector<16x32xf32>
    %365 = vector.broadcast %346 : vector<1x32xf32> to vector<16x32xf32>
    %366 = arith.addf %364, %365 : vector<16x32xf32>
    %367 = arith.truncf %366 : vector<16x32xf32> to vector<16x32xbf16>
    %c0_111 = arith.constant 0 : index
    %c0_112 = arith.constant 0 : index
    %368 = vector.load %arg17[%c0_111, %c0_112] : memref<32x64xbf16, #tpu.memory_space<vmem>>, vector<32x64xbf16>
    %cst_113 = arith.constant dense<0.000000e+00> : vector<16x64xf32>
    %369 = tpu.matmul %367, %368, %cst_113 {dimension_numbers = #tpu.dot_dimension_numbers<[1], [0], [0], [1], [0, 0, 1, 1], [], []>} : vector<16x32xbf16>, vector<32x64xbf16>, vector<16x64xf32> -> vector<16x64xf32>
    %c0_114 = arith.constant 0 : index
    %c0_115 = arith.constant 0 : index
    %370 = vector.load %arg18[%c0_114, %c0_115] : memref<1x64xf32, #tpu.memory_space<vmem>>, vector<1x64xf32>
    %371 = vector.broadcast %370 : vector<1x64xf32> to vector<16x64xf32>
    %372 = arith.addf %369, %371 : vector<16x64xf32>
    %cst_116 = arith.constant 0.000000e+00 : f32
    %373 = vector.broadcast %cst_116 : f32 to vector<16x64xf32>
    %374 = arith.maximumf %372, %373 : vector<16x64xf32>
    %375 = arith.truncf %374 : vector<16x64xf32> to vector<16x64xbf16>
    %c0_117 = arith.constant 0 : index
    %c0_118 = arith.constant 0 : index
    %376 = vector.load %arg19[%c0_117, %c0_118] : memref<64x32xbf16, #tpu.memory_space<vmem>>, vector<64x32xbf16>
    %cst_119 = arith.constant dense<0.000000e+00> : vector<16x32xf32>
    %377 = tpu.matmul %375, %376, %cst_119 {dimension_numbers = #tpu.dot_dimension_numbers<[1], [0], [0], [1], [0, 0, 1, 1], [], []>} : vector<16x64xbf16>, vector<64x32xbf16>, vector<16x32xf32> -> vector<16x32xf32>
    %c0_120 = arith.constant 0 : index
    %c0_121 = arith.constant 0 : index
    %378 = vector.load %arg20[%c0_120, %c0_121] : memref<1x32xf32, #tpu.memory_space<vmem>>, vector<1x32xf32>
    %379 = vector.broadcast %378 : vector<1x32xf32> to vector<16x32xf32>
    %380 = arith.addf %377, %379 : vector<16x32xf32>
    %381 = arith.addf %366, %380 : vector<16x32xf32>
    %c0_122 = arith.constant 0 : index
    %c0_123 = arith.constant 0 : index
    %382 = vector.load %arg21[%c0_122, %c0_123] : memref<1x32xf32, #tpu.memory_space<vmem>>, vector<1x32xf32>
    %c0_124 = arith.constant 0 : index
    %c0_125 = arith.constant 0 : index
    %383 = vector.load %arg22[%c0_124, %c0_125] : memref<1x32xf32, #tpu.memory_space<vmem>>, vector<1x32xf32>
    %cst_126 = arith.constant dense<0.000000e+00> : vector<16xf32>
    %384 = vector.multi_reduction <add>, %381, %cst_126 [1] : vector<16x32xf32> to vector<16xf32>
    %385 = vector.shape_cast %384 : vector<16xf32> to vector<16x1xf32>
    %cst_127 = arith.constant 3.200000e+01 : f32
    %386 = vector.broadcast %cst_127 : f32 to vector<16x1xf32>
    %387 = arith.divf %385, %386 : vector<16x1xf32>
    %388 = vector.broadcast %387 : vector<16x1xf32> to vector<16x32xf32>
    %389 = arith.subf %381, %388 : vector<16x32xf32>
    %390 = arith.mulf %389, %389 : vector<16x32xf32>
    %cst_128 = arith.constant dense<0.000000e+00> : vector<16xf32>
    %391 = vector.multi_reduction <add>, %390, %cst_128 [1] : vector<16x32xf32> to vector<16xf32>
    %392 = vector.shape_cast %391 : vector<16xf32> to vector<16x1xf32>
    %cst_129 = arith.constant 3.200000e+01 : f32
    %393 = vector.broadcast %cst_129 : f32 to vector<16x1xf32>
    %394 = arith.divf %392, %393 : vector<16x1xf32>
    %cst_130 = arith.constant 9.99999974E-6 : f32
    %395 = vector.broadcast %cst_130 : f32 to vector<16x1xf32>
    %396 = arith.addf %394, %395 : vector<16x1xf32>
    %397 = math.rsqrt %396 : vector<16x1xf32>
    %398 = vector.broadcast %397 : vector<16x1xf32> to vector<16x32xf32>
    %399 = arith.mulf %389, %398 : vector<16x32xf32>
    %400 = vector.broadcast %382 : vector<1x32xf32> to vector<16x32xf32>
    %401 = arith.mulf %399, %400 : vector<16x32xf32>
    %402 = vector.broadcast %383 : vector<1x32xf32> to vector<16x32xf32>
    %403 = arith.addf %401, %402 : vector<16x32xf32>
    %c0_131 = arith.constant 0 : index
    %c0_132 = arith.constant 0 : index
    %404 = vector.load %arg23[%c0_131, %c0_132] : memref<16x32xf32, #tpu.memory_space<vmem>>, vector<16x32xf32>
    tpu.vector_store %arg23[%c0_131, %c0_132], %403 {strides = array<i32>} : memref<16x32xf32, #tpu.memory_space<vmem>>, vector<16x32xf32>,
    return
  }
  func.func @transform_0(%arg0: i32) -> (i32, i32) {
    %c0_i32 = arith.constant 0 : i32
    %c0_i32_0 = arith.constant 0 : i32
    %c0_i32_1 = arith.constant 0 : i32
    return %c0_i32, %c0_i32_0 : i32, i32
  }
  func.func @transform_1(%arg0: i32) -> (i32, i32) {
    %c0_i32 = arith.constant 0 : i32
    %c0_i32_0 = arith.constant 0 : i32
    %c0_i32_1 = arith.constant 0 : i32
    return %c0_i32, %c0_i32_0 : i32, i32
  }
  func.func @transform_2(%arg0: i32) -> (i32, i32) {
    %c0_i32 = arith.constant 0 : i32
    %c0_i32_0 = arith.constant 0 : i32
    %c0_i32_1 = arith.constant 0 : i32
    return %c0_i32, %c0_i32_0 : i32, i32
  }
  func.func @transform_3(%arg0: i32) -> (i32, i32) {
    %c0_i32 = arith.constant 0 : i32
    %c0_i32_0 = arith.constant 0 : i32
    %c0_i32_1 = arith.constant 0 : i32
    return %c0_i32, %c0_i32_0 : i32, i32
  }
  func.func @transform_4(%arg0: i32) -> (i32, i32) {
    %c0_i32 = arith.constant 0 : i32
    %c0_i32_0 = arith.constant 0 : i32
    %c0_i32_1 = arith.constant 0 : i32
    return %c0_i32, %c0_i32_0 : i32, i32
  }
  func.func @transform_5(%arg0: i32) -> (i32, i32) {
    %c0_i32 = arith.constant 0 : i32
    %c0_i32_0 = arith.constant 0 : i32
    %c0_i32_1 = arith.constant 0 : i32
    return %c0_i32, %c0_i32_0 : i32, i32
  }
  func.func @transform_6(%arg0: i32) -> (i32, i32) {
    %c0_i32 = arith.constant 0 : i32
    %c0_i32_0 = arith.constant 0 : i32
    %c0_i32_1 = arith.constant 0 : i32
    return %c0_i32, %c0_i32_0 : i32, i32
  }
  func.func @transform_7(%arg0: i32) -> (i32, i32) {
    %c0_i32 = arith.constant 0 : i32
    %c0_i32_0 = arith.constant 0 : i32
    %c0_i32_1 = arith.constant 0 : i32
    return %c0_i32, %c0_i32_0 : i32, i32
  }
  func.func @transform_8(%arg0: i32) -> (i32, i32) {
    %c0_i32 = arith.constant 0 : i32
    %c0_i32_0 = arith.constant 0 : i32
    %c0_i32_1 = arith.constant 0 : i32
    return %c0_i32, %c0_i32_0 : i32, i32
  }
  func.func @transform_9(%arg0: i32) -> (i32, i32) {
    %c0_i32 = arith.constant 0 : i32
    %c0_i32_0 = arith.constant 0 : i32
    %c0_i32_1 = arith.constant 0 : i32
    return %c0_i32, %c0_i32_0 : i32, i32
  }
  func.func @transform_10(%arg0: i32) -> (i32, i32) {
    %c0_i32 = arith.constant 0 : i32
    %c0_i32_0 = arith.constant 0 : i32
    %c0_i32_1 = arith.constant 0 : i32
    return %c0_i32, %c0_i32_0 : i32, i32
  }
  func.func @transform_11(%arg0: i32) -> (i32, i32) {
    %c0_i32 = arith.constant 0 : i32
    %c0_i32_0 = arith.constant 0 : i32
    %c0_i32_1 = arith.constant 0 : i32
    return %c0_i32, %c0_i32_0 : i32, i32
  }
  func.func @transform_12(%arg0: i32) -> (i32, i32) {
    %c0_i32 = arith.constant 0 : i32
    %c0_i32_0 = arith.constant 0 : i32
    %c0_i32_1 = arith.constant 0 : i32
    return %c0_i32, %c0_i32_0 : i32, i32
  }
  func.func @transform_13(%arg0: i32) -> (i32, i32) {
    %c0_i32 = arith.constant 0 : i32
    %c0_i32_0 = arith.constant 0 : i32
    %c0_i32_1 = arith.constant 0 : i32
    return %c0_i32, %c0_i32_0 : i32, i32
  }
  func.func @transform_14(%arg0: i32) -> (i32, i32) {
    %c0_i32 = arith.constant 0 : i32
    %c0_i32_0 = arith.constant 0 : i32
    %c0_i32_1 = arith.constant 0 : i32
    return %c0_i32, %c0_i32_0 : i32, i32
  }
  func.func @transform_15(%arg0: i32) -> (i32, i32) {
    %c0_i32 = arith.constant 0 : i32
    %c0_i32_0 = arith.constant 0 : i32
    %c0_i32_1 = arith.constant 0 : i32
    return %c0_i32, %c0_i32_0 : i32, i32
  }
  func.func @transform_16(%arg0: i32) -> (i32, i32) {
    %c0_i32 = arith.constant 0 : i32
    %c0_i32_0 = arith.constant 0 : i32
    %c0_i32_1 = arith.constant 0 : i32
    return %c0_i32, %c0_i32_0 : i32, i32
  }
  func.func @transform_17(%arg0: i32) -> (i32, i32) {
    %c0_i32 = arith.constant 0 : i32
    %c0_i32_0 = arith.constant 0 : i32
    %c0_i32_1 = arith.constant 0 : i32
    return %c0_i32, %c0_i32_0 : i32, i32
  }
  func.func @transform_18(%arg0: i32) -> (i32, i32) {
    %c0_i32 = arith.constant 0 : i32
    %c0_i32_0 = arith.constant 0 : i32
    %c0_i32_1 = arith.constant 0 : i32
    return %c0_i32, %c0_i32_0 : i32, i32
  }
  func.func @transform_19(%arg0: i32) -> (i32, i32) {
    %c0_i32 = arith.constant 0 : i32
    %c0_i32_0 = arith.constant 0 : i32
    %c0_i32_1 = arith.constant 0 : i32
    return %c0_i32, %c0_i32_0 : i32, i32
  }
  func.func @transform_20(%arg0: i32) -> (i32, i32) {
    %c0_i32 = arith.constant 0 : i32
    %c0_i32_0 = arith.constant 0 : i32
    %c0_i32_1 = arith.constant 0 : i32
    return %c0_i32, %c0_i32_0 : i32, i32
  }
  func.func @transform_21(%arg0: i32) -> (i32, i32) {
    %c0_i32 = arith.constant 0 : i32
    %c0_i32_0 = arith.constant 0 : i32
    %c0_i32_1 = arith.constant 0 : i32
    return %c0_i32, %c0_i32_0 : i32, i32
  }
  func.func @transform_22(%arg0: i32) -> (i32, i32) {
    %c0_i32 = arith.constant 0 : i32
    %c0_i32_0 = arith.constant 0 : i32
    %c0_i32_1 = arith.constant 0 : i32
    return %c0_i32, %c0_i32_0 : i32, i32
  }
}

</mosaic_0001>

<bundles_post_ra>
// kernel: forward.8
= control target key start
LH: loop header
LB: loop body
LE: loop exit
PB: predicated region body
PF: predicated region fallthrough
CT: control target
= control target key end

     0   :  { %vm19_vm0 = vcmask 261120   ;;  %s59_s0 = inlined_call_operand.vmem [shape: f32[16,32], index: 0, kind: input, shape index: {}]   ;;  %s60_s1 = inlined_call_operand.vmem [shape: f32[16,32], index: 1, kind: input, shape index: {}]   ;;  %s61_s2 = inlined_call_operand.vmem [shape: f32[16,32], index: 2, kind: output, shape index: {}]  }
   0x1   :  { %v11_v0 = vld [vmem:[%s59_s0] sm:$0xff]  ;;  %v12_v2 = vld [vmem:[%s59_s0 + $0x8] sm:$0xff] }
   0x2   :  { %v15_v1 = vld [vmem:[%s60_s1] sm:$0xff]  ;;  %v13_v3 = vmul.f32 5.656854, %v11_v0  ;;  %v14_v4 = vmul.f32 5.656854, %v12_v2  ;;  %v16_v5 = vld [vmem:[%s60_s1 + $0x8] sm:$0xff] }
   0x4   :  { %v17_v6 = vadd.f32 %v15_v1, %v13_v3  ;;  %v18_v7 = vadd.f32 %v16_v5, %v14_v4 }
   0x6   :  { %20 = vst.msk [vmem:[%s61_s2] sm:$0xff] %vm19_vm0, %v17_v6  ;;  %21 = vst.msk [vmem:[%s61_s2 + $0x8] sm:$0xff] %vm19_vm0, %v18_v7 }

// kernel: forward.12
= control target key start
LH: loop header
LB: loop body
LE: loop exit
PB: predicated region body
PF: predicated region fallthrough
CT: control target
= control target key end

     0   :  { %vm18_vm0 = vcmask 261120   ;;  %s118_s0 = inlined_call_operand.vmem [shape: f32[16,32], index: 0, kind: input, shape index: {}]   ;;  %s119_s1 = inlined_call_operand.vmem [shape: f32[1,32], index: 1, kind: input, shape index: {}]   ;;  %s120_s2 = inlined_call_operand.vmem [shape: f32[1,32], index: 2, kind: input, shape index: {}]   ;;  %s121_s3 = inlined_call_operand.vmem [shape: f32[16,32], index: 3, kind: output, shape index: {}]  }
   0x1   :  { %v14_v0 = vld [vmem:[%s118_s0] sm:$0xff]  ;;  %v15_v1 = vld [vmem:[%s118_s0 + $0x8] sm:$0xff] }
   0x2   :  { %v19_v2 = vsel %vm18_vm0, %v14_v0, 0.0  ;;  %v22_v3 = vsel %vm18_vm0, %v15_v1, 0.0  ;;  %v68_v21 = vld [vmem:[%s119_s1] ss:$0 sm:$0xff] }
   0x3   :  { %20 = vadd.xlane.f32.xlu0 %v19_v2  ;;  %v69_v23 = vld [vmem:[%s120_s2] ss:$0 sm:$0xff] }
   0x7   :  { %23 = vadd.xlane.f32.xlu0 %v22_v3 }
  0x90   :  { %v21_v4 = vpop.xlane.xlu0 %20 }
  0x91   :  { %v26_v5 = vmul.f32 0.03125, %v21_v4 }
  0x93   :  { %v28_v6 = vsub.f32 %v14_v0, %v26_v5 }
  0x94   :  { %v24_v7 = vpop.xlane.xlu0 %23 }
  0x95   :  { %v27_v8 = vmul.f32 0.03125, %v24_v7  ;;  %v30_v9 = vmul.f32 %v28_v6, %v28_v6 }
  0x97   :  { %v29_v10 = vsub.f32 %v15_v1, %v27_v8  ;;  %v32_v11 = vsel %vm18_vm0, %v30_v9, 0.0 }
  0x98   :  { %33 = vadd.xlane.f32.xlu1 %v32_v11 }
  0x99   :  { %v31_v12 = vmul.f32 %v29_v10, %v29_v10 }
  0x9b   :  { %v35_v13 = vsel %vm18_vm0, %v31_v12, 0.0 }
  0x9c   :  { %36 = vadd.xlane.f32.xlu1 %v35_v13 }
 0x125   :  { %v34_v14 = vpop.xlane.xlu1 %33 }
 0x126   :  { %v38_v15 = vmul.f32 0.03125, %v34_v14 }
 0x128   :  { %v40_v16 = vadd.f32 1e-05, %v38_v15 }
 0x129   :  { %v37_v17 = vpop.xlane.xlu1 %36 }
 0x12a   :  { %70 = vrsqrt.f32 %v40_v16  ;;  %v39_v18 = vmul.f32 0.03125, %v37_v17 }
 0x12c   :  { %v41_v19 = vadd.f32 1e-05, %v39_v18 }
 0x12e   :  { %72 = vrsqrt.f32 %v41_v19 }
 0x134   :  { %v71_v20 = vpop.eup %70 }
 0x135   :  { %v44_v22 = vmul.f32 %v71_v20, %v28_v6 }
 0x137   :  { %v52_v24 = vmul.f32 %v68_v21, %v44_v22 }
 0x138   :  { %v73_v25 = vpop.eup %72 }
 0x139   :  { %v60_v26 = vadd.f32 %v69_v23, %v52_v24  ;;  %v45_v27 = vmul.f32 %v73_v25, %v29_v10 }
 0x13b   :  { %62 = vst.msk [vmem:[%s121_s3] sm:$0xff] %vm18_vm0, %v60_v26  ;;  %v53_v28 = vmul.f32 %v68_v21, %v45_v27 }
 0x13d   :  { %v61_v29 = vadd.f32 %v69_v23, %v53_v28 }
 0x13f   :  { %63 = vst.msk [vmem:[%s121_s3 + $0x8] sm:$0xff] %vm18_vm0, %v61_v29 }

// kernel: forward.10
= control target key start
LH: loop header
LB: loop body
LE: loop exit
PB: predicated region body
PF: predicated region fallthrough
CT: control target
= control target key end

     0   :  { %v1653_v0 = vmov 0.0   ;;  %vm1654_vm0 = vmmov 0   ;;  %vm71_vm1 = vcmask 261120   ;;  %s1656_s17 = smov 120   ;;  %s1657_s18 = smov 88   ;;  %vm123_vm2 = vcmask 64512   ;;  %s2015_s1 = inlined_call_operand.vmem [shape: bf16[32,96], index: 1, kind: input, shape index: {}]   ;;  %s2016_s0 = inlined_call_operand.vmem [shape: f32[16,32], index: 0, kind: input, shape index: {}]   ;;  %s2017_s2 = inlined_call_operand.vmem [shape: f32[1,96], index: 2, kind: input, shape index: {}]   ;;  %s2018_s3 = inlined_call_operand.vmem [shape: bf16[32,32], index: 3, kind: input, shape index: {}]   ;;  %s2019_s4 = inlined_call_operand.vmem [shape: f32[1,32], index: 4, kind: input, shape index: {}]   ;;  %s2020_s7 = inlined_call_operand.vmem [shape: bf16[32,64], index: 7, kind: input, shape index: {}]   ;;  %s2021_s9 = inlined_call_operand.vmem [shape: bf16[64,32], index: 9, kind: input, shape index: {}]   ;;  %s2022_s5 = inlined_call_operand.vmem [shape: f32[1,32], index: 5, kind: input, shape index: {}]   ;;  %s2023_s6 = inlined_call_operand.vmem [shape: f32[1,32], index: 6, kind: input, shape index: {}]   ;;  %s2024_s8 = inlined_call_operand.vmem [shape: f32[1,64], index: 8, kind: input, shape index: {}]   ;;  %s2025_s10 = inlined_call_operand.vmem [shape: f32[1,32], index: 10, kind: input, shape index: {}]   ;;  %s2026_s11 = inlined_call_operand.vmem [shape: f32[1,32], index: 11, kind: input, shape index: {}]   ;;  %s2027_s12 = inlined_call_operand.vmem [shape: f32[1,32], index: 12, kind: input, shape index: {}]   ;;  %s2028_s13 = inlined_call_operand.vmem [shape: f32[16,32], index: 13, kind: output, shape index: {}]  }
   0x1   :  { %1440 = vmatprep.subr.bf16.mxu0 %v1653_v0  ;;  %v1603_v1 = vld [vmem:[%s2015_s1] sm:$0xff]   ;;  %1444 = vmatprep.mubr.msk.bf16.mxu0 %vm1654_vm0, %v1653_v0  ;;  %v1604_v2 = vld [vmem:[%s2015_s1 + $0x8] sm:$0xff]   ;;  %s1659_s19 = smov 112   ;;  %s1660_s20 = smov 72   ;;  %vm187_vm3 = vcmask 1043456   ;;  %vm575_vm4 = vcmask 130048  }
   0x2   :  { %1448 = vmatprep.subr.bf16.mxu1 %v1653_v0  ;;  %1450 = vmatprep.mubr.msk.bf16.mxu1 %vm1654_vm0, %v1653_v0  ;;  %v1754_v3 = vld [vmem:[%s2016_s0] sm:$0xff]  ;;  %v1759_v4 = vld [vmem:[%s2016_s0 + $0x8] sm:$0xff]  ;;  %s1655_s0 = smov 96   ;;  %s1661_s21 = smov 104   ;;  %vm577_vm5 = vcmask 195584   ;;  %vm1259_vm6 = vcmask 523264  }
   0x3   :  { %1441 = vmatpush3.bf16.msra.mxu0 %v1603_v1  ;;  %v47_v5 = vpack.c.bf16 %v1759_v4, %v1754_v3  ;;  %v1356_v6 = vld [vmem:[%s2017_s2] ss:$0 sm:$0xff]  ;;  %s1658_s2 = smov 80   ;;  %s1662_s22 = smov 56  }
   0x4   :  { %1442 = vmatprep.subr.bf16.mxu0 %v1653_v0  ;;  %s1663_s23 = smov 64   ;;  %s1664_s24 = smov 48  }
   0x5   :  { %s1665_s25 = smov 40   ;;  %s1666_s28 = smov 8  }
   0x6   :  { %s1667_s14 = smov 16   ;;  %s1668_s15 = smov 24  }
   0x7   :  { %1443 = vmatpush3.bf16.msra.mxu0 %v1604_v2 }
   0x8   :  { %1454 = vmatprep.subr.bf16.mxu0 %v1653_v0 }
   0xa   :  { %1445 = vmatmul.mubr.msk.bf16.vlgmr.msra.gmra.mrb[0].mxu0 %vm71_vm1, %v47_v5 }
   0xb   :  { %1456 = vmatprep.mubr.msk.bf16.mxu0 %vm1654_vm0, %v1653_v0 }
  0xdd   :  { %v109_v7 = vpop.f32.mrb[0].mxu0 }
  0xde   :  { %v110_v8 = vadd.f32 %v1356_v6, %v109_v7  ;;  %v1446_v9 = vpop.f32.mrb[1].mxu0 }
  0xdf   :  { %v112_v10 = vpop.f32.mrb[2].mxu0 }
  0xe0   :  { %v113_v11 = vadd.f32 %v1356_v6, %v112_v10  ;;  %v1447_v12 = vpop.f32.mrb[3].mxu0  ;;  %v116_v13 = vmul.f32 0.35355338, %v110_v8 }
  0xe2   :  { %v117_v14 = vmul.f32 0.35355338, %v113_v11  ;;  %v1771_v15 = vpack.c.bf16 %v113_v11, %v110_v8 }
  0xe4   :  { %v118_v16 = vpack.c.bf16 %v117_v14, %v116_v13  ;;  %121 = vrot.lane.b32.xlu0 %v1771_v15, %s1655_s0  ;;  %v1778_v17 = vrot.slane %v1771_v15, 4 }
  0xe6   :  { %232 = vrot.lane.b32.xlu1 %v118_v16, %s1656_s17  ;;  %v579_v18 = vrot.slane %v118_v16, 4 }
  0xe8   :  { %234 = vrot.lane.b32.xlu0 %v1771_v15, %s1657_s18 }
  0xea   :  { %344 = vrot.lane.b32.xlu1 %v1771_v15, %s1658_s2 }
  0xec   :  { %342 = vrot.lane.b32.xlu0 %v118_v16, %s1659_s19 }
  0xee   :  { %454 = vrot.lane.b32.xlu1 %v1771_v15, %s1660_s20 }
  0xf0   :  { %452 = vrot.lane.b32.xlu0 %v118_v16, %s1661_s21 }
  0xf2   :  { %581 = vrot.lane.b32.xlu1 %v1778_v17, %s1655_s0 }
  0xf4   :  { %691 = vrot.lane.b32.xlu0 %v1778_v17, %s1657_s18 }
  0xf6   :  { %689 = vrot.lane.b32.xlu1 %v579_v18, %s1656_s17 }
  0xf8   :  { %801 = vrot.lane.b32.xlu0 %v1778_v17, %s1658_s2 }
  0xfa   :  { %799 = vrot.lane.b32.xlu1 %v579_v18, %s1659_s19 }
  0xfc   :  { %911 = vrot.lane.b32.xlu0 %v1778_v17, %s1660_s20 }
  0xfe   :  { %909 = vrot.lane.b32.xlu1 %v579_v18, %s1661_s21 }
 0x156   :  { %v122_v19 = vpop.permute.xlu0 %121 }
 0x157   :  { %v128_v20 = vsel %vm123_vm2, %v122_v19, 0 }
 0x158   :  { %1449 = vmatpush3.bf16.xpose.msra.mxu1 %v128_v20  ;;  %v233_v22 = vpop.permute.xlu1 %232 }
 0x159   :  { %1460 = vmatprep.subr.bf16.mxu1 %v1653_v0 }
 0x15a   :  { %v235_v21 = vpop.permute.xlu0 %234 }
 0x15b   :  { %v240_v23 = vsel %vm123_vm2, %v235_v21, 0 }
 0x15c   :  { %v345_v24 = vpop.permute.xlu1 %344 }
 0x15d   :  { %v350_v25 = vsel %vm123_vm2, %v345_v24, 0 }
 0x15e   :  { %v343_v27 = vpop.permute.xlu0 %342 }
 0x15f   :  { %1451 = vmatmul.mubr.msk.bf16.vlgmr.msra.gmra.mrb[0].mxu1 %vm123_vm2, %v118_v16 }
 0x160   :  { %1461 = vmatpush3.bf16.xpose.msra.mxu1 %v240_v23  ;;  %1462 = vmatprep.mubr.msk.bf16.mxu1 %vm1654_vm0, %v1653_v0  ;;  %v455_v26 = vpop.permute.xlu1 %454 }
 0x161   :  { %1472 = vmatprep.subr.bf16.mxu1 %v1653_v0  ;;  %v460_v28 = vsel %vm123_vm2, %v455_v26, 0 }
 0x162   :  { %v453_v30 = vpop.permute.xlu0 %452 }
 0x164   :  { %v582_v29 = vpop.permute.xlu1 %581 }
 0x165   :  { %v587_v31 = vsel %vm123_vm2, %v582_v29, 0 }
 0x166   :  { %v692_v32 = vpop.permute.xlu0 %691 }
 0x167   :  { %1463 = vmatmul.mubr.msk.bf16.vlgmr.msra.gmra.mrb[4].mxu1 %vm123_vm2, %v233_v22  ;;  %v697_v33 = vsel %vm123_vm2, %v692_v32, 0 }
 0x168   :  { %1473 = vmatpush3.bf16.xpose.msra.mxu1 %v350_v25  ;;  %1474 = vmatprep.mubr.msk.bf16.mxu1 %vm1654_vm0, %v1653_v0  ;;  %v690_v35 = vpop.permute.xlu1 %689 }
 0x169   :  { %1484 = vmatprep.subr.bf16.mxu1 %v1653_v0 }
 0x16a   :  { %v802_v34 = vpop.permute.xlu0 %801 }
 0x16b   :  { %v807_v36 = vsel %vm123_vm2, %v802_v34, 0 }
 0x16c   :  { %v800_v38 = vpop.permute.xlu1 %799 }
 0x16e   :  { %v912_v37 = vpop.permute.xlu0 %911 }
 0x16f   :  { %1475 = vmatmul.mubr.msk.bf16.vlgmr.msra.gmra.mrb[8].mxu1 %vm123_vm2, %v343_v27  ;;  %v917_v39 = vsel %vm123_vm2, %v912_v37, 0 }
 0x170   :  { %1485 = vmatpush3.bf16.xpose.msra.mxu1 %v460_v28  ;;  %1486 = vmatprep.mubr.msk.bf16.mxu1 %vm1654_vm0, %v1653_v0  ;;  %v910_v40 = vpop.permute.xlu1 %909 }
 0x171   :  { %1496 = vmatprep.subr.bf16.mxu1 %v1653_v0 }
 0x177   :  { %1487 = vmatmul.mubr.msk.bf16.vlgmr.msra.gmra.mrb[12].mxu1 %vm123_vm2, %v453_v30 }
 0x178   :  { %1497 = vmatpush3.bf16.xpose.msra.mxu1 %v587_v31  ;;  %1498 = vmatprep.mubr.msk.bf16.mxu1 %vm1654_vm0, %v1653_v0 }
 0x179   :  { %1508 = vmatprep.subr.bf16.mxu1 %v1653_v0 }
 0x17f   :  { %1499 = vmatmul.mubr.msk.bf16.vlgmr.msra.gmra.mrb[16].mxu1 %vm123_vm2, %v579_v18 }
 0x180   :  { %1509 = vmatpush3.bf16.xpose.msra.mxu1 %v697_v33  ;;  %1510 = vmatprep.mubr.msk.bf16.mxu1 %vm1654_vm0, %v1653_v0 }
 0x181   :  { %1520 = vmatprep.subr.bf16.mxu1 %v1653_v0 }
 0x187   :  { %1511 = vmatmul.mubr.msk.bf16.vlgmr.msra.gmra.mrb[20].mxu1 %vm123_vm2, %v690_v35 }
 0x188   :  { %1521 = vmatpush3.bf16.xpose.msra.mxu1 %v807_v36  ;;  %1522 = vmatprep.mubr.msk.bf16.mxu1 %vm1654_vm0, %v1653_v0 }
 0x189   :  { %1532 = vmatprep.subr.bf16.mxu1 %v1653_v0 }
 0x18f   :  { %1523 = vmatmul.mubr.msk.bf16.vlgmr.msra.gmra.mrb[24].mxu1 %vm123_vm2, %v800_v38 }
 0x190   :  { %1533 = vmatpush3.bf16.xpose.msra.mxu1 %v917_v39  ;;  %1534 = vmatprep.mubr.msk.bf16.mxu1 %vm1654_vm0, %v1653_v0 }
 0x191   :  { %1544 = vmatprep.subr.bf16.mxu1 %v1653_v0 }
 0x197   :  { %1535 = vmatmul.mubr.msk.bf16.vlgmr.msra.gmra.mrb[28].mxu1 %vm123_vm2, %v910_v40 }
 0x198   :  { %1548 = vmatprep.mubr.msk.bf16.mxu1 %vm1654_vm0, %v1653_v0 }
 0x232   :  { %v164_v41 = vpop.f32.mrb[0].mxu1 }
 0x233   :  { %v1452_v42 = vpop.f32.mrb[1].mxu1  ;;  %v170_v43 = vsel %vm123_vm2, %v164_v41, -inf }
 0x234   :  { %171 = vmax.xlane.f32.xlu0 %v170_v43  ;;  %v167_v44 = vpop.f32.mrb[2].mxu1 }
 0x235   :  { %v1453_v45 = vpop.f32.mrb[3].mxu1 }
 0x23a   :  { %v276_v46 = vpop.f32.mrb[4].mxu1 }
 0x23b   :  { %v1464_v47 = vpop.f32.mrb[5].mxu1  ;;  %v282_v48 = vsel %vm123_vm2, %v276_v46, -inf }
 0x23c   :  { %283 = vmax.xlane.f32.xlu1 %v282_v48  ;;  %v279_v49 = vpop.f32.mrb[6].mxu1 }
 0x23d   :  { %v1465_v50 = vpop.f32.mrb[7].mxu1 }
 0x242   :  { %v386_v51 = vpop.f32.mrb[8].mxu1 }
 0x243   :  { %v1476_v52 = vpop.f32.mrb[9].mxu1  ;;  %v392_v53 = vsel %vm123_vm2, %v386_v51, -inf }
 0x244   :  { %393 = vmax.xlane.f32.xlu0 %v392_v53  ;;  %v389_v54 = vpop.f32.mrb[10].mxu1 }
 0x245   :  { %v1477_v55 = vpop.f32.mrb[11].mxu1 }
 0x24a   :  { %v1827_v56 = vpop.f32.mrb[12].mxu1 }
 0x24b   :  { %v1488_v57 = vpop.f32.mrb[13].mxu1  ;;  %v502_v58 = vsel %vm123_vm2, %v1827_v56, -inf }
 0x24c   :  { %503 = vmax.xlane.f32.xlu0 %v502_v58  ;;  %v499_v59 = vpop.f32.mrb[14].mxu1 }
 0x24d   :  { %v1489_v60 = vpop.f32.mrb[15].mxu1 }
 0x252   :  { %v1831_v61 = vpop.f32.mrb[16].mxu1 }
 0x253   :  { %v1500_v62 = vpop.f32.mrb[17].mxu1  ;;  %v629_v63 = vsel %vm123_vm2, %v1831_v61, -inf }
 0x254   :  { %630 = vmax.xlane.f32.xlu1 %v629_v63  ;;  %v626_v1 = vpop.f32.mrb[18].mxu1 }
 0x255   :  { %v1501_v2 = vpop.f32.mrb[19].mxu1 }
 0x25a   :  { %v1835_v5 = vpop.f32.mrb[20].mxu1 }
 0x25b   :  { %v1512_v6 = vpop.f32.mrb[21].mxu1  ;;  %v739_v7 = vsel %vm123_vm2, %v1835_v5, -inf }
 0x25c   :  { %740 = vmax.xlane.f32.xlu0 %v739_v7  ;;  %v736_v8 = vpop.f32.mrb[22].mxu1 }
 0x25d   :  { %v1513_v9 = vpop.f32.mrb[23].mxu1 }
 0x262   :  { %v843_v10 = vpop.f32.mrb[24].mxu1 }
 0x263   :  { %v1524_v11 = vpop.f32.mrb[25].mxu1  ;;  %v849_v12 = vsel %vm123_vm2, %v843_v10, -inf }
 0x264   :  { %850 = vmax.xlane.f32.xlu1 %v849_v12  ;;  %v846_v13 = vpop.f32.mrb[26].mxu1 }
 0x265   :  { %v1525_v14 = vpop.f32.mrb[27].mxu1 }
 0x26a   :  { %v1840_v16 = vpop.f32.mrb[28].mxu1 }
 0x26b   :  { %v1536_v18 = vpop.f32.mrb[29].mxu1  ;;  %v959_v21 = vsel %vm123_vm2, %v1840_v16, -inf }
 0x26c   :  { %v956_v19 = vpop.f32.mrb[30].mxu1 }
 0x26d   :  { %v1537_v20 = vpop.f32.mrb[31].mxu1 }
 0x272   :  { %294 = vrot.lane.b32.xlu0 %v1771_v15, %s1662_s22 }
 0x275   :  { %182 = vrot.lane.b32.xlu1 %v1771_v15, %s1663_s23 }
 0x291   :  { %960 = vmax.xlane.f32.xlu0 %v959_v21 }
 0x2c1   :  { %v172_v22 = vpop.xlane.xlu0 %171 }
 0x2c2   :  { %v173_v23 = vsub.f32 %v164_v41, %v172_v22 }
 0x2c4   :  { %v174_v24 = vmul.f32 1.442695, %v173_v23 }
 0x2c6   :  { %1613 = vpow2.f32 %v174_v24 }
 0x2c9   :  { %v284_v25 = vpop.xlane.xlu1 %283 }
 0x2ca   :  { %v285_v26 = vsub.f32 %v276_v46, %v284_v25 }
 0x2cc   :  { %v286_v27 = vmul.f32 1.442695, %v285_v26 }
 0x2ce   :  { %1615 = vpow2.f32 %v286_v27 }
 0x2d0   :  { %v1848_v28 = vpop.eup %1613 }
 0x2d1   :  { %v394_v29 = vpop.xlane.xlu0 %393  ;;  %v176_v30 = vsel %vm123_vm2, %v1848_v28, 0.0 }
 0x2d2   :  { %v395_v31 = vsub.f32 %v386_v51, %v394_v29  ;;  %177 = vadd.xlane.f32.xlu1 %v176_v30 }
 0x2d4   :  { %v396_v32 = vmul.f32 1.442695, %v395_v31 }
 0x2d6   :  { %1617 = vpow2.f32 %v396_v32 }
 0x2d8   :  { %v1852_v33 = vpop.eup %1615 }
 0x2d9   :  { %v288_v34 = vsel %vm123_vm2, %v1852_v33, 0.0  ;;  %v504_v40 = vpop.xlane.xlu0 %503 }
 0x2da   :  { %289 = vadd.xlane.f32.xlu0 %v288_v34  ;;  %v505_v42 = vsub.f32 %v1827_v56, %v504_v40 }
 0x2dc   :  { %v506_v43 = vmul.f32 1.442695, %v505_v42 }
 0x2de   :  { %1619 = vpow2.f32 %v506_v43 }
 0x2e0   :  { %v1856_v35 = vpop.eup %1617 }
 0x2e1   :  { %v398_v36 = vsel %vm123_vm2, %v1856_v35, 0.0  ;;  %v631_v37 = vpop.xlane.xlu1 %630 }
 0x2e2   :  { %399 = vadd.xlane.f32.xlu1 %v398_v36  ;;  %v632_v44 = vsub.f32 %v1831_v61, %v631_v37 }
 0x2e4   :  { %v633_v47 = vmul.f32 1.442695, %v632_v44 }
 0x2e6   :  { %1621 = vpow2.f32 %v633_v47 }
 0x2e8   :  { %v1620_v50 = vpop.eup %1619 }
 0x2e9   :  { %v741_v45 = vpop.xlane.xlu0 %740  ;;  %v508_v51 = vsel %vm123_vm2, %v1620_v50, 0.0 }
 0x2ea   :  { %v742_v46 = vsub.f32 %v1835_v5, %v741_v45 }
 0x2ed   :  { %v295_v58 = vpop.permute.xlu0 %294 }
 0x2ee   :  { %v300_v8 = vsel %vm187_vm3, %v295_v58, 0 }
 0x2f0   :  { %404 = vrot.lane.b32.xlu0 %v1771_v15, %s1664_s24  ;;  %v1870_v52 = vpop.eup %1621 }
 0x2f1   :  { %v851_v38 = vpop.xlane.xlu1 %850  ;;  %v635_v54 = vsel %vm123_vm2, %v1870_v52, 0.0 }
 0x2f2   :  { %v852_v48 = vsub.f32 %v843_v10, %v851_v38 }
 0x2f3   :  { %514 = vrot.lane.b32.xlu1 %v1771_v15, %s1665_s25  ;;  %v743_v15 = vmul.f32 1.442695, %v742_v46 }
 0x2f4   :  { %v853_v49 = vmul.f32 1.442695, %v852_v48 }
 0x2f5   :  { %v183_v39 = vpop.permute.xlu1 %182  ;;  %1623 = vpow2.f32 %v743_v15 }
 0x2f6   :  { %v189_v41 = vsel %vm187_vm3, %v183_v39, 0  ;;  %1625 = vpow2.f32 %v853_v49 }
 0x2f7   :  { %1455 = vmatpush3.bf16.msra.mxu0 %v189_v41 }
 0x2f8   :  { %1466 = vmatprep.subr.bf16.mxu0 %v1653_v0 }
 0x2ff   :  { %v1872_v53 = vpop.eup %1623 }
 0x300   :  { %v1876_v55 = vpop.eup %1625  ;;  %v745_v56 = vsel %vm123_vm2, %v1872_v53, 0.0 }
 0x301   :  { %v855_v57 = vsel %vm123_vm2, %v1876_v55, 0.0 }
 0x30f   :  { %509 = vadd.xlane.f32.xlu0 %v508_v51 }
 0x313   :  { %636 = vadd.xlane.f32.xlu0 %v635_v54 }
 0x317   :  { %746 = vadd.xlane.f32.xlu1 %v745_v56  ;;  %856 = vadd.xlane.f32.xlu0 %v855_v57 }
 0x31e   :  { %v961_v59 = vpop.xlane.xlu0 %960 }
 0x31f   :  { %v962_v60 = vsub.f32 %v1840_v16, %v961_v59 }
 0x321   :  { %v963_v61 = vmul.f32 1.442695, %v962_v60 }
 0x323   :  { %1627 = vpow2.f32 %v963_v61 }
 0x328   :  { %751 = vrot.lane.b32.xlu1 %v1778_v17, %s1662_s22 }
 0x32c   :  { %861 = vrot.lane.b32.xlu1 %v1778_v17, %s1664_s24 }
 0x32d   :  { %v1887_v62 = vpop.eup %1627 }
 0x32e   :  { %v965_v63 = vsel %vm123_vm2, %v1887_v62, 0.0 }
 0x32f   :  { %966 = vadd.xlane.f32.xlu0 %v965_v63 }
 0x330   :  { %971 = vrot.lane.b32.xlu1 %v1778_v17, %s1665_s25 }
 0x345   :  { %641 = vrot.lane.b32.xlu0 %v1778_v17, %s1663_s23 }
 0x35f   :  { %v178_v1 = vpop.xlane.xlu1 %177 }
 0x360   :  { %1629 = vrcp.f32 %v178_v1 }
 0x367   :  { %v290_v2 = vpop.xlane.xlu0 %289 }
 0x368   :  { %1631 = vrcp.f32 %v290_v2 }
 0x36a   :  { %v1630_v5 = vpop.eup %1629 }
 0x36b   :  { %v180_v6 = vmul.f32 %v1630_v5, %v1848_v28  ;;  %v405_v11 = vpop.permute.xlu0 %404 }
 0x36c   :  { %v410_v13 = vsel %vm187_vm3, %v405_v11, 0 }
 0x36d   :  { %v181_v7 = vpack.c.bf16 %v180_v6, %v180_v6 }
 0x36f   :  { %1457 = vmatmul.mubr.msk.bf16.vlgmr.msra.gmra.mrb[4].mxu0 %vm123_vm2, %v181_v7  ;;  %v400_v9 = vpop.xlane.xlu1 %399 }
 0x370   :  { %1467 = vmatpush3.bf16.msra.mxu0 %v300_v8  ;;  %1633 = vrcp.f32 %v400_v9  ;;  %1468 = vmatprep.mubr.msk.bf16.mxu0 %vm1654_vm0, %v1653_v0 }
 0x371   :  { %1478 = vmatprep.subr.bf16.mxu0 %v1653_v0 }
 0x372   :  { %v1632_v17 = vpop.eup %1631 }
 0x373   :  { %v292_v10 = vmul.f32 %v1632_v17, %v1852_v33  ;;  %v515_v18 = vpop.permute.xlu1 %514  ;;  %v1605_v17 = vld [vmem:[%s2018_s3] sm:$0xff]  }
 0x374   :  { %v520_v20 = vsel %vm187_vm3, %v515_v18, 0  ;;  %1545 = vmatpush3.bf16.msra.mxu1 %v1605_v17 }
 0x375   :  { %v293_v12 = vpack.c.bf16 %v292_v10, %v292_v10  ;;  %1546 = vmatprep.subr.bf16.mxu1 %v1653_v0 }
 0x377   :  { %1469 = vmatmul.mubr.msk.bf16.vlgmr.msra.gmra.mrb[8].mxu0 %vm123_vm2, %v293_v12  ;;  %v1606_v12 = vld [vmem:[%s2018_s3 + $0x8] sm:$0xff]  }
 0x378   :  { %1479 = vmatpush3.bf16.msra.mxu0 %v410_v13  ;;  %1480 = vmatprep.mubr.msk.bf16.mxu0 %vm1654_vm0, %v1653_v0 }
 0x379   :  { %1490 = vmatprep.subr.bf16.mxu0 %v1653_v0  ;;  %1547 = vmatpush3.bf16.msra.mxu1 %v1606_v12 }
 0x37a   :  { %v1634_v14 = vpop.eup %1633  ;;  %1560 = vmatprep.subr.bf16.mxu1 %v1653_v0 }
 0x37b   :  { %v402_v16 = vmul.f32 %v1634_v14, %v1856_v35 }
 0x37d   :  { %v403_v19 = vpack.c.bf16 %v402_v16, %v402_v16 }
 0x37f   :  { %1481 = vmatmul.mubr.msk.bf16.vlgmr.msra.gmra.mrb[12].mxu0 %vm123_vm2, %v403_v19 }
 0x380   :  { %1491 = vmatpush3.bf16.msra.mxu0 %v520_v20  ;;  %1492 = vmatprep.mubr.msk.bf16.mxu0 %vm1654_vm0, %v1653_v0 }
 0x381   :  { %1502 = vmatprep.subr.bf16.mxu0 %v1653_v0 }
 0x39c   :  { %v510_v21 = vpop.xlane.xlu0 %509 }
 0x39d   :  { %1635 = vrcp.f32 %v510_v21 }
 0x3a0   :  { %v637_v25 = vpop.xlane.xlu0 %636 }
 0x3a1   :  { %1637 = vrcp.f32 %v637_v25 }
 0x3a4   :  { %v747_v26 = vpop.xlane.xlu1 %746  ;;  %v857_v27 = vpop.xlane.xlu0 %856 }
 0x3a5   :  { %1639 = vrcp.f32 %v747_v26 }
 0x3a6   :  { %1641 = vrcp.f32 %v857_v27 }
 0x3a7   :  { %v1636_v22 = vpop.eup %1635 }
 0x3a8   :  { %v512_v23 = vmul.f32 %v1636_v22, %v1620_v50  ;;  %v752_v33 = vpop.permute.xlu1 %751 }
 0x3a9   :  { %v757_v36 = vsel %vm187_vm3, %v752_v33, 0 }
 0x3aa   :  { %v513_v24 = vpack.c.bf16 %v512_v23, %v512_v23 }
 0x3ab   :  { %v1638_v28 = vpop.eup %1637 }
 0x3ac   :  { %1493 = vmatmul.mubr.msk.bf16.vlgmr.msra.gmra.mrb[16].mxu0 %vm123_vm2, %v513_v24  ;;  %v639_v30 = vmul.f32 %v1638_v28, %v1870_v52  ;;  %v862_v38 = vpop.permute.xlu1 %861 }
 0x3ad   :  { %1504 = vmatprep.mubr.msk.bf16.mxu0 %vm1654_vm0, %v1653_v0  ;;  %v867_v41 = vsel %vm187_vm3, %v862_v38, 0 }
 0x3ae   :  { %v640_v34 = vpack.c.bf16 %v639_v30, %v639_v30 }
 0x3af   :  { %v1640_v35 = vpop.eup %1639 }
 0x3b0   :  { %v749_v37 = vmul.f32 %v1640_v35, %v1872_v53  ;;  %v1642_v40 = vpop.eup %1641  ;;  %v972_v43 = vpop.permute.xlu1 %971 }
 0x3b1   :  { %v859_v42 = vmul.f32 %v1642_v40, %v1876_v55  ;;  %v977_v46 = vsel %vm187_vm3, %v972_v43, 0 }
 0x3b2   :  { %v750_v39 = vpack.c.bf16 %v749_v37, %v749_v37 }
 0x3b3   :  { %v860_v44 = vpack.c.bf16 %v859_v42, %v859_v42 }
 0x3bc   :  { %v967_v29 = vpop.xlane.xlu0 %966 }
 0x3bd   :  { %1643 = vrcp.f32 %v967_v29 }
 0x3c0   :  { %v642_v31 = vpop.permute.xlu0 %641 }
 0x3c1   :  { %v647_v32 = vsel %vm187_vm3, %v642_v31, 0 }
 0x3c2   :  { %1503 = vmatpush3.bf16.msra.mxu0 %v647_v32 }
 0x3c3   :  { %1514 = vmatprep.subr.bf16.mxu0 %v1653_v0 }
 0x3c5   :  { %1505 = vmatmul.mubr.msk.bf16.vlgmr.msra.gmra.mrb[20].mxu0 %vm123_vm2, %v640_v34 }
 0x3c6   :  { %1515 = vmatpush3.bf16.msra.mxu0 %v757_v36  ;;  %1516 = vmatprep.mubr.msk.bf16.mxu0 %vm1654_vm0, %v1653_v0 }
 0x3c7   :  { %1526 = vmatprep.subr.bf16.mxu0 %v1653_v0  ;;  %v1644_v45 = vpop.eup %1643 }
 0x3c8   :  { %v969_v47 = vmul.f32 %v1644_v45, %v1887_v62 }
 0x3ca   :  { %v970_v48 = vpack.c.bf16 %v969_v47, %v969_v47 }
 0x3cd   :  { %1517 = vmatmul.mubr.msk.bf16.vlgmr.msra.gmra.mrb[24].mxu0 %vm123_vm2, %v750_v39 }
 0x3ce   :  { %1527 = vmatpush3.bf16.msra.mxu0 %v867_v41  ;;  %1528 = vmatprep.mubr.msk.bf16.mxu0 %vm1654_vm0, %v1653_v0  ;;  %v1376_v41 = vld [vmem:[%s2019_s4] ss:$0 sm:$0xff] }
 0x3cf   :  { %1538 = vmatprep.subr.bf16.mxu0 %v1653_v0 }
 0x3d5   :  { %1529 = vmatmul.mubr.msk.bf16.vlgmr.msra.gmra.mrb[28].mxu0 %vm123_vm2, %v860_v44 }
 0x3d6   :  { %1539 = vmatpush3.bf16.msra.mxu0 %v977_v46  ;;  %1540 = vmatprep.mubr.msk.bf16.mxu0 %vm1654_vm0, %v1653_v0 }
 0x3d7   :  { %1552 = vmatprep.subr.bf16.mxu0 %v1653_v0 }
 0x3dd   :  { %1541 = vmatmul.mubr.msk.bf16.vlgmr.msra.gmra.mrb[32].mxu0 %vm123_vm2, %v970_v48 }
 0x3de   :  { %1556 = vmatprep.mubr.msk.bf16.mxu0 %vm1654_vm0, %v1653_v0 }
 0x442   :  { %v225_v15 = vpop.f32.mrb[4].mxu0 }
 0x443   :  { %v1458_v49 = vpop.f32.mrb[5].mxu0 }
 0x444   :  { %v228_v50 = vpop.f32.mrb[6].mxu0 }
 0x445   :  { %v1459_v51 = vpop.f32.mrb[7].mxu0 }
 0x44a   :  { %v336_v52 = vpop.f32.mrb[8].mxu0 }
 0x44b   :  { %v1470_v53 = vpop.f32.mrb[9].mxu0 }
 0x44c   :  { %v339_v54 = vpop.f32.mrb[10].mxu0 }
 0x44d   :  { %v1471_v55 = vpop.f32.mrb[11].mxu0 }
 0x452   :  { %v446_v56 = vpop.f32.mrb[12].mxu0 }
 0x453   :  { %v1482_v57 = vpop.f32.mrb[13].mxu0 }
 0x454   :  { %v449_v58 = vpop.f32.mrb[14].mxu0 }
 0x455   :  { %v1483_v59 = vpop.f32.mrb[15].mxu0 }
 0x47f   :  { %v556_v60 = vpop.f32.mrb[16].mxu0 }
 0x480   :  { %v1494_v61 = vpop.f32.mrb[17].mxu0 }
 0x481   :  { %v559_v62 = vpop.f32.mrb[18].mxu0  ;;  %v1609_v61 = vld [vmem:[%s2021_s9] sm:$0xff]  }
 0x482   :  { %v1495_v63 = vpop.f32.mrb[19].mxu0  ;;  %v1610_v62 = vld [vmem:[%s2021_s9 + $0x8] sm:$0xff]  }
 0x498   :  { %v683_v1 = vpop.f32.mrb[20].mxu0 }
 0x499   :  { %v1506_v2 = vpop.f32.mrb[21].mxu0 }
 0x49a   :  { %v686_v5 = vpop.f32.mrb[22].mxu0 }
 0x49b   :  { %v1507_v6 = vpop.f32.mrb[23].mxu0 }
 0x4a0   :  { %v793_v7 = vpop.f32.mrb[24].mxu0 }
 0x4a1   :  { %v1588_v8 = vpack.i.bf16 %v793_v7, %v336_v52  ;;  %v1518_v9 = vpop.f32.mrb[25].mxu0 }
 0x4a2   :  { %v796_v10 = vpop.f32.mrb[26].mxu0  ;;  %v1380_v9 = vld [vmem:[%s2022_s5] ss:$0 sm:$0xff] }
 0x4a3   :  { %1589 = vrot.lane.b32.xlu1 %v1588_v8, %s1666_s28  ;;  %v1519_v11 = vpop.f32.mrb[27].mxu0 }
 0x4a8   :  { %v903_v13 = vpop.f32.mrb[28].mxu0 }
 0x4a9   :  { %v1593_v14 = vpack.i.bf16 %v903_v13, %v446_v56  ;;  %v1530_v16 = vpop.f32.mrb[29].mxu0  ;;  %v1381_v13 = vld [vmem:[%s2023_s6] ss:$0 sm:$0xff] }
 0x4aa   :  { %v906_v18 = vpop.f32.mrb[30].mxu0 }
 0x4ab   :  { %1594 = vrot.lane.b32.xlu1 %v1593_v14, %s1667_s14  ;;  %v1531_v19 = vpop.f32.mrb[31].mxu0 }
 0x4b0   :  { %v1013_v20 = vpop.f32.mrb[32].mxu0 }
 0x4b1   :  { %v1598_v21 = vpack.i.bf16 %v1013_v20, %v556_v60  ;;  %v1542_v22 = vpop.f32.mrb[33].mxu0  ;;  %v1608_v60 = vld [vmem:[%s2020_s7 + $0x8] sm:$0xff]   ;;  %v1611_v20 = vld [vmem:[%s2021_s9 + $0x10] sm:$0xff]  }
 0x4b2   :  { %v1016_v23 = vpop.f32.mrb[34].mxu0  ;;  %v1382_v22 = vld [vmem:[%s2024_s8] ss:$0 sm:$0xff] }
 0x4b3   :  { %1599 = vrot.lane.b32.xlu0 %v1598_v21, %s1668_s15  ;;  %v1543_v24 = vpop.f32.mrb[35].mxu0  ;;  %v1612_v21 = vld [vmem:[%s2021_s9 + $0x18] sm:$0xff]  }
 0x515   :  { %v1590_v25 = vpop.permute.xlu1 %1589 }
 0x516   :  { %v1592_v27 = vunpack.i.h.bf16 %v1590_v25  ;;  %v1591_v28 = vunpack.i.l.bf16 %v1590_v25 }
 0x518   :  { %v1031_v32 = vsel %vm123_vm2, %v683_v1, %v1592_v27  ;;  %v574_v33 = vsel %vm123_vm2, %v225_v15, %v1591_v28 }
 0x51d   :  { %v1595_v26 = vpop.permute.xlu1 %1594 }
 0x51e   :  { %v1597_v29 = vunpack.i.h.bf16 %v1595_v26  ;;  %v1596_v30 = vunpack.i.l.bf16 %v1595_v26 }
 0x520   :  { %v1032_v36 = vsel %vm575_vm4, %v1031_v32, %v1597_v29  ;;  %v576_v37 = vsel %vm575_vm4, %v574_v33, %v1596_v30 }
 0x525   :  { %v1600_v31 = vpop.permute.xlu0 %1599 }
 0x526   :  { %v1602_v34 = vunpack.i.h.bf16 %v1600_v31  ;;  %v1601_v35 = vunpack.i.l.bf16 %v1600_v31 }
 0x528   :  { %v1033_v38 = vsel %vm577_vm5, %v1032_v36, %v1602_v34  ;;  %v578_v39 = vsel %vm577_vm5, %v576_v37, %v1601_v35 }
 0x529   :  { %v1034_v40 = vpack.c.bf16 %v1033_v38, %v578_v39 }
 0x52b   :  { %1549 = vmatmul.mubr.msk.bf16.vlgmr.msra.gmra.mrb[32].mxu1 %vm71_vm1, %v1034_v40 }
 0x52c   :  { %1568 = vmatprep.mubr.msk.bf16.mxu1 %vm1654_vm0, %v1653_v0  ;;  %1561 = vmatpush3.bf16.msra.mxu1 %v1609_v61 }
 0x52d   :  { %1562 = vmatprep.subr.bf16.mxu1 %v1653_v0 }
 0x530   :  { %1563 = vmatpush3.bf16.msra.mxu1 %v1610_v62 }
 0x531   :  { %1564 = vmatprep.subr.bf16.mxu1 %v1653_v0 }
 0x534   :  { %1565 = vmatpush3.bf16.msra.mxu1 %v1611_v20 }
 0x535   :  { %1566 = vmatprep.subr.bf16.mxu1 %v1653_v0 }
 0x538   :  { %1567 = vmatpush3.bf16.msra.mxu1 %v1612_v21 }
 0x5fe   :  { %v1095_v42 = vpop.f32.mrb[32].mxu1 }
 0x5ff   :  { %v1096_v43 = vadd.f32 %v1376_v41, %v1095_v42  ;;  %v1550_v44 = vpop.f32.mrb[33].mxu1 }
 0x600   :  { %v1098_v45 = vpop.f32.mrb[34].mxu1 }
 0x601   :  { %v1099_v46 = vadd.f32 %v1376_v41, %v1098_v45  ;;  %v1551_v47 = vpop.f32.mrb[35].mxu1  ;;  %v1102_v48 = vadd.f32 %v1096_v43, %v1754_v3 }
 0x603   :  { %v1106_v15 = vsel %vm71_vm1, %v1102_v48, 0.0  ;;  %v1103_v49 = vadd.f32 %v1099_v46, %v1759_v4  ;;  %v1607_v4 = vld [vmem:[%s2020_s7] sm:$0xff]  }
 0x604   :  { %1107 = vadd.xlane.f32.xlu1 %v1106_v15  ;;  %1553 = vmatpush3.bf16.msra.mxu0 %v1607_v4  ;;  %v1393_v4 = vld [vmem:[%s2027_s12] ss:$0 sm:$0xff] }
 0x605   :  { %v1109_v50 = vsel %vm71_vm1, %v1103_v49, 0.0  ;;  %1554 = vmatprep.subr.bf16.mxu0 %v1653_v0  ;;  %v1386_v0 = vld [vmem:[%s2025_s10] ss:$0 sm:$0xff] }
 0x606   :  { %1110 = vadd.xlane.f32.xlu0 %v1109_v50 }
 0x608   :  { %1555 = vmatpush3.bf16.msra.mxu0 %v1608_v60 }
 0x691   :  { %v1108_v51 = vpop.xlane.xlu1 %1107 }
 0x692   :  { %v1113_v52 = vmul.f32 0.03125, %v1108_v51 }
 0x693   :  { %v1111_v53 = vpop.xlane.xlu0 %1110 }
 0x694   :  { %v1115_v54 = vsub.f32 %v1102_v48, %v1113_v52  ;;  %v1114_v55 = vmul.f32 0.03125, %v1111_v53 }
 0x696   :  { %v1116_v56 = vsub.f32 %v1103_v49, %v1114_v55  ;;  %v1117_v57 = vmul.f32 %v1115_v54, %v1115_v54 }
 0x698   :  { %v1119_v58 = vsel %vm71_vm1, %v1117_v57, 0.0  ;;  %v1118_v59 = vmul.f32 %v1116_v56, %v1116_v56 }
 0x699   :  { %1120 = vadd.xlane.f32.xlu0 %v1119_v58  ;;  %v1392_v58 = vld [vmem:[%s2026_s11] ss:$0 sm:$0xff] }
 0x69a   :  { %v1122_v3 = vsel %vm71_vm1, %v1118_v59, 0.0 }
 0x69b   :  { %1123 = vadd.xlane.f32.xlu1 %v1122_v3 }
 0x726   :  { %v1121_v63 = vpop.xlane.xlu0 %1120 }
 0x727   :  { %v1125_v1 = vmul.f32 0.03125, %v1121_v63 }
 0x728   :  { %v1124_v2 = vpop.xlane.xlu1 %1123 }
 0x729   :  { %v1127_v5 = vadd.f32 1e-05, %v1125_v1  ;;  %v1126_v6 = vmul.f32 0.03125, %v1124_v2 }
 0x72b   :  { %1645 = vrsqrt.f32 %v1127_v5  ;;  %v1128_v7 = vadd.f32 1e-05, %v1126_v6 }
 0x72d   :  { %1647 = vrsqrt.f32 %v1128_v7 }
 0x735   :  { %v1646_v8 = vpop.eup %1645 }
 0x736   :  { %v1131_v17 = vmul.f32 %v1646_v8, %v1115_v54 }
 0x737   :  { %v1648_v10 = vpop.eup %1647 }
 0x738   :  { %v1139_v11 = vmul.f32 %v1380_v9, %v1131_v17  ;;  %v1132_v12 = vmul.f32 %v1648_v10, %v1116_v56 }
 0x73a   :  { %v1140_v14 = vmul.f32 %v1380_v9, %v1132_v12  ;;  %v1147_v16 = vadd.f32 %v1381_v13, %v1139_v11 }
 0x73c   :  { %v1148_v18 = vadd.f32 %v1381_v13, %v1140_v14 }
 0x73e   :  { %v1149_v19 = vpack.c.bf16 %v1148_v18, %v1147_v16 }
 0x740   :  { %1557 = vmatmul.mubr.msk.bf16.vlgmr.msra.gmra.mrb[36].mxu0 %vm71_vm1, %v1149_v19 }
 0x813   :  { %v1210_v23 = vpop.f32.mrb[36].mxu0 }
 0x814   :  { %v1211_v24 = vadd.f32 %v1382_v22, %v1210_v23  ;;  %v1558_v25 = vpop.f32.mrb[37].mxu0 }
 0x815   :  { %v1213_v26 = vpop.f32.mrb[38].mxu0 }
 0x816   :  { %v1214_v27 = vadd.f32 %v1382_v22, %v1213_v26  ;;  %v1559_v28 = vpop.f32.mrb[39].mxu0  ;;  %v1217_v29 = vmax.f32 %v1211_v24, 0.0 }
 0x818   :  { %v1218_v30 = vmax.f32 %v1214_v27, 0.0 }
 0x81a   :  { %v1219_v31 = vpack.c.bf16 %v1218_v30, %v1217_v29 }
 0x81c   :  { %1569 = vmatmul.mubr.msk.bf16.vlgmr.msra.gmra.mrb[36].mxu1 %vm1259_vm6, %v1219_v31 }
 0x8ef   :  { %v1297_v32 = vpop.f32.mrb[36].mxu1 }
 0x8f0   :  { %v1298_v33 = vadd.f32 %v1386_v0, %v1297_v32  ;;  %v1570_v34 = vpop.f32.mrb[37].mxu1 }
 0x8f1   :  { %v1300_v35 = vpop.f32.mrb[38].mxu1 }
 0x8f2   :  { %v1301_v36 = vadd.f32 %v1386_v0, %v1300_v35  ;;  %v1571_v37 = vpop.f32.mrb[39].mxu1  ;;  %v1304_v38 = vadd.f32 %v1298_v33, %v1147_v16 }
 0x8f4   :  { %v1308_v39 = vsel %vm71_vm1, %v1304_v38, 0.0  ;;  %v1305_v40 = vadd.f32 %v1301_v36, %v1148_v18 }
 0x8f5   :  { %1309 = vadd.xlane.f32.xlu0 %v1308_v39 }
 0x8f6   :  { %v1311_v41 = vsel %vm71_vm1, %v1305_v40, 0.0 }
 0x8f7   :  { %1312 = vadd.xlane.f32.xlu1 %v1311_v41 }
 0x982   :  { %v1310_v42 = vpop.xlane.xlu0 %1309 }
 0x983   :  { %v1314_v43 = vmul.f32 0.03125, %v1310_v42 }
 0x984   :  { %v1313_v44 = vpop.xlane.xlu1 %1312 }
 0x985   :  { %v1316_v45 = vsub.f32 %v1304_v38, %v1314_v43  ;;  %v1315_v46 = vmul.f32 0.03125, %v1313_v44 }
 0x987   :  { %v1317_v47 = vsub.f32 %v1305_v40, %v1315_v46  ;;  %v1318_v48 = vmul.f32 %v1316_v45, %v1316_v45 }
 0x989   :  { %v1320_v15 = vsel %vm71_vm1, %v1318_v48, 0.0  ;;  %v1319_v49 = vmul.f32 %v1317_v47, %v1317_v47 }
 0x98a   :  { %1321 = vadd.xlane.f32.xlu0 %v1320_v15 }
 0x98b   :  { %v1323_v50 = vsel %vm71_vm1, %v1319_v49, 0.0 }
 0x98c   :  { %1324 = vadd.xlane.f32.xlu1 %v1323_v50 }
 0xa17   :  { %v1322_v51 = vpop.xlane.xlu0 %1321 }
 0xa18   :  { %v1326_v52 = vmul.f32 0.03125, %v1322_v51 }
 0xa19   :  { %v1325_v53 = vpop.xlane.xlu1 %1324 }
 0xa1a   :  { %v1328_v54 = vadd.f32 1e-05, %v1326_v52  ;;  %v1327_v55 = vmul.f32 0.03125, %v1325_v53 }
 0xa1c   :  { %1649 = vrsqrt.f32 %v1328_v54  ;;  %v1329_v56 = vadd.f32 1e-05, %v1327_v55 }
 0xa1e   :  { %1651 = vrsqrt.f32 %v1329_v56 }
 0xa26   :  { %v1650_v57 = vpop.eup %1649 }
 0xa27   :  { %v1332_v59 = vmul.f32 %v1650_v57, %v1316_v45 }
 0xa28   :  { %v1652_v3 = vpop.eup %1651 }
 0xa29   :  { %v1340_v60 = vmul.f32 %v1392_v58, %v1332_v59  ;;  %v1333_v61 = vmul.f32 %v1652_v3, %v1317_v47 }
 0xa2b   :  { %v1348_v62 = vadd.f32 %v1393_v4, %v1340_v60  ;;  %v1341_v63 = vmul.f32 %v1392_v58, %v1333_v61 }
 0xa2d   :  { %1350 = vst.msk [vmem:[%s2028_s13] sm:$0xff] %vm71_vm1, %v1348_v62  ;;  %v1349_v1 = vadd.f32 %v1393_v4, %v1341_v63 }
 0xa2f   :  { %1351 = vst.msk [vmem:[%s2028_s13 + $0x8] sm:$0xff] %vm71_vm1, %v1349_v1 }

// kernel: forward.15
= control target key start
LH: loop header
LB: loop body
LE: loop exit
PB: predicated region body
PF: predicated region fallthrough
CT: control target
= control target key end

     0   :  { %vm25_vm0 = vcmask 261120   ;;  %v168_v15 = vmov 0.0   ;;  %vm169_vm1 = vmmov 0   ;;  %s232_s0 = inlined_call_operand.vmem [shape: f32[16,32], index: 0, kind: input, shape index: {}]   ;;  %s233_s3 = inlined_call_operand.vmem [shape: bf16[32,128], index: 3, kind: input, shape index: {}]   ;;  %s234_s1 = inlined_call_operand.vmem [shape: f32[1,32], index: 1, kind: input, shape index: {}]   ;;  %s235_s2 = inlined_call_operand.vmem [shape: f32[1,32], index: 2, kind: input, shape index: {}]   ;;  %s236_s4 = inlined_call_operand.vmem [shape: f32[1,128], index: 4, kind: input, shape index: {}]   ;;  %s237_s5 = inlined_call_operand.vmem [shape: f32[16,128], index: 5, kind: output, shape index: {}]  }
   0x1   :  { %v21_v0 = vld [vmem:[%s232_s0] sm:$0xff]  ;;  %v22_v1 = vld [vmem:[%s232_s0 + $0x8] sm:$0xff]  ;;  %152 = vmatprep.subr.bf16.mxu0 %v168_v15  ;;  %156 = vmatprep.mubr.msk.bf16.mxu0 %vm169_vm1, %v168_v15 }
   0x2   :  { %v26_v2 = vsel %vm25_vm0, %v21_v0, 0.0  ;;  %v29_v3 = vsel %vm25_vm0, %v22_v1, 0.0  ;;  %v162_v14 = vld [vmem:[%s233_s3] sm:$0xff]   ;;  %v163_v16 = vld [vmem:[%s233_s3 + $0x8] sm:$0xff]  }
   0x3   :  { %27 = vadd.xlane.f32.xlu0 %v26_v2  ;;  %153 = vmatpush3.bf16.msra.mxu0 %v162_v14  ;;  %v143_v25 = vld [vmem:[%s234_s1] ss:$0 sm:$0xff] }
   0x4   :  { %154 = vmatprep.subr.bf16.mxu0 %v168_v15  ;;  %v144_v29 = vld [vmem:[%s235_s2] ss:$0 sm:$0xff] }
   0x5   :  { %v145_v34 = vld [vmem:[%s236_s4] ss:$0 sm:$0xff] }
   0x7   :  { %30 = vadd.xlane.f32.xlu0 %v29_v3  ;;  %155 = vmatpush3.bf16.msra.mxu0 %v163_v16 }
  0x90   :  { %v28_v4 = vpop.xlane.xlu0 %27 }
  0x91   :  { %v33_v5 = vmul.f32 0.03125, %v28_v4 }
  0x93   :  { %v35_v6 = vsub.f32 %v21_v0, %v33_v5 }
  0x94   :  { %v31_v7 = vpop.xlane.xlu0 %30 }
  0x95   :  { %v34_v8 = vmul.f32 0.03125, %v31_v7  ;;  %v37_v9 = vmul.f32 %v35_v6, %v35_v6 }
  0x97   :  { %v36_v10 = vsub.f32 %v22_v1, %v34_v8  ;;  %v39_v11 = vsel %vm25_vm0, %v37_v9, 0.0 }
  0x98   :  { %40 = vadd.xlane.f32.xlu1 %v39_v11 }
  0x99   :  { %v38_v12 = vmul.f32 %v36_v10, %v36_v10 }
  0x9b   :  { %v42_v13 = vsel %vm25_vm0, %v38_v12, 0.0 }
  0x9c   :  { %43 = vadd.xlane.f32.xlu1 %v42_v13 }
 0x125   :  { %v41_v17 = vpop.xlane.xlu1 %40 }
 0x126   :  { %v45_v18 = vmul.f32 0.03125, %v41_v17 }
 0x128   :  { %v47_v19 = vadd.f32 1e-05, %v45_v18 }
 0x129   :  { %v44_v20 = vpop.xlane.xlu1 %43 }
 0x12a   :  { %164 = vrsqrt.f32 %v47_v19  ;;  %v46_v21 = vmul.f32 0.03125, %v44_v20 }
 0x12c   :  { %v48_v22 = vadd.f32 1e-05, %v46_v21 }
 0x12e   :  { %166 = vrsqrt.f32 %v48_v22 }
 0x134   :  { %v165_v23 = vpop.eup %164 }
 0x135   :  { %v51_v24 = vmul.f32 %v165_v23, %v35_v6 }
 0x137   :  { %v59_v28 = vmul.f32 %v143_v25, %v51_v24 }
 0x138   :  { %v167_v26 = vpop.eup %166 }
 0x139   :  { %v52_v27 = vmul.f32 %v167_v26, %v36_v10  ;;  %v67_v31 = vadd.f32 %v144_v29, %v59_v28 }
 0x13b   :  { %v60_v30 = vmul.f32 %v143_v25, %v52_v27 }
 0x13d   :  { %v68_v32 = vadd.f32 %v144_v29, %v60_v30 }
 0x13f   :  { %v69_v33 = vpack.c.bf16 %v68_v32, %v67_v31 }
 0x141   :  { %157 = vmatmul.mubr.msk.bf16.vlgmr.msra.gmra.mrb[0].mxu0 %vm25_vm0, %v69_v33 }
 0x214   :  { %v130_v35 = vpop.f32.mrb[0].mxu0 }
 0x215   :  { %v131_v36 = vadd.f32 %v145_v34, %v130_v35  ;;  %v158_v37 = vpop.f32.mrb[1].mxu0 }
 0x216   :  { %v133_v38 = vpop.f32.mrb[2].mxu0 }
 0x217   :  { %137 = vst [vmem:[%s237_s5] sm:$0xff] %v131_v36  ;;  %v134_v39 = vadd.f32 %v145_v34, %v133_v38  ;;  %v159_v40 = vpop.f32.mrb[3].mxu0 }
 0x219   :  { %138 = vst [vmem:[%s237_s5 + $0x8] sm:$0xff] %v134_v39 }

// kernel: forward.13
= control target key start
LH: loop header
LB: loop body
LE: loop exit
PB: predicated region body
PF: predicated region fallthrough
CT: control target
= control target key end

     0   :  { %v3090_v0 = vmov 0.0   ;;  %vm3091_vm0 = vmmov 0   ;;  %vm100_vm1 = vcmask 261120   ;;  %s3093_s27 = smov 120   ;;  %s3803_s28 = smov 80   ;;  %vm152_vm2 = vcmask 64512   ;;  %s3770_s2 = inlined_call_operand.vmem [shape: bf16[32,96], index: 2, kind: input, shape index: {}]   ;;  %s3771_s0 = inlined_call_operand.vmem [shape: f32[16,32], index: 0, kind: input, shape index: {}]   ;;  %s3772_s3 = inlined_call_operand.vmem [shape: f32[1,96], index: 3, kind: input, shape index: {}]   ;;  %s3773_s4 = inlined_call_operand.vmem [shape: bf16[32,32], index: 4, kind: input, shape index: {}]   ;;  %s3774_s5 = inlined_call_operand.vmem [shape: f32[1,32], index: 5, kind: input, shape index: {}]   ;;  %s3775_s10 = inlined_call_operand.vmem [shape: bf16[32,64], index: 10, kind: input, shape index: {}]   ;;  %s3776_s8 = inlined_call_operand.vmem [shape: bf16[32,32], index: 8, kind: input, shape index: {}]   ;;  %s3777_s1 = inlined_call_operand.vmem [shape: f32[16,32], index: 1, kind: input, shape index: {}]   ;;  %s3778_s6 = inlined_call_operand.vmem [shape: f32[1,32], index: 6, kind: input, shape index: {}]   ;;  %s3779_s7 = inlined_call_operand.vmem [shape: f32[1,32], index: 7, kind: input, shape index: {}]   ;;  %s3780_s11 = inlined_call_operand.vmem [shape: f32[1,64], index: 11, kind: input, shape index: {}]   ;;  %s3781_s9 = inlined_call_operand.vmem [shape: f32[1,32], index: 9, kind: input, shape index: {}]   ;;  %s3782_s12 = inlined_call_operand.vmem [shape: bf16[32,32], index: 12, kind: input, shape index: {}]   ;;  %s3783_s13 = inlined_call_operand.vmem [shape: f32[1,32], index: 13, kind: input, shape index: {}]   ;;  %s3784_s16 = inlined_call_operand.vmem [shape: bf16[32,64], index: 16, kind: input, shape index: {}]   ;;  %s3785_s18 = inlined_call_operand.vmem [shape: bf16[64,32], index: 18, kind: input, shape index: {}]   ;;  %s3786_s14 = inlined_call_operand.vmem [shape: f32[1,32], index: 14, kind: input, shape index: {}]   ;;  %s3787_s15 = inlined_call_operand.vmem [shape: f32[1,32], index: 15, kind: input, shape index: {}]   ;;  %s3788_s17 = inlined_call_operand.vmem [shape: f32[1,64], index: 17, kind: input, shape index: {}]   ;;  %s3789_s19 = inlined_call_operand.vmem [shape: f32[1,32], index: 19, kind: input, shape index: {}]   ;;  %s3790_s20 = inlined_call_operand.vmem [shape: f32[1,32], index: 20, kind: input, shape index: {}]   ;;  %s3791_s21 = inlined_call_operand.vmem [shape: f32[1,32], index: 21, kind: input, shape index: {}]   ;;  %s3792_s22 = inlined_call_operand.vmem [shape: f32[16,32], index: 22, kind: output, shape index: {}]  }
   0x1   :  { %3809 = sst [smem:[#allocation2_spill]] %s3770_s2  ;;  %2700 = vmatprep.subr.bf16.mxu1 %v3090_v0  ;;  %2704 = vmatprep.mubr.msk.bf16.mxu1 %vm3091_vm0, %v3090_v0  ;;  %s3801_s30 = smov 72   ;;  %vm216_vm3 = vcmask 1043456   ;;  %vm604_vm4 = vcmask 130048   ;;  %vm606_vm5 = vcmask 195584   ;;  %vm2448_vm6 = vcmask 523264  }
   0x2   :  { %3810 = sst [smem:[#allocation3_spill]] %s3771_s0  ;;  %s3816_s29 = sld [smem:[#allocation2_spill]]  ;;  %2714 = vmatprep.subr.bf16.mxu0 %v3090_v0  ;;  %2716 = vmatprep.mubr.msk.bf16.mxu0 %vm3091_vm0, %v3090_v0 }
   0x3   :  { %3811 = sst [smem:[#allocation4_spill]] %s3772_s3  ;;  %s3817_s0 = sld [smem:[#allocation3_spill]] }
   0x4   :  { %3812 = sst [smem:[#allocation5_spill]] %s3773_s4  ;;  %s3818_s26 = sld [smem:[#allocation4_spill]] }
   0x5   :  { %3813 = sst [smem:[#allocation6_spill]] %s3774_s5  ;;  %s3805_s3 = smov 96  }
   0x6   :  { %3814 = sst [smem:[#allocation7_spill]] %s3775_s10  ;;  %s3807_s4 = smov 88  }
   0x7   :  { %3815 = sst [smem:[#allocation8_spill]] %s3776_s8  ;;  %s3098_s5 = smov 104  }
   0x8   :  { %v2998_v1 = vld [vmem:[%s3816_s29] sm:$0xff]   ;;  %v2999_v2 = vld [vmem:[%s3816_s29 + $0x8] sm:$0xff]   ;;  %s3096_s29 = smov 112   ;;  %s3099_s2 = smov 56  }
   0x9   :  { %2701 = vmatpush3.bf16.msra.mxu1 %v2998_v1  ;;  %v3236_v3 = vld [vmem:[%s3817_s0] sm:$0xff]  ;;  %v3241_v4 = vld [vmem:[%s3817_s0 + $0x8] sm:$0xff]  ;;  %s3100_s23 = smov 64   ;;  %s3101_s0 = smov 48  }
   0xa   :  { %2702 = vmatprep.subr.bf16.mxu1 %v3090_v0  ;;  %v76_v5 = vpack.c.bf16 %v3241_v4, %v3236_v3  ;;  %v2545_v6 = vld [vmem:[%s3818_s26] ss:$0 sm:$0xff]  ;;  %s3102_s10 = smov 40   ;;  %s3819_s25 = sld [smem:[#allocation5_spill]] }
   0xb   :  { %s3800_s26 = smov 8   ;;  %s3821_s24 = sld [smem:[#allocation7_spill]] }
   0xd   :  { %2703 = vmatpush3.bf16.msra.mxu1 %v2999_v2 }
   0xe   :  { %2708 = vmatprep.subr.bf16.mxu1 %v3090_v0 }
  0x10   :  { %2705 = vmatmul.mubr.msk.bf16.vlgmr.msra.gmra.mrb[0].mxu1 %vm100_vm1, %v76_v5 }
  0x11   :  { %2710 = vmatprep.mubr.msk.bf16.mxu1 %vm3091_vm0, %v3090_v0 }
  0xe3   :  { %v138_v7 = vpop.f32.mrb[0].mxu1 }
  0xe4   :  { %v139_v8 = vadd.f32 %v2545_v6, %v138_v7  ;;  %v2706_v9 = vpop.f32.mrb[1].mxu1 }
  0xe5   :  { %v141_v10 = vpop.f32.mrb[2].mxu1 }
  0xe6   :  { %v142_v11 = vadd.f32 %v2545_v6, %v141_v10  ;;  %v2707_v12 = vpop.f32.mrb[3].mxu1  ;;  %v145_v13 = vmul.f32 0.35355338, %v139_v8 }
  0xe8   :  { %v146_v14 = vmul.f32 0.35355338, %v142_v11  ;;  %v3253_v15 = vpack.c.bf16 %v142_v11, %v139_v8 }
  0xea   :  { %v147_v16 = vpack.c.bf16 %v146_v14, %v145_v13  ;;  %150 = vrot.lane.b32.xlu0 %v3253_v15, %s3805_s3  ;;  %v3267_v17 = vrot.slane %v3253_v15, 4 }
  0xec   :  { %261 = vrot.lane.b32.xlu1 %v147_v16, %s3093_s27  ;;  %v608_v18 = vrot.slane %v147_v16, 4 }
  0xee   :  { %263 = vrot.lane.b32.xlu0 %v3253_v15, %s3807_s4 }
  0xf0   :  { %373 = vrot.lane.b32.xlu1 %v3253_v15, %s3803_s28 }
  0xf2   :  { %371 = vrot.lane.b32.xlu0 %v147_v16, %s3096_s29 }
  0xf4   :  { %483 = vrot.lane.b32.xlu1 %v3253_v15, %s3801_s30 }
  0xf6   :  { %481 = vrot.lane.b32.xlu0 %v147_v16, %s3098_s5 }
  0xf8   :  { %610 = vrot.lane.b32.xlu1 %v3267_v17, %s3805_s3 }
  0xfa   :  { %720 = vrot.lane.b32.xlu0 %v3267_v17, %s3807_s4 }
  0xfc   :  { %718 = vrot.lane.b32.xlu1 %v608_v18, %s3093_s27 }
  0xfe   :  { %830 = vrot.lane.b32.xlu0 %v3267_v17, %s3803_s28 }
 0x100   :  { %828 = vrot.lane.b32.xlu1 %v608_v18, %s3096_s29 }
 0x102   :  { %940 = vrot.lane.b32.xlu0 %v3267_v17, %s3801_s30 }
 0x104   :  { %938 = vrot.lane.b32.xlu1 %v608_v18, %s3098_s5 }
 0x15c   :  { %v151_v19 = vpop.permute.xlu0 %150 }
 0x15d   :  { %v157_v20 = vsel %vm152_vm2, %v151_v19, 0 }
 0x15e   :  { %2709 = vmatpush3.bf16.xpose.msra.mxu1 %v157_v20  ;;  %v262_v22 = vpop.permute.xlu1 %261 }
 0x15f   :  { %2720 = vmatprep.subr.bf16.mxu1 %v3090_v0 }
 0x160   :  { %v264_v21 = vpop.permute.xlu0 %263 }
 0x161   :  { %v269_v23 = vsel %vm152_vm2, %v264_v21, 0 }
 0x162   :  { %v374_v24 = vpop.permute.xlu1 %373 }
 0x163   :  { %v379_v25 = vsel %vm152_vm2, %v374_v24, 0 }
 0x164   :  { %v372_v27 = vpop.permute.xlu0 %371 }
 0x165   :  { %2711 = vmatmul.mubr.msk.bf16.vlgmr.msra.gmra.mrb[4].mxu1 %vm152_vm2, %v147_v16 }
 0x166   :  { %2721 = vmatpush3.bf16.xpose.msra.mxu1 %v269_v23  ;;  %2722 = vmatprep.mubr.msk.bf16.mxu1 %vm3091_vm0, %v3090_v0  ;;  %v484_v26 = vpop.permute.xlu1 %483 }
 0x167   :  { %2732 = vmatprep.subr.bf16.mxu1 %v3090_v0  ;;  %v489_v28 = vsel %vm152_vm2, %v484_v26, 0 }
 0x168   :  { %v482_v30 = vpop.permute.xlu0 %481 }
 0x16a   :  { %v611_v29 = vpop.permute.xlu1 %610 }
 0x16b   :  { %v616_v31 = vsel %vm152_vm2, %v611_v29, 0 }
 0x16c   :  { %v721_v32 = vpop.permute.xlu0 %720 }
 0x16d   :  { %2723 = vmatmul.mubr.msk.bf16.vlgmr.msra.gmra.mrb[8].mxu1 %vm152_vm2, %v262_v22  ;;  %v726_v33 = vsel %vm152_vm2, %v721_v32, 0 }
 0x16e   :  { %2733 = vmatpush3.bf16.xpose.msra.mxu1 %v379_v25  ;;  %2734 = vmatprep.mubr.msk.bf16.mxu1 %vm3091_vm0, %v3090_v0  ;;  %v719_v35 = vpop.permute.xlu1 %718 }
 0x16f   :  { %2744 = vmatprep.subr.bf16.mxu1 %v3090_v0 }
 0x170   :  { %v831_v34 = vpop.permute.xlu0 %830 }
 0x171   :  { %v836_v36 = vsel %vm152_vm2, %v831_v34, 0 }
 0x172   :  { %v829_v38 = vpop.permute.xlu1 %828 }
 0x174   :  { %v941_v37 = vpop.permute.xlu0 %940 }
 0x175   :  { %2735 = vmatmul.mubr.msk.bf16.vlgmr.msra.gmra.mrb[12].mxu1 %vm152_vm2, %v372_v27  ;;  %v946_v39 = vsel %vm152_vm2, %v941_v37, 0 }
 0x176   :  { %2745 = vmatpush3.bf16.xpose.msra.mxu1 %v489_v28  ;;  %2746 = vmatprep.mubr.msk.bf16.mxu1 %vm3091_vm0, %v3090_v0  ;;  %v939_v40 = vpop.permute.xlu1 %938 }
 0x177   :  { %2756 = vmatprep.subr.bf16.mxu1 %v3090_v0 }
 0x17d   :  { %2747 = vmatmul.mubr.msk.bf16.vlgmr.msra.gmra.mrb[16].mxu1 %vm152_vm2, %v482_v30 }
 0x17e   :  { %2757 = vmatpush3.bf16.xpose.msra.mxu1 %v616_v31  ;;  %2758 = vmatprep.mubr.msk.bf16.mxu1 %vm3091_vm0, %v3090_v0 }
 0x17f   :  { %2768 = vmatprep.subr.bf16.mxu1 %v3090_v0 }
 0x185   :  { %2759 = vmatmul.mubr.msk.bf16.vlgmr.msra.gmra.mrb[20].mxu1 %vm152_vm2, %v608_v18 }
 0x186   :  { %2769 = vmatpush3.bf16.xpose.msra.mxu1 %v726_v33  ;;  %2770 = vmatprep.mubr.msk.bf16.mxu1 %vm3091_vm0, %v3090_v0 }
 0x187   :  { %2780 = vmatprep.subr.bf16.mxu1 %v3090_v0 }
 0x18d   :  { %2771 = vmatmul.mubr.msk.bf16.vlgmr.msra.gmra.mrb[24].mxu1 %vm152_vm2, %v719_v35 }
 0x18e   :  { %2781 = vmatpush3.bf16.xpose.msra.mxu1 %v836_v36  ;;  %2782 = vmatprep.mubr.msk.bf16.mxu1 %vm3091_vm0, %v3090_v0 }
 0x18f   :  { %2792 = vmatprep.subr.bf16.mxu1 %v3090_v0 }
 0x195   :  { %2783 = vmatmul.mubr.msk.bf16.vlgmr.msra.gmra.mrb[28].mxu1 %vm152_vm2, %v829_v38 }
 0x196   :  { %2793 = vmatpush3.bf16.xpose.msra.mxu1 %v946_v39  ;;  %2794 = vmatprep.mubr.msk.bf16.mxu1 %vm3091_vm0, %v3090_v0 }
 0x197   :  { %2804 = vmatprep.subr.bf16.mxu1 %v3090_v0 }
 0x19d   :  { %2795 = vmatmul.mubr.msk.bf16.vlgmr.msra.gmra.mrb[32].mxu1 %vm152_vm2, %v939_v40 }
 0x19e   :  { %2808 = vmatprep.mubr.msk.bf16.mxu1 %vm3091_vm0, %v3090_v0 }
 0x238   :  { %v193_v41 = vpop.f32.mrb[4].mxu1 }
 0x239   :  { %v2712_v42 = vpop.f32.mrb[5].mxu1  ;;  %v199_v43 = vsel %vm152_vm2, %v193_v41, -inf }
 0x23a   :  { %200 = vmax.xlane.f32.xlu0 %v199_v43  ;;  %v196_v44 = vpop.f32.mrb[6].mxu1 }
 0x23b   :  { %v2713_v45 = vpop.f32.mrb[7].mxu1 }
 0x240   :  { %v305_v46 = vpop.f32.mrb[8].mxu1 }
 0x241   :  { %v2724_v47 = vpop.f32.mrb[9].mxu1  ;;  %v311_v48 = vsel %vm152_vm2, %v305_v46, -inf }
 0x242   :  { %312 = vmax.xlane.f32.xlu1 %v311_v48  ;;  %v308_v49 = vpop.f32.mrb[10].mxu1 }
 0x243   :  { %v2725_v50 = vpop.f32.mrb[11].mxu1 }
 0x248   :  { %v415_v51 = vpop.f32.mrb[12].mxu1 }
 0x249   :  { %v2736_v52 = vpop.f32.mrb[13].mxu1  ;;  %v421_v53 = vsel %vm152_vm2, %v415_v51, -inf }
 0x24a   :  { %422 = vmax.xlane.f32.xlu0 %v421_v53  ;;  %v418_v54 = vpop.f32.mrb[14].mxu1 }
 0x24b   :  { %v2737_v55 = vpop.f32.mrb[15].mxu1 }
 0x250   :  { %v3323_v56 = vpop.f32.mrb[16].mxu1 }
 0x251   :  { %v2748_v57 = vpop.f32.mrb[17].mxu1  ;;  %v531_v58 = vsel %vm152_vm2, %v3323_v56, -inf }
 0x252   :  { %532 = vmax.xlane.f32.xlu0 %v531_v58  ;;  %v528_v59 = vpop.f32.mrb[18].mxu1 }
 0x253   :  { %v2749_v60 = vpop.f32.mrb[19].mxu1 }
 0x258   :  { %v3327_v61 = vpop.f32.mrb[20].mxu1 }
 0x259   :  { %v2760_v62 = vpop.f32.mrb[21].mxu1  ;;  %v658_v63 = vsel %vm152_vm2, %v3327_v61, -inf }
 0x25a   :  { %659 = vmax.xlane.f32.xlu1 %v658_v63  ;;  %v655_v1 = vpop.f32.mrb[22].mxu1 }
 0x25b   :  { %v2761_v2 = vpop.f32.mrb[23].mxu1 }
 0x260   :  { %v3331_v5 = vpop.f32.mrb[24].mxu1 }
 0x261   :  { %v2772_v6 = vpop.f32.mrb[25].mxu1  ;;  %v768_v7 = vsel %vm152_vm2, %v3331_v5, -inf }
 0x262   :  { %769 = vmax.xlane.f32.xlu0 %v768_v7  ;;  %v765_v8 = vpop.f32.mrb[26].mxu1 }
 0x263   :  { %v2773_v9 = vpop.f32.mrb[27].mxu1 }
 0x268   :  { %v872_v10 = vpop.f32.mrb[28].mxu1 }
 0x269   :  { %v2784_v11 = vpop.f32.mrb[29].mxu1  ;;  %v878_v12 = vsel %vm152_vm2, %v872_v10, -inf }
 0x26a   :  { %879 = vmax.xlane.f32.xlu1 %v878_v12  ;;  %v875_v13 = vpop.f32.mrb[30].mxu1 }
 0x26b   :  { %v2785_v14 = vpop.f32.mrb[31].mxu1 }
 0x270   :  { %v3336_v16 = vpop.f32.mrb[32].mxu1 }
 0x271   :  { %v2796_v18 = vpop.f32.mrb[33].mxu1  ;;  %v988_v21 = vsel %vm152_vm2, %v3336_v16, -inf }
 0x272   :  { %v985_v19 = vpop.f32.mrb[34].mxu1 }
 0x273   :  { %v2797_v20 = vpop.f32.mrb[35].mxu1 }
 0x278   :  { %323 = vrot.lane.b32.xlu0 %v3253_v15, %s3099_s2 }
 0x27b   :  { %211 = vrot.lane.b32.xlu1 %v3253_v15, %s3100_s23 }
 0x297   :  { %989 = vmax.xlane.f32.xlu0 %v988_v21 }
 0x2c7   :  { %v201_v22 = vpop.xlane.xlu0 %200 }
 0x2c8   :  { %v202_v23 = vsub.f32 %v193_v41, %v201_v22 }
 0x2ca   :  { %v203_v24 = vmul.f32 1.442695, %v202_v23 }
 0x2cc   :  { %3014 = vpow2.f32 %v203_v24 }
 0x2cf   :  { %v313_v25 = vpop.xlane.xlu1 %312 }
 0x2d0   :  { %v314_v26 = vsub.f32 %v305_v46, %v313_v25 }
 0x2d2   :  { %v315_v27 = vmul.f32 1.442695, %v314_v26 }
 0x2d4   :  { %3016 = vpow2.f32 %v315_v27 }
 0x2d6   :  { %v3344_v28 = vpop.eup %3014 }
 0x2d7   :  { %v423_v29 = vpop.xlane.xlu0 %422  ;;  %v205_v30 = vsel %vm152_vm2, %v3344_v28, 0.0 }
 0x2d8   :  { %v424_v31 = vsub.f32 %v415_v51, %v423_v29  ;;  %206 = vadd.xlane.f32.xlu1 %v205_v30 }
 0x2da   :  { %v425_v32 = vmul.f32 1.442695, %v424_v31 }
 0x2dc   :  { %3018 = vpow2.f32 %v425_v32 }
 0x2de   :  { %v3348_v33 = vpop.eup %3016 }
 0x2df   :  { %v317_v34 = vsel %vm152_vm2, %v3348_v33, 0.0  ;;  %v533_v40 = vpop.xlane.xlu0 %532 }
 0x2e0   :  { %318 = vadd.xlane.f32.xlu0 %v317_v34  ;;  %v534_v42 = vsub.f32 %v3323_v56, %v533_v40 }
 0x2e2   :  { %v535_v43 = vmul.f32 1.442695, %v534_v42 }
 0x2e4   :  { %3020 = vpow2.f32 %v535_v43 }
 0x2e6   :  { %v3352_v35 = vpop.eup %3018 }
 0x2e7   :  { %v427_v36 = vsel %vm152_vm2, %v3352_v35, 0.0  ;;  %v660_v37 = vpop.xlane.xlu1 %659 }
 0x2e8   :  { %428 = vadd.xlane.f32.xlu1 %v427_v36  ;;  %v661_v44 = vsub.f32 %v3327_v61, %v660_v37 }
 0x2ea   :  { %v662_v47 = vmul.f32 1.442695, %v661_v44 }
 0x2ec   :  { %3022 = vpow2.f32 %v662_v47 }
 0x2ee   :  { %v3021_v50 = vpop.eup %3020 }
 0x2ef   :  { %v770_v45 = vpop.xlane.xlu0 %769  ;;  %v537_v51 = vsel %vm152_vm2, %v3021_v50, 0.0 }
 0x2f0   :  { %v771_v46 = vsub.f32 %v3331_v5, %v770_v45 }
 0x2f3   :  { %v324_v58 = vpop.permute.xlu0 %323 }
 0x2f4   :  { %v329_v8 = vsel %vm216_vm3, %v324_v58, 0 }
 0x2f6   :  { %433 = vrot.lane.b32.xlu0 %v3253_v15, %s3101_s0  ;;  %v3366_v52 = vpop.eup %3022 }
 0x2f7   :  { %v880_v38 = vpop.xlane.xlu1 %879  ;;  %v664_v54 = vsel %vm152_vm2, %v3366_v52, 0.0 }
 0x2f8   :  { %v881_v48 = vsub.f32 %v872_v10, %v880_v38 }
 0x2f9   :  { %543 = vrot.lane.b32.xlu1 %v3253_v15, %s3102_s10  ;;  %v772_v15 = vmul.f32 1.442695, %v771_v46 }
 0x2fa   :  { %v882_v49 = vmul.f32 1.442695, %v881_v48 }
 0x2fb   :  { %v212_v39 = vpop.permute.xlu1 %211  ;;  %3024 = vpow2.f32 %v772_v15 }
 0x2fc   :  { %v218_v41 = vsel %vm216_vm3, %v212_v39, 0  ;;  %3026 = vpow2.f32 %v882_v49 }
 0x2fd   :  { %2715 = vmatpush3.bf16.msra.mxu0 %v218_v41 }
 0x2fe   :  { %2726 = vmatprep.subr.bf16.mxu0 %v3090_v0 }
 0x305   :  { %v3368_v53 = vpop.eup %3024 }
 0x306   :  { %v3372_v55 = vpop.eup %3026  ;;  %v774_v56 = vsel %vm152_vm2, %v3368_v53, 0.0 }
 0x307   :  { %v884_v57 = vsel %vm152_vm2, %v3372_v55, 0.0 }
 0x315   :  { %538 = vadd.xlane.f32.xlu0 %v537_v51 }
 0x319   :  { %665 = vadd.xlane.f32.xlu0 %v664_v54 }
 0x31d   :  { %775 = vadd.xlane.f32.xlu1 %v774_v56  ;;  %885 = vadd.xlane.f32.xlu0 %v884_v57 }
 0x324   :  { %v990_v59 = vpop.xlane.xlu0 %989 }
 0x325   :  { %v991_v60 = vsub.f32 %v3336_v16, %v990_v59 }
 0x327   :  { %v992_v61 = vmul.f32 1.442695, %v991_v60 }
 0x329   :  { %3028 = vpow2.f32 %v992_v61 }
 0x32e   :  { %780 = vrot.lane.b32.xlu1 %v3267_v17, %s3099_s2  ;;  %s3829_s2 = smov 24  }
 0x332   :  { %890 = vrot.lane.b32.xlu1 %v3267_v17, %s3101_s0  ;;  %s3799_s0 = smov 16  }
 0x333   :  { %v3383_v62 = vpop.eup %3028 }
 0x334   :  { %v994_v63 = vsel %vm152_vm2, %v3383_v62, 0.0 }
 0x335   :  { %995 = vadd.xlane.f32.xlu0 %v994_v63 }
 0x336   :  { %1000 = vrot.lane.b32.xlu1 %v3267_v17, %s3102_s10  ;;  %s3798_s10 = smov 24  }
 0x34b   :  { %670 = vrot.lane.b32.xlu0 %v3267_v17, %s3100_s23 }
 0x365   :  { %v207_v1 = vpop.xlane.xlu1 %206 }
 0x366   :  { %3030 = vrcp.f32 %v207_v1 }
 0x36d   :  { %v319_v2 = vpop.xlane.xlu0 %318 }
 0x36e   :  { %3032 = vrcp.f32 %v319_v2 }
 0x370   :  { %v3031_v5 = vpop.eup %3030 }
 0x371   :  { %v209_v6 = vmul.f32 %v3031_v5, %v3344_v28  ;;  %v434_v11 = vpop.permute.xlu0 %433 }
 0x372   :  { %v439_v13 = vsel %vm216_vm3, %v434_v11, 0 }
 0x373   :  { %v210_v7 = vpack.c.bf16 %v209_v6, %v209_v6 }
 0x375   :  { %2717 = vmatmul.mubr.msk.bf16.vlgmr.msra.gmra.mrb[0].mxu0 %vm152_vm2, %v210_v7  ;;  %v429_v9 = vpop.xlane.xlu1 %428 }
 0x376   :  { %2727 = vmatpush3.bf16.msra.mxu0 %v329_v8  ;;  %3034 = vrcp.f32 %v429_v9  ;;  %2728 = vmatprep.mubr.msk.bf16.mxu0 %vm3091_vm0, %v3090_v0 }
 0x377   :  { %2738 = vmatprep.subr.bf16.mxu0 %v3090_v0 }
 0x378   :  { %v3033_v17 = vpop.eup %3032 }
 0x379   :  { %v321_v10 = vmul.f32 %v3033_v17, %v3348_v33  ;;  %v544_v18 = vpop.permute.xlu1 %543  ;;  %v3000_v17 = vld [vmem:[%s3819_s25] sm:$0xff]  }
 0x37a   :  { %v549_v20 = vsel %vm216_vm3, %v544_v18, 0  ;;  %2805 = vmatpush3.bf16.msra.mxu1 %v3000_v17 }
 0x37b   :  { %v322_v12 = vpack.c.bf16 %v321_v10, %v321_v10  ;;  %2806 = vmatprep.subr.bf16.mxu1 %v3090_v0 }
 0x37d   :  { %2729 = vmatmul.mubr.msk.bf16.vlgmr.msra.gmra.mrb[4].mxu0 %vm152_vm2, %v322_v12  ;;  %v3001_v12 = vld [vmem:[%s3819_s25 + $0x8] sm:$0xff]   ;;  %s3820_s25 = sld [smem:[#allocation6_spill]] }
 0x37e   :  { %2739 = vmatpush3.bf16.msra.mxu0 %v439_v13  ;;  %2740 = vmatprep.mubr.msk.bf16.mxu0 %vm3091_vm0, %v3090_v0 }
 0x37f   :  { %2750 = vmatprep.subr.bf16.mxu0 %v3090_v0  ;;  %2807 = vmatpush3.bf16.msra.mxu1 %v3001_v12 }
 0x380   :  { %v3035_v14 = vpop.eup %3034  ;;  %2820 = vmatprep.subr.bf16.mxu1 %v3090_v0 }
 0x381   :  { %v431_v16 = vmul.f32 %v3035_v14, %v3352_v35 }
 0x383   :  { %v432_v19 = vpack.c.bf16 %v431_v16, %v431_v16 }
 0x385   :  { %2741 = vmatmul.mubr.msk.bf16.vlgmr.msra.gmra.mrb[8].mxu0 %vm152_vm2, %v432_v19 }
 0x386   :  { %2751 = vmatpush3.bf16.msra.mxu0 %v549_v20  ;;  %2752 = vmatprep.mubr.msk.bf16.mxu0 %vm3091_vm0, %v3090_v0 }
 0x387   :  { %2762 = vmatprep.subr.bf16.mxu0 %v3090_v0 }
 0x3a2   :  { %v539_v21 = vpop.xlane.xlu0 %538 }
 0x3a3   :  { %3036 = vrcp.f32 %v539_v21 }
 0x3a6   :  { %v666_v25 = vpop.xlane.xlu0 %665 }
 0x3a7   :  { %3038 = vrcp.f32 %v666_v25 }
 0x3aa   :  { %v776_v26 = vpop.xlane.xlu1 %775  ;;  %v886_v27 = vpop.xlane.xlu0 %885 }
 0x3ab   :  { %3040 = vrcp.f32 %v776_v26 }
 0x3ac   :  { %3042 = vrcp.f32 %v886_v27 }
 0x3ad   :  { %v3037_v22 = vpop.eup %3036 }
 0x3ae   :  { %v541_v23 = vmul.f32 %v3037_v22, %v3021_v50  ;;  %v781_v33 = vpop.permute.xlu1 %780 }
 0x3af   :  { %v786_v36 = vsel %vm216_vm3, %v781_v33, 0 }
 0x3b0   :  { %v542_v24 = vpack.c.bf16 %v541_v23, %v541_v23 }
 0x3b1   :  { %v3039_v28 = vpop.eup %3038 }
 0x3b2   :  { %2753 = vmatmul.mubr.msk.bf16.vlgmr.msra.gmra.mrb[12].mxu0 %vm152_vm2, %v542_v24  ;;  %v668_v30 = vmul.f32 %v3039_v28, %v3366_v52  ;;  %v891_v38 = vpop.permute.xlu1 %890 }
 0x3b3   :  { %2764 = vmatprep.mubr.msk.bf16.mxu0 %vm3091_vm0, %v3090_v0  ;;  %v896_v41 = vsel %vm216_vm3, %v891_v38, 0 }
 0x3b4   :  { %v669_v34 = vpack.c.bf16 %v668_v30, %v668_v30 }
 0x3b5   :  { %v3041_v35 = vpop.eup %3040 }
 0x3b6   :  { %v778_v37 = vmul.f32 %v3041_v35, %v3368_v53  ;;  %v3043_v40 = vpop.eup %3042  ;;  %v1001_v43 = vpop.permute.xlu1 %1000 }
 0x3b7   :  { %v888_v42 = vmul.f32 %v3043_v40, %v3372_v55  ;;  %v1006_v46 = vsel %vm216_vm3, %v1001_v43, 0 }
 0x3b8   :  { %v779_v39 = vpack.c.bf16 %v778_v37, %v778_v37 }
 0x3b9   :  { %v889_v44 = vpack.c.bf16 %v888_v42, %v888_v42 }
 0x3c2   :  { %v996_v29 = vpop.xlane.xlu0 %995 }
 0x3c3   :  { %3044 = vrcp.f32 %v996_v29 }
 0x3c6   :  { %v671_v31 = vpop.permute.xlu0 %670 }
 0x3c7   :  { %v676_v32 = vsel %vm216_vm3, %v671_v31, 0 }
 0x3c8   :  { %2763 = vmatpush3.bf16.msra.mxu0 %v676_v32 }
 0x3c9   :  { %2774 = vmatprep.subr.bf16.mxu0 %v3090_v0 }
 0x3cb   :  { %2765 = vmatmul.mubr.msk.bf16.vlgmr.msra.gmra.mrb[16].mxu0 %vm152_vm2, %v669_v34 }
 0x3cc   :  { %2775 = vmatpush3.bf16.msra.mxu0 %v786_v36  ;;  %2776 = vmatprep.mubr.msk.bf16.mxu0 %vm3091_vm0, %v3090_v0 }
 0x3cd   :  { %2786 = vmatprep.subr.bf16.mxu0 %v3090_v0  ;;  %v3045_v45 = vpop.eup %3044 }
 0x3ce   :  { %v998_v47 = vmul.f32 %v3045_v45, %v3383_v62 }
 0x3d0   :  { %v999_v48 = vpack.c.bf16 %v998_v47, %v998_v47 }
 0x3d3   :  { %2777 = vmatmul.mubr.msk.bf16.vlgmr.msra.gmra.mrb[20].mxu0 %vm152_vm2, %v779_v39 }
 0x3d4   :  { %2787 = vmatpush3.bf16.msra.mxu0 %v896_v41  ;;  %2788 = vmatprep.mubr.msk.bf16.mxu0 %vm3091_vm0, %v3090_v0  ;;  %v2565_v41 = vld [vmem:[%s3820_s25] ss:$0 sm:$0xff]  ;;  %s3828_s25 = smov 16  }
 0x3d5   :  { %2798 = vmatprep.subr.bf16.mxu0 %v3090_v0 }
 0x3db   :  { %2789 = vmatmul.mubr.msk.bf16.vlgmr.msra.gmra.mrb[24].mxu0 %vm152_vm2, %v889_v44 }
 0x3dc   :  { %2799 = vmatpush3.bf16.msra.mxu0 %v1006_v46  ;;  %2800 = vmatprep.mubr.msk.bf16.mxu0 %vm3091_vm0, %v3090_v0 }
 0x3dd   :  { %2812 = vmatprep.subr.bf16.mxu0 %v3090_v0 }
 0x3e3   :  { %2801 = vmatmul.mubr.msk.bf16.vlgmr.msra.gmra.mrb[28].mxu0 %vm152_vm2, %v999_v48 }
 0x3e4   :  { %2816 = vmatprep.mubr.msk.bf16.mxu0 %vm3091_vm0, %v3090_v0 }
 0x448   :  { %v254_v15 = vpop.f32.mrb[0].mxu0 }
 0x449   :  { %v2718_v49 = vpop.f32.mrb[1].mxu0 }
 0x44a   :  { %v257_v50 = vpop.f32.mrb[2].mxu0 }
 0x44b   :  { %v2719_v51 = vpop.f32.mrb[3].mxu0 }
 0x450   :  { %v365_v52 = vpop.f32.mrb[4].mxu0 }
 0x451   :  { %v2730_v53 = vpop.f32.mrb[5].mxu0 }
 0x452   :  { %v368_v54 = vpop.f32.mrb[6].mxu0 }
 0x453   :  { %v2731_v55 = vpop.f32.mrb[7].mxu0 }
 0x458   :  { %v475_v56 = vpop.f32.mrb[8].mxu0 }
 0x459   :  { %v2742_v57 = vpop.f32.mrb[9].mxu0 }
 0x45a   :  { %v478_v58 = vpop.f32.mrb[10].mxu0 }
 0x45b   :  { %v2743_v59 = vpop.f32.mrb[11].mxu0 }
 0x485   :  { %v585_v60 = vpop.f32.mrb[12].mxu0 }
 0x486   :  { %v2754_v61 = vpop.f32.mrb[13].mxu0 }
 0x487   :  { %v588_v62 = vpop.f32.mrb[14].mxu0 }
 0x488   :  { %v2755_v63 = vpop.f32.mrb[15].mxu0  ;;  %v74_v62 = vld [vmem:[%s3777_s1] sm:$0xff] }
 0x489   :  { %v75_v63 = vld [vmem:[%s3777_s1 + $0x8] sm:$0xff] }
 0x49e   :  { %v712_v1 = vpop.f32.mrb[16].mxu0 }
 0x49f   :  { %v2766_v2 = vpop.f32.mrb[17].mxu0 }
 0x4a0   :  { %v715_v5 = vpop.f32.mrb[18].mxu0 }
 0x4a1   :  { %v2767_v6 = vpop.f32.mrb[19].mxu0 }
 0x4a6   :  { %v822_v7 = vpop.f32.mrb[20].mxu0 }
 0x4a7   :  { %v2968_v8 = vpack.i.bf16 %v822_v7, %v365_v52  ;;  %v2778_v9 = vpop.f32.mrb[21].mxu0 }
 0x4a8   :  { %v825_v10 = vpop.f32.mrb[22].mxu0 }
 0x4a9   :  { %2969 = vrot.lane.b32.xlu1 %v2968_v8, %s3800_s26  ;;  %v2779_v11 = vpop.f32.mrb[23].mxu0  ;;  %s3822_s26 = sld [smem:[#allocation8_spill]] }
 0x4aa   :  { %v2569_v11 = vld [vmem:[%s3778_s6] ss:$0 sm:$0xff] }
 0x4ae   :  { %v932_v13 = vpop.f32.mrb[24].mxu0 }
 0x4af   :  { %v2973_v14 = vpack.i.bf16 %v932_v13, %v475_v56  ;;  %v2790_v16 = vpop.f32.mrb[25].mxu0  ;;  %v3004_v61 = vld [vmem:[%s3822_s26] sm:$0xff]   ;;  %v3005_v2 = vld [vmem:[%s3822_s26 + $0x8] sm:$0xff]  }
 0x4b0   :  { %v935_v18 = vpop.f32.mrb[26].mxu0  ;;  %2813 = vmatpush3.bf16.msra.mxu0 %v3004_v61 }
 0x4b1   :  { %2974 = vrot.lane.b32.xlu1 %v2973_v14, %s3799_s0  ;;  %v2791_v19 = vpop.f32.mrb[27].mxu0  ;;  %2814 = vmatprep.subr.bf16.mxu0 %v3090_v0  ;;  %v2570_v18 = vld [vmem:[%s3779_s7] ss:$0 sm:$0xff] }
 0x4b4   :  { %2815 = vmatpush3.bf16.msra.mxu0 %v3005_v2 }
 0x4b5   :  { %2828 = vmatprep.subr.bf16.mxu0 %v3090_v0 }
 0x4b6   :  { %v1042_v20 = vpop.f32.mrb[28].mxu0 }
 0x4b7   :  { %v2978_v21 = vpack.i.bf16 %v1042_v20, %v585_v60  ;;  %v2802_v22 = vpop.f32.mrb[29].mxu0  ;;  %v3003_v60 = vld [vmem:[%s3821_s24 + $0x8] sm:$0xff]  }
 0x4b8   :  { %v1045_v23 = vpop.f32.mrb[30].mxu0 }
 0x4b9   :  { %2979 = vrot.lane.b32.xlu0 %v2978_v21, %s3798_s10  ;;  %v2803_v24 = vpop.f32.mrb[31].mxu0  ;;  %v2575_v23 = vld [vmem:[%s3780_s11] ss:$0 sm:$0xff]  ;;  %s3824_s11 = smov 96   ;;  %s3827_s10 = smov 8  }
 0x51b   :  { %v2970_v25 = vpop.permute.xlu1 %2969 }
 0x51c   :  { %v2972_v27 = vunpack.i.h.bf16 %v2970_v25  ;;  %v2971_v28 = vunpack.i.l.bf16 %v2970_v25 }
 0x51e   :  { %v1060_v32 = vsel %vm152_vm2, %v712_v1, %v2972_v27  ;;  %v603_v33 = vsel %vm152_vm2, %v254_v15, %v2971_v28  ;;  %v1246_v1 = vpack.c.bf16 %v75_v63, %v74_v62 }
 0x523   :  { %v2975_v26 = vpop.permute.xlu1 %2974 }
 0x524   :  { %v2977_v29 = vunpack.i.h.bf16 %v2975_v26  ;;  %v2976_v30 = vunpack.i.l.bf16 %v2975_v26 }
 0x526   :  { %v1061_v36 = vsel %vm604_vm4, %v1060_v32, %v2977_v29  ;;  %v605_v37 = vsel %vm604_vm4, %v603_v33, %v2976_v30  ;;  %v2571_v32 = vld [vmem:[%s3781_s9] ss:$0 sm:$0xff]  ;;  %s3823_s9 = smov 88  }
 0x52b   :  { %v2980_v31 = vpop.permute.xlu0 %2979 }
 0x52c   :  { %v2982_v34 = vunpack.i.h.bf16 %v2980_v31  ;;  %v2981_v35 = vunpack.i.l.bf16 %v2980_v31 }
 0x52e   :  { %v1062_v38 = vsel %vm606_vm5, %v1061_v36, %v2982_v34  ;;  %v607_v39 = vsel %vm606_vm5, %v605_v37, %v2981_v35 }
 0x52f   :  { %v1063_v40 = vpack.c.bf16 %v1062_v38, %v607_v39 }
 0x531   :  { %2809 = vmatmul.mubr.msk.bf16.vlgmr.msra.gmra.mrb[36].mxu1 %vm100_vm1, %v1063_v40 }
 0x532   :  { %2824 = vmatprep.mubr.msk.bf16.mxu1 %vm3091_vm0, %v3090_v0 }
 0x604   :  { %v1124_v42 = vpop.f32.mrb[36].mxu1 }
 0x605   :  { %v1125_v43 = vadd.f32 %v2565_v41, %v1124_v42  ;;  %v2810_v44 = vpop.f32.mrb[37].mxu1 }
 0x606   :  { %v1127_v45 = vpop.f32.mrb[38].mxu1 }
 0x607   :  { %v1128_v46 = vadd.f32 %v2565_v41, %v1127_v45  ;;  %v2811_v47 = vpop.f32.mrb[39].mxu1  ;;  %v1131_v48 = vadd.f32 %v1125_v43, %v3236_v3 }
 0x609   :  { %v1135_v15 = vsel %vm100_vm1, %v1131_v48, 0.0  ;;  %v1132_v49 = vadd.f32 %v1128_v46, %v3241_v4  ;;  %v3002_v4 = vld [vmem:[%s3821_s24] sm:$0xff]  }
 0x60a   :  { %1136 = vadd.xlane.f32.xlu1 %v1135_v15  ;;  %2821 = vmatpush3.bf16.msra.mxu1 %v3002_v4 }
 0x60b   :  { %v1138_v50 = vsel %vm100_vm1, %v1132_v49, 0.0  ;;  %2822 = vmatprep.subr.bf16.mxu1 %v3090_v0 }
 0x60c   :  { %1139 = vadd.xlane.f32.xlu0 %v1138_v50 }
 0x60e   :  { %2823 = vmatpush3.bf16.msra.mxu1 %v3003_v60 }
 0x60f   :  { %2834 = vmatprep.subr.bf16.mxu1 %v3090_v0 }
 0x611   :  { %2825 = vmatmul.mubr.msk.bf16.vlgmr.msra.gmra.mrb[40].mxu1 %vm100_vm1, %v1246_v1 }
 0x612   :  { %2836 = vmatprep.mubr.msk.bf16.mxu1 %vm3091_vm0, %v3090_v0 }
 0x697   :  { %v1137_v51 = vpop.xlane.xlu1 %1136 }
 0x698   :  { %v1142_v52 = vmul.f32 0.03125, %v1137_v51 }
 0x699   :  { %v1140_v53 = vpop.xlane.xlu0 %1139 }
 0x69a   :  { %v1144_v54 = vsub.f32 %v1131_v48, %v1142_v52  ;;  %v1143_v55 = vmul.f32 0.03125, %v1140_v53 }
 0x69c   :  { %v1145_v56 = vsub.f32 %v1132_v49, %v1143_v55  ;;  %v1146_v57 = vmul.f32 %v1144_v54, %v1144_v54 }
 0x69e   :  { %v1148_v58 = vsel %vm100_vm1, %v1146_v57, 0.0  ;;  %v1147_v59 = vmul.f32 %v1145_v56, %v1145_v56 }
 0x69f   :  { %1149 = vadd.xlane.f32.xlu0 %v1148_v58 }
 0x6a0   :  { %v1151_v3 = vsel %vm100_vm1, %v1147_v59, 0.0 }
 0x6a1   :  { %1152 = vadd.xlane.f32.xlu1 %v1151_v3 }
 0x6e4   :  { %v1307_v24 = vpop.f32.mrb[40].mxu1 }
 0x6e5   :  { %v1308_v25 = vadd.f32 %v2575_v23, %v1307_v24  ;;  %v2826_v26 = vpop.f32.mrb[41].mxu1 }
 0x6e6   :  { %v1310_v27 = vpop.f32.mrb[42].mxu1 }
 0x6e7   :  { %v1311_v28 = vadd.f32 %v2575_v23, %v1310_v27  ;;  %v2827_v29 = vpop.f32.mrb[43].mxu1 }
 0x6e9   :  { %v3508_v30 = vpack.c.bf16 %v1311_v28, %v1308_v25 }
 0x6eb   :  { %1428 = vrot.lane.b32.xlu0 %v3508_v30, %s3093_s27  ;;  %v1322_v31 = vsel %vm152_vm2, %v3508_v30, 0  ;;  %v3532_v45 = vrot.slane %v3508_v30, 4 }
 0x6ed   :  { %v1777_v52 = vsel %vm152_vm2, %v3532_v45, 0 }
 0x72c   :  { %v1150_v5 = vpop.xlane.xlu0 %1149 }
 0x72d   :  { %v1154_v6 = vmul.f32 0.03125, %v1150_v5 }
 0x72e   :  { %v1153_v7 = vpop.xlane.xlu1 %1152 }
 0x72f   :  { %v1156_v8 = vadd.f32 1e-05, %v1154_v6  ;;  %v1155_v9 = vmul.f32 0.03125, %v1153_v7 }
 0x731   :  { %3046 = vrsqrt.f32 %v1156_v8  ;;  %v1157_v17 = vadd.f32 1e-05, %v1155_v9 }
 0x733   :  { %3048 = vrsqrt.f32 %v1157_v17 }
 0x73b   :  { %v3047_v10 = vpop.eup %3046 }
 0x73c   :  { %v1160_v12 = vmul.f32 %v3047_v10, %v1144_v54 }
 0x73d   :  { %v3049_v13 = vpop.eup %3048 }
 0x73e   :  { %v1168_v14 = vmul.f32 %v2569_v11, %v1160_v12  ;;  %v1161_v16 = vmul.f32 %v3049_v13, %v1145_v56 }
 0x740   :  { %v1169_v19 = vmul.f32 %v2569_v11, %v1161_v16  ;;  %v3496_v20 = vadd.f32 %v2570_v18, %v1168_v14 }
 0x742   :  { %v3498_v21 = vadd.f32 %v2570_v18, %v1169_v19 }
 0x744   :  { %v1178_v22 = vpack.c.bf16 %v3498_v21, %v3496_v20 }
 0x746   :  { %2817 = vmatmul.mubr.msk.bf16.vlgmr.msra.gmra.mrb[32].mxu0 %vm100_vm1, %v1178_v22 }
 0x747   :  { %2830 = vmatprep.mubr.msk.bf16.mxu0 %vm3091_vm0, %v3090_v0  ;;  %2829 = vmatpush3.bf16.xpose.msra.mxu0 %v1322_v31 }
 0x748   :  { %2840 = vmatprep.subr.bf16.mxu0 %v3090_v0 }
 0x75d   :  { %v1429_v41 = vpop.permute.xlu0 %1428 }
 0x75e   :  { %v1434_v43 = vsel %vm152_vm2, %v1429_v41, 0 }
 0x819   :  { %v1239_v33 = vpop.f32.mrb[32].mxu0 }
 0x81a   :  { %v1240_v34 = vadd.f32 %v2571_v32, %v1239_v33  ;;  %v2818_v35 = vpop.f32.mrb[33].mxu0 }
 0x81b   :  { %v1242_v36 = vpop.f32.mrb[34].mxu0 }
 0x81c   :  { %v1243_v37 = vadd.f32 %v2571_v32, %v1242_v36  ;;  %v2819_v38 = vpop.f32.mrb[35].mxu0  ;;  %v1314_v39 = vmul.f32 0.35355338, %v1240_v34 }
 0x81e   :  { %v1315_v40 = vmul.f32 0.35355338, %v1243_v37 }
 0x820   :  { %v1316_v42 = vpack.c.bf16 %v1315_v40, %v1314_v39 }
 0x822   :  { %1426 = vrot.lane.b32.xlu1 %v1316_v42, %s3093_s27  ;;  %1536 = vrot.lane.b32.xlu0 %v1316_v42, %s3096_s29  ;;  %v1771_v44 = vrot.slane %v1316_v42, 4 }
 0x823   :  { %2831 = vmatmul.mubr.msk.bf16.vlgmr.msra.gmra.mrb[36].mxu0 %vm152_vm2, %v1316_v42 }
 0x824   :  { %2841 = vmatpush3.bf16.xpose.msra.mxu0 %v1434_v43  ;;  %2842 = vmatprep.mubr.msk.bf16.mxu0 %vm3091_vm0, %v3090_v0 }
 0x825   :  { %2852 = vmatprep.subr.bf16.mxu0 %v3090_v0 }
 0x826   :  { %1538 = vrot.lane.b32.xlu1 %v3508_v30, %s3096_s29  ;;  %1646 = vrot.lane.b32.xlu0 %v1316_v42, %s3098_s5 }
 0x82a   :  { %1648 = vrot.lane.b32.xlu1 %v3508_v30, %s3098_s5  ;;  %1879 = vrot.lane.b32.xlu0 %v1771_v44, %s3093_s27 }
 0x82e   :  { %1989 = vrot.lane.b32.xlu0 %v1771_v44, %s3096_s29  ;;  %1881 = vrot.lane.b32.xlu1 %v3532_v45, %s3093_s27  ;;  %s3825_s27 = smov 80  }
 0x832   :  { %2099 = vrot.lane.b32.xlu0 %v1771_v44, %s3098_s5  ;;  %1991 = vrot.lane.b32.xlu1 %v3532_v45, %s3096_s29  ;;  %s3826_s29 = smov 72  }
 0x836   :  { %2101 = vrot.lane.b32.xlu1 %v3532_v45, %s3098_s5 }
 0x894   :  { %v1427_v46 = vpop.permute.xlu1 %1426  ;;  %v1537_v49 = vpop.permute.xlu0 %1536 }
 0x895   :  { %2843 = vmatmul.mubr.msk.bf16.vlgmr.msra.gmra.mrb[40].mxu0 %vm152_vm2, %v1427_v46 }
 0x896   :  { %2854 = vmatprep.mubr.msk.bf16.mxu0 %vm3091_vm0, %v3090_v0 }
 0x898   :  { %v1539_v47 = vpop.permute.xlu1 %1538  ;;  %v1647_v51 = vpop.permute.xlu0 %1646 }
 0x899   :  { %v1544_v48 = vsel %vm152_vm2, %v1539_v47, 0 }
 0x89a   :  { %2853 = vmatpush3.bf16.xpose.msra.mxu0 %v1544_v48 }
 0x89b   :  { %2864 = vmatprep.subr.bf16.mxu0 %v3090_v0 }
 0x89c   :  { %v1649_v15 = vpop.permute.xlu1 %1648  ;;  %v1880_v56 = vpop.permute.xlu0 %1879 }
 0x89d   :  { %v1654_v50 = vsel %vm152_vm2, %v1649_v15, 0 }
 0x8a0   :  { %v1882_v53 = vpop.permute.xlu1 %1881  ;;  %v1990_v59 = vpop.permute.xlu0 %1989 }
 0x8a1   :  { %2855 = vmatmul.mubr.msk.bf16.vlgmr.msra.gmra.mrb[44].mxu0 %vm152_vm2, %v1537_v49  ;;  %v1887_v54 = vsel %vm152_vm2, %v1882_v53, 0 }
 0x8a2   :  { %2865 = vmatpush3.bf16.xpose.msra.mxu0 %v1654_v50  ;;  %2866 = vmatprep.mubr.msk.bf16.mxu0 %vm3091_vm0, %v3090_v0 }
 0x8a3   :  { %2876 = vmatprep.subr.bf16.mxu0 %v3090_v0 }
 0x8a4   :  { %v1992_v55 = vpop.permute.xlu1 %1991  ;;  %v2100_v4 = vpop.permute.xlu0 %2099 }
 0x8a5   :  { %v1997_v57 = vsel %vm152_vm2, %v1992_v55, 0 }
 0x8a8   :  { %v2102_v58 = vpop.permute.xlu1 %2101 }
 0x8a9   :  { %2867 = vmatmul.mubr.msk.bf16.vlgmr.msra.gmra.mrb[48].mxu0 %vm152_vm2, %v1647_v51  ;;  %v2107_v3 = vsel %vm152_vm2, %v2102_v58, 0 }
 0x8aa   :  { %2877 = vmatpush3.bf16.xpose.msra.mxu0 %v1777_v52  ;;  %2878 = vmatprep.mubr.msk.bf16.mxu0 %vm3091_vm0, %v3090_v0 }
 0x8ab   :  { %2888 = vmatprep.subr.bf16.mxu0 %v3090_v0 }
 0x8b1   :  { %2879 = vmatmul.mubr.msk.bf16.vlgmr.msra.gmra.mrb[52].mxu0 %vm152_vm2, %v1771_v44 }
 0x8b2   :  { %2889 = vmatpush3.bf16.xpose.msra.mxu0 %v1887_v54  ;;  %2890 = vmatprep.mubr.msk.bf16.mxu0 %vm3091_vm0, %v3090_v0 }
 0x8b3   :  { %2900 = vmatprep.subr.bf16.mxu0 %v3090_v0 }
 0x8b9   :  { %2891 = vmatmul.mubr.msk.bf16.vlgmr.msra.gmra.mrb[56].mxu0 %vm152_vm2, %v1880_v56 }
 0x8ba   :  { %2901 = vmatpush3.bf16.xpose.msra.mxu0 %v1997_v57  ;;  %2902 = vmatprep.mubr.msk.bf16.mxu0 %vm3091_vm0, %v3090_v0 }
 0x8bb   :  { %2912 = vmatprep.subr.bf16.mxu0 %v3090_v0 }
 0x8c1   :  { %2903 = vmatmul.mubr.msk.bf16.vlgmr.msra.gmra.mrb[60].mxu0 %vm152_vm2, %v1990_v59 }
 0x8c2   :  { %2913 = vmatpush3.bf16.xpose.msra.mxu0 %v2107_v3  ;;  %2914 = vmatprep.mubr.msk.bf16.mxu0 %vm3091_vm0, %v3090_v0 }
 0x8c3   :  { %2924 = vmatprep.subr.bf16.mxu0 %v3090_v0 }
 0x8c9   :  { %2915 = vmatmul.mubr.msk.bf16.vlgmr.msra.gmra.mrb[64].mxu0 %vm152_vm2, %v2100_v4 }
 0x8ca   :  { %2928 = vmatprep.mubr.msk.bf16.mxu0 %vm3091_vm0, %v3090_v0 }
 0x8f6   :  { %v1358_v60 = vpop.f32.mrb[36].mxu0 }
 0x8f7   :  { %v2832_v61 = vpop.f32.mrb[37].mxu0  ;;  %v1364_v62 = vsel %vm152_vm2, %v1358_v60, -inf }
 0x8f8   :  { %1365 = vmax.xlane.f32.xlu1 %v1364_v62  ;;  %v1361_v63 = vpop.f32.mrb[38].mxu0 }
 0x8f9   :  { %v2833_v1 = vpop.f32.mrb[39].mxu0 }
 0x968   :  { %v1470_v2 = vpop.f32.mrb[40].mxu0 }
 0x969   :  { %v2844_v5 = vpop.f32.mrb[41].mxu0  ;;  %v1476_v6 = vsel %vm152_vm2, %v1470_v2, -inf }
 0x96a   :  { %1477 = vmax.xlane.f32.xlu0 %v1476_v6  ;;  %v1473_v7 = vpop.f32.mrb[42].mxu0 }
 0x96b   :  { %v2845_v8 = vpop.f32.mrb[43].mxu0 }
 0x974   :  { %v1580_v9 = vpop.f32.mrb[44].mxu0 }
 0x975   :  { %v2856_v17 = vpop.f32.mrb[45].mxu0  ;;  %v1586_v10 = vsel %vm152_vm2, %v1580_v9, -inf }
 0x976   :  { %1587 = vmax.xlane.f32.xlu0 %v1586_v10  ;;  %v1583_v11 = vpop.f32.mrb[46].mxu0 }
 0x977   :  { %v2857_v12 = vpop.f32.mrb[47].mxu0 }
 0x97c   :  { %v1690_v13 = vpop.f32.mrb[48].mxu0 }
 0x97d   :  { %v2868_v14 = vpop.f32.mrb[49].mxu0  ;;  %v1696_v16 = vsel %vm152_vm2, %v1690_v13, -inf }
 0x97e   :  { %1697 = vmax.xlane.f32.xlu1 %v1696_v16  ;;  %v1693_v18 = vpop.f32.mrb[50].mxu0 }
 0x97f   :  { %v2869_v19 = vpop.f32.mrb[51].mxu0 }
 0x984   :  { %v1813_v22 = vpop.f32.mrb[52].mxu0 }
 0x985   :  { %v2880_v23 = vpop.f32.mrb[53].mxu0  ;;  %v1819_v24 = vsel %vm152_vm2, %v1813_v22, -inf  ;;  %v1366_v42 = vpop.xlane.xlu1 %1365 }
 0x986   :  { %1820 = vmax.xlane.f32.xlu0 %v1819_v24  ;;  %v1816_v25 = vpop.f32.mrb[54].mxu0  ;;  %v1367_v43 = vsub.f32 %v1358_v60, %v1366_v42 }
 0x987   :  { %v2881_v26 = vpop.f32.mrb[55].mxu0 }
 0x988   :  { %v1368_v44 = vmul.f32 1.442695, %v1367_v43 }
 0x98a   :  { %3050 = vpow2.f32 %v1368_v44 }
 0x98c   :  { %v3581_v27 = vpop.f32.mrb[56].mxu0 }
 0x98d   :  { %v2892_v28 = vpop.f32.mrb[57].mxu0  ;;  %v1929_v29 = vsel %vm152_vm2, %v3581_v27, -inf }
 0x98e   :  { %1930 = vmax.xlane.f32.xlu1 %v1929_v29  ;;  %v1926_v31 = vpop.f32.mrb[58].mxu0 }
 0x98f   :  { %v2893_v32 = vpop.f32.mrb[59].mxu0 }
 0x994   :  { %v2033_v33 = vpop.f32.mrb[60].mxu0  ;;  %v3594_v47 = vpop.eup %3050 }
 0x995   :  { %v2904_v34 = vpop.f32.mrb[61].mxu0  ;;  %v2039_v35 = vsel %vm152_vm2, %v2033_v33, -inf  ;;  %v1370_v48 = vsel %vm152_vm2, %v3594_v47, 0.0 }
 0x996   :  { %2040 = vmax.xlane.f32.xlu0 %v2039_v35  ;;  %v2036_v36 = vpop.f32.mrb[62].mxu0 }
 0x997   :  { %v2905_v37 = vpop.f32.mrb[63].mxu0 }
 0x99c   :  { %v3586_v38 = vpop.f32.mrb[64].mxu0 }
 0x99d   :  { %v2916_v39 = vpop.f32.mrb[65].mxu0  ;;  %v2149_v46 = vsel %vm152_vm2, %v3586_v38, -inf }
 0x99e   :  { %v2146_v40 = vpop.f32.mrb[66].mxu0 }
 0x99f   :  { %1488 = vrot.lane.b32.xlu1 %v3508_v30, %s3823_s9  ;;  %v2917_v41 = vpop.f32.mrb[67].mxu0 }
 0x9ac   :  { %1377 = vrot.lane.b32.xlu0 %v3508_v30, %s3824_s11 }
 0x9c3   :  { %2150 = vmax.xlane.f32.xlu1 %v2149_v46 }
 0x9cb   :  { %1371 = vadd.xlane.f32.xlu0 %v1370_v48 }
 0x9d4   :  { %1598 = vrot.lane.b32.xlu1 %v3508_v30, %s3825_s27 }
 0x9f7   :  { %v1478_v15 = vpop.xlane.xlu0 %1477 }
 0x9f8   :  { %v1479_v49 = vsub.f32 %v1470_v2, %v1478_v15 }
 0x9fa   :  { %v1480_v50 = vmul.f32 1.442695, %v1479_v49 }
 0x9fc   :  { %3052 = vpow2.f32 %v1480_v50 }
 0xa03   :  { %v1588_v51 = vpop.xlane.xlu0 %1587 }
 0xa04   :  { %v1589_v52 = vsub.f32 %v1580_v9, %v1588_v51 }
 0xa06   :  { %v3600_v53 = vpop.eup %3052  ;;  %v1590_v54 = vmul.f32 1.442695, %v1589_v52 }
 0xa07   :  { %v1482_v55 = vsel %vm152_vm2, %v3600_v53, 0.0 }
 0xa08   :  { %3054 = vpow2.f32 %v1590_v54  ;;  %1483 = vadd.xlane.f32.xlu1 %v1482_v55 }
 0xa0b   :  { %v1698_v56 = vpop.xlane.xlu1 %1697 }
 0xa0c   :  { %v1699_v57 = vsub.f32 %v1690_v13, %v1698_v56 }
 0xa0e   :  { %v1700_v58 = vmul.f32 1.442695, %v1699_v57 }
 0xa10   :  { %3056 = vpow2.f32 %v1700_v58 }
 0xa12   :  { %v3604_v59 = vpop.eup %3054 }
 0xa13   :  { %v1821_v3 = vpop.xlane.xlu0 %1820  ;;  %v1592_v4 = vsel %vm152_vm2, %v3604_v59, 0.0 }
 0xa14   :  { %v1822_v60 = vsub.f32 %v1813_v22, %v1821_v3  ;;  %1593 = vadd.xlane.f32.xlu0 %v1592_v4 }
 0xa16   :  { %v1823_v61 = vmul.f32 1.442695, %v1822_v60 }
 0xa18   :  { %3058 = vpow2.f32 %v1823_v61 }
 0xa1a   :  { %v3608_v62 = vpop.eup %3056 }
 0xa1b   :  { %v1702_v63 = vsel %vm152_vm2, %v3608_v62, 0.0  ;;  %v1931_v17 = vpop.xlane.xlu1 %1930 }
 0xa1c   :  { %1703 = vadd.xlane.f32.xlu1 %v1702_v63  ;;  %v1932_v11 = vsub.f32 %v3581_v27, %v1931_v17 }
 0xa1e   :  { %v1933_v13 = vmul.f32 1.442695, %v1932_v11 }
 0xa22   :  { %v3612_v1 = vpop.eup %3058 }
 0xa23   :  { %v2041_v2 = vpop.xlane.xlu0 %2040  ;;  %v1825_v5 = vsel %vm152_vm2, %v3612_v1, 0.0 }
 0xa24   :  { %v2042_v6 = vsub.f32 %v2033_v33, %v2041_v2  ;;  %1826 = vadd.xlane.f32.xlu1 %v1825_v5 }
 0xa26   :  { %v2043_v7 = vmul.f32 1.442695, %v2042_v6 }
 0xa27   :  { %v1378_v8 = vpop.permute.xlu0 %1377 }
 0xa28   :  { %3060 = vpow2.f32 %v2043_v7  ;;  %v1383_v9 = vsel %vm216_vm3, %v1378_v8, 0 }
 0xa29   :  { %2835 = vmatpush3.bf16.msra.mxu1 %v1383_v9  ;;  %3062 = vpow2.f32 %v1933_v13 }
 0xa2a   :  { %1708 = vrot.lane.b32.xlu0 %v3508_v30, %s3826_s29  ;;  %2846 = vmatprep.subr.bf16.mxu1 %v3090_v0  ;;  %v1489_v30 = vpop.permute.xlu1 %1488 }
 0xa2b   :  { %v1494_v29 = vsel %vm216_vm3, %v1489_v30, 0 }
 0xa32   :  { %v3620_v10 = vpop.eup %3060 }
 0xa33   :  { %v2045_v12 = vsel %vm152_vm2, %v3620_v10, 0.0  ;;  %v3625_v14 = vpop.eup %3062 }
 0xa34   :  { %2046 = vadd.xlane.f32.xlu1 %v2045_v12  ;;  %v1935_v16 = vsel %vm152_vm2, %v3625_v14, 0.0 }
 0xa49   :  { %1936 = vadd.xlane.f32.xlu0 %v1935_v16 }
 0xa50   :  { %v2151_v18 = vpop.xlane.xlu1 %2150 }
 0xa51   :  { %v2152_v19 = vsub.f32 %v3586_v38, %v2151_v18 }
 0xa53   :  { %v2153_v22 = vmul.f32 1.442695, %v2152_v19 }
 0xa54   :  { %v1599_v31 = vpop.permute.xlu1 %1598 }
 0xa55   :  { %3064 = vpow2.f32 %v2153_v22  ;;  %v1604_v37 = vsel %vm216_vm3, %v1599_v31, 0 }
 0xa58   :  { %v1372_v23 = vpop.xlane.xlu0 %1371 }
 0xa59   :  { %3066 = vrcp.f32 %v1372_v23 }
 0xa5f   :  { %v3630_v24 = vpop.eup %3064  ;;  %1941 = vrot.lane.b32.xlu0 %v3532_v45, %s3823_s9 }
 0xa60   :  { %v2155_v25 = vsel %vm152_vm2, %v3630_v24, 0.0 }
 0xa61   :  { %2156 = vadd.xlane.f32.xlu1 %v2155_v25 }
 0xa63   :  { %v3067_v26 = vpop.eup %3066  ;;  %2051 = vrot.lane.b32.xlu0 %v3532_v45, %s3825_s27 }
 0xa64   :  { %v1374_v27 = vmul.f32 %v3067_v26, %v3594_v47 }
 0xa66   :  { %v1375_v28 = vpack.c.bf16 %v1374_v27, %v1374_v27 }
 0xa67   :  { %2161 = vrot.lane.b32.xlu0 %v3532_v45, %s3826_s29 }
 0xa68   :  { %2837 = vmatmul.mubr.msk.bf16.vlgmr.msra.gmra.mrb[44].mxu1 %vm152_vm2, %v1375_v28 }
 0xa69   :  { %2847 = vmatpush3.bf16.msra.mxu1 %v1494_v29  ;;  %2848 = vmatprep.mubr.msk.bf16.mxu1 %vm3091_vm0, %v3090_v0 }
 0xa6a   :  { %2858 = vmatprep.subr.bf16.mxu1 %v3090_v0 }
 0xa72   :  { %1831 = vrot.lane.b32.xlu1 %v3532_v45, %s3824_s11 }
 0xa95   :  { %v1484_v32 = vpop.xlane.xlu1 %1483 }
 0xa96   :  { %3068 = vrcp.f32 %v1484_v32 }
 0xaa0   :  { %v3069_v33 = vpop.eup %3068 }
 0xaa1   :  { %v1486_v34 = vmul.f32 %v3069_v33, %v3600_v53  ;;  %v1594_v35 = vpop.xlane.xlu0 %1593  ;;  %v3006_v33 = vld [vmem:[%s3782_s12] sm:$0xff]  }
 0xaa2   :  { %3070 = vrcp.f32 %v1594_v35  ;;  %2925 = vmatpush3.bf16.msra.mxu0 %v3006_v33  ;;  %v2599_v33 = vld [vmem:[%s3786_s14] ss:$0 sm:$0xff] }
 0xaa3   :  { %v1487_v36 = vpack.c.bf16 %v1486_v34, %v1486_v34  ;;  %2926 = vmatprep.subr.bf16.mxu0 %v3090_v0 }
 0xaa5   :  { %2849 = vmatmul.mubr.msk.bf16.vlgmr.msra.gmra.mrb[48].mxu1 %vm152_vm2, %v1487_v36  ;;  %v1709_v40 = vpop.permute.xlu0 %1708  ;;  %v3007_v36 = vld [vmem:[%s3782_s12 + $0x8] sm:$0xff]  }
 0xaa6   :  { %2859 = vmatpush3.bf16.msra.mxu1 %v1604_v37  ;;  %2860 = vmatprep.mubr.msk.bf16.mxu1 %vm3091_vm0, %v3090_v0  ;;  %v1714_v42 = vsel %vm216_vm3, %v1709_v40, 0 }
 0xaa7   :  { %2870 = vmatprep.subr.bf16.mxu1 %v3090_v0  ;;  %2927 = vmatpush3.bf16.msra.mxu0 %v3007_v36 }
 0xaa8   :  { %2940 = vmatprep.subr.bf16.mxu0 %v3090_v0 }
 0xaa9   :  { %v1704_v45 = vpop.xlane.xlu1 %1703 }
 0xaaa   :  { %3072 = vrcp.f32 %v1704_v45 }
 0xaac   :  { %v3071_v38 = vpop.eup %3070 }
 0xaad   :  { %v1596_v39 = vmul.f32 %v3071_v38, %v3604_v59 }
 0xaaf   :  { %v1597_v41 = vpack.c.bf16 %v1596_v39, %v1596_v39 }
 0xab1   :  { %2861 = vmatmul.mubr.msk.bf16.vlgmr.msra.gmra.mrb[52].mxu1 %vm152_vm2, %v1597_v41  ;;  %v1827_v47 = vpop.xlane.xlu1 %1826 }
 0xab2   :  { %2871 = vmatpush3.bf16.msra.mxu1 %v1714_v42  ;;  %2872 = vmatprep.mubr.msk.bf16.mxu1 %vm3091_vm0, %v3090_v0  ;;  %3074 = vrcp.f32 %v1827_v47 }
 0xab3   :  { %2882 = vmatprep.subr.bf16.mxu1 %v3090_v0 }
 0xab4   :  { %v3073_v43 = vpop.eup %3072 }
 0xab5   :  { %v1706_v44 = vmul.f32 %v3073_v43, %v3608_v62 }
 0xab7   :  { %v1707_v46 = vpack.c.bf16 %v1706_v44, %v1706_v44 }
 0xab9   :  { %2873 = vmatmul.mubr.msk.bf16.vlgmr.msra.gmra.mrb[56].mxu1 %vm152_vm2, %v1707_v46 }
 0xaba   :  { %2884 = vmatprep.mubr.msk.bf16.mxu1 %vm3091_vm0, %v3090_v0 }
 0xabc   :  { %v3075_v49 = vpop.eup %3074 }
 0xabd   :  { %v1829_v51 = vmul.f32 %v3075_v49, %v3612_v1 }
 0xabf   :  { %v1830_v55 = vpack.c.bf16 %v1829_v51, %v1829_v51 }
 0xac1   :  { %v2047_v15 = vpop.xlane.xlu1 %2046 }
 0xad6   :  { %v1937_v48 = vpop.xlane.xlu0 %1936 }
 0xad7   :  { %3076 = vrcp.f32 %v1937_v48 }
 0xad8   :  { %3078 = vrcp.f32 %v2047_v15 }
 0xada   :  { %v1942_v54 = vpop.permute.xlu0 %1941 }
 0xadb   :  { %v1947_v57 = vsel %vm216_vm3, %v1942_v54, 0 }
 0xade   :  { %v2052_v59 = vpop.permute.xlu0 %2051 }
 0xadf   :  { %v2057_v60 = vsel %vm216_vm3, %v2052_v59, 0 }
 0xae1   :  { %v3077_v56 = vpop.eup %3076 }
 0xae2   :  { %v1939_v58 = vmul.f32 %v3077_v56, %v3625_v14  ;;  %v3079_v4 = vpop.eup %3078  ;;  %v2162_v62 = vpop.permute.xlu0 %2161 }
 0xae3   :  { %v2049_v61 = vmul.f32 %v3079_v4, %v3620_v10  ;;  %v2167_v2 = vsel %vm216_vm3, %v2162_v62, 0 }
 0xae4   :  { %v1940_v3 = vpack.c.bf16 %v1939_v58, %v1939_v58 }
 0xae5   :  { %v2050_v63 = vpack.c.bf16 %v2049_v61, %v2049_v61 }
 0xaee   :  { %v2157_v50 = vpop.xlane.xlu1 %2156 }
 0xaef   :  { %3080 = vrcp.f32 %v2157_v50 }
 0xaf2   :  { %v1832_v52 = vpop.permute.xlu1 %1831 }
 0xaf3   :  { %v1837_v53 = vsel %vm216_vm3, %v1832_v52, 0 }
 0xaf4   :  { %2883 = vmatpush3.bf16.msra.mxu1 %v1837_v53 }
 0xaf5   :  { %2894 = vmatprep.subr.bf16.mxu1 %v3090_v0 }
 0xaf7   :  { %2885 = vmatmul.mubr.msk.bf16.vlgmr.msra.gmra.mrb[60].mxu1 %vm152_vm2, %v1830_v55 }
 0xaf8   :  { %2895 = vmatpush3.bf16.msra.mxu1 %v1947_v57  ;;  %2896 = vmatprep.mubr.msk.bf16.mxu1 %vm3091_vm0, %v3090_v0 }
 0xaf9   :  { %2906 = vmatprep.subr.bf16.mxu1 %v3090_v0  ;;  %v3081_v1 = vpop.eup %3080 }
 0xafa   :  { %v2159_v5 = vmul.f32 %v3081_v1, %v3630_v24 }
 0xafc   :  { %v2160_v6 = vpack.c.bf16 %v2159_v5, %v2159_v5 }
 0xaff   :  { %2897 = vmatmul.mubr.msk.bf16.vlgmr.msra.gmra.mrb[64].mxu1 %vm152_vm2, %v1940_v3 }
 0xb00   :  { %2907 = vmatpush3.bf16.msra.mxu1 %v2057_v60  ;;  %2908 = vmatprep.mubr.msk.bf16.mxu1 %vm3091_vm0, %v3090_v0  ;;  %v2595_v60 = vld [vmem:[%s3783_s13] ss:$0 sm:$0xff] }
 0xb01   :  { %2918 = vmatprep.subr.bf16.mxu1 %v3090_v0 }
 0xb07   :  { %2909 = vmatmul.mubr.msk.bf16.vlgmr.msra.gmra.mrb[68].mxu1 %vm152_vm2, %v2050_v63 }
 0xb08   :  { %2919 = vmatpush3.bf16.msra.mxu1 %v2167_v2  ;;  %2920 = vmatprep.mubr.msk.bf16.mxu1 %vm3091_vm0, %v3090_v0 }
 0xb09   :  { %2932 = vmatprep.subr.bf16.mxu1 %v3090_v0 }
 0xb0f   :  { %2921 = vmatmul.mubr.msk.bf16.vlgmr.msra.gmra.mrb[72].mxu1 %vm152_vm2, %v2160_v6 }
 0xb10   :  { %2936 = vmatprep.mubr.msk.bf16.mxu1 %vm3091_vm0, %v3090_v0 }
 0xb3b   :  { %v1419_v7 = vpop.f32.mrb[44].mxu1 }
 0xb3c   :  { %v2838_v8 = vpop.f32.mrb[45].mxu1 }
 0xb3d   :  { %v1422_v9 = vpop.f32.mrb[46].mxu1 }
 0xb3e   :  { %v2839_v17 = vpop.f32.mrb[47].mxu1 }
 0xb78   :  { %v1530_v10 = vpop.f32.mrb[48].mxu1 }
 0xb79   :  { %v2850_v11 = vpop.f32.mrb[49].mxu1 }
 0xb7a   :  { %v1533_v12 = vpop.f32.mrb[50].mxu1 }
 0xb7b   :  { %v2851_v13 = vpop.f32.mrb[51].mxu1 }
 0xb84   :  { %v1640_v14 = vpop.f32.mrb[52].mxu1 }
 0xb85   :  { %v2862_v16 = vpop.f32.mrb[53].mxu1 }
 0xb86   :  { %v1643_v30 = vpop.f32.mrb[54].mxu1 }
 0xb87   :  { %v2863_v18 = vpop.f32.mrb[55].mxu1 }
 0xb8c   :  { %v1750_v19 = vpop.f32.mrb[56].mxu1 }
 0xb8d   :  { %v2874_v22 = vpop.f32.mrb[57].mxu1 }
 0xb8e   :  { %v1753_v23 = vpop.f32.mrb[58].mxu1  ;;  %v3010_v22 = vld [vmem:[%s3785_s18] sm:$0xff]  }
 0xb8f   :  { %v2875_v24 = vpop.f32.mrb[59].mxu1  ;;  %v3011_v23 = vld [vmem:[%s3785_s18 + $0x8] sm:$0xff]  }
 0xbca   :  { %v1873_v25 = vpop.f32.mrb[60].mxu1 }
 0xbcb   :  { %v2886_v26 = vpop.f32.mrb[61].mxu1 }
 0xbcc   :  { %v1876_v27 = vpop.f32.mrb[62].mxu1 }
 0xbcd   :  { %v2887_v28 = vpop.f32.mrb[63].mxu1 }
 0xbd2   :  { %v1983_v29 = vpop.f32.mrb[64].mxu1 }
 0xbd3   :  { %v2983_v31 = vpack.i.bf16 %v1983_v29, %v1530_v10  ;;  %v2898_v32 = vpop.f32.mrb[65].mxu1 }
 0xbd4   :  { %v1986_v34 = vpop.f32.mrb[66].mxu1 }
 0xbd5   :  { %2984 = vrot.lane.b32.xlu1 %v2983_v31, %s3827_s10  ;;  %v2899_v35 = vpop.f32.mrb[67].mxu1 }
 0xbda   :  { %v2093_v37 = vpop.f32.mrb[68].mxu1 }
 0xbdb   :  { %v2988_v45 = vpack.i.bf16 %v2093_v37, %v1640_v14  ;;  %v2910_v38 = vpop.f32.mrb[69].mxu1  ;;  %v2600_v37 = vld [vmem:[%s3787_s15] ss:$0 sm:$0xff] }
 0xbdc   :  { %v2096_v39 = vpop.f32.mrb[70].mxu1 }
 0xbdd   :  { %2989 = vrot.lane.b32.xlu0 %v2988_v45, %s3828_s25  ;;  %v2911_v40 = vpop.f32.mrb[71].mxu1 }
 0xbe2   :  { %v2203_v41 = vpop.f32.mrb[72].mxu1 }
 0xbe3   :  { %v2993_v42 = vpack.i.bf16 %v2203_v41, %v1750_v19  ;;  %v2922_v43 = vpop.f32.mrb[73].mxu1  ;;  %v3009_v19 = vld [vmem:[%s3784_s16 + $0x8] sm:$0xff]   ;;  %v3012_v41 = vld [vmem:[%s3785_s18 + $0x10] sm:$0xff]  }
 0xbe4   :  { %v2206_v44 = vpop.f32.mrb[74].mxu1  ;;  %v2601_v43 = vld [vmem:[%s3788_s17] ss:$0 sm:$0xff] }
 0xbe5   :  { %2994 = vrot.lane.b32.xlu1 %v2993_v42, %s3829_s2  ;;  %v2923_v46 = vpop.f32.mrb[75].mxu1  ;;  %v3013_v42 = vld [vmem:[%s3785_s18 + $0x18] sm:$0xff]  }
 0xc47   :  { %v2985_v47 = vpop.permute.xlu1 %2984 }
 0xc48   :  { %v2987_v15 = vunpack.i.h.bf16 %v2985_v47  ;;  %v2986_v49 = vunpack.i.l.bf16 %v2985_v47 }
 0xc4a   :  { %v2221_v53 = vsel %vm152_vm2, %v1873_v25, %v2987_v15  ;;  %v1768_v54 = vsel %vm152_vm2, %v1419_v7, %v2986_v49 }
 0xc4f   :  { %v2990_v48 = vpop.permute.xlu0 %2989 }
 0xc50   :  { %v2992_v50 = vunpack.i.h.bf16 %v2990_v48  ;;  %v2991_v51 = vunpack.i.l.bf16 %v2990_v48 }
 0xc52   :  { %v2222_v57 = vsel %vm604_vm4, %v2221_v53, %v2992_v50  ;;  %v1769_v58 = vsel %vm604_vm4, %v1768_v54, %v2991_v51 }
 0xc57   :  { %v2995_v52 = vpop.permute.xlu1 %2994 }
 0xc58   :  { %v2997_v55 = vunpack.i.h.bf16 %v2995_v52  ;;  %v2996_v56 = vunpack.i.l.bf16 %v2995_v52 }
 0xc5a   :  { %v2223_v59 = vsel %vm606_vm5, %v2222_v57, %v2997_v55  ;;  %v1770_v3 = vsel %vm606_vm5, %v1769_v58, %v2996_v56 }
 0xc5b   :  { %v2224_v4 = vpack.c.bf16 %v2223_v59, %v1770_v3 }
 0xc5d   :  { %2929 = vmatmul.mubr.msk.bf16.vlgmr.msra.gmra.mrb[68].mxu0 %vm100_vm1, %v2224_v4 }
 0xc5e   :  { %2948 = vmatprep.mubr.msk.bf16.mxu0 %vm3091_vm0, %v3090_v0  ;;  %2941 = vmatpush3.bf16.msra.mxu0 %v3010_v22 }
 0xc5f   :  { %2942 = vmatprep.subr.bf16.mxu0 %v3090_v0 }
 0xc62   :  { %2943 = vmatpush3.bf16.msra.mxu0 %v3011_v23 }
 0xc63   :  { %2944 = vmatprep.subr.bf16.mxu0 %v3090_v0 }
 0xc66   :  { %2945 = vmatpush3.bf16.msra.mxu0 %v3012_v41 }
 0xc67   :  { %2946 = vmatprep.subr.bf16.mxu0 %v3090_v0 }
 0xc6a   :  { %2947 = vmatpush3.bf16.msra.mxu0 %v3013_v42 }
 0xd30   :  { %v2285_v61 = vpop.f32.mrb[68].mxu0 }
 0xd31   :  { %v2286_v62 = vadd.f32 %v2595_v60, %v2285_v61  ;;  %v2930_v63 = vpop.f32.mrb[69].mxu0 }
 0xd32   :  { %v2288_v1 = vpop.f32.mrb[70].mxu0 }
 0xd33   :  { %v2289_v2 = vadd.f32 %v2595_v60, %v2288_v1  ;;  %v2931_v5 = vpop.f32.mrb[71].mxu0  ;;  %v2292_v6 = vadd.f32 %v2286_v62, %v3496_v20 }
 0xd35   :  { %v2296_v7 = vsel %vm100_vm1, %v2292_v6, 0.0  ;;  %v2293_v8 = vadd.f32 %v2289_v2, %v3498_v21  ;;  %v3008_v21 = vld [vmem:[%s3784_s16] sm:$0xff]  }
 0xd36   :  { %2297 = vadd.xlane.f32.xlu0 %v2296_v7  ;;  %2933 = vmatpush3.bf16.msra.mxu1 %v3008_v21  ;;  %v2612_v21 = vld [vmem:[%s3791_s21] ss:$0 sm:$0xff] }
 0xd37   :  { %v2299_v9 = vsel %vm100_vm1, %v2293_v8, 0.0  ;;  %2934 = vmatprep.subr.bf16.mxu1 %v3090_v0  ;;  %v2605_v0 = vld [vmem:[%s3789_s19] ss:$0 sm:$0xff] }
 0xd38   :  { %2300 = vadd.xlane.f32.xlu1 %v2299_v9 }
 0xd3a   :  { %2935 = vmatpush3.bf16.msra.mxu1 %v3009_v19 }
 0xdc3   :  { %v2298_v17 = vpop.xlane.xlu0 %2297 }
 0xdc4   :  { %v2302_v10 = vmul.f32 0.03125, %v2298_v17 }
 0xdc5   :  { %v2301_v11 = vpop.xlane.xlu1 %2300 }
 0xdc6   :  { %v2304_v12 = vsub.f32 %v2292_v6, %v2302_v10  ;;  %v2303_v13 = vmul.f32 0.03125, %v2301_v11 }
 0xdc8   :  { %v2305_v14 = vsub.f32 %v2293_v8, %v2303_v13  ;;  %v2306_v16 = vmul.f32 %v2304_v12, %v2304_v12 }
 0xdca   :  { %v2308_v30 = vsel %vm100_vm1, %v2306_v16, 0.0  ;;  %v2307_v18 = vmul.f32 %v2305_v14, %v2305_v14 }
 0xdcb   :  { %2309 = vadd.xlane.f32.xlu0 %v2308_v30  ;;  %v2611_v30 = vld [vmem:[%s3790_s20] ss:$0 sm:$0xff] }
 0xdcc   :  { %v2311_v20 = vsel %vm100_vm1, %v2307_v18, 0.0 }
 0xdcf   :  { %2312 = vadd.xlane.f32.xlu0 %v2311_v20 }
 0xe58   :  { %v2310_v24 = vpop.xlane.xlu0 %2309 }
 0xe59   :  { %v2314_v25 = vmul.f32 0.03125, %v2310_v24 }
 0xe5b   :  { %v2316_v26 = vadd.f32 1e-05, %v2314_v25 }
 0xe5c   :  { %v2313_v27 = vpop.xlane.xlu0 %2312 }
 0xe5d   :  { %3082 = vrsqrt.f32 %v2316_v26  ;;  %v2315_v28 = vmul.f32 0.03125, %v2313_v27 }
 0xe5f   :  { %v2317_v29 = vadd.f32 1e-05, %v2315_v28 }
 0xe61   :  { %3084 = vrsqrt.f32 %v2317_v29 }
 0xe67   :  { %v3083_v31 = vpop.eup %3082 }
 0xe68   :  { %v2320_v32 = vmul.f32 %v3083_v31, %v2304_v12 }
 0xe6a   :  { %v2328_v35 = vmul.f32 %v2599_v33, %v2320_v32 }
 0xe6b   :  { %v3085_v34 = vpop.eup %3084 }
 0xe6c   :  { %v2321_v36 = vmul.f32 %v3085_v34, %v2305_v14  ;;  %v2336_v38 = vadd.f32 %v2600_v37, %v2328_v35 }
 0xe6e   :  { %v2329_v45 = vmul.f32 %v2599_v33, %v2321_v36 }
 0xe70   :  { %v2337_v39 = vadd.f32 %v2600_v37, %v2329_v45 }
 0xe72   :  { %v2338_v40 = vpack.c.bf16 %v2337_v39, %v2336_v38 }
 0xe74   :  { %2937 = vmatmul.mubr.msk.bf16.vlgmr.msra.gmra.mrb[76].mxu1 %vm100_vm1, %v2338_v40 }
 0xf47   :  { %v2399_v44 = vpop.f32.mrb[76].mxu1 }
 0xf48   :  { %v2400_v46 = vadd.f32 %v2601_v43, %v2399_v44  ;;  %v2938_v47 = vpop.f32.mrb[77].mxu1 }
 0xf49   :  { %v2402_v48 = vpop.f32.mrb[78].mxu1 }
 0xf4a   :  { %v2403_v15 = vadd.f32 %v2601_v43, %v2402_v48  ;;  %v2939_v49 = vpop.f32.mrb[79].mxu1  ;;  %v2406_v50 = vmax.f32 %v2400_v46, 0.0 }
 0xf4c   :  { %v2407_v51 = vmax.f32 %v2403_v15, 0.0 }
 0xf4e   :  { %v2408_v52 = vpack.c.bf16 %v2407_v51, %v2406_v50 }
 0xf50   :  { %2949 = vmatmul.mubr.msk.bf16.vlgmr.msra.gmra.mrb[72].mxu0 %vm2448_vm6, %v2408_v52 }
0x1023   :  { %v2486_v53 = vpop.f32.mrb[72].mxu0 }
0x1024   :  { %v2487_v54 = vadd.f32 %v2605_v0, %v2486_v53  ;;  %v2950_v55 = vpop.f32.mrb[73].mxu0 }
0x1025   :  { %v2489_v56 = vpop.f32.mrb[74].mxu0 }
0x1026   :  { %v2490_v57 = vadd.f32 %v2605_v0, %v2489_v56  ;;  %v2951_v58 = vpop.f32.mrb[75].mxu0  ;;  %v2493_v59 = vadd.f32 %v2487_v54, %v2336_v38 }
0x1028   :  { %v2497_v3 = vsel %vm100_vm1, %v2493_v59, 0.0  ;;  %v2494_v4 = vadd.f32 %v2490_v57, %v2337_v39 }
0x1029   :  { %2498 = vadd.xlane.f32.xlu1 %v2497_v3 }
0x102a   :  { %v2500_v60 = vsel %vm100_vm1, %v2494_v4, 0.0 }
0x102b   :  { %2501 = vadd.xlane.f32.xlu0 %v2500_v60 }
0x10b6   :  { %v2499_v61 = vpop.xlane.xlu1 %2498 }
0x10b7   :  { %v2503_v62 = vmul.f32 0.03125, %v2499_v61 }
0x10b8   :  { %v2502_v63 = vpop.xlane.xlu0 %2501 }
0x10b9   :  { %v2505_v1 = vsub.f32 %v2493_v59, %v2503_v62  ;;  %v2504_v2 = vmul.f32 0.03125, %v2502_v63 }
0x10bb   :  { %v2506_v5 = vsub.f32 %v2494_v4, %v2504_v2  ;;  %v2507_v6 = vmul.f32 %v2505_v1, %v2505_v1 }
0x10bd   :  { %v2509_v7 = vsel %vm100_vm1, %v2507_v6, 0.0  ;;  %v2508_v8 = vmul.f32 %v2506_v5, %v2506_v5 }
0x10be   :  { %2510 = vadd.xlane.f32.xlu1 %v2509_v7 }
0x10bf   :  { %v2512_v9 = vsel %vm100_vm1, %v2508_v8, 0.0 }
0x10c0   :  { %2513 = vadd.xlane.f32.xlu0 %v2512_v9 }
0x114b   :  { %v2511_v17 = vpop.xlane.xlu1 %2510 }
0x114c   :  { %v2515_v10 = vmul.f32 0.03125, %v2511_v17 }
0x114d   :  { %v2514_v11 = vpop.xlane.xlu0 %2513 }
0x114e   :  { %v2517_v12 = vadd.f32 1e-05, %v2515_v10  ;;  %v2516_v13 = vmul.f32 0.03125, %v2514_v11 }
0x1150   :  { %3086 = vrsqrt.f32 %v2517_v12  ;;  %v2518_v14 = vadd.f32 1e-05, %v2516_v13 }
0x1152   :  { %3088 = vrsqrt.f32 %v2518_v14 }
0x115a   :  { %v3087_v16 = vpop.eup %3086 }
0x115b   :  { %v2521_v18 = vmul.f32 %v3087_v16, %v2505_v1 }
0x115c   :  { %v3089_v20 = vpop.eup %3088 }
0x115d   :  { %v2529_v19 = vmul.f32 %v2611_v30, %v2521_v18  ;;  %v2522_v22 = vmul.f32 %v3089_v20, %v2506_v5 }
0x115f   :  { %v2537_v23 = vadd.f32 %v2612_v21, %v2529_v19  ;;  %v2530_v24 = vmul.f32 %v2611_v30, %v2522_v22 }
0x1161   :  { %2539 = vst.msk [vmem:[%s3792_s22] sm:$0xff] %vm100_vm1, %v2537_v23  ;;  %v2538_v25 = vadd.f32 %v2612_v21, %v2530_v24 }
0x1163   :  { %2540 = vst.msk [vmem:[%s3792_s22 + $0x8] sm:$0xff] %vm100_vm1, %v2538_v25 }

// kernel: forward.14
= control target key start
LH: loop header
LB: loop body
LE: loop exit
PB: predicated region body
PF: predicated region fallthrough
CT: control target
= control target key end

     0   :  { %s3818_s0 = inlined_call_operand.vmem [shape: f32[16,32], index: 0, kind: input, shape index: {}]   ;;  %s3819_s1 = inlined_call_operand.vmem [shape: f32[16,32], index: 1, kind: input, shape index: {}]   ;;  %s3820_s2 = inlined_call_operand.vmem [shape: bf16[32,96], index: 2, kind: input, shape index: {}]   ;;  %s3821_s3 = inlined_call_operand.vmem [shape: f32[1,96], index: 3, kind: input, shape index: {}]   ;;  %s3822_s4 = inlined_call_operand.vmem [shape: bf16[32,32], index: 4, kind: input, shape index: {}]   ;;  %s3823_s5 = inlined_call_operand.vmem [shape: f32[1,32], index: 5, kind: input, shape index: {}]   ;;  %s3824_s6 = inlined_call_operand.vmem [shape: f32[1,32], index: 6, kind: input, shape index: {}]   ;;  %s3825_s7 = inlined_call_operand.vmem [shape: f32[1,32], index: 7, kind: input, shape index: {}]   ;;  %s3826_s8 = inlined_call_operand.vmem [shape: bf16[32,32], index: 8, kind: input, shape index: {}]   ;;  %s3827_s9 = inlined_call_operand.vmem [shape: f32[1,32], index: 9, kind: input, shape index: {}]   ;;  %s3828_s10 = inlined_call_operand.vmem [shape: bf16[32,64], index: 10, kind: input, shape index: {}]   ;;  %s3829_s11 = inlined_call_operand.vmem [shape: f32[1,64], index: 11, kind: input, shape index: {}]   ;;  %s3830_s12 = inlined_call_operand.vmem [shape: bf16[32,32], index: 12, kind: input, shape index: {}]   ;;  %s3831_s13 = inlined_call_operand.vmem [shape: f32[1,32], index: 13, kind: input, shape index: {}]   ;;  %s3832_s14 = inlined_call_operand.vmem [shape: f32[1,32], index: 14, kind: input, shape index: {}]   ;;  %s3833_s15 = inlined_call_operand.vmem [shape: f32[1,32], index: 15, kind: input, shape index: {}]   ;;  %s3834_s16 = inlined_call_operand.vmem [shape: bf16[32,64], index: 16, kind: input, shape index: {}]   ;;  %s3835_s17 = inlined_call_operand.vmem [shape: f32[1,64], index: 17, kind: input, shape index: {}]   ;;  %s3836_s18 = inlined_call_operand.vmem [shape: bf16[64,32], index: 18, kind: input, shape index: {}]   ;;  %s3837_s19 = inlined_call_operand.vmem [shape: f32[1,32], index: 19, kind: input, shape index: {}]   ;;  %s3838_s20 = inlined_call_operand.vmem [shape: f32[1,32], index: 20, kind: input, shape index: {}]   ;;  %s3839_s21 = inlined_call_operand.hbm [shape: f32[1,32], index: 21, kind: input, shape index: {}]   ;;  %s3840_s22 = inlined_call_operand.vmem [shape: f32[16,32], index: 22, kind: output, shape index: {}]  }
   0x1   :  { %3852 = sst [smem:[#allocation5_spill]] %s3818_s0 }
   0x2   :  { %3853 = sst [smem:[#allocation6_spill]] %s3819_s1 }
   0x3   :  { %3854 = sst [smem:[#allocation7_spill]] %s3820_s2 }
   0x4   :  { %3855 = sst [smem:[#allocation8_spill]] %s3821_s3 }
   0x5   :  { %3856 = sst [smem:[#allocation9_spill]] %s3822_s4 }
   0x6   :  { %3857 = sst [smem:[#allocation10_spill]] %s3823_s5 }
   0x7   :  { %3858 = sst [smem:[#allocation11_spill]] %s3824_s6 }
   0x8   :  { %27 = vsyncpa [#allocation3], 0  ;;  %s3128_s3 = smov [#allocation2]   ;;  %s3104_s4 = scalar_lea.hbm %s3839_s21, 16 }
   0x9   :  { %s76_s28 = sshll.u32 %s3128_s3, 4  ;;  %p3105_p0 = scmp.ne.s32.totalorder %s3839_s21, %s3104_s4  ;;  %s77_s28 = int_to_ptr.vmem [resolvable:$true] %s76_s28 }
   0xa   :  { %p3108_p1 = scmp.lt.u32.totalorder %s3104_s4, %s3839_s21 }
   0xc   :  { %p3110_p2 = pnand %p3108_p1, %p3105_p0 }
   0xe   :  { %3113 = shalt.err (!%p3110_p2)
}
   0xf   :  { %s3114_s24 = scalar_lea.vmem %s77_s28, 16  ;;  %s3118_s6 = scalar_lea.vmem %s77_s28, 32 }
  0x10   :  { %p3115_p3 = scmp.ne.s32.totalorder %s77_s28, %s3114_s24  ;;  %p3119_p4 = scmp.lt.s32.totalorder %s77_s28, %s77_s28 }
  0x11   :  { %p3120_p5 = scmp.lt.s32.totalorder %s3118_s6, %s3114_s24 }
  0x13   :  { %p3121_p6 = por %p3120_p5, %p3119_p4 }
  0x15   :  { %p3122_p7 = pnand %p3121_p6, %p3115_p3 }
  0x17   :  { %3125 = shalt.err (!%p3122_p7)
}
  0x18   :  { %79 = dma.hbm_to_vmem [thread:$0]  %s3839_s21, 16, %s77_s28, [#allocation3]  }
  0x19   :  { %3126 = dma.done.wait [#allocation3], 16  }
  0x1a   :  { %3127 = vsyncadd [#allocation3], 4294967280  ;;  %v3129_v0 = vmov 0.0   ;;  %vm3130_vm0 = vmmov 0   ;;  %s3859_s3 = sld [smem:[#allocation7_spill]]  ;;  %s3860_s4 = sld [smem:[#allocation5_spill]] }
  0x1b   :  { %2713 = vmatprep.subr.bf16.mxu1 %v3129_v0  ;;  %2717 = vmatprep.mubr.msk.bf16.mxu1 %vm3130_vm0, %v3129_v0  ;;  %vm112_vm1 = vcmask 261120   ;;  %s3861_s24 = sld [smem:[#allocation8_spill]]  ;;  %s3131_s6 = smov 96   ;;  %vm164_vm2 = vcmask 64512   ;;  %vm228_vm3 = vcmask 1043456   ;;  %vm616_vm4 = vcmask 130048  }
  0x1c   :  { %2727 = vmatprep.subr.bf16.mxu0 %v3129_v0  ;;  %2729 = vmatprep.mubr.msk.bf16.mxu0 %vm3130_vm0, %v3129_v0  ;;  %s3132_s25 = smov 120   ;;  %s3133_s26 = smov 88   ;;  %vm618_vm5 = vcmask 195584   ;;  %vm2460_vm6 = vcmask 523264  }
  0x1d   :  { %s3850_s2 = smov 80   ;;  %s3135_s27 = smov 112  }
  0x1e   :  { %s3137_s21 = smov 104   ;;  %s3138_s28 = smov 56  }
  0x1f   :  { %s3139_s29 = smov 64   ;;  %s3140_s30 = smov 48  }
  0x20   :  { %v3012_v1 = vld [vmem:[%s3859_s3] sm:$0xff]   ;;  %v3013_v2 = vld [vmem:[%s3859_s3 + $0x8] sm:$0xff]   ;;  %s3848_s3 = smov 72   ;;  %s3862_s1 = sld [smem:[#allocation9_spill]] }
  0x21   :  { %2714 = vmatpush3.bf16.msra.mxu1 %v3012_v1  ;;  %v3287_v3 = vld [vmem:[%s3860_s4] sm:$0xff]  ;;  %v3292_v4 = vld [vmem:[%s3860_s4 + $0x8] sm:$0xff]  ;;  %s3141_s4 = smov 40   ;;  %s3847_s5 = smov 8  }
  0x22   :  { %2715 = vmatprep.subr.bf16.mxu1 %v3129_v0  ;;  %v88_v5 = vpack.c.bf16 %v3292_v4, %v3287_v3  ;;  %v2558_v6 = vld [vmem:[%s3861_s24] ss:$0 sm:$0xff]  ;;  %s3863_s23 = sld [smem:[#allocation10_spill]]  ;;  %s3870_s0 = smov 24  }
  0x25   :  { %2716 = vmatpush3.bf16.msra.mxu1 %v3013_v2 }
  0x26   :  { %2721 = vmatprep.subr.bf16.mxu1 %v3129_v0 }
  0x28   :  { %2718 = vmatmul.mubr.msk.bf16.vlgmr.msra.gmra.mrb[0].mxu1 %vm112_vm1, %v88_v5 }
  0x29   :  { %2723 = vmatprep.mubr.msk.bf16.mxu1 %vm3130_vm0, %v3129_v0 }
  0xfb   :  { %v150_v7 = vpop.f32.mrb[0].mxu1 }
  0xfc   :  { %v151_v8 = vadd.f32 %v2558_v6, %v150_v7  ;;  %v2719_v9 = vpop.f32.mrb[1].mxu1 }
  0xfd   :  { %v153_v10 = vpop.f32.mrb[2].mxu1 }
  0xfe   :  { %v154_v11 = vadd.f32 %v2558_v6, %v153_v10  ;;  %v2720_v12 = vpop.f32.mrb[3].mxu1  ;;  %v157_v13 = vmul.f32 0.35355338, %v151_v8 }
 0x100   :  { %v158_v14 = vmul.f32 0.35355338, %v154_v11  ;;  %v3304_v15 = vpack.c.bf16 %v154_v11, %v151_v8 }
 0x102   :  { %v159_v16 = vpack.c.bf16 %v158_v14, %v157_v13  ;;  %162 = vrot.lane.b32.xlu0 %v3304_v15, %s3131_s6  ;;  %v3318_v17 = vrot.slane %v3304_v15, 4 }
 0x104   :  { %273 = vrot.lane.b32.xlu1 %v159_v16, %s3132_s25  ;;  %v620_v18 = vrot.slane %v159_v16, 4 }
 0x106   :  { %275 = vrot.lane.b32.xlu0 %v3304_v15, %s3133_s26 }
 0x108   :  { %385 = vrot.lane.b32.xlu1 %v3304_v15, %s3850_s2 }
 0x10a   :  { %383 = vrot.lane.b32.xlu0 %v159_v16, %s3135_s27 }
 0x10c   :  { %495 = vrot.lane.b32.xlu1 %v3304_v15, %s3848_s3 }
 0x10e   :  { %493 = vrot.lane.b32.xlu0 %v159_v16, %s3137_s21 }
 0x110   :  { %622 = vrot.lane.b32.xlu1 %v3318_v17, %s3131_s6 }
 0x112   :  { %732 = vrot.lane.b32.xlu0 %v3318_v17, %s3133_s26 }
 0x114   :  { %730 = vrot.lane.b32.xlu1 %v620_v18, %s3132_s25 }
 0x116   :  { %842 = vrot.lane.b32.xlu0 %v3318_v17, %s3850_s2  ;;  %s3865_s2 = sld [smem:[#allocation11_spill]] }
 0x118   :  { %840 = vrot.lane.b32.xlu1 %v620_v18, %s3135_s27 }
 0x11a   :  { %952 = vrot.lane.b32.xlu0 %v3318_v17, %s3848_s3 }
 0x11c   :  { %950 = vrot.lane.b32.xlu1 %v620_v18, %s3137_s21 }
 0x174   :  { %v163_v19 = vpop.permute.xlu0 %162 }
 0x175   :  { %v169_v20 = vsel %vm164_vm2, %v163_v19, 0 }
 0x176   :  { %2722 = vmatpush3.bf16.xpose.msra.mxu1 %v169_v20  ;;  %v274_v22 = vpop.permute.xlu1 %273 }
 0x177   :  { %2733 = vmatprep.subr.bf16.mxu1 %v3129_v0 }
 0x178   :  { %v276_v21 = vpop.permute.xlu0 %275 }
 0x179   :  { %v281_v23 = vsel %vm164_vm2, %v276_v21, 0 }
 0x17a   :  { %v386_v24 = vpop.permute.xlu1 %385 }
 0x17b   :  { %v391_v25 = vsel %vm164_vm2, %v386_v24, 0 }
 0x17c   :  { %v384_v27 = vpop.permute.xlu0 %383 }
 0x17d   :  { %2724 = vmatmul.mubr.msk.bf16.vlgmr.msra.gmra.mrb[4].mxu1 %vm164_vm2, %v159_v16 }
 0x17e   :  { %2734 = vmatpush3.bf16.xpose.msra.mxu1 %v281_v23  ;;  %2735 = vmatprep.mubr.msk.bf16.mxu1 %vm3130_vm0, %v3129_v0  ;;  %v496_v26 = vpop.permute.xlu1 %495 }
 0x17f   :  { %2745 = vmatprep.subr.bf16.mxu1 %v3129_v0  ;;  %v501_v28 = vsel %vm164_vm2, %v496_v26, 0 }
 0x180   :  { %v494_v30 = vpop.permute.xlu0 %493 }
 0x182   :  { %v623_v29 = vpop.permute.xlu1 %622 }
 0x183   :  { %v628_v31 = vsel %vm164_vm2, %v623_v29, 0 }
 0x184   :  { %v733_v32 = vpop.permute.xlu0 %732 }
 0x185   :  { %2736 = vmatmul.mubr.msk.bf16.vlgmr.msra.gmra.mrb[8].mxu1 %vm164_vm2, %v274_v22  ;;  %v738_v33 = vsel %vm164_vm2, %v733_v32, 0 }
 0x186   :  { %2746 = vmatpush3.bf16.xpose.msra.mxu1 %v391_v25  ;;  %2747 = vmatprep.mubr.msk.bf16.mxu1 %vm3130_vm0, %v3129_v0  ;;  %v731_v35 = vpop.permute.xlu1 %730 }
 0x187   :  { %2757 = vmatprep.subr.bf16.mxu1 %v3129_v0 }
 0x188   :  { %v843_v34 = vpop.permute.xlu0 %842 }
 0x189   :  { %v848_v36 = vsel %vm164_vm2, %v843_v34, 0 }
 0x18a   :  { %v841_v38 = vpop.permute.xlu1 %840 }
 0x18c   :  { %v953_v37 = vpop.permute.xlu0 %952 }
 0x18d   :  { %2748 = vmatmul.mubr.msk.bf16.vlgmr.msra.gmra.mrb[12].mxu1 %vm164_vm2, %v384_v27  ;;  %v958_v39 = vsel %vm164_vm2, %v953_v37, 0 }
 0x18e   :  { %2758 = vmatpush3.bf16.xpose.msra.mxu1 %v501_v28  ;;  %2759 = vmatprep.mubr.msk.bf16.mxu1 %vm3130_vm0, %v3129_v0  ;;  %v951_v40 = vpop.permute.xlu1 %950 }
 0x18f   :  { %2769 = vmatprep.subr.bf16.mxu1 %v3129_v0 }
 0x195   :  { %2760 = vmatmul.mubr.msk.bf16.vlgmr.msra.gmra.mrb[16].mxu1 %vm164_vm2, %v494_v30 }
 0x196   :  { %2770 = vmatpush3.bf16.xpose.msra.mxu1 %v628_v31  ;;  %2771 = vmatprep.mubr.msk.bf16.mxu1 %vm3130_vm0, %v3129_v0 }
 0x197   :  { %2781 = vmatprep.subr.bf16.mxu1 %v3129_v0 }
 0x19d   :  { %2772 = vmatmul.mubr.msk.bf16.vlgmr.msra.gmra.mrb[20].mxu1 %vm164_vm2, %v620_v18 }
 0x19e   :  { %2782 = vmatpush3.bf16.xpose.msra.mxu1 %v738_v33  ;;  %2783 = vmatprep.mubr.msk.bf16.mxu1 %vm3130_vm0, %v3129_v0 }
 0x19f   :  { %2793 = vmatprep.subr.bf16.mxu1 %v3129_v0 }
 0x1a5   :  { %2784 = vmatmul.mubr.msk.bf16.vlgmr.msra.gmra.mrb[24].mxu1 %vm164_vm2, %v731_v35 }
 0x1a6   :  { %2794 = vmatpush3.bf16.xpose.msra.mxu1 %v848_v36  ;;  %2795 = vmatprep.mubr.msk.bf16.mxu1 %vm3130_vm0, %v3129_v0 }
 0x1a7   :  { %2805 = vmatprep.subr.bf16.mxu1 %v3129_v0 }
 0x1ad   :  { %2796 = vmatmul.mubr.msk.bf16.vlgmr.msra.gmra.mrb[28].mxu1 %vm164_vm2, %v841_v38 }
 0x1ae   :  { %2806 = vmatpush3.bf16.xpose.msra.mxu1 %v958_v39  ;;  %2807 = vmatprep.mubr.msk.bf16.mxu1 %vm3130_vm0, %v3129_v0 }
 0x1af   :  { %2817 = vmatprep.subr.bf16.mxu1 %v3129_v0 }
 0x1b5   :  { %2808 = vmatmul.mubr.msk.bf16.vlgmr.msra.gmra.mrb[32].mxu1 %vm164_vm2, %v951_v40 }
 0x1b6   :  { %2821 = vmatprep.mubr.msk.bf16.mxu1 %vm3130_vm0, %v3129_v0 }
 0x250   :  { %v205_v41 = vpop.f32.mrb[4].mxu1 }
 0x251   :  { %v2725_v42 = vpop.f32.mrb[5].mxu1  ;;  %v211_v43 = vsel %vm164_vm2, %v205_v41, -inf }
 0x252   :  { %212 = vmax.xlane.f32.xlu0 %v211_v43  ;;  %v208_v44 = vpop.f32.mrb[6].mxu1 }
 0x253   :  { %v2726_v45 = vpop.f32.mrb[7].mxu1 }
 0x258   :  { %v317_v46 = vpop.f32.mrb[8].mxu1 }
 0x259   :  { %v2737_v47 = vpop.f32.mrb[9].mxu1  ;;  %v323_v48 = vsel %vm164_vm2, %v317_v46, -inf }
 0x25a   :  { %324 = vmax.xlane.f32.xlu1 %v323_v48  ;;  %v320_v49 = vpop.f32.mrb[10].mxu1 }
 0x25b   :  { %v2738_v50 = vpop.f32.mrb[11].mxu1 }
 0x260   :  { %v427_v51 = vpop.f32.mrb[12].mxu1 }
 0x261   :  { %v2749_v52 = vpop.f32.mrb[13].mxu1  ;;  %v433_v53 = vsel %vm164_vm2, %v427_v51, -inf }
 0x262   :  { %434 = vmax.xlane.f32.xlu0 %v433_v53  ;;  %v430_v54 = vpop.f32.mrb[14].mxu1 }
 0x263   :  { %v2750_v55 = vpop.f32.mrb[15].mxu1 }
 0x268   :  { %v3374_v56 = vpop.f32.mrb[16].mxu1 }
 0x269   :  { %v2761_v57 = vpop.f32.mrb[17].mxu1  ;;  %v543_v58 = vsel %vm164_vm2, %v3374_v56, -inf }
 0x26a   :  { %544 = vmax.xlane.f32.xlu0 %v543_v58  ;;  %v540_v59 = vpop.f32.mrb[18].mxu1 }
 0x26b   :  { %v2762_v60 = vpop.f32.mrb[19].mxu1 }
 0x270   :  { %v3378_v61 = vpop.f32.mrb[20].mxu1 }
 0x271   :  { %v2773_v62 = vpop.f32.mrb[21].mxu1  ;;  %v670_v63 = vsel %vm164_vm2, %v3378_v61, -inf }
 0x272   :  { %671 = vmax.xlane.f32.xlu1 %v670_v63  ;;  %v667_v1 = vpop.f32.mrb[22].mxu1 }
 0x273   :  { %v2774_v2 = vpop.f32.mrb[23].mxu1 }
 0x278   :  { %v3382_v5 = vpop.f32.mrb[24].mxu1 }
 0x279   :  { %v2785_v6 = vpop.f32.mrb[25].mxu1  ;;  %v780_v7 = vsel %vm164_vm2, %v3382_v5, -inf }
 0x27a   :  { %781 = vmax.xlane.f32.xlu0 %v780_v7  ;;  %v777_v8 = vpop.f32.mrb[26].mxu1 }
 0x27b   :  { %v2786_v9 = vpop.f32.mrb[27].mxu1 }
 0x280   :  { %v884_v10 = vpop.f32.mrb[28].mxu1 }
 0x281   :  { %v2797_v11 = vpop.f32.mrb[29].mxu1  ;;  %v890_v12 = vsel %vm164_vm2, %v884_v10, -inf }
 0x282   :  { %891 = vmax.xlane.f32.xlu1 %v890_v12  ;;  %v887_v13 = vpop.f32.mrb[30].mxu1 }
 0x283   :  { %v2798_v14 = vpop.f32.mrb[31].mxu1 }
 0x288   :  { %v3387_v16 = vpop.f32.mrb[32].mxu1 }
 0x289   :  { %v2809_v18 = vpop.f32.mrb[33].mxu1  ;;  %v1000_v21 = vsel %vm164_vm2, %v3387_v16, -inf }
 0x28a   :  { %v997_v19 = vpop.f32.mrb[34].mxu1 }
 0x28b   :  { %v2810_v20 = vpop.f32.mrb[35].mxu1 }
 0x290   :  { %335 = vrot.lane.b32.xlu0 %v3304_v15, %s3138_s28 }
 0x293   :  { %223 = vrot.lane.b32.xlu1 %v3304_v15, %s3139_s29 }
 0x2af   :  { %1001 = vmax.xlane.f32.xlu0 %v1000_v21 }
 0x2df   :  { %v213_v22 = vpop.xlane.xlu0 %212 }
 0x2e0   :  { %v214_v23 = vsub.f32 %v205_v41, %v213_v22 }
 0x2e2   :  { %v215_v24 = vmul.f32 1.442695, %v214_v23 }
 0x2e4   :  { %3028 = vpow2.f32 %v215_v24 }
 0x2e7   :  { %v325_v25 = vpop.xlane.xlu1 %324 }
 0x2e8   :  { %v326_v26 = vsub.f32 %v317_v46, %v325_v25 }
 0x2ea   :  { %v327_v27 = vmul.f32 1.442695, %v326_v26 }
 0x2ec   :  { %3030 = vpow2.f32 %v327_v27 }
 0x2ee   :  { %v3395_v28 = vpop.eup %3028 }
 0x2ef   :  { %v435_v29 = vpop.xlane.xlu0 %434  ;;  %v217_v30 = vsel %vm164_vm2, %v3395_v28, 0.0 }
 0x2f0   :  { %v436_v31 = vsub.f32 %v427_v51, %v435_v29  ;;  %218 = vadd.xlane.f32.xlu1 %v217_v30 }
 0x2f2   :  { %v437_v32 = vmul.f32 1.442695, %v436_v31 }
 0x2f4   :  { %3032 = vpow2.f32 %v437_v32 }
 0x2f6   :  { %v3399_v33 = vpop.eup %3030 }
 0x2f7   :  { %v329_v34 = vsel %vm164_vm2, %v3399_v33, 0.0  ;;  %v545_v40 = vpop.xlane.xlu0 %544 }
 0x2f8   :  { %330 = vadd.xlane.f32.xlu0 %v329_v34  ;;  %v546_v42 = vsub.f32 %v3374_v56, %v545_v40 }
 0x2fa   :  { %v547_v43 = vmul.f32 1.442695, %v546_v42 }
 0x2fc   :  { %3034 = vpow2.f32 %v547_v43 }
 0x2fe   :  { %v3403_v35 = vpop.eup %3032 }
 0x2ff   :  { %v439_v36 = vsel %vm164_vm2, %v3403_v35, 0.0  ;;  %v672_v37 = vpop.xlane.xlu1 %671 }
 0x300   :  { %440 = vadd.xlane.f32.xlu1 %v439_v36  ;;  %v673_v44 = vsub.f32 %v3378_v61, %v672_v37 }
 0x302   :  { %v674_v47 = vmul.f32 1.442695, %v673_v44 }
 0x304   :  { %3036 = vpow2.f32 %v674_v47 }
 0x306   :  { %v3035_v50 = vpop.eup %3034 }
 0x307   :  { %v782_v45 = vpop.xlane.xlu0 %781  ;;  %v549_v51 = vsel %vm164_vm2, %v3035_v50, 0.0 }
 0x308   :  { %v783_v46 = vsub.f32 %v3382_v5, %v782_v45 }
 0x30b   :  { %v336_v58 = vpop.permute.xlu0 %335 }
 0x30c   :  { %v341_v8 = vsel %vm228_vm3, %v336_v58, 0 }
 0x30e   :  { %445 = vrot.lane.b32.xlu0 %v3304_v15, %s3140_s30  ;;  %v3417_v52 = vpop.eup %3036 }
 0x30f   :  { %v892_v38 = vpop.xlane.xlu1 %891  ;;  %v676_v54 = vsel %vm164_vm2, %v3417_v52, 0.0 }
 0x310   :  { %v893_v48 = vsub.f32 %v884_v10, %v892_v38 }
 0x311   :  { %555 = vrot.lane.b32.xlu1 %v3304_v15, %s3141_s4  ;;  %v784_v15 = vmul.f32 1.442695, %v783_v46 }
 0x312   :  { %v894_v49 = vmul.f32 1.442695, %v893_v48 }
 0x313   :  { %v224_v39 = vpop.permute.xlu1 %223  ;;  %3038 = vpow2.f32 %v784_v15 }
 0x314   :  { %v230_v41 = vsel %vm228_vm3, %v224_v39, 0  ;;  %3040 = vpow2.f32 %v894_v49 }
 0x315   :  { %2728 = vmatpush3.bf16.msra.mxu0 %v230_v41 }
 0x316   :  { %2739 = vmatprep.subr.bf16.mxu0 %v3129_v0 }
 0x31d   :  { %v3419_v53 = vpop.eup %3038 }
 0x31e   :  { %v3423_v55 = vpop.eup %3040  ;;  %v786_v56 = vsel %vm164_vm2, %v3419_v53, 0.0 }
 0x31f   :  { %v896_v57 = vsel %vm164_vm2, %v3423_v55, 0.0 }
 0x32d   :  { %550 = vadd.xlane.f32.xlu0 %v549_v51 }
 0x331   :  { %677 = vadd.xlane.f32.xlu0 %v676_v54 }
 0x335   :  { %787 = vadd.xlane.f32.xlu1 %v786_v56  ;;  %897 = vadd.xlane.f32.xlu0 %v896_v57 }
 0x33c   :  { %v1002_v59 = vpop.xlane.xlu0 %1001 }
 0x33d   :  { %v1003_v60 = vsub.f32 %v3387_v16, %v1002_v59 }
 0x33f   :  { %v1004_v61 = vmul.f32 1.442695, %v1003_v60 }
 0x341   :  { %3042 = vpow2.f32 %v1004_v61 }
 0x346   :  { %792 = vrot.lane.b32.xlu1 %v3318_v17, %s3138_s28 }
 0x34a   :  { %902 = vrot.lane.b32.xlu1 %v3318_v17, %s3140_s30  ;;  %s3845_s30 = smov 24  }
 0x34b   :  { %v3434_v62 = vpop.eup %3042 }
 0x34c   :  { %v1006_v63 = vsel %vm164_vm2, %v3434_v62, 0.0 }
 0x34d   :  { %1007 = vadd.xlane.f32.xlu0 %v1006_v63 }
 0x34e   :  { %1012 = vrot.lane.b32.xlu1 %v3318_v17, %s3141_s4  ;;  %s3869_s4 = smov 16  }
 0x363   :  { %682 = vrot.lane.b32.xlu0 %v3318_v17, %s3139_s29  ;;  %s3846_s29 = smov 16  }
 0x37d   :  { %v219_v1 = vpop.xlane.xlu1 %218 }
 0x37e   :  { %3044 = vrcp.f32 %v219_v1 }
 0x385   :  { %v331_v2 = vpop.xlane.xlu0 %330 }
 0x386   :  { %3046 = vrcp.f32 %v331_v2 }
 0x388   :  { %v3045_v5 = vpop.eup %3044 }
 0x389   :  { %v221_v6 = vmul.f32 %v3045_v5, %v3395_v28  ;;  %v446_v11 = vpop.permute.xlu0 %445 }
 0x38a   :  { %v451_v13 = vsel %vm228_vm3, %v446_v11, 0 }
 0x38b   :  { %v222_v7 = vpack.c.bf16 %v221_v6, %v221_v6 }
 0x38d   :  { %2730 = vmatmul.mubr.msk.bf16.vlgmr.msra.gmra.mrb[0].mxu0 %vm164_vm2, %v222_v7  ;;  %v441_v9 = vpop.xlane.xlu1 %440 }
 0x38e   :  { %2740 = vmatpush3.bf16.msra.mxu0 %v341_v8  ;;  %3048 = vrcp.f32 %v441_v9  ;;  %2741 = vmatprep.mubr.msk.bf16.mxu0 %vm3130_vm0, %v3129_v0  ;;  %v3014_v8 = vld [vmem:[%s3862_s1] sm:$0xff]  }
 0x38f   :  { %2751 = vmatprep.subr.bf16.mxu0 %v3129_v0  ;;  %2818 = vmatpush3.bf16.msra.mxu1 %v3014_v8 }
 0x390   :  { %v3047_v17 = vpop.eup %3046  ;;  %2819 = vmatprep.subr.bf16.mxu1 %v3129_v0 }
 0x391   :  { %v333_v10 = vmul.f32 %v3047_v17, %v3399_v33  ;;  %v556_v18 = vpop.permute.xlu1 %555 }
 0x392   :  { %v561_v20 = vsel %vm228_vm3, %v556_v18, 0 }
 0x393   :  { %v334_v12 = vpack.c.bf16 %v333_v10, %v333_v10 }
 0x395   :  { %2742 = vmatmul.mubr.msk.bf16.vlgmr.msra.gmra.mrb[4].mxu0 %vm164_vm2, %v334_v12  ;;  %v3015_v12 = vld [vmem:[%s3862_s1 + $0x8] sm:$0xff]  }
 0x396   :  { %2752 = vmatpush3.bf16.msra.mxu0 %v451_v13  ;;  %2753 = vmatprep.mubr.msk.bf16.mxu0 %vm3130_vm0, %v3129_v0 }
 0x397   :  { %2763 = vmatprep.subr.bf16.mxu0 %v3129_v0  ;;  %2820 = vmatpush3.bf16.msra.mxu1 %v3015_v12 }
 0x398   :  { %v3049_v14 = vpop.eup %3048  ;;  %2833 = vmatprep.subr.bf16.mxu1 %v3129_v0 }
 0x399   :  { %v443_v16 = vmul.f32 %v3049_v14, %v3403_v35 }
 0x39b   :  { %v444_v19 = vpack.c.bf16 %v443_v16, %v443_v16 }
 0x39d   :  { %2754 = vmatmul.mubr.msk.bf16.vlgmr.msra.gmra.mrb[8].mxu0 %vm164_vm2, %v444_v19 }
 0x39e   :  { %2764 = vmatpush3.bf16.msra.mxu0 %v561_v20  ;;  %2765 = vmatprep.mubr.msk.bf16.mxu0 %vm3130_vm0, %v3129_v0 }
 0x39f   :  { %2775 = vmatprep.subr.bf16.mxu0 %v3129_v0 }
 0x3ba   :  { %v551_v21 = vpop.xlane.xlu0 %550 }
 0x3bb   :  { %3050 = vrcp.f32 %v551_v21 }
 0x3be   :  { %v678_v25 = vpop.xlane.xlu0 %677 }
 0x3bf   :  { %3052 = vrcp.f32 %v678_v25 }
 0x3c2   :  { %v788_v26 = vpop.xlane.xlu1 %787  ;;  %v898_v27 = vpop.xlane.xlu0 %897 }
 0x3c3   :  { %3054 = vrcp.f32 %v788_v26 }
 0x3c4   :  { %3056 = vrcp.f32 %v898_v27 }
 0x3c5   :  { %v3051_v22 = vpop.eup %3050 }
 0x3c6   :  { %v553_v23 = vmul.f32 %v3051_v22, %v3035_v50  ;;  %v793_v33 = vpop.permute.xlu1 %792 }
 0x3c7   :  { %v798_v36 = vsel %vm228_vm3, %v793_v33, 0 }
 0x3c8   :  { %v554_v24 = vpack.c.bf16 %v553_v23, %v553_v23 }
 0x3c9   :  { %v3053_v28 = vpop.eup %3052 }
 0x3ca   :  { %2766 = vmatmul.mubr.msk.bf16.vlgmr.msra.gmra.mrb[12].mxu0 %vm164_vm2, %v554_v24  ;;  %v680_v30 = vmul.f32 %v3053_v28, %v3417_v52  ;;  %v903_v38 = vpop.permute.xlu1 %902 }
 0x3cb   :  { %2777 = vmatprep.mubr.msk.bf16.mxu0 %vm3130_vm0, %v3129_v0  ;;  %v908_v41 = vsel %vm228_vm3, %v903_v38, 0 }
 0x3cc   :  { %v681_v34 = vpack.c.bf16 %v680_v30, %v680_v30 }
 0x3cd   :  { %v3055_v35 = vpop.eup %3054 }
 0x3ce   :  { %v790_v37 = vmul.f32 %v3055_v35, %v3419_v53  ;;  %v3057_v40 = vpop.eup %3056  ;;  %v1013_v43 = vpop.permute.xlu1 %1012 }
 0x3cf   :  { %v900_v42 = vmul.f32 %v3057_v40, %v3423_v55  ;;  %v1018_v46 = vsel %vm228_vm3, %v1013_v43, 0 }
 0x3d0   :  { %v791_v39 = vpack.c.bf16 %v790_v37, %v790_v37 }
 0x3d1   :  { %v901_v44 = vpack.c.bf16 %v900_v42, %v900_v42 }
 0x3da   :  { %v1008_v29 = vpop.xlane.xlu0 %1007 }
 0x3db   :  { %3058 = vrcp.f32 %v1008_v29 }
 0x3de   :  { %v683_v31 = vpop.permute.xlu0 %682 }
 0x3df   :  { %v688_v32 = vsel %vm228_vm3, %v683_v31, 0 }
 0x3e0   :  { %2776 = vmatpush3.bf16.msra.mxu0 %v688_v32 }
 0x3e1   :  { %2787 = vmatprep.subr.bf16.mxu0 %v3129_v0 }
 0x3e3   :  { %2778 = vmatmul.mubr.msk.bf16.vlgmr.msra.gmra.mrb[16].mxu0 %vm164_vm2, %v681_v34 }
 0x3e4   :  { %2788 = vmatpush3.bf16.msra.mxu0 %v798_v36  ;;  %2789 = vmatprep.mubr.msk.bf16.mxu0 %vm3130_vm0, %v3129_v0 }
 0x3e5   :  { %2799 = vmatprep.subr.bf16.mxu0 %v3129_v0  ;;  %v3059_v45 = vpop.eup %3058 }
 0x3e6   :  { %v1010_v47 = vmul.f32 %v3059_v45, %v3434_v62 }
 0x3e8   :  { %v1011_v48 = vpack.c.bf16 %v1010_v47, %v1010_v47 }
 0x3eb   :  { %2790 = vmatmul.mubr.msk.bf16.vlgmr.msra.gmra.mrb[20].mxu0 %vm164_vm2, %v791_v39 }
 0x3ec   :  { %2800 = vmatpush3.bf16.msra.mxu0 %v908_v41  ;;  %2801 = vmatprep.mubr.msk.bf16.mxu0 %vm3130_vm0, %v3129_v0  ;;  %v2578_v41 = vld [vmem:[%s3863_s23] ss:$0 sm:$0xff] }
 0x3ed   :  { %2811 = vmatprep.subr.bf16.mxu0 %v3129_v0 }
 0x3f3   :  { %2802 = vmatmul.mubr.msk.bf16.vlgmr.msra.gmra.mrb[24].mxu0 %vm164_vm2, %v901_v44 }
 0x3f4   :  { %2812 = vmatpush3.bf16.msra.mxu0 %v1018_v46  ;;  %2813 = vmatprep.mubr.msk.bf16.mxu0 %vm3130_vm0, %v3129_v0 }
 0x3f5   :  { %2825 = vmatprep.subr.bf16.mxu0 %v3129_v0 }
 0x3fb   :  { %2814 = vmatmul.mubr.msk.bf16.vlgmr.msra.gmra.mrb[28].mxu0 %vm164_vm2, %v1011_v48 }
 0x3fc   :  { %2829 = vmatprep.mubr.msk.bf16.mxu0 %vm3130_vm0, %v3129_v0 }
 0x460   :  { %v266_v15 = vpop.f32.mrb[0].mxu0 }
 0x461   :  { %v2731_v49 = vpop.f32.mrb[1].mxu0 }
 0x462   :  { %v269_v50 = vpop.f32.mrb[2].mxu0 }
 0x463   :  { %v2732_v51 = vpop.f32.mrb[3].mxu0 }
 0x468   :  { %v377_v52 = vpop.f32.mrb[4].mxu0 }
 0x469   :  { %v2743_v53 = vpop.f32.mrb[5].mxu0 }
 0x46a   :  { %v380_v54 = vpop.f32.mrb[6].mxu0 }
 0x46b   :  { %v2744_v55 = vpop.f32.mrb[7].mxu0 }
 0x470   :  { %v487_v56 = vpop.f32.mrb[8].mxu0 }
 0x471   :  { %v2755_v57 = vpop.f32.mrb[9].mxu0 }
 0x472   :  { %v490_v58 = vpop.f32.mrb[10].mxu0 }
 0x473   :  { %v2756_v59 = vpop.f32.mrb[11].mxu0 }
 0x49d   :  { %v597_v60 = vpop.f32.mrb[12].mxu0 }
 0x49e   :  { %v2767_v61 = vpop.f32.mrb[13].mxu0 }
 0x49f   :  { %v600_v62 = vpop.f32.mrb[14].mxu0  ;;  %v3018_v61 = vld [vmem:[%s3826_s8] sm:$0xff]  }
 0x4a0   :  { %v2768_v63 = vpop.f32.mrb[15].mxu0  ;;  %2826 = vmatpush3.bf16.msra.mxu0 %v3018_v61 }
 0x4a1   :  { %2827 = vmatprep.subr.bf16.mxu0 %v3129_v0 }
 0x4b6   :  { %v724_v1 = vpop.f32.mrb[16].mxu0 }
 0x4b7   :  { %v2779_v2 = vpop.f32.mrb[17].mxu0 }
 0x4b8   :  { %v727_v5 = vpop.f32.mrb[18].mxu0  ;;  %v3019_v2 = vld [vmem:[%s3826_s8 + $0x8] sm:$0xff]  }
 0x4b9   :  { %v2780_v6 = vpop.f32.mrb[19].mxu0  ;;  %2828 = vmatpush3.bf16.msra.mxu0 %v3019_v2 }
 0x4ba   :  { %2841 = vmatprep.subr.bf16.mxu0 %v3129_v0 }
 0x4be   :  { %v834_v7 = vpop.f32.mrb[20].mxu0 }
 0x4bf   :  { %v2982_v9 = vpack.i.bf16 %v834_v7, %v377_v52  ;;  %v2791_v17 = vpop.f32.mrb[21].mxu0 }
 0x4c0   :  { %v837_v10 = vpop.f32.mrb[22].mxu0 }
 0x4c1   :  { %2983 = vrot.lane.b32.xlu1 %v2982_v9, %s3847_s5  ;;  %v2792_v11 = vpop.f32.mrb[23].mxu0  ;;  %s3864_s5 = sld [smem:[#allocation6_spill]] }
 0x4c2   :  { %v2582_v11 = vld [vmem:[%s3865_s2] ss:$0 sm:$0xff] }
 0x4c6   :  { %v944_v13 = vpop.f32.mrb[24].mxu0 }
 0x4c7   :  { %v2987_v14 = vpack.i.bf16 %v944_v13, %v487_v56  ;;  %v2803_v16 = vpop.f32.mrb[25].mxu0  ;;  %v86_v62 = vld [vmem:[%s3864_s5] sm:$0xff]  ;;  %v87_v63 = vld [vmem:[%s3864_s5 + $0x8] sm:$0xff] }
 0x4c8   :  { %v947_v18 = vpop.f32.mrb[26].mxu0 }
 0x4c9   :  { %2988 = vrot.lane.b32.xlu1 %v2987_v14, %s3846_s29  ;;  %v2804_v19 = vpop.f32.mrb[27].mxu0  ;;  %v2583_v18 = vld [vmem:[%s3825_s7] ss:$0 sm:$0xff] }
 0x4ce   :  { %v1054_v20 = vpop.f32.mrb[28].mxu0 }
 0x4cf   :  { %v2992_v21 = vpack.i.bf16 %v1054_v20, %v597_v60  ;;  %v2815_v22 = vpop.f32.mrb[29].mxu0  ;;  %v3017_v60 = vld [vmem:[%s3828_s10 + $0x8] sm:$0xff]  }
 0x4d0   :  { %v1057_v23 = vpop.f32.mrb[30].mxu0 }
 0x4d1   :  { %2993 = vrot.lane.b32.xlu0 %v2992_v21, %s3845_s30  ;;  %v2816_v24 = vpop.f32.mrb[31].mxu0  ;;  %v2588_v23 = vld [vmem:[%s3829_s11] ss:$0 sm:$0xff]  ;;  %s3867_s11 = smov 72  }
 0x533   :  { %v2984_v25 = vpop.permute.xlu1 %2983 }
 0x534   :  { %v2986_v27 = vunpack.i.h.bf16 %v2984_v25  ;;  %v2985_v28 = vunpack.i.l.bf16 %v2984_v25 }
 0x536   :  { %v1072_v32 = vsel %vm164_vm2, %v724_v1, %v2986_v27  ;;  %v615_v33 = vsel %vm164_vm2, %v266_v15, %v2985_v28  ;;  %v1258_v1 = vpack.c.bf16 %v87_v63, %v86_v62 }
 0x53b   :  { %v2989_v26 = vpop.permute.xlu1 %2988 }
 0x53c   :  { %v2991_v29 = vunpack.i.h.bf16 %v2989_v26  ;;  %v2990_v30 = vunpack.i.l.bf16 %v2989_v26 }
 0x53e   :  { %v1073_v36 = vsel %vm616_vm4, %v1072_v32, %v2991_v29  ;;  %v617_v37 = vsel %vm616_vm4, %v615_v33, %v2990_v30  ;;  %v2584_v32 = vld [vmem:[%s3827_s9] ss:$0 sm:$0xff]  ;;  %s3866_s9 = smov 80  }
 0x543   :  { %v2994_v31 = vpop.permute.xlu0 %2993 }
 0x544   :  { %v2996_v34 = vunpack.i.h.bf16 %v2994_v31  ;;  %v2995_v35 = vunpack.i.l.bf16 %v2994_v31 }
 0x546   :  { %v1074_v38 = vsel %vm618_vm5, %v1073_v36, %v2996_v34  ;;  %v619_v39 = vsel %vm618_vm5, %v617_v37, %v2995_v35 }
 0x547   :  { %v1075_v40 = vpack.c.bf16 %v1074_v38, %v619_v39 }
 0x549   :  { %2822 = vmatmul.mubr.msk.bf16.vlgmr.msra.gmra.mrb[36].mxu1 %vm112_vm1, %v1075_v40 }
 0x54a   :  { %2837 = vmatprep.mubr.msk.bf16.mxu1 %vm3130_vm0, %v3129_v0 }
 0x61c   :  { %v1136_v42 = vpop.f32.mrb[36].mxu1 }
 0x61d   :  { %v1137_v43 = vadd.f32 %v2578_v41, %v1136_v42  ;;  %v2823_v44 = vpop.f32.mrb[37].mxu1 }
 0x61e   :  { %v1139_v45 = vpop.f32.mrb[38].mxu1 }
 0x61f   :  { %v1140_v46 = vadd.f32 %v2578_v41, %v1139_v45  ;;  %v2824_v47 = vpop.f32.mrb[39].mxu1  ;;  %v1143_v48 = vadd.f32 %v1137_v43, %v3287_v3 }
 0x621   :  { %v1147_v15 = vsel %vm112_vm1, %v1143_v48, 0.0  ;;  %v1144_v49 = vadd.f32 %v1140_v46, %v3292_v4  ;;  %v3016_v4 = vld [vmem:[%s3828_s10] sm:$0xff]  }
 0x622   :  { %1148 = vadd.xlane.f32.xlu1 %v1147_v15  ;;  %2834 = vmatpush3.bf16.msra.mxu1 %v3016_v4 }
 0x623   :  { %v1150_v50 = vsel %vm112_vm1, %v1144_v49, 0.0  ;;  %2835 = vmatprep.subr.bf16.mxu1 %v3129_v0 }
 0x624   :  { %1151 = vadd.xlane.f32.xlu0 %v1150_v50 }
 0x626   :  { %2836 = vmatpush3.bf16.msra.mxu1 %v3017_v60 }
 0x627   :  { %2847 = vmatprep.subr.bf16.mxu1 %v3129_v0 }
 0x629   :  { %2838 = vmatmul.mubr.msk.bf16.vlgmr.msra.gmra.mrb[40].mxu1 %vm112_vm1, %v1258_v1 }
 0x62a   :  { %2849 = vmatprep.mubr.msk.bf16.mxu1 %vm3130_vm0, %v3129_v0 }
 0x6af   :  { %v1149_v51 = vpop.xlane.xlu1 %1148 }
 0x6b0   :  { %v1154_v52 = vmul.f32 0.03125, %v1149_v51 }
 0x6b1   :  { %v1152_v53 = vpop.xlane.xlu0 %1151 }
 0x6b2   :  { %v1156_v54 = vsub.f32 %v1143_v48, %v1154_v52  ;;  %v1155_v55 = vmul.f32 0.03125, %v1152_v53 }
 0x6b4   :  { %v1157_v56 = vsub.f32 %v1144_v49, %v1155_v55  ;;  %v1158_v57 = vmul.f32 %v1156_v54, %v1156_v54 }
 0x6b6   :  { %v1160_v58 = vsel %vm112_vm1, %v1158_v57, 0.0  ;;  %v1159_v59 = vmul.f32 %v1157_v56, %v1157_v56 }
 0x6b7   :  { %1161 = vadd.xlane.f32.xlu0 %v1160_v58 }
 0x6b8   :  { %v1163_v3 = vsel %vm112_vm1, %v1159_v59, 0.0 }
 0x6b9   :  { %1164 = vadd.xlane.f32.xlu1 %v1163_v3 }
 0x6fc   :  { %v1319_v24 = vpop.f32.mrb[40].mxu1 }
 0x6fd   :  { %v1320_v25 = vadd.f32 %v2588_v23, %v1319_v24  ;;  %v2839_v26 = vpop.f32.mrb[41].mxu1 }
 0x6fe   :  { %v1322_v27 = vpop.f32.mrb[42].mxu1 }
 0x6ff   :  { %v1323_v28 = vadd.f32 %v2588_v23, %v1322_v27  ;;  %v2840_v29 = vpop.f32.mrb[43].mxu1 }
 0x701   :  { %v3559_v30 = vpack.c.bf16 %v1323_v28, %v1320_v25 }
 0x703   :  { %1440 = vrot.lane.b32.xlu0 %v3559_v30, %s3132_s25  ;;  %v1334_v31 = vsel %vm164_vm2, %v3559_v30, 0  ;;  %v3583_v45 = vrot.slane %v3559_v30, 4 }
 0x705   :  { %v1789_v52 = vsel %vm164_vm2, %v3583_v45, 0 }
 0x744   :  { %v1162_v5 = vpop.xlane.xlu0 %1161 }
 0x745   :  { %v1166_v6 = vmul.f32 0.03125, %v1162_v5 }
 0x746   :  { %v1165_v7 = vpop.xlane.xlu1 %1164 }
 0x747   :  { %v1168_v8 = vadd.f32 1e-05, %v1166_v6  ;;  %v1167_v9 = vmul.f32 0.03125, %v1165_v7 }
 0x749   :  { %3060 = vrsqrt.f32 %v1168_v8  ;;  %v1169_v17 = vadd.f32 1e-05, %v1167_v9 }
 0x74b   :  { %3062 = vrsqrt.f32 %v1169_v17 }
 0x753   :  { %v3061_v10 = vpop.eup %3060 }
 0x754   :  { %v1172_v12 = vmul.f32 %v3061_v10, %v1156_v54 }
 0x755   :  { %v3063_v13 = vpop.eup %3062 }
 0x756   :  { %v1180_v14 = vmul.f32 %v2582_v11, %v1172_v12  ;;  %v1173_v16 = vmul.f32 %v3063_v13, %v1157_v56 }
 0x758   :  { %v1181_v19 = vmul.f32 %v2582_v11, %v1173_v16  ;;  %v3547_v20 = vadd.f32 %v2583_v18, %v1180_v14 }
 0x75a   :  { %v3549_v21 = vadd.f32 %v2583_v18, %v1181_v19 }
 0x75c   :  { %v1190_v22 = vpack.c.bf16 %v3549_v21, %v3547_v20 }
 0x75e   :  { %2830 = vmatmul.mubr.msk.bf16.vlgmr.msra.gmra.mrb[32].mxu0 %vm112_vm1, %v1190_v22 }
 0x75f   :  { %2843 = vmatprep.mubr.msk.bf16.mxu0 %vm3130_vm0, %v3129_v0  ;;  %2842 = vmatpush3.bf16.xpose.msra.mxu0 %v1334_v31 }
 0x760   :  { %2853 = vmatprep.subr.bf16.mxu0 %v3129_v0 }
 0x775   :  { %v1441_v41 = vpop.permute.xlu0 %1440 }
 0x776   :  { %v1446_v43 = vsel %vm164_vm2, %v1441_v41, 0 }
 0x831   :  { %v1251_v33 = vpop.f32.mrb[32].mxu0 }
 0x832   :  { %v1252_v34 = vadd.f32 %v2584_v32, %v1251_v33  ;;  %v2831_v35 = vpop.f32.mrb[33].mxu0 }
 0x833   :  { %v1254_v36 = vpop.f32.mrb[34].mxu0 }
 0x834   :  { %v1255_v37 = vadd.f32 %v2584_v32, %v1254_v36  ;;  %v2832_v38 = vpop.f32.mrb[35].mxu0  ;;  %v1326_v39 = vmul.f32 0.35355338, %v1252_v34 }
 0x836   :  { %v1327_v40 = vmul.f32 0.35355338, %v1255_v37 }
 0x838   :  { %v1328_v42 = vpack.c.bf16 %v1327_v40, %v1326_v39 }
 0x83a   :  { %1438 = vrot.lane.b32.xlu1 %v1328_v42, %s3132_s25  ;;  %1548 = vrot.lane.b32.xlu0 %v1328_v42, %s3135_s27  ;;  %v1783_v44 = vrot.slane %v1328_v42, 4 }
 0x83b   :  { %2844 = vmatmul.mubr.msk.bf16.vlgmr.msra.gmra.mrb[36].mxu0 %vm164_vm2, %v1328_v42 }
 0x83c   :  { %2854 = vmatpush3.bf16.xpose.msra.mxu0 %v1446_v43  ;;  %2855 = vmatprep.mubr.msk.bf16.mxu0 %vm3130_vm0, %v3129_v0 }
 0x83d   :  { %2865 = vmatprep.subr.bf16.mxu0 %v3129_v0 }
 0x83e   :  { %1550 = vrot.lane.b32.xlu1 %v3559_v30, %s3135_s27  ;;  %1658 = vrot.lane.b32.xlu0 %v1328_v42, %s3137_s21 }
 0x842   :  { %1660 = vrot.lane.b32.xlu1 %v3559_v30, %s3137_s21  ;;  %1891 = vrot.lane.b32.xlu0 %v1783_v44, %s3132_s25 }
 0x846   :  { %2001 = vrot.lane.b32.xlu0 %v1783_v44, %s3135_s27  ;;  %1893 = vrot.lane.b32.xlu1 %v3583_v45, %s3132_s25 }
 0x84a   :  { %2111 = vrot.lane.b32.xlu0 %v1783_v44, %s3137_s21  ;;  %2003 = vrot.lane.b32.xlu1 %v3583_v45, %s3135_s27 }
 0x84e   :  { %2113 = vrot.lane.b32.xlu1 %v3583_v45, %s3137_s21 }
 0x8ac   :  { %v1439_v46 = vpop.permute.xlu1 %1438  ;;  %v1549_v49 = vpop.permute.xlu0 %1548 }
 0x8ad   :  { %2856 = vmatmul.mubr.msk.bf16.vlgmr.msra.gmra.mrb[40].mxu0 %vm164_vm2, %v1439_v46 }
 0x8ae   :  { %2867 = vmatprep.mubr.msk.bf16.mxu0 %vm3130_vm0, %v3129_v0 }
 0x8b0   :  { %v1551_v47 = vpop.permute.xlu1 %1550  ;;  %v1659_v51 = vpop.permute.xlu0 %1658 }
 0x8b1   :  { %v1556_v48 = vsel %vm164_vm2, %v1551_v47, 0 }
 0x8b2   :  { %2866 = vmatpush3.bf16.xpose.msra.mxu0 %v1556_v48 }
 0x8b3   :  { %2877 = vmatprep.subr.bf16.mxu0 %v3129_v0 }
 0x8b4   :  { %v1661_v15 = vpop.permute.xlu1 %1660  ;;  %v1892_v56 = vpop.permute.xlu0 %1891 }
 0x8b5   :  { %v1666_v50 = vsel %vm164_vm2, %v1661_v15, 0 }
 0x8b8   :  { %v1894_v53 = vpop.permute.xlu1 %1893  ;;  %v2002_v59 = vpop.permute.xlu0 %2001 }
 0x8b9   :  { %2868 = vmatmul.mubr.msk.bf16.vlgmr.msra.gmra.mrb[44].mxu0 %vm164_vm2, %v1549_v49  ;;  %v1899_v54 = vsel %vm164_vm2, %v1894_v53, 0 }
 0x8ba   :  { %2878 = vmatpush3.bf16.xpose.msra.mxu0 %v1666_v50  ;;  %2879 = vmatprep.mubr.msk.bf16.mxu0 %vm3130_vm0, %v3129_v0 }
 0x8bb   :  { %2889 = vmatprep.subr.bf16.mxu0 %v3129_v0 }
 0x8bc   :  { %v2004_v55 = vpop.permute.xlu1 %2003  ;;  %v2112_v4 = vpop.permute.xlu0 %2111 }
 0x8bd   :  { %v2009_v57 = vsel %vm164_vm2, %v2004_v55, 0 }
 0x8c0   :  { %v2114_v58 = vpop.permute.xlu1 %2113 }
 0x8c1   :  { %2880 = vmatmul.mubr.msk.bf16.vlgmr.msra.gmra.mrb[48].mxu0 %vm164_vm2, %v1659_v51  ;;  %v2119_v3 = vsel %vm164_vm2, %v2114_v58, 0 }
 0x8c2   :  { %2890 = vmatpush3.bf16.xpose.msra.mxu0 %v1789_v52  ;;  %2891 = vmatprep.mubr.msk.bf16.mxu0 %vm3130_vm0, %v3129_v0 }
 0x8c3   :  { %2901 = vmatprep.subr.bf16.mxu0 %v3129_v0 }
 0x8c9   :  { %2892 = vmatmul.mubr.msk.bf16.vlgmr.msra.gmra.mrb[52].mxu0 %vm164_vm2, %v1783_v44 }
 0x8ca   :  { %2902 = vmatpush3.bf16.xpose.msra.mxu0 %v1899_v54  ;;  %2903 = vmatprep.mubr.msk.bf16.mxu0 %vm3130_vm0, %v3129_v0 }
 0x8cb   :  { %2913 = vmatprep.subr.bf16.mxu0 %v3129_v0 }
 0x8d1   :  { %2904 = vmatmul.mubr.msk.bf16.vlgmr.msra.gmra.mrb[56].mxu0 %vm164_vm2, %v1892_v56 }
 0x8d2   :  { %2914 = vmatpush3.bf16.xpose.msra.mxu0 %v2009_v57  ;;  %2915 = vmatprep.mubr.msk.bf16.mxu0 %vm3130_vm0, %v3129_v0 }
 0x8d3   :  { %2925 = vmatprep.subr.bf16.mxu0 %v3129_v0 }
 0x8d9   :  { %2916 = vmatmul.mubr.msk.bf16.vlgmr.msra.gmra.mrb[60].mxu0 %vm164_vm2, %v2002_v59 }
 0x8da   :  { %2926 = vmatpush3.bf16.xpose.msra.mxu0 %v2119_v3  ;;  %2927 = vmatprep.mubr.msk.bf16.mxu0 %vm3130_vm0, %v3129_v0 }
 0x8db   :  { %2937 = vmatprep.subr.bf16.mxu0 %v3129_v0 }
 0x8e1   :  { %2928 = vmatmul.mubr.msk.bf16.vlgmr.msra.gmra.mrb[64].mxu0 %vm164_vm2, %v2112_v4 }
 0x8e2   :  { %2941 = vmatprep.mubr.msk.bf16.mxu0 %vm3130_vm0, %v3129_v0 }
 0x90e   :  { %v1370_v60 = vpop.f32.mrb[36].mxu0 }
 0x90f   :  { %v2845_v61 = vpop.f32.mrb[37].mxu0  ;;  %v1376_v62 = vsel %vm164_vm2, %v1370_v60, -inf }
 0x910   :  { %1377 = vmax.xlane.f32.xlu1 %v1376_v62  ;;  %v1373_v63 = vpop.f32.mrb[38].mxu0 }
 0x911   :  { %v2846_v1 = vpop.f32.mrb[39].mxu0 }
 0x980   :  { %v1482_v2 = vpop.f32.mrb[40].mxu0 }
 0x981   :  { %v2857_v5 = vpop.f32.mrb[41].mxu0  ;;  %v1488_v6 = vsel %vm164_vm2, %v1482_v2, -inf }
 0x982   :  { %1489 = vmax.xlane.f32.xlu0 %v1488_v6  ;;  %v1485_v7 = vpop.f32.mrb[42].mxu0 }
 0x983   :  { %v2858_v8 = vpop.f32.mrb[43].mxu0 }
 0x98c   :  { %v1592_v9 = vpop.f32.mrb[44].mxu0 }
 0x98d   :  { %v2869_v17 = vpop.f32.mrb[45].mxu0  ;;  %v1598_v10 = vsel %vm164_vm2, %v1592_v9, -inf }
 0x98e   :  { %1599 = vmax.xlane.f32.xlu0 %v1598_v10  ;;  %v1595_v11 = vpop.f32.mrb[46].mxu0 }
 0x98f   :  { %v2870_v12 = vpop.f32.mrb[47].mxu0 }
 0x994   :  { %v1702_v13 = vpop.f32.mrb[48].mxu0 }
 0x995   :  { %v2881_v14 = vpop.f32.mrb[49].mxu0  ;;  %v1708_v16 = vsel %vm164_vm2, %v1702_v13, -inf }
 0x996   :  { %1709 = vmax.xlane.f32.xlu1 %v1708_v16  ;;  %v1705_v18 = vpop.f32.mrb[50].mxu0 }
 0x997   :  { %v2882_v19 = vpop.f32.mrb[51].mxu0 }
 0x99c   :  { %v1825_v22 = vpop.f32.mrb[52].mxu0 }
 0x99d   :  { %v2893_v23 = vpop.f32.mrb[53].mxu0  ;;  %v1831_v24 = vsel %vm164_vm2, %v1825_v22, -inf  ;;  %v1378_v42 = vpop.xlane.xlu1 %1377 }
 0x99e   :  { %1832 = vmax.xlane.f32.xlu0 %v1831_v24  ;;  %v1828_v25 = vpop.f32.mrb[54].mxu0  ;;  %v1379_v43 = vsub.f32 %v1370_v60, %v1378_v42 }
 0x99f   :  { %v2894_v26 = vpop.f32.mrb[55].mxu0 }
 0x9a0   :  { %v1380_v44 = vmul.f32 1.442695, %v1379_v43 }
 0x9a2   :  { %3064 = vpow2.f32 %v1380_v44 }
 0x9a4   :  { %v3632_v27 = vpop.f32.mrb[56].mxu0 }
 0x9a5   :  { %v2905_v28 = vpop.f32.mrb[57].mxu0  ;;  %v1941_v29 = vsel %vm164_vm2, %v3632_v27, -inf }
 0x9a6   :  { %1942 = vmax.xlane.f32.xlu1 %v1941_v29  ;;  %v1938_v31 = vpop.f32.mrb[58].mxu0 }
 0x9a7   :  { %v2906_v32 = vpop.f32.mrb[59].mxu0 }
 0x9ac   :  { %v2045_v33 = vpop.f32.mrb[60].mxu0  ;;  %v3645_v47 = vpop.eup %3064 }
 0x9ad   :  { %v2917_v34 = vpop.f32.mrb[61].mxu0  ;;  %v2051_v35 = vsel %vm164_vm2, %v2045_v33, -inf  ;;  %v1382_v48 = vsel %vm164_vm2, %v3645_v47, 0.0 }
 0x9ae   :  { %2052 = vmax.xlane.f32.xlu0 %v2051_v35  ;;  %v2048_v36 = vpop.f32.mrb[62].mxu0 }
 0x9af   :  { %v2918_v37 = vpop.f32.mrb[63].mxu0 }
 0x9b4   :  { %v3637_v38 = vpop.f32.mrb[64].mxu0 }
 0x9b5   :  { %v2929_v39 = vpop.f32.mrb[65].mxu0  ;;  %v2161_v46 = vsel %vm164_vm2, %v3637_v38, -inf }
 0x9b6   :  { %v2158_v40 = vpop.f32.mrb[66].mxu0 }
 0x9b7   :  { %1500 = vrot.lane.b32.xlu1 %v3559_v30, %s3133_s26  ;;  %v2930_v41 = vpop.f32.mrb[67].mxu0 }
 0x9c4   :  { %1389 = vrot.lane.b32.xlu0 %v3559_v30, %s3131_s6 }
 0x9db   :  { %2162 = vmax.xlane.f32.xlu1 %v2161_v46 }
 0x9e3   :  { %1383 = vadd.xlane.f32.xlu0 %v1382_v48 }
 0x9ec   :  { %1610 = vrot.lane.b32.xlu1 %v3559_v30, %s3866_s9 }
 0xa0f   :  { %v1490_v15 = vpop.xlane.xlu0 %1489 }
 0xa10   :  { %v1491_v49 = vsub.f32 %v1482_v2, %v1490_v15 }
 0xa12   :  { %v1492_v50 = vmul.f32 1.442695, %v1491_v49 }
 0xa14   :  { %3066 = vpow2.f32 %v1492_v50 }
 0xa1b   :  { %v1600_v51 = vpop.xlane.xlu0 %1599 }
 0xa1c   :  { %v1601_v52 = vsub.f32 %v1592_v9, %v1600_v51 }
 0xa1e   :  { %v3651_v53 = vpop.eup %3066  ;;  %v1602_v54 = vmul.f32 1.442695, %v1601_v52 }
 0xa1f   :  { %v1494_v55 = vsel %vm164_vm2, %v3651_v53, 0.0 }
 0xa20   :  { %3068 = vpow2.f32 %v1602_v54  ;;  %1495 = vadd.xlane.f32.xlu1 %v1494_v55 }
 0xa23   :  { %v1710_v56 = vpop.xlane.xlu1 %1709 }
 0xa24   :  { %v1711_v57 = vsub.f32 %v1702_v13, %v1710_v56 }
 0xa26   :  { %v1712_v58 = vmul.f32 1.442695, %v1711_v57 }
 0xa28   :  { %3070 = vpow2.f32 %v1712_v58 }
 0xa2a   :  { %v3655_v59 = vpop.eup %3068 }
 0xa2b   :  { %v1833_v3 = vpop.xlane.xlu0 %1832  ;;  %v1604_v4 = vsel %vm164_vm2, %v3655_v59, 0.0 }
 0xa2c   :  { %v1834_v60 = vsub.f32 %v1825_v22, %v1833_v3  ;;  %1605 = vadd.xlane.f32.xlu0 %v1604_v4 }
 0xa2e   :  { %v1835_v61 = vmul.f32 1.442695, %v1834_v60 }
 0xa30   :  { %3072 = vpow2.f32 %v1835_v61 }
 0xa32   :  { %v3659_v62 = vpop.eup %3070 }
 0xa33   :  { %v1714_v63 = vsel %vm164_vm2, %v3659_v62, 0.0  ;;  %v1943_v17 = vpop.xlane.xlu1 %1942 }
 0xa34   :  { %1715 = vadd.xlane.f32.xlu1 %v1714_v63  ;;  %v1944_v11 = vsub.f32 %v3632_v27, %v1943_v17 }
 0xa36   :  { %v1945_v13 = vmul.f32 1.442695, %v1944_v11 }
 0xa3a   :  { %v3663_v1 = vpop.eup %3072 }
 0xa3b   :  { %v2053_v2 = vpop.xlane.xlu0 %2052  ;;  %v1837_v5 = vsel %vm164_vm2, %v3663_v1, 0.0 }
 0xa3c   :  { %v2054_v6 = vsub.f32 %v2045_v33, %v2053_v2  ;;  %1838 = vadd.xlane.f32.xlu1 %v1837_v5 }
 0xa3e   :  { %v2055_v7 = vmul.f32 1.442695, %v2054_v6 }
 0xa3f   :  { %v1390_v8 = vpop.permute.xlu0 %1389 }
 0xa40   :  { %3074 = vpow2.f32 %v2055_v7  ;;  %v1395_v9 = vsel %vm228_vm3, %v1390_v8, 0 }
 0xa41   :  { %2848 = vmatpush3.bf16.msra.mxu1 %v1395_v9  ;;  %3076 = vpow2.f32 %v1945_v13 }
 0xa42   :  { %1720 = vrot.lane.b32.xlu0 %v3559_v30, %s3867_s11  ;;  %2859 = vmatprep.subr.bf16.mxu1 %v3129_v0  ;;  %v1501_v30 = vpop.permute.xlu1 %1500 }
 0xa43   :  { %v1506_v29 = vsel %vm228_vm3, %v1501_v30, 0 }
 0xa4a   :  { %v3671_v10 = vpop.eup %3074 }
 0xa4b   :  { %v2057_v12 = vsel %vm164_vm2, %v3671_v10, 0.0  ;;  %v3676_v14 = vpop.eup %3076 }
 0xa4c   :  { %2058 = vadd.xlane.f32.xlu1 %v2057_v12  ;;  %v1947_v16 = vsel %vm164_vm2, %v3676_v14, 0.0 }
 0xa61   :  { %1948 = vadd.xlane.f32.xlu0 %v1947_v16 }
 0xa68   :  { %v2163_v18 = vpop.xlane.xlu1 %2162 }
 0xa69   :  { %v2164_v19 = vsub.f32 %v3637_v38, %v2163_v18 }
 0xa6b   :  { %v2165_v22 = vmul.f32 1.442695, %v2164_v19 }
 0xa6c   :  { %v1611_v31 = vpop.permute.xlu1 %1610 }
 0xa6d   :  { %3078 = vpow2.f32 %v2165_v22  ;;  %v1616_v37 = vsel %vm228_vm3, %v1611_v31, 0  ;;  %v3020_v31 = vld [vmem:[%s3830_s12] sm:$0xff]  }
 0xa6e   :  { %2938 = vmatpush3.bf16.msra.mxu0 %v3020_v31 }
 0xa6f   :  { %2939 = vmatprep.subr.bf16.mxu0 %v3129_v0 }
 0xa70   :  { %v1384_v23 = vpop.xlane.xlu0 %1383 }
 0xa71   :  { %3080 = vrcp.f32 %v1384_v23 }
 0xa77   :  { %v3681_v24 = vpop.eup %3078  ;;  %1953 = vrot.lane.b32.xlu0 %v3583_v45, %s3133_s26  ;;  %s3868_s26 = smov 8  }
 0xa78   :  { %v2167_v25 = vsel %vm164_vm2, %v3681_v24, 0.0 }
 0xa79   :  { %2168 = vadd.xlane.f32.xlu1 %v2167_v25 }
 0xa7b   :  { %v3081_v26 = vpop.eup %3080  ;;  %2063 = vrot.lane.b32.xlu0 %v3583_v45, %s3866_s9 }
 0xa7c   :  { %v1386_v27 = vmul.f32 %v3081_v26, %v3645_v47 }
 0xa7e   :  { %v1387_v28 = vpack.c.bf16 %v1386_v27, %v1386_v27 }
 0xa7f   :  { %2173 = vrot.lane.b32.xlu0 %v3583_v45, %s3867_s11 }
 0xa80   :  { %2850 = vmatmul.mubr.msk.bf16.vlgmr.msra.gmra.mrb[44].mxu1 %vm164_vm2, %v1387_v28 }
 0xa81   :  { %2860 = vmatpush3.bf16.msra.mxu1 %v1506_v29  ;;  %2861 = vmatprep.mubr.msk.bf16.mxu1 %vm3130_vm0, %v3129_v0 }
 0xa82   :  { %2871 = vmatprep.subr.bf16.mxu1 %v3129_v0 }
 0xa8a   :  { %1843 = vrot.lane.b32.xlu1 %v3583_v45, %s3131_s6 }
 0xaad   :  { %v1496_v32 = vpop.xlane.xlu1 %1495 }
 0xaae   :  { %3082 = vrcp.f32 %v1496_v32 }
 0xab8   :  { %v3083_v33 = vpop.eup %3082 }
 0xab9   :  { %v1498_v34 = vmul.f32 %v3083_v33, %v3651_v53  ;;  %v1606_v35 = vpop.xlane.xlu0 %1605 }
 0xaba   :  { %3084 = vrcp.f32 %v1606_v35 }
 0xabb   :  { %v1499_v36 = vpack.c.bf16 %v1498_v34, %v1498_v34 }
 0xabd   :  { %2862 = vmatmul.mubr.msk.bf16.vlgmr.msra.gmra.mrb[48].mxu1 %vm164_vm2, %v1499_v36  ;;  %v1721_v40 = vpop.permute.xlu0 %1720  ;;  %v3021_v36 = vld [vmem:[%s3830_s12 + $0x8] sm:$0xff]  }
 0xabe   :  { %2872 = vmatpush3.bf16.msra.mxu1 %v1616_v37  ;;  %2873 = vmatprep.mubr.msk.bf16.mxu1 %vm3130_vm0, %v3129_v0  ;;  %v1726_v42 = vsel %vm228_vm3, %v1721_v40, 0 }
 0xabf   :  { %2883 = vmatprep.subr.bf16.mxu1 %v3129_v0  ;;  %2940 = vmatpush3.bf16.msra.mxu0 %v3021_v36 }
 0xac0   :  { %2953 = vmatprep.subr.bf16.mxu0 %v3129_v0 }
 0xac1   :  { %v1716_v45 = vpop.xlane.xlu1 %1715 }
 0xac2   :  { %3086 = vrcp.f32 %v1716_v45 }
 0xac4   :  { %v3085_v38 = vpop.eup %3084 }
 0xac5   :  { %v1608_v39 = vmul.f32 %v3085_v38, %v3655_v59 }
 0xac7   :  { %v1609_v41 = vpack.c.bf16 %v1608_v39, %v1608_v39 }
 0xac9   :  { %2874 = vmatmul.mubr.msk.bf16.vlgmr.msra.gmra.mrb[52].mxu1 %vm164_vm2, %v1609_v41  ;;  %v1839_v47 = vpop.xlane.xlu1 %1838 }
 0xaca   :  { %2884 = vmatpush3.bf16.msra.mxu1 %v1726_v42  ;;  %2885 = vmatprep.mubr.msk.bf16.mxu1 %vm3130_vm0, %v3129_v0  ;;  %3088 = vrcp.f32 %v1839_v47 }
 0xacb   :  { %2895 = vmatprep.subr.bf16.mxu1 %v3129_v0 }
 0xacc   :  { %v3087_v43 = vpop.eup %3086 }
 0xacd   :  { %v1718_v44 = vmul.f32 %v3087_v43, %v3659_v62 }
 0xacf   :  { %v1719_v46 = vpack.c.bf16 %v1718_v44, %v1718_v44 }
 0xad1   :  { %2886 = vmatmul.mubr.msk.bf16.vlgmr.msra.gmra.mrb[56].mxu1 %vm164_vm2, %v1719_v46 }
 0xad2   :  { %2897 = vmatprep.mubr.msk.bf16.mxu1 %vm3130_vm0, %v3129_v0 }
 0xad4   :  { %v3089_v49 = vpop.eup %3088 }
 0xad5   :  { %v1841_v51 = vmul.f32 %v3089_v49, %v3663_v1 }
 0xad7   :  { %v1842_v55 = vpack.c.bf16 %v1841_v51, %v1841_v51 }
 0xad9   :  { %v2059_v15 = vpop.xlane.xlu1 %2058 }
 0xaee   :  { %v1949_v48 = vpop.xlane.xlu0 %1948 }
 0xaef   :  { %3090 = vrcp.f32 %v1949_v48 }
 0xaf0   :  { %3092 = vrcp.f32 %v2059_v15 }
 0xaf2   :  { %v1954_v54 = vpop.permute.xlu0 %1953 }
 0xaf3   :  { %v1959_v57 = vsel %vm228_vm3, %v1954_v54, 0 }
 0xaf6   :  { %v2064_v59 = vpop.permute.xlu0 %2063 }
 0xaf7   :  { %v2069_v60 = vsel %vm228_vm3, %v2064_v59, 0 }
 0xaf9   :  { %v3091_v56 = vpop.eup %3090 }
 0xafa   :  { %v1951_v58 = vmul.f32 %v3091_v56, %v3676_v14  ;;  %v3093_v4 = vpop.eup %3092  ;;  %v2174_v62 = vpop.permute.xlu0 %2173 }
 0xafb   :  { %v2061_v61 = vmul.f32 %v3093_v4, %v3671_v10  ;;  %v2179_v2 = vsel %vm228_vm3, %v2174_v62, 0 }
 0xafc   :  { %v1952_v3 = vpack.c.bf16 %v1951_v58, %v1951_v58 }
 0xafd   :  { %v2062_v63 = vpack.c.bf16 %v2061_v61, %v2061_v61 }
 0xb06   :  { %v2169_v50 = vpop.xlane.xlu1 %2168 }
 0xb07   :  { %3094 = vrcp.f32 %v2169_v50 }
 0xb0a   :  { %v1844_v52 = vpop.permute.xlu1 %1843 }
 0xb0b   :  { %v1849_v53 = vsel %vm228_vm3, %v1844_v52, 0 }
 0xb0c   :  { %2896 = vmatpush3.bf16.msra.mxu1 %v1849_v53 }
 0xb0d   :  { %2907 = vmatprep.subr.bf16.mxu1 %v3129_v0 }
 0xb0f   :  { %2898 = vmatmul.mubr.msk.bf16.vlgmr.msra.gmra.mrb[60].mxu1 %vm164_vm2, %v1842_v55 }
 0xb10   :  { %2908 = vmatpush3.bf16.msra.mxu1 %v1959_v57  ;;  %2909 = vmatprep.mubr.msk.bf16.mxu1 %vm3130_vm0, %v3129_v0 }
 0xb11   :  { %2919 = vmatprep.subr.bf16.mxu1 %v3129_v0  ;;  %v3095_v1 = vpop.eup %3094 }
 0xb12   :  { %v2171_v5 = vmul.f32 %v3095_v1, %v3681_v24 }
 0xb14   :  { %v2172_v6 = vpack.c.bf16 %v2171_v5, %v2171_v5 }
 0xb17   :  { %2910 = vmatmul.mubr.msk.bf16.vlgmr.msra.gmra.mrb[64].mxu1 %vm164_vm2, %v1952_v3 }
 0xb18   :  { %2920 = vmatpush3.bf16.msra.mxu1 %v2069_v60  ;;  %2921 = vmatprep.mubr.msk.bf16.mxu1 %vm3130_vm0, %v3129_v0  ;;  %v2608_v60 = vld [vmem:[%s3831_s13] ss:$0 sm:$0xff] }
 0xb19   :  { %2931 = vmatprep.subr.bf16.mxu1 %v3129_v0 }
 0xb1f   :  { %2922 = vmatmul.mubr.msk.bf16.vlgmr.msra.gmra.mrb[68].mxu1 %vm164_vm2, %v2062_v63 }
 0xb20   :  { %2932 = vmatpush3.bf16.msra.mxu1 %v2179_v2  ;;  %2933 = vmatprep.mubr.msk.bf16.mxu1 %vm3130_vm0, %v3129_v0 }
 0xb21   :  { %2945 = vmatprep.subr.bf16.mxu1 %v3129_v0 }
 0xb27   :  { %2934 = vmatmul.mubr.msk.bf16.vlgmr.msra.gmra.mrb[72].mxu1 %vm164_vm2, %v2172_v6 }
 0xb28   :  { %2949 = vmatprep.mubr.msk.bf16.mxu1 %vm3130_vm0, %v3129_v0 }
 0xb53   :  { %v1431_v7 = vpop.f32.mrb[44].mxu1 }
 0xb54   :  { %v2851_v8 = vpop.f32.mrb[45].mxu1 }
 0xb55   :  { %v1434_v9 = vpop.f32.mrb[46].mxu1 }
 0xb56   :  { %v2852_v17 = vpop.f32.mrb[47].mxu1 }
 0xb90   :  { %v1542_v10 = vpop.f32.mrb[48].mxu1 }
 0xb91   :  { %v2863_v11 = vpop.f32.mrb[49].mxu1 }
 0xb92   :  { %v1545_v12 = vpop.f32.mrb[50].mxu1 }
 0xb93   :  { %v2864_v13 = vpop.f32.mrb[51].mxu1 }
 0xb9c   :  { %v1652_v14 = vpop.f32.mrb[52].mxu1 }
 0xb9d   :  { %v2875_v16 = vpop.f32.mrb[53].mxu1 }
 0xb9e   :  { %v1655_v30 = vpop.f32.mrb[54].mxu1 }
 0xb9f   :  { %v2876_v18 = vpop.f32.mrb[55].mxu1 }
 0xba4   :  { %v1762_v19 = vpop.f32.mrb[56].mxu1 }
 0xba5   :  { %v2887_v22 = vpop.f32.mrb[57].mxu1 }
 0xba6   :  { %v1765_v23 = vpop.f32.mrb[58].mxu1  ;;  %v3024_v22 = vld [vmem:[%s3836_s18] sm:$0xff]  }
 0xba7   :  { %v2888_v24 = vpop.f32.mrb[59].mxu1  ;;  %v3025_v23 = vld [vmem:[%s3836_s18 + $0x8] sm:$0xff]  }
 0xbe2   :  { %v1885_v25 = vpop.f32.mrb[60].mxu1 }
 0xbe3   :  { %v2899_v26 = vpop.f32.mrb[61].mxu1 }
 0xbe4   :  { %v1888_v27 = vpop.f32.mrb[62].mxu1 }
 0xbe5   :  { %v2900_v28 = vpop.f32.mrb[63].mxu1 }
 0xbea   :  { %v1995_v29 = vpop.f32.mrb[64].mxu1 }
 0xbeb   :  { %v2997_v32 = vpack.i.bf16 %v1995_v29, %v1542_v10  ;;  %v2911_v33 = vpop.f32.mrb[65].mxu1 }
 0xbec   :  { %v1998_v34 = vpop.f32.mrb[66].mxu1  ;;  %v2612_v33 = vld [vmem:[%s3832_s14] ss:$0 sm:$0xff] }
 0xbed   :  { %2998 = vrot.lane.b32.xlu1 %v2997_v32, %s3868_s26  ;;  %v2912_v35 = vpop.f32.mrb[67].mxu1 }
 0xbf2   :  { %v2105_v37 = vpop.f32.mrb[68].mxu1 }
 0xbf3   :  { %v3002_v45 = vpack.i.bf16 %v2105_v37, %v1652_v14  ;;  %v2923_v38 = vpop.f32.mrb[69].mxu1  ;;  %v2613_v37 = vld [vmem:[%s3833_s15] ss:$0 sm:$0xff] }
 0xbf4   :  { %v2108_v39 = vpop.f32.mrb[70].mxu1 }
 0xbf5   :  { %3003 = vrot.lane.b32.xlu0 %v3002_v45, %s3869_s4  ;;  %v2924_v40 = vpop.f32.mrb[71].mxu1 }
 0xbfa   :  { %v2215_v41 = vpop.f32.mrb[72].mxu1 }
 0xbfb   :  { %v3007_v42 = vpack.i.bf16 %v2215_v41, %v1762_v19  ;;  %v2935_v43 = vpop.f32.mrb[73].mxu1  ;;  %v3023_v19 = vld [vmem:[%s3834_s16 + $0x8] sm:$0xff]   ;;  %v3026_v41 = vld [vmem:[%s3836_s18 + $0x10] sm:$0xff]  }
 0xbfc   :  { %v2218_v44 = vpop.f32.mrb[74].mxu1  ;;  %v2614_v43 = vld [vmem:[%s3835_s17] ss:$0 sm:$0xff] }
 0xbfd   :  { %3008 = vrot.lane.b32.xlu1 %v3007_v42, %s3870_s0  ;;  %v2936_v46 = vpop.f32.mrb[75].mxu1  ;;  %v3027_v42 = vld [vmem:[%s3836_s18 + $0x18] sm:$0xff]  }
 0xc5f   :  { %v2999_v47 = vpop.permute.xlu1 %2998 }
 0xc60   :  { %v3001_v15 = vunpack.i.h.bf16 %v2999_v47  ;;  %v3000_v49 = vunpack.i.l.bf16 %v2999_v47 }
 0xc62   :  { %v2233_v53 = vsel %vm164_vm2, %v1885_v25, %v3001_v15  ;;  %v1780_v54 = vsel %vm164_vm2, %v1431_v7, %v3000_v49 }
 0xc67   :  { %v3004_v48 = vpop.permute.xlu0 %3003 }
 0xc68   :  { %v3006_v50 = vunpack.i.h.bf16 %v3004_v48  ;;  %v3005_v51 = vunpack.i.l.bf16 %v3004_v48 }
 0xc6a   :  { %v2234_v57 = vsel %vm616_vm4, %v2233_v53, %v3006_v50  ;;  %v1781_v58 = vsel %vm616_vm4, %v1780_v54, %v3005_v51 }
 0xc6f   :  { %v3009_v52 = vpop.permute.xlu1 %3008 }
 0xc70   :  { %v3011_v55 = vunpack.i.h.bf16 %v3009_v52  ;;  %v3010_v56 = vunpack.i.l.bf16 %v3009_v52 }
 0xc72   :  { %v2235_v59 = vsel %vm618_vm5, %v2234_v57, %v3011_v55  ;;  %v1782_v3 = vsel %vm618_vm5, %v1781_v58, %v3010_v56 }
 0xc73   :  { %v2236_v4 = vpack.c.bf16 %v2235_v59, %v1782_v3 }
 0xc75   :  { %2942 = vmatmul.mubr.msk.bf16.vlgmr.msra.gmra.mrb[68].mxu0 %vm112_vm1, %v2236_v4 }
 0xc76   :  { %2961 = vmatprep.mubr.msk.bf16.mxu0 %vm3130_vm0, %v3129_v0  ;;  %2954 = vmatpush3.bf16.msra.mxu0 %v3024_v22 }
 0xc77   :  { %2955 = vmatprep.subr.bf16.mxu0 %v3129_v0 }
 0xc7a   :  { %2956 = vmatpush3.bf16.msra.mxu0 %v3025_v23 }
 0xc7b   :  { %2957 = vmatprep.subr.bf16.mxu0 %v3129_v0 }
 0xc7e   :  { %2958 = vmatpush3.bf16.msra.mxu0 %v3026_v41 }
 0xc7f   :  { %2959 = vmatprep.subr.bf16.mxu0 %v3129_v0 }
 0xc82   :  { %2960 = vmatpush3.bf16.msra.mxu0 %v3027_v42 }
 0xd48   :  { %v2297_v61 = vpop.f32.mrb[68].mxu0 }
 0xd49   :  { %v2298_v62 = vadd.f32 %v2608_v60, %v2297_v61  ;;  %v2943_v63 = vpop.f32.mrb[69].mxu0 }
 0xd4a   :  { %v2300_v1 = vpop.f32.mrb[70].mxu0 }
 0xd4b   :  { %v2301_v2 = vadd.f32 %v2608_v60, %v2300_v1  ;;  %v2944_v5 = vpop.f32.mrb[71].mxu0  ;;  %v2304_v6 = vadd.f32 %v2298_v62, %v3547_v20 }
 0xd4d   :  { %v2308_v7 = vsel %vm112_vm1, %v2304_v6, 0.0  ;;  %v2305_v8 = vadd.f32 %v2301_v2, %v3549_v21  ;;  %v3022_v21 = vld [vmem:[%s3834_s16] sm:$0xff]  }
 0xd4e   :  { %2309 = vadd.xlane.f32.xlu0 %v2308_v7  ;;  %2946 = vmatpush3.bf16.msra.mxu1 %v3022_v21  ;;  %v2625_v21 = vld [vmem:[#allocation2] ss:$0 sm:$0xff] }
 0xd4f   :  { %v2311_v9 = vsel %vm112_vm1, %v2305_v8, 0.0  ;;  %2947 = vmatprep.subr.bf16.mxu1 %v3129_v0  ;;  %v2618_v0 = vld [vmem:[%s3837_s19] ss:$0 sm:$0xff] }
 0xd50   :  { %2312 = vadd.xlane.f32.xlu1 %v2311_v9 }
 0xd52   :  { %2948 = vmatpush3.bf16.msra.mxu1 %v3023_v19 }
 0xddb   :  { %v2310_v17 = vpop.xlane.xlu0 %2309 }
 0xddc   :  { %v2314_v10 = vmul.f32 0.03125, %v2310_v17 }
 0xddd   :  { %v2313_v11 = vpop.xlane.xlu1 %2312 }
 0xdde   :  { %v2316_v12 = vsub.f32 %v2304_v6, %v2314_v10  ;;  %v2315_v13 = vmul.f32 0.03125, %v2313_v11 }
 0xde0   :  { %v2317_v14 = vsub.f32 %v2305_v8, %v2315_v13  ;;  %v2318_v16 = vmul.f32 %v2316_v12, %v2316_v12 }
 0xde2   :  { %v2320_v30 = vsel %vm112_vm1, %v2318_v16, 0.0  ;;  %v2319_v18 = vmul.f32 %v2317_v14, %v2317_v14 }
 0xde3   :  { %2321 = vadd.xlane.f32.xlu0 %v2320_v30  ;;  %v2624_v30 = vld [vmem:[%s3838_s20] ss:$0 sm:$0xff] }
 0xde4   :  { %v2323_v20 = vsel %vm112_vm1, %v2319_v18, 0.0 }
 0xde7   :  { %2324 = vadd.xlane.f32.xlu0 %v2323_v20 }
 0xe70   :  { %v2322_v24 = vpop.xlane.xlu0 %2321 }
 0xe71   :  { %v2326_v25 = vmul.f32 0.03125, %v2322_v24 }
 0xe73   :  { %v2328_v26 = vadd.f32 1e-05, %v2326_v25 }
 0xe74   :  { %v2325_v27 = vpop.xlane.xlu0 %2324 }
 0xe75   :  { %3096 = vrsqrt.f32 %v2328_v26  ;;  %v2327_v28 = vmul.f32 0.03125, %v2325_v27 }
 0xe77   :  { %v2329_v29 = vadd.f32 1e-05, %v2327_v28 }
 0xe79   :  { %3098 = vrsqrt.f32 %v2329_v29 }
 0xe7f   :  { %v3097_v31 = vpop.eup %3096 }
 0xe80   :  { %v2332_v32 = vmul.f32 %v3097_v31, %v2316_v12 }
 0xe82   :  { %v2340_v35 = vmul.f32 %v2612_v33, %v2332_v32 }
 0xe83   :  { %v3099_v34 = vpop.eup %3098 }
 0xe84   :  { %v2333_v36 = vmul.f32 %v3099_v34, %v2317_v14  ;;  %v2348_v38 = vadd.f32 %v2613_v37, %v2340_v35 }
 0xe86   :  { %v2341_v45 = vmul.f32 %v2612_v33, %v2333_v36 }
 0xe88   :  { %v2349_v39 = vadd.f32 %v2613_v37, %v2341_v45 }
 0xe8a   :  { %v2350_v40 = vpack.c.bf16 %v2349_v39, %v2348_v38 }
 0xe8c   :  { %2950 = vmatmul.mubr.msk.bf16.vlgmr.msra.gmra.mrb[76].mxu1 %vm112_vm1, %v2350_v40 }
 0xf5f   :  { %v2411_v44 = vpop.f32.mrb[76].mxu1 }
 0xf60   :  { %v2412_v46 = vadd.f32 %v2614_v43, %v2411_v44  ;;  %v2951_v47 = vpop.f32.mrb[77].mxu1 }
 0xf61   :  { %v2414_v48 = vpop.f32.mrb[78].mxu1 }
 0xf62   :  { %v2415_v15 = vadd.f32 %v2614_v43, %v2414_v48  ;;  %v2952_v49 = vpop.f32.mrb[79].mxu1  ;;  %v2418_v50 = vmax.f32 %v2412_v46, 0.0 }
 0xf64   :  { %v2419_v51 = vmax.f32 %v2415_v15, 0.0 }
 0xf66   :  { %v2420_v52 = vpack.c.bf16 %v2419_v51, %v2418_v50 }
 0xf68   :  { %2962 = vmatmul.mubr.msk.bf16.vlgmr.msra.gmra.mrb[72].mxu0 %vm2460_vm6, %v2420_v52 }
0x103b   :  { %v2498_v53 = vpop.f32.mrb[72].mxu0 }
0x103c   :  { %v2499_v54 = vadd.f32 %v2618_v0, %v2498_v53  ;;  %v2963_v55 = vpop.f32.mrb[73].mxu0 }
0x103d   :  { %v2501_v56 = vpop.f32.mrb[74].mxu0 }
0x103e   :  { %v2502_v57 = vadd.f32 %v2618_v0, %v2501_v56  ;;  %v2964_v58 = vpop.f32.mrb[75].mxu0  ;;  %v2505_v59 = vadd.f32 %v2499_v54, %v2348_v38 }
0x1040   :  { %v2509_v3 = vsel %vm112_vm1, %v2505_v59, 0.0  ;;  %v2506_v4 = vadd.f32 %v2502_v57, %v2349_v39 }
0x1041   :  { %2510 = vadd.xlane.f32.xlu1 %v2509_v3 }
0x1042   :  { %v2512_v60 = vsel %vm112_vm1, %v2506_v4, 0.0 }
0x1043   :  { %2513 = vadd.xlane.f32.xlu0 %v2512_v60 }
0x10ce   :  { %v2511_v61 = vpop.xlane.xlu1 %2510 }
0x10cf   :  { %v2515_v62 = vmul.f32 0.03125, %v2511_v61 }
0x10d0   :  { %v2514_v63 = vpop.xlane.xlu0 %2513 }
0x10d1   :  { %v2517_v1 = vsub.f32 %v2505_v59, %v2515_v62  ;;  %v2516_v2 = vmul.f32 0.03125, %v2514_v63 }
0x10d3   :  { %v2518_v5 = vsub.f32 %v2506_v4, %v2516_v2  ;;  %v2519_v6 = vmul.f32 %v2517_v1, %v2517_v1 }
0x10d5   :  { %v2521_v7 = vsel %vm112_vm1, %v2519_v6, 0.0  ;;  %v2520_v8 = vmul.f32 %v2518_v5, %v2518_v5 }
0x10d6   :  { %2522 = vadd.xlane.f32.xlu1 %v2521_v7 }
0x10d7   :  { %v2524_v9 = vsel %vm112_vm1, %v2520_v8, 0.0 }
0x10d8   :  { %2525 = vadd.xlane.f32.xlu0 %v2524_v9 }
0x1163   :  { %v2523_v17 = vpop.xlane.xlu1 %2522 }
0x1164   :  { %v2527_v10 = vmul.f32 0.03125, %v2523_v17 }
0x1165   :  { %v2526_v11 = vpop.xlane.xlu0 %2525 }
0x1166   :  { %v2529_v12 = vadd.f32 1e-05, %v2527_v10  ;;  %v2528_v13 = vmul.f32 0.03125, %v2526_v11 }
0x1168   :  { %3100 = vrsqrt.f32 %v2529_v12  ;;  %v2530_v14 = vadd.f32 1e-05, %v2528_v13 }
0x116a   :  { %3102 = vrsqrt.f32 %v2530_v14 }
0x1172   :  { %v3101_v16 = vpop.eup %3100 }
0x1173   :  { %v2533_v18 = vmul.f32 %v3101_v16, %v2517_v1 }
0x1174   :  { %v3103_v20 = vpop.eup %3102 }
0x1175   :  { %v2541_v19 = vmul.f32 %v2624_v30, %v2533_v18  ;;  %v2534_v22 = vmul.f32 %v3103_v20, %v2518_v5 }
0x1177   :  { %v2549_v23 = vadd.f32 %v2625_v21, %v2541_v19  ;;  %v2542_v24 = vmul.f32 %v2624_v30, %v2534_v22 }
0x1179   :  { %2551 = vst.msk [vmem:[%s3840_s22] sm:$0xff] %vm112_vm1, %v2549_v23  ;;  %v2550_v25 = vadd.f32 %v2625_v21, %v2542_v24 }
0x117b   :  { %2552 = vst.msk [vmem:[%s3840_s22 + $0x8] sm:$0xff] %vm112_vm1, %v2550_v25 }
0x117c   :  { %2557 = vsyncpa [#allocation3], 1 }

</bundles_post_ra>
